<compile_context>
chip_gen: v5e
topology: v5e:2x2
jax: 0.10.0
libtpu: 0.0.40
codegen_flags: <defaults>
</compile_context>

<pallas_src>
import functools

import jax
import jax.numpy as jnp
import numpy as np
from jax import lax
from jax.experimental import pallas as pl
from jax.experimental.pallas import tpu as pltpu

LN_EPS = 1e-5      # torch.nn.LayerNorm default eps
GEN_EPS = 1e-7     # GENConv message eps
LANE = 128
SUBLANE = 8


def _round_up(x, m):
    return ((x + m - 1) // m) * m


def _pad_to(a, shape):
    pads = [(0, t - s) for s, t in zip(a.shape, shape)]
    return jnp.pad(a, pads)


def _layernorm(h, gamma, beta, real_width):
    """LayerNorm over the last dim; masks zero-padded channels only when padding exists."""
    hp = h.shape[-1]
    inv_n = 1.0 / float(real_width)
    if real_width == hp:                       # lane-dense: no channel mask needed
        mu = jnp.sum(h, axis=-1, keepdims=True) * inv_n
        diff = h - mu
    else:                                      # padded channels >= real_width stay exactly 0
        mask = (lax.broadcasted_iota(jnp.int32, (1, hp), 1) < real_width).astype(h.dtype)
        mu = jnp.sum(h * mask, axis=-1, keepdims=True) * inv_n
        diff = (h - mu) * mask
    var = jnp.sum(diff * diff, axis=-1, keepdims=True) * inv_n
    return diff * lax.rsqrt(var + LN_EPS) * gamma + beta


def deeper_gcn_kernel(num_layers, hidden, hidden2,
                      # scalar prefetch (SMEM): per-layer GENConv temperature t
                      t_ref,
                      # per-block inputs
                      x_ref, ea_ref, gm_ref, sm_ref, pw_ref,
                      # resident per-layer weight stacks + readout
                      W1_ref, b1_ref, g1_ref, be1_ref, W2_ref, b2_ref, gn_ref, bn_ref,
                      WoutT_ref, bout_ref,
                      # output
                      out_ref):
    f32, bf16 = jnp.float32, jnp.bfloat16

    def genconv(h_in, l):
        hp = h_in.shape[-1]
        t = t_ref[l]
        gm = gm_ref[0]                                   # [Eb, Nb] one-hot(src), bf16
        sm = sm_ref[0]                                   # [Nb, Eb] one-hot(dst)^T, bf16
        ea = ea_ref[0]                                   # [Eb, hp] encoded edge feats, f32
        # gather x_j = x[src] (block-diagonal one-hot matmul on the MXU)
        xj = jnp.dot(gm, h_in.astype(bf16), preferred_element_type=f32)
        m = jnp.maximum(xj + ea, 0.0) + GEN_EPS
        # Per-destination softmax over incoming edges, per channel.  Any per-group shift
        # cancels exactly, so clamp the logits instead: exact for |t*m| <= 60, and m >= eps
        # means a node with incoming edges can never see a zero denominator.
        w = jnp.exp(jnp.clip(t * m, -60.0, 60.0))
        # fused den/num scatter: one MXU pass over Sm with a 2*hp-lane RHS
        dn = jnp.dot(sm, jnp.concatenate([w, w * m], axis=-1).astype(bf16),
                     preferred_element_type=f32)          # [Nb, 2*hp]
        den, num = dn[:, :hp], dn[:, hp:]
        has_in = den > 0.0                                # nodes with no in-edges -> 0
        agg = jnp.where(
            has_in,
            num * pl.reciprocal(jnp.where(has_in, den, 1.0), approx=True),
            0.0)
        y = agg + h_in                                    # GENConv residual (out + x)
        # MLP: Linear(H, 2H) -> LayerNorm(2H) -> ReLU -> Linear(2H, H)
        h1 = jnp.dot(y.astype(bf16), W1_ref[l], preferred_element_type=f32) + b1_ref[l]
        h1 = jnp.maximum(_layernorm(h1, g1_ref[l], be1_ref[l], hidden2), 0.0)
        return jnp.dot(h1.astype(bf16), W2_ref[l], preferred_element_type=f32) + b2_ref[l]

    # ---- layer 0 (peeled): x = conv(encoded_x); no pre-norm, no residual ----
    x = genconv(x_ref[0], 0)

    # ---- layers 1..L-1, 'res+': x <- x + conv(dropout(relu(LN_l(x)))); dropout = id (eval) ----
    def body(l, xc):
        h_pre = jnp.maximum(_layernorm(xc, gn_ref[l], bn_ref[l], hidden), 0.0)
        return xc + genconv(h_pre, l)
    x = lax.fori_loop(1, num_layers, body, x, unroll=num_layers <= 8)

    # ---- readout: relu(layers[0].norm(x)) -> per-graph mean pool -> Linear(H, 1) ----
    yf = jnp.maximum(_layernorm(x, gn_ref[0], bn_ref[0], hidden), 0.0)
    pooled = jnp.dot(pw_ref[0], yf, preferred_element_type=f32)          # [Gb, hp]
    g_out = jnp.sum(pooled * WoutT_ref[...], axis=-1, keepdims=True) + bout_ref[...]
    out_ref[0] = jnp.broadcast_to(g_out, out_ref.shape[1:])              # lane-dense store


def deeper_gcn_forward(packed, hidden, xg_raw, eag_raw, Gm, Sm, pw):
    num_blocks, n_blk, _ = xg_raw.shape
    _, e_blk, _ = eag_raw.shape
    _, gpb, _ = pw.shape
    num_layers = int(packed["t"].shape[0])
    hp, h2p = packed["W1"].shape[1], packed["W1"].shape[2]

    # Node / edge encoders as tiny XLA matmuls on raw (unpadded) features; the kernel only
    # sees lane-dense, pre-encoded blocks.
    x_enc = jnp.einsum("bnf,fh->bnh", xg_raw, packed["Wne"]) + packed["bne"]
    ea_enc = jnp.einsum("bef,fh->beh", eag_raw, packed["Wee"]) + packed["bee"]
    x_enc = jnp.pad(x_enc, ((0, 0), (0, 0), (0, hp - hidden)))
    ea_enc = jnp.pad(ea_enc, ((0, 0), (0, 0), (0, hp - hidden)))

    def per_block(*trailing):
        return pl.BlockSpec((1,) + trailing, lambda b, t_sm: (b,) + (0,) * len(trailing))

    def whole(*shape):
        return pl.BlockSpec(shape, lambda b, t_sm: (0,) * len(shape))

    grid_spec = pltpu.PrefetchScalarGridSpec(
        num_scalar_prefetch=1,                       # GENConv temperatures t -> SMEM
        grid=(num_blocks,),                          # packed graph blocks are independent
        in_specs=[
            per_block(n_blk, hp),                    # pre-encoded node features  [B, Nb, hp]
            per_block(e_blk, hp),                    # pre-encoded edge features  [B, Eb, hp]
            per_block(e_blk, n_blk),                 # block-diag one-hot(src)    bf16
            per_block(n_blk, e_blk),                 # block-diag one-hot(dst)^T  bf16
            per_block(gpb, n_blk),                   # per-graph mean-pool weights
            # per-layer weight stacks stay resident in VMEM for the whole layer loop
            whole(num_layers, hp, h2p), whole(num_layers, 1, h2p),   # GENConv MLP W1, b1
            whole(num_layers, 1, h2p), whole(num_layers, 1, h2p),    # MLP LayerNorm gamma/beta
            whole(num_layers, h2p, hp), whole(num_layers, 1, hp),    # GENConv MLP W2, b2
            whole(num_layers, 1, hp), whole(num_layers, 1, hp),      # DeepGCNLayer LN gamma/beta
            whole(1, hp), whole(1, 1),                               # readout Linear^T, bias
        ],
        out_specs=pl.BlockSpec((1, gpb, LANE), lambda b, t_sm: (b, 0, 0)),
    )

    out = pl.pallas_call(
        functools.partial(deeper_gcn_kernel, num_layers, hidden, 2 * hidden),
        grid_spec=grid_spec,
        out_shape=jax.ShapeDtypeStruct((num_blocks, gpb, LANE), jnp.float32),
        compiler_params=pltpu.CompilerParams(
            dimension_semantics=("parallel",),
            # v7x-safe cap (64 MiB physical VMEM per TC); can go to 64-96 MiB on v5e/v6e
            # if larger packed blocks are used.
            vmem_limit_bytes=48 * 1024 * 1024),
    )(packed["t"], x_enc, ea_enc, Gm, Sm, pw,
      packed["W1"], packed["b1"], packed["g1"], packed["be1"],
      packed["W2"], packed["b2"], packed["gn"], packed["bn"],
      packed["WoutT"], packed["bout"])
    return out                                        # [num_blocks, gpb, LANE]


# ----------------------------- parameter construction -----------------------------

def linear_params(key, in_dim, out_dim):
    # PyTorch Linear default init: U(-1/sqrt(in), 1/sqrt(in)); stored as (in, out).
    kW, kb = jax.random.split(key)
    bound = 1.0 / (in_dim ** 0.5)
    W = jax.random.uniform(kW, (in_dim, out_dim), jnp.float32, -bound, bound)
    b = jax.random.uniform(kb, (1, out_dim), jnp.float32, -bound, bound)
    return W, b


def init_params(key, hidden, num_layers, num_node_features, num_edge_features):
    keys = jax.random.split(key, 3 + 2 * num_layers)
    Wne, bne = linear_params(keys[0], num_node_features, hidden)
    Wee, bee = linear_params(keys[1], num_edge_features, hidden)
    Wout, bout = linear_params(keys[2], hidden, 1)

    W1s, b1s, W2s, b2s = [], [], [], []
    for l in range(num_layers):
        W1, b1 = linear_params(keys[3 + 2 * l], hidden, 2 * hidden)
        W2, b2 = linear_params(keys[4 + 2 * l], 2 * hidden, hidden)
        W1s.append(W1); b1s.append(b1); W2s.append(W2); b2s.append(b2)

    return {
        "Wne": Wne, "bne": bne, "Wee": Wee, "bee": bee,
        "t": jnp.ones((num_layers,), jnp.float32),                    # GENConv t (init 1.0)
        "W1": jnp.stack(W1s), "b1": jnp.stack(b1s),
        "g1": jnp.ones((num_layers, 1, 2 * hidden), jnp.float32),
        "be1": jnp.zeros((num_layers, 1, 2 * hidden), jnp.float32),
        "W2": jnp.stack(W2s), "b2": jnp.stack(b2s),
        "gn": jnp.ones((num_layers, 1, hidden), jnp.float32),
        "bn": jnp.zeros((num_layers, 1, hidden), jnp.float32),
        "Wout": Wout, "bout": bout,
    }


def pack_params(p, hidden, num_layers):
    """Zero-pad in-kernel weights to lane-dense shapes; matmul weights in bf16."""
    hp = _round_up(hidden, LANE)
    h2p = _round_up(2 * hidden, LANE)
    bf16 = jnp.bfloat16
    L = num_layers
    return {
        "t": p["t"],
        # encoders stay unpadded/f32 (applied in XLA outside the kernel)
        "Wne": p["Wne"], "bne": p["bne"], "Wee": p["Wee"], "bee": p["bee"],
        "W1": _pad_to(p["W1"], (L, hp, h2p)).astype(bf16),
        "b1": _pad_to(p["b1"], (L, 1, h2p)),
        "g1": _pad_to(p["g1"], (L, 1, h2p)),
        "be1": _pad_to(p["be1"], (L, 1, h2p)),
        "W2": _pad_to(p["W2"], (L, h2p, hp)).astype(bf16),
        "b2": _pad_to(p["b2"], (L, 1, hp)),
        "gn": _pad_to(p["gn"], (L, 1, hp)),
        "bn": _pad_to(p["bn"], (L, 1, hp)),
        "WoutT": _pad_to(p["Wout"].T, (1, hp)),
        "bout": p["bout"],
    }


# ----------------------------- host-side graph packing -----------------------------

def pack_graph_blocks(x, edge_index, edge_attr, batch, num_graphs,
                      target_nodes=128, target_edges=256, max_graphs_per_block=256):
    """Greedily pack whole graphs into fixed-size blocks (block-diagonal batched graph)."""
    x = np.asarray(x, np.float32)
    ea = np.asarray(edge_attr, np.float32)
    ei = np.asarray(edge_index)
    b = np.asarray(batch)
    src, dst = ei[0], ei[1]
    assert bool((b[src] == b[dst]).all()), "edges must not cross graphs"
    f_n, f_e = x.shape[1], ea.shape[1]

    node_counts = np.bincount(b, minlength=num_graphs)
    edge_graph = b[dst]
    edge_counts = np.bincount(edge_graph, minlength=num_graphs)

    node_cap = max(target_nodes, int(node_counts.max()) if num_graphs else target_nodes)
    edge_cap = max(target_edges, int(edge_counts.max()) if num_graphs else target_edges)

    blocks, cur, cn, ce = [], [], 0, 0
    for g in range(num_graphs):
        ng, ne = int(node_counts[g]), int(edge_counts[g])
        if cur and (cn + ng > node_cap or ce + ne > edge_cap
                    or len(cur) >= max_graphs_per_block):
            blocks.append(cur); cur, cn, ce = [], 0, 0
        cur.append(g); cn += ng; ce += ne
    if cur:
        blocks.append(cur)

    B = len(blocks)
    n_blk = _round_up(max(sum(int(node_counts[g]) for g in blk) for blk in blocks), SUBLANE)
    e_blk = _round_up(max(max(sum(int(edge_counts[g]) for g in blk) for blk in blocks), 1),
                      SUBLANE)
    gpb = _round_up(max(len(blk) for blk in blocks), SUBLANE)

    xg = np.zeros((B, n_blk, f_n), np.float32)
    eag = np.zeros((B, e_blk, f_e), np.float32)
    gm = np.zeros((B, e_blk, n_blk), np.float32)     # one-hot(edge source)
    sm = np.zeros((B, n_blk, e_blk), np.float32)     # one-hot(edge target), transposed
    pw = np.zeros((B, gpb, n_blk), np.float32)       # per-graph global_mean_pool weights
    blk_of = np.zeros(num_graphs, np.int32)
    slot_of = np.zeros(num_graphs, np.int32)
    node_row = np.zeros(x.shape[0], np.int64)        # global node -> block-local row

    for bi, blk in enumerate(blocks):
        nrow, erow = 0, 0
        for si, g in enumerate(blk):
            blk_of[g], slot_of[g] = bi, si
            idx = np.where(b == g)[0]
            nn = len(idx)
            xg[bi, nrow:nrow + nn, :] = x[idx]
            node_row[idx] = nrow + np.arange(nn)
            pw[bi, si, nrow:nrow + nn] = 1.0 / max(nn, 1)
            nrow += nn
        for g in blk:
            for e in np.where(edge_graph == g)[0]:
                eag[bi, erow, :] = ea[e]
                gm[bi, erow, node_row[src[e]]] = 1.0
                sm[bi, node_row[dst[e]], erow] = 1.0
                erow += 1

    return (jnp.asarray(xg), jnp.asarray(eag),
            jnp.asarray(gm, jnp.bfloat16), jnp.asarray(sm, jnp.bfloat16),
            jnp.asarray(pw), jnp.asarray(blk_of), jnp.asarray(slot_of))


if __name__ == "__main__":
    # small synthetic batched-graph problem (16 graphs pack into one 128-node block)
    NUM_GRAPHS = 16
    NODES_PER_GRAPH = 8
    EDGES_PER_GRAPH = 16
    F_N, F_E = 8, 4                  # num_node_features, num_edge_features
    HIDDEN, LAYERS = 32, 3           # hidden_channels, num_layers

    N = NUM_GRAPHS * NODES_PER_GRAPH
    E = NUM_GRAPHS * EDGES_PER_GRAPH

    root = jax.random.PRNGKey(0)
    k_par, k_x, k_e, k_src, k_dst = jax.random.split(root, 5)

    params = init_params(k_par, HIDDEN, LAYERS, F_N, F_E)
    packed = pack_params(params, HIDDEN, LAYERS)

    x = jax.random.normal(k_x, (N, F_N), jnp.float32)
    edge_attr = jax.random.normal(k_e, (E, F_E), jnp.float32)

    # edges stay inside their own graph (PyG batching convention); row 0 = src, row 1 = dst
    offsets = np.repeat(np.arange(NUM_GRAPHS) * NODES_PER_GRAPH, EDGES_PER_GRAPH)
    src = np.asarray(jax.random.randint(k_src, (E,), 0, NODES_PER_GRAPH)) + offsets
    dst = np.asarray(jax.random.randint(k_dst, (E,), 0, NODES_PER_GRAPH)) + offsets
    edge_index = np.stack([src, dst])
    batch = np.repeat(np.arange(NUM_GRAPHS), NODES_PER_GRAPH)

    xg, eag, Gm, Sm, pw, blk_of, slot_of = pack_graph_blocks(
        x, edge_index, edge_attr, batch, NUM_GRAPHS,
        target_nodes=128, target_edges=256)

    out_blocks = deeper_gcn_forward(packed, HIDDEN, xg, eag, Gm, Sm, pw)
    out_blocks = jax.block_until_ready(out_blocks)

    out = out_blocks[blk_of, slot_of, 0][:, None]     # [num_graphs, 1]
    assert out.shape == (NUM_GRAPHS, 1)
    assert bool(jnp.all(jnp.isfinite(out)))
    print("KERNEL_OK")
</pallas_src>

<mosaic_0001>
module attributes {stable_mosaic.version = 11 : i64} {
  func.func @deeper_gcn_kernel(%arg0: i32, %arg1: memref<3xf32, #tpu.memory_space<smem>>, %arg2: memref<1x128x128xf32, #tpu.memory_space<vmem>>, %arg3: memref<1x256x128xf32, #tpu.memory_space<vmem>>, %arg4: memref<1x256x128xbf16, #tpu.memory_space<vmem>>, %arg5: memref<1x128x256xbf16, #tpu.memory_space<vmem>>, %arg6: memref<1x16x128xf32, #tpu.memory_space<vmem>>, %arg7: memref<3x128x128xbf16, #tpu.memory_space<vmem>>, %arg8: memref<3x1x128xf32, #tpu.memory_space<vmem>>, %arg9: memref<3x1x128xf32, #tpu.memory_space<vmem>>, %arg10: memref<3x1x128xf32, #tpu.memory_space<vmem>>, %arg11: memref<3x128x128xbf16, #tpu.memory_space<vmem>>, %arg12: memref<3x1x128xf32, #tpu.memory_space<vmem>>, %arg13: memref<3x1x128xf32, #tpu.memory_space<vmem>>, %arg14: memref<3x1x128xf32, #tpu.memory_space<vmem>>, %arg15: memref<1x128xf32, #tpu.memory_space<vmem>>, %arg16: memref<1x1xf32, #tpu.memory_space<vmem>>, %arg17: memref<1x16x128xf32, #tpu.memory_space<vmem>>) attributes {dimension_semantics = [#tpu.dimension_semantics<parallel>], iteration_bounds = array<i64: 1>, scalar_prefetch = 1 : i64, scratch_operands = 0 : i64, tpu.core_type = #tpu.core_type<tc>, window_params = [{transform_indices = @transform_0, window_bounds = array<i64: 1, 128, 128>}, {transform_indices = @transform_1, window_bounds = array<i64: 1, 256, 128>}, {transform_indices = @transform_2, window_bounds = array<i64: 1, 256, 128>}, {transform_indices = @transform_3, window_bounds = array<i64: 1, 128, 256>}, {transform_indices = @transform_4, window_bounds = array<i64: 1, 16, 128>}, {pipeline_mode = #tpu.pipeline_mode<synchronous>, transform_indices = @transform_5, window_bounds = array<i64: 3, 128, 128>}, {pipeline_mode = #tpu.pipeline_mode<synchronous>, transform_indices = @transform_6, window_bounds = array<i64: 3, 1, 128>}, {pipeline_mode = #tpu.pipeline_mode<synchronous>, transform_indices = @transform_7, window_bounds = array<i64: 3, 1, 128>}, {pipeline_mode = #tpu.pipeline_mode<synchronous>, transform_indices = @transform_8, window_bounds = array<i64: 3, 1, 128>}, {pipeline_mode = #tpu.pipeline_mode<synchronous>, transform_indices = @transform_9, window_bounds = array<i64: 3, 128, 128>}, {pipeline_mode = #tpu.pipeline_mode<synchronous>, transform_indices = @transform_10, window_bounds = array<i64: 3, 1, 128>}, {pipeline_mode = #tpu.pipeline_mode<synchronous>, transform_indices = @transform_11, window_bounds = array<i64: 3, 1, 128>}, {pipeline_mode = #tpu.pipeline_mode<synchronous>, transform_indices = @transform_12, window_bounds = array<i64: 3, 1, 128>}, {pipeline_mode = #tpu.pipeline_mode<synchronous>, transform_indices = @transform_13, window_bounds = array<i64: 1, 128>}, {pipeline_mode = #tpu.pipeline_mode<synchronous>, transform_indices = @transform_14, window_bounds = array<i64: 1, 1>}, {transform_indices = @transform_15, window_bounds = array<i64: 1, 16, 128>}]} {
    %c0 = arith.constant 0 : index
    %c0_0 = arith.constant 0 : index
    %c0_1 = arith.constant 0 : index
    %0 = vector.load %arg2[%c0, %c0_0, %c0_1] : memref<1x128x128xf32, #tpu.memory_space<vmem>>, vector<1x128x128xf32>
    %1 = vector.shape_cast %0 : vector<1x128x128xf32> to vector<128x128xf32>
    %c0_2 = arith.constant 0 : index
    %2 = memref.load %arg1[%c0_2] : memref<3xf32, #tpu.memory_space<smem>>
    %c0_3 = arith.constant 0 : index
    %c0_4 = arith.constant 0 : index
    %c0_5 = arith.constant 0 : index
    %3 = vector.load %arg4[%c0_3, %c0_4, %c0_5] : memref<1x256x128xbf16, #tpu.memory_space<vmem>>, vector<1x256x128xbf16>
    %4 = vector.shape_cast %3 : vector<1x256x128xbf16> to vector<256x128xbf16>
    %c0_6 = arith.constant 0 : index
    %c0_7 = arith.constant 0 : index
    %c0_8 = arith.constant 0 : index
    %5 = vector.load %arg5[%c0_6, %c0_7, %c0_8] : memref<1x128x256xbf16, #tpu.memory_space<vmem>>, vector<1x128x256xbf16>
    %6 = vector.shape_cast %5 : vector<1x128x256xbf16> to vector<128x256xbf16>
    %c0_9 = arith.constant 0 : index
    %c0_10 = arith.constant 0 : index
    %c0_11 = arith.constant 0 : index
    %7 = vector.load %arg3[%c0_9, %c0_10, %c0_11] : memref<1x256x128xf32, #tpu.memory_space<vmem>>, vector<1x256x128xf32>
    %8 = vector.shape_cast %7 : vector<1x256x128xf32> to vector<256x128xf32>
    %9 = arith.truncf %1 : vector<128x128xf32> to vector<128x128xbf16>
    %cst = arith.constant dense<0.000000e+00> : vector<256x128xf32>
    %10 = tpu.matmul %4, %9, %cst {dimension_numbers = #tpu.dot_dimension_numbers<[1], [0], [0], [1], [0, 0, 1, 1], [], []>} : vector<256x128xbf16>, vector<128x128xbf16>, vector<256x128xf32> -> vector<256x128xf32>
    %11 = arith.addf %10, %8 : vector<256x128xf32>
    %cst_12 = arith.constant 0.000000e+00 : f32
    %12 = vector.broadcast %cst_12 : f32 to vector<256x128xf32>
    %13 = arith.maximumf %11, %12 : vector<256x128xf32>
    %cst_13 = arith.constant 1.000000e-07 : f32
    %14 = vector.broadcast %cst_13 : f32 to vector<256x128xf32>
    %15 = arith.addf %13, %14 : vector<256x128xf32>
    %16 = vector.broadcast %2 : f32 to vector<256x128xf32>
    %17 = arith.mulf %16, %15 : vector<256x128xf32>
    %cst_14 = arith.constant -6.000000e+01 : f32
    %cst_15 = arith.constant 6.000000e+01 : f32
    %18 = vector.broadcast %cst_14 : f32 to vector<256x128xf32>
    %19 = arith.maximumf %18, %17 : vector<256x128xf32>
    %20 = vector.broadcast %cst_15 : f32 to vector<256x128xf32>
    %21 = arith.minimumf %20, %19 : vector<256x128xf32>
    %22 = math.exp %21 : vector<256x128xf32>
    %23 = arith.mulf %22, %15 : vector<256x128xf32>
    %24 = tpu.concatenate %22, %23 in 1 : vector<256x128xf32>, vector<256x128xf32> -> vector<256x256xf32>
    %25 = arith.truncf %24 : vector<256x256xf32> to vector<256x256xbf16>
    %cst_16 = arith.constant dense<0.000000e+00> : vector<128x256xf32>
    %26 = tpu.matmul %6, %25, %cst_16 {dimension_numbers = #tpu.dot_dimension_numbers<[1], [0], [0], [1], [0, 0, 1, 1], [], []>} : vector<128x256xbf16>, vector<256x256xbf16>, vector<128x256xf32> -> vector<128x256xf32>
    %27 = vector.extract_strided_slice %26 {offsets = [0, 0], sizes = [128, 128], strides = [1, 1]} : vector<128x256xf32> to vector<128x128xf32>
    %28 = vector.extract_strided_slice %26 {offsets = [0, 128], sizes = [128, 128], strides = [1, 1]} : vector<128x256xf32> to vector<128x128xf32>
    %cst_17 = arith.constant 0.000000e+00 : f32
    %29 = vector.broadcast %cst_17 : f32 to vector<128x128xf32>
    %30 = arith.cmpf ogt, %27, %29 : vector<128x128xf32>
    %cst_18 = arith.constant 1.000000e+00 : f32
    %31 = vector.broadcast %cst_18 : f32 to vector<128x128xf32>
    %32 = arith.select %30, %27, %31 : vector<128x128xi1>, vector<128x128xf32>
    %33 = tpu.reciprocal %32 {approx = true} : vector<128x128xf32> -> vector<128x128xf32>
    %34 = arith.mulf %28, %33 : vector<128x128xf32>
    %cst_19 = arith.constant 0.000000e+00 : f32
    %35 = vector.broadcast %cst_19 : f32 to vector<128x128xf32>
    %36 = arith.select %30, %34, %35 : vector<128x128xi1>, vector<128x128xf32>
    %37 = arith.addf %36, %1 : vector<128x128xf32>
    %38 = arith.truncf %37 : vector<128x128xf32> to vector<128x128xbf16>
    %c0_20 = arith.constant 0 : index
    %c0_21 = arith.constant 0 : index
    %c0_22 = arith.constant 0 : index
    %39 = vector.load %arg7[%c0_20, %c0_21, %c0_22] : memref<3x128x128xbf16, #tpu.memory_space<vmem>>, vector<1x128x128xbf16>
    %40 = vector.shape_cast %39 : vector<1x128x128xbf16> to vector<128x128xbf16>
    %cst_23 = arith.constant dense<0.000000e+00> : vector<128x128xf32>
    %41 = tpu.matmul %38, %40, %cst_23 {dimension_numbers = #tpu.dot_dimension_numbers<[1], [0], [0], [1], [0, 0, 1, 1], [], []>} : vector<128x128xbf16>, vector<128x128xbf16>, vector<128x128xf32> -> vector<128x128xf32>
    %c0_24 = arith.constant 0 : index
    %c0_25 = arith.constant 0 : index
    %c0_26 = arith.constant 0 : index
    %42 = vector.load %arg8[%c0_24, %c0_25, %c0_26] : memref<3x1x128xf32, #tpu.memory_space<vmem>>, vector<1x1x128xf32>
    %43 = vector.shape_cast %42 : vector<1x1x128xf32> to vector<1x128xf32>
    %44 = vector.broadcast %43 : vector<1x128xf32> to vector<128x128xf32>
    %45 = arith.addf %41, %44 : vector<128x128xf32>
    %c0_27 = arith.constant 0 : index
    %c0_28 = arith.constant 0 : index
    %c0_29 = arith.constant 0 : index
    %46 = vector.load %arg9[%c0_27, %c0_28, %c0_29] : memref<3x1x128xf32, #tpu.memory_space<vmem>>, vector<1x1x128xf32>
    %47 = vector.shape_cast %46 : vector<1x1x128xf32> to vector<1x128xf32>
    %c0_30 = arith.constant 0 : index
    %c0_31 = arith.constant 0 : index
    %c0_32 = arith.constant 0 : index
    %48 = vector.load %arg10[%c0_30, %c0_31, %c0_32] : memref<3x1x128xf32, #tpu.memory_space<vmem>>, vector<1x1x128xf32>
    %49 = vector.shape_cast %48 : vector<1x1x128xf32> to vector<1x128xf32>
    %50 = tpu.iota {dimensions = array<i32: 1>} : vector<1x128xi32>
    %c64_i32 = arith.constant 64 : i32
    %51 = vector.broadcast %c64_i32 : i32 to vector<1x128xi32>
    %52 = arith.cmpi slt, %50, %51 : vector<1x128xi32>
    %53 = arith.extui %52 : vector<1x128xi1> to vector<1x128xi32>
    %54 = arith.sitofp %53 : vector<1x128xi32> to vector<1x128xf32>
    %55 = vector.broadcast %54 : vector<1x128xf32> to vector<128x128xf32>
    %56 = arith.mulf %45, %55 : vector<128x128xf32>
    %cst_33 = arith.constant dense<0.000000e+00> : vector<128xf32>
    %57 = vector.multi_reduction <add>, %56, %cst_33 [1] : vector<128x128xf32> to vector<128xf32>
    %58 = vector.shape_cast %57 : vector<128xf32> to vector<128x1xf32>
    %cst_34 = arith.constant 1.562500e-02 : f32
    %59 = vector.broadcast %cst_34 : f32 to vector<128x1xf32>
    %60 = arith.mulf %58, %59 : vector<128x1xf32>
    %61 = vector.broadcast %60 : vector<128x1xf32> to vector<128x128xf32>
    %62 = arith.subf %45, %61 : vector<128x128xf32>
    %63 = vector.broadcast %54 : vector<1x128xf32> to vector<128x128xf32>
    %64 = arith.mulf %62, %63 : vector<128x128xf32>
    %65 = arith.mulf %64, %64 : vector<128x128xf32>
    %cst_35 = arith.constant dense<0.000000e+00> : vector<128xf32>
    %66 = vector.multi_reduction <add>, %65, %cst_35 [1] : vector<128x128xf32> to vector<128xf32>
    %67 = vector.shape_cast %66 : vector<128xf32> to vector<128x1xf32>
    %cst_36 = arith.constant 1.562500e-02 : f32
    %68 = vector.broadcast %cst_36 : f32 to vector<128x1xf32>
    %69 = arith.mulf %67, %68 : vector<128x1xf32>
    %cst_37 = arith.constant 9.99999974E-6 : f32
    %70 = vector.broadcast %cst_37 : f32 to vector<128x1xf32>
    %71 = arith.addf %69, %70 : vector<128x1xf32>
    %72 = math.rsqrt %71 : vector<128x1xf32>
    %73 = vector.broadcast %72 : vector<128x1xf32> to vector<128x128xf32>
    %74 = arith.mulf %64, %73 : vector<128x128xf32>
    %75 = vector.broadcast %47 : vector<1x128xf32> to vector<128x128xf32>
    %76 = arith.mulf %74, %75 : vector<128x128xf32>
    %77 = vector.broadcast %49 : vector<1x128xf32> to vector<128x128xf32>
    %78 = arith.addf %76, %77 : vector<128x128xf32>
    %cst_38 = arith.constant 0.000000e+00 : f32
    %79 = vector.broadcast %cst_38 : f32 to vector<128x128xf32>
    %80 = arith.maximumf %78, %79 : vector<128x128xf32>
    %81 = arith.truncf %80 : vector<128x128xf32> to vector<128x128xbf16>
    %c0_39 = arith.constant 0 : index
    %c0_40 = arith.constant 0 : index
    %c0_41 = arith.constant 0 : index
    %82 = vector.load %arg11[%c0_39, %c0_40, %c0_41] : memref<3x128x128xbf16, #tpu.memory_space<vmem>>, vector<1x128x128xbf16>
    %83 = vector.shape_cast %82 : vector<1x128x128xbf16> to vector<128x128xbf16>
    %cst_42 = arith.constant dense<0.000000e+00> : vector<128x128xf32>
    %84 = tpu.matmul %81, %83, %cst_42 {dimension_numbers = #tpu.dot_dimension_numbers<[1], [0], [0], [1], [0, 0, 1, 1], [], []>} : vector<128x128xbf16>, vector<128x128xbf16>, vector<128x128xf32> -> vector<128x128xf32>
    %c0_43 = arith.constant 0 : index
    %c0_44 = arith.constant 0 : index
    %c0_45 = arith.constant 0 : index
    %85 = vector.load %arg12[%c0_43, %c0_44, %c0_45] : memref<3x1x128xf32, #tpu.memory_space<vmem>>, vector<1x1x128xf32>
    %86 = vector.shape_cast %85 : vector<1x1x128xf32> to vector<1x128xf32>
    %87 = vector.broadcast %86 : vector<1x128xf32> to vector<128x128xf32>
    %88 = arith.addf %84, %87 : vector<128x128xf32>
    %c1_i32 = arith.constant 1 : i32
    %89 = arith.index_cast %c1_i32 : i32 to index
    %c0_46 = arith.constant 0 : index
    %c0_47 = arith.constant 0 : index
    %90 = vector.load %arg13[%89, %c0_46, %c0_47] : memref<3x1x128xf32, #tpu.memory_space<vmem>>, vector<1x1x128xf32>
    %91 = vector.shape_cast %90 : vector<1x1x128xf32> to vector<1x128xf32>
    %92 = arith.index_cast %c1_i32 : i32 to index
    %c0_48 = arith.constant 0 : index
    %c0_49 = arith.constant 0 : index
    %93 = vector.load %arg14[%92, %c0_48, %c0_49] : memref<3x1x128xf32, #tpu.memory_space<vmem>>, vector<1x1x128xf32>
    %94 = vector.shape_cast %93 : vector<1x1x128xf32> to vector<1x128xf32>
    %95 = tpu.iota {dimensions = array<i32: 1>} : vector<1x128xi32>
    %c32_i32 = arith.constant 32 : i32
    %96 = vector.broadcast %c32_i32 : i32 to vector<1x128xi32>
    %97 = arith.cmpi slt, %95, %96 : vector<1x128xi32>
    %98 = arith.extui %97 : vector<1x128xi1> to vector<1x128xi32>
    %99 = arith.sitofp %98 : vector<1x128xi32> to vector<1x128xf32>
    %100 = vector.broadcast %99 : vector<1x128xf32> to vector<128x128xf32>
    %101 = arith.mulf %88, %100 : vector<128x128xf32>
    %cst_50 = arith.constant dense<0.000000e+00> : vector<128xf32>
    %102 = vector.multi_reduction <add>, %101, %cst_50 [1] : vector<128x128xf32> to vector<128xf32>
    %103 = vector.shape_cast %102 : vector<128xf32> to vector<128x1xf32>
    %cst_51 = arith.constant 3.125000e-02 : f32
    %104 = vector.broadcast %cst_51 : f32 to vector<128x1xf32>
    %105 = arith.mulf %103, %104 : vector<128x1xf32>
    %106 = vector.broadcast %105 : vector<128x1xf32> to vector<128x128xf32>
    %107 = arith.subf %88, %106 : vector<128x128xf32>
    %108 = vector.broadcast %99 : vector<1x128xf32> to vector<128x128xf32>
    %109 = arith.mulf %107, %108 : vector<128x128xf32>
    %110 = arith.mulf %109, %109 : vector<128x128xf32>
    %cst_52 = arith.constant dense<0.000000e+00> : vector<128xf32>
    %111 = vector.multi_reduction <add>, %110, %cst_52 [1] : vector<128x128xf32> to vector<128xf32>
    %112 = vector.shape_cast %111 : vector<128xf32> to vector<128x1xf32>
    %cst_53 = arith.constant 3.125000e-02 : f32
    %113 = vector.broadcast %cst_53 : f32 to vector<128x1xf32>
    %114 = arith.mulf %112, %113 : vector<128x1xf32>
    %cst_54 = arith.constant 9.99999974E-6 : f32
    %115 = vector.broadcast %cst_54 : f32 to vector<128x1xf32>
    %116 = arith.addf %114, %115 : vector<128x1xf32>
    %117 = math.rsqrt %116 : vector<128x1xf32>
    %118 = vector.broadcast %117 : vector<128x1xf32> to vector<128x128xf32>
    %119 = arith.mulf %109, %118 : vector<128x128xf32>
    %120 = vector.broadcast %91 : vector<1x128xf32> to vector<128x128xf32>
    %121 = arith.mulf %119, %120 : vector<128x128xf32>
    %122 = vector.broadcast %94 : vector<1x128xf32> to vector<128x128xf32>
    %123 = arith.addf %121, %122 : vector<128x128xf32>
    %cst_55 = arith.constant 0.000000e+00 : f32
    %124 = vector.broadcast %cst_55 : f32 to vector<128x128xf32>
    %125 = arith.maximumf %123, %124 : vector<128x128xf32>
    %126 = arith.index_cast %c1_i32 : i32 to index
    %127 = memref.load %arg1[%126] : memref<3xf32, #tpu.memory_space<smem>>
    %c0_56 = arith.constant 0 : index
    %c0_57 = arith.constant 0 : index
    %c0_58 = arith.constant 0 : index
    %128 = vector.load %arg4[%c0_56, %c0_57, %c0_58] : memref<1x256x128xbf16, #tpu.memory_space<vmem>>, vector<1x256x128xbf16>
    %129 = vector.shape_cast %128 : vector<1x256x128xbf16> to vector<256x128xbf16>
    %c0_59 = arith.constant 0 : index
    %c0_60 = arith.constant 0 : index
    %c0_61 = arith.constant 0 : index
    %130 = vector.load %arg5[%c0_59, %c0_60, %c0_61] : memref<1x128x256xbf16, #tpu.memory_space<vmem>>, vector<1x128x256xbf16>
    %131 = vector.shape_cast %130 : vector<1x128x256xbf16> to vector<128x256xbf16>
    %c0_62 = arith.constant 0 : index
    %c0_63 = arith.constant 0 : index
    %c0_64 = arith.constant 0 : index
    %132 = vector.load %arg3[%c0_62, %c0_63, %c0_64] : memref<1x256x128xf32, #tpu.memory_space<vmem>>, vector<1x256x128xf32>
    %133 = vector.shape_cast %132 : vector<1x256x128xf32> to vector<256x128xf32>
    %134 = arith.truncf %125 : vector<128x128xf32> to vector<128x128xbf16>
    %cst_65 = arith.constant dense<0.000000e+00> : vector<256x128xf32>
    %135 = tpu.matmul %129, %134, %cst_65 {dimension_numbers = #tpu.dot_dimension_numbers<[1], [0], [0], [1], [0, 0, 1, 1], [], []>} : vector<256x128xbf16>, vector<128x128xbf16>, vector<256x128xf32> -> vector<256x128xf32>
    %136 = arith.addf %135, %133 : vector<256x128xf32>
    %cst_66 = arith.constant 0.000000e+00 : f32
    %137 = vector.broadcast %cst_66 : f32 to vector<256x128xf32>
    %138 = arith.maximumf %136, %137 : vector<256x128xf32>
    %cst_67 = arith.constant 1.000000e-07 : f32
    %139 = vector.broadcast %cst_67 : f32 to vector<256x128xf32>
    %140 = arith.addf %138, %139 : vector<256x128xf32>
    %141 = vector.broadcast %127 : f32 to vector<256x128xf32>
    %142 = arith.mulf %141, %140 : vector<256x128xf32>
    %cst_68 = arith.constant -6.000000e+01 : f32
    %cst_69 = arith.constant 6.000000e+01 : f32
    %143 = vector.broadcast %cst_68 : f32 to vector<256x128xf32>
    %144 = arith.maximumf %143, %142 : vector<256x128xf32>
    %145 = vector.broadcast %cst_69 : f32 to vector<256x128xf32>
    %146 = arith.minimumf %145, %144 : vector<256x128xf32>
    %147 = math.exp %146 : vector<256x128xf32>
    %148 = arith.mulf %147, %140 : vector<256x128xf32>
    %149 = tpu.concatenate %147, %148 in 1 : vector<256x128xf32>, vector<256x128xf32> -> vector<256x256xf32>
    %150 = arith.truncf %149 : vector<256x256xf32> to vector<256x256xbf16>
    %cst_70 = arith.constant dense<0.000000e+00> : vector<128x256xf32>
    %151 = tpu.matmul %131, %150, %cst_70 {dimension_numbers = #tpu.dot_dimension_numbers<[1], [0], [0], [1], [0, 0, 1, 1], [], []>} : vector<128x256xbf16>, vector<256x256xbf16>, vector<128x256xf32> -> vector<128x256xf32>
    %152 = vector.extract_strided_slice %151 {offsets = [0, 0], sizes = [128, 128], strides = [1, 1]} : vector<128x256xf32> to vector<128x128xf32>
    %153 = vector.extract_strided_slice %151 {offsets = [0, 128], sizes = [128, 128], strides = [1, 1]} : vector<128x256xf32> to vector<128x128xf32>
    %cst_71 = arith.constant 0.000000e+00 : f32
    %154 = vector.broadcast %cst_71 : f32 to vector<128x128xf32>
    %155 = arith.cmpf ogt, %152, %154 : vector<128x128xf32>
    %cst_72 = arith.constant 1.000000e+00 : f32
    %156 = vector.broadcast %cst_72 : f32 to vector<128x128xf32>
    %157 = arith.select %155, %152, %156 : vector<128x128xi1>, vector<128x128xf32>
    %158 = tpu.reciprocal %157 {approx = true} : vector<128x128xf32> -> vector<128x128xf32>
    %159 = arith.mulf %153, %158 : vector<128x128xf32>
    %cst_73 = arith.constant 0.000000e+00 : f32
    %160 = vector.broadcast %cst_73 : f32 to vector<128x128xf32>
    %161 = arith.select %155, %159, %160 : vector<128x128xi1>, vector<128x128xf32>
    %162 = arith.addf %161, %125 : vector<128x128xf32>
    %163 = arith.truncf %162 : vector<128x128xf32> to vector<128x128xbf16>
    %164 = arith.index_cast %c1_i32 : i32 to index
    %c0_74 = arith.constant 0 : index
    %c0_75 = arith.constant 0 : index
    %165 = vector.load %arg7[%164, %c0_74, %c0_75] : memref<3x128x128xbf16, #tpu.memory_space<vmem>>, vector<1x128x128xbf16>
    %166 = vector.shape_cast %165 : vector<1x128x128xbf16> to vector<128x128xbf16>
    %cst_76 = arith.constant dense<0.000000e+00> : vector<128x128xf32>
    %167 = tpu.matmul %163, %166, %cst_76 {dimension_numbers = #tpu.dot_dimension_numbers<[1], [0], [0], [1], [0, 0, 1, 1], [], []>} : vector<128x128xbf16>, vector<128x128xbf16>, vector<128x128xf32> -> vector<128x128xf32>
    %168 = arith.index_cast %c1_i32 : i32 to index
    %c0_77 = arith.constant 0 : index
    %c0_78 = arith.constant 0 : index
    %169 = vector.load %arg8[%168, %c0_77, %c0_78] : memref<3x1x128xf32, #tpu.memory_space<vmem>>, vector<1x1x128xf32>
    %170 = vector.shape_cast %169 : vector<1x1x128xf32> to vector<1x128xf32>
    %171 = vector.broadcast %170 : vector<1x128xf32> to vector<128x128xf32>
    %172 = arith.addf %167, %171 : vector<128x128xf32>
    %173 = arith.index_cast %c1_i32 : i32 to index
    %c0_79 = arith.constant 0 : index
    %c0_80 = arith.constant 0 : index
    %174 = vector.load %arg9[%173, %c0_79, %c0_80] : memref<3x1x128xf32, #tpu.memory_space<vmem>>, vector<1x1x128xf32>
    %175 = vector.shape_cast %174 : vector<1x1x128xf32> to vector<1x128xf32>
    %176 = arith.index_cast %c1_i32 : i32 to index
    %c0_81 = arith.constant 0 : index
    %c0_82 = arith.constant 0 : index
    %177 = vector.load %arg10[%176, %c0_81, %c0_82] : memref<3x1x128xf32, #tpu.memory_space<vmem>>, vector<1x1x128xf32>
    %178 = vector.shape_cast %177 : vector<1x1x128xf32> to vector<1x128xf32>
    %179 = tpu.iota {dimensions = array<i32: 1>} : vector<1x128xi32>
    %c64_i32_83 = arith.constant 64 : i32
    %180 = vector.broadcast %c64_i32_83 : i32 to vector<1x128xi32>
    %181 = arith.cmpi slt, %179, %180 : vector<1x128xi32>
    %182 = arith.extui %181 : vector<1x128xi1> to vector<1x128xi32>
    %183 = arith.sitofp %182 : vector<1x128xi32> to vector<1x128xf32>
    %184 = vector.broadcast %183 : vector<1x128xf32> to vector<128x128xf32>
    %185 = arith.mulf %172, %184 : vector<128x128xf32>
    %cst_84 = arith.constant dense<0.000000e+00> : vector<128xf32>
    %186 = vector.multi_reduction <add>, %185, %cst_84 [1] : vector<128x128xf32> to vector<128xf32>
    %187 = vector.shape_cast %186 : vector<128xf32> to vector<128x1xf32>
    %cst_85 = arith.constant 1.562500e-02 : f32
    %188 = vector.broadcast %cst_85 : f32 to vector<128x1xf32>
    %189 = arith.mulf %187, %188 : vector<128x1xf32>
    %190 = vector.broadcast %189 : vector<128x1xf32> to vector<128x128xf32>
    %191 = arith.subf %172, %190 : vector<128x128xf32>
    %192 = vector.broadcast %183 : vector<1x128xf32> to vector<128x128xf32>
    %193 = arith.mulf %191, %192 : vector<128x128xf32>
    %194 = arith.mulf %193, %193 : vector<128x128xf32>
    %cst_86 = arith.constant dense<0.000000e+00> : vector<128xf32>
    %195 = vector.multi_reduction <add>, %194, %cst_86 [1] : vector<128x128xf32> to vector<128xf32>
    %196 = vector.shape_cast %195 : vector<128xf32> to vector<128x1xf32>
    %cst_87 = arith.constant 1.562500e-02 : f32
    %197 = vector.broadcast %cst_87 : f32 to vector<128x1xf32>
    %198 = arith.mulf %196, %197 : vector<128x1xf32>
    %cst_88 = arith.constant 9.99999974E-6 : f32
    %199 = vector.broadcast %cst_88 : f32 to vector<128x1xf32>
    %200 = arith.addf %198, %199 : vector<128x1xf32>
    %201 = math.rsqrt %200 : vector<128x1xf32>
    %202 = vector.broadcast %201 : vector<128x1xf32> to vector<128x128xf32>
    %203 = arith.mulf %193, %202 : vector<128x128xf32>
    %204 = vector.broadcast %175 : vector<1x128xf32> to vector<128x128xf32>
    %205 = arith.mulf %203, %204 : vector<128x128xf32>
    %206 = vector.broadcast %178 : vector<1x128xf32> to vector<128x128xf32>
    %207 = arith.addf %205, %206 : vector<128x128xf32>
    %cst_89 = arith.constant 0.000000e+00 : f32
    %208 = vector.broadcast %cst_89 : f32 to vector<128x128xf32>
    %209 = arith.maximumf %207, %208 : vector<128x128xf32>
    %210 = arith.truncf %209 : vector<128x128xf32> to vector<128x128xbf16>
    %211 = arith.index_cast %c1_i32 : i32 to index
    %c0_90 = arith.constant 0 : index
    %c0_91 = arith.constant 0 : index
    %212 = vector.load %arg11[%211, %c0_90, %c0_91] : memref<3x128x128xbf16, #tpu.memory_space<vmem>>, vector<1x128x128xbf16>
    %213 = vector.shape_cast %212 : vector<1x128x128xbf16> to vector<128x128xbf16>
    %cst_92 = arith.constant dense<0.000000e+00> : vector<128x128xf32>
    %214 = tpu.matmul %210, %213, %cst_92 {dimension_numbers = #tpu.dot_dimension_numbers<[1], [0], [0], [1], [0, 0, 1, 1], [], []>} : vector<128x128xbf16>, vector<128x128xbf16>, vector<128x128xf32> -> vector<128x128xf32>
    %215 = arith.index_cast %c1_i32 : i32 to index
    %c0_93 = arith.constant 0 : index
    %c0_94 = arith.constant 0 : index
    %216 = vector.load %arg12[%215, %c0_93, %c0_94] : memref<3x1x128xf32, #tpu.memory_space<vmem>>, vector<1x1x128xf32>
    %217 = vector.shape_cast %216 : vector<1x1x128xf32> to vector<1x128xf32>
    %218 = vector.broadcast %217 : vector<1x128xf32> to vector<128x128xf32>
    %219 = arith.addf %214, %218 : vector<128x128xf32>
    %220 = arith.addf %88, %219 : vector<128x128xf32>
    %c2_i32 = arith.constant 2 : i32
    %221 = arith.index_cast %c2_i32 : i32 to index
    %c0_95 = arith.constant 0 : index
    %c0_96 = arith.constant 0 : index
    %222 = vector.load %arg13[%221, %c0_95, %c0_96] : memref<3x1x128xf32, #tpu.memory_space<vmem>>, vector<1x1x128xf32>
    %223 = vector.shape_cast %222 : vector<1x1x128xf32> to vector<1x128xf32>
    %224 = arith.index_cast %c2_i32 : i32 to index
    %c0_97 = arith.constant 0 : index
    %c0_98 = arith.constant 0 : index
    %225 = vector.load %arg14[%224, %c0_97, %c0_98] : memref<3x1x128xf32, #tpu.memory_space<vmem>>, vector<1x1x128xf32>
    %226 = vector.shape_cast %225 : vector<1x1x128xf32> to vector<1x128xf32>
    %227 = tpu.iota {dimensions = array<i32: 1>} : vector<1x128xi32>
    %c32_i32_99 = arith.constant 32 : i32
    %228 = vector.broadcast %c32_i32_99 : i32 to vector<1x128xi32>
    %229 = arith.cmpi slt, %227, %228 : vector<1x128xi32>
    %230 = arith.extui %229 : vector<1x128xi1> to vector<1x128xi32>
    %231 = arith.sitofp %230 : vector<1x128xi32> to vector<1x128xf32>
    %232 = vector.broadcast %231 : vector<1x128xf32> to vector<128x128xf32>
    %233 = arith.mulf %220, %232 : vector<128x128xf32>
    %cst_100 = arith.constant dense<0.000000e+00> : vector<128xf32>
    %234 = vector.multi_reduction <add>, %233, %cst_100 [1] : vector<128x128xf32> to vector<128xf32>
    %235 = vector.shape_cast %234 : vector<128xf32> to vector<128x1xf32>
    %cst_101 = arith.constant 3.125000e-02 : f32
    %236 = vector.broadcast %cst_101 : f32 to vector<128x1xf32>
    %237 = arith.mulf %235, %236 : vector<128x1xf32>
    %238 = vector.broadcast %237 : vector<128x1xf32> to vector<128x128xf32>
    %239 = arith.subf %220, %238 : vector<128x128xf32>
    %240 = vector.broadcast %231 : vector<1x128xf32> to vector<128x128xf32>
    %241 = arith.mulf %239, %240 : vector<128x128xf32>
    %242 = arith.mulf %241, %241 : vector<128x128xf32>
    %cst_102 = arith.constant dense<0.000000e+00> : vector<128xf32>
    %243 = vector.multi_reduction <add>, %242, %cst_102 [1] : vector<128x128xf32> to vector<128xf32>
    %244 = vector.shape_cast %243 : vector<128xf32> to vector<128x1xf32>
    %cst_103 = arith.constant 3.125000e-02 : f32
    %245 = vector.broadcast %cst_103 : f32 to vector<128x1xf32>
    %246 = arith.mulf %244, %245 : vector<128x1xf32>
    %cst_104 = arith.constant 9.99999974E-6 : f32
    %247 = vector.broadcast %cst_104 : f32 to vector<128x1xf32>
    %248 = arith.addf %246, %247 : vector<128x1xf32>
    %249 = math.rsqrt %248 : vector<128x1xf32>
    %250 = vector.broadcast %249 : vector<128x1xf32> to vector<128x128xf32>
    %251 = arith.mulf %241, %250 : vector<128x128xf32>
    %252 = vector.broadcast %223 : vector<1x128xf32> to vector<128x128xf32>
    %253 = arith.mulf %251, %252 : vector<128x128xf32>
    %254 = vector.broadcast %226 : vector<1x128xf32> to vector<128x128xf32>
    %255 = arith.addf %253, %254 : vector<128x128xf32>
    %cst_105 = arith.constant 0.000000e+00 : f32
    %256 = vector.broadcast %cst_105 : f32 to vector<128x128xf32>
    %257 = arith.maximumf %255, %256 : vector<128x128xf32>
    %258 = arith.index_cast %c2_i32 : i32 to index
    %259 = memref.load %arg1[%258] : memref<3xf32, #tpu.memory_space<smem>>
    %c0_106 = arith.constant 0 : index
    %c0_107 = arith.constant 0 : index
    %c0_108 = arith.constant 0 : index
    %260 = vector.load %arg4[%c0_106, %c0_107, %c0_108] : memref<1x256x128xbf16, #tpu.memory_space<vmem>>, vector<1x256x128xbf16>
    %261 = vector.shape_cast %260 : vector<1x256x128xbf16> to vector<256x128xbf16>
    %c0_109 = arith.constant 0 : index
    %c0_110 = arith.constant 0 : index
    %c0_111 = arith.constant 0 : index
    %262 = vector.load %arg5[%c0_109, %c0_110, %c0_111] : memref<1x128x256xbf16, #tpu.memory_space<vmem>>, vector<1x128x256xbf16>
    %263 = vector.shape_cast %262 : vector<1x128x256xbf16> to vector<128x256xbf16>
    %c0_112 = arith.constant 0 : index
    %c0_113 = arith.constant 0 : index
    %c0_114 = arith.constant 0 : index
    %264 = vector.load %arg3[%c0_112, %c0_113, %c0_114] : memref<1x256x128xf32, #tpu.memory_space<vmem>>, vector<1x256x128xf32>
    %265 = vector.shape_cast %264 : vector<1x256x128xf32> to vector<256x128xf32>
    %266 = arith.truncf %257 : vector<128x128xf32> to vector<128x128xbf16>
    %cst_115 = arith.constant dense<0.000000e+00> : vector<256x128xf32>
    %267 = tpu.matmul %261, %266, %cst_115 {dimension_numbers = #tpu.dot_dimension_numbers<[1], [0], [0], [1], [0, 0, 1, 1], [], []>} : vector<256x128xbf16>, vector<128x128xbf16>, vector<256x128xf32> -> vector<256x128xf32>
    %268 = arith.addf %267, %265 : vector<256x128xf32>
    %cst_116 = arith.constant 0.000000e+00 : f32
    %269 = vector.broadcast %cst_116 : f32 to vector<256x128xf32>
    %270 = arith.maximumf %268, %269 : vector<256x128xf32>
    %cst_117 = arith.constant 1.000000e-07 : f32
    %271 = vector.broadcast %cst_117 : f32 to vector<256x128xf32>
    %272 = arith.addf %270, %271 : vector<256x128xf32>
    %273 = vector.broadcast %259 : f32 to vector<256x128xf32>
    %274 = arith.mulf %273, %272 : vector<256x128xf32>
    %cst_118 = arith.constant -6.000000e+01 : f32
    %cst_119 = arith.constant 6.000000e+01 : f32
    %275 = vector.broadcast %cst_118 : f32 to vector<256x128xf32>
    %276 = arith.maximumf %275, %274 : vector<256x128xf32>
    %277 = vector.broadcast %cst_119 : f32 to vector<256x128xf32>
    %278 = arith.minimumf %277, %276 : vector<256x128xf32>
    %279 = math.exp %278 : vector<256x128xf32>
    %280 = arith.mulf %279, %272 : vector<256x128xf32>
    %281 = tpu.concatenate %279, %280 in 1 : vector<256x128xf32>, vector<256x128xf32> -> vector<256x256xf32>
    %282 = arith.truncf %281 : vector<256x256xf32> to vector<256x256xbf16>
    %cst_120 = arith.constant dense<0.000000e+00> : vector<128x256xf32>
    %283 = tpu.matmul %263, %282, %cst_120 {dimension_numbers = #tpu.dot_dimension_numbers<[1], [0], [0], [1], [0, 0, 1, 1], [], []>} : vector<128x256xbf16>, vector<256x256xbf16>, vector<128x256xf32> -> vector<128x256xf32>
    %284 = vector.extract_strided_slice %283 {offsets = [0, 0], sizes = [128, 128], strides = [1, 1]} : vector<128x256xf32> to vector<128x128xf32>
    %285 = vector.extract_strided_slice %283 {offsets = [0, 128], sizes = [128, 128], strides = [1, 1]} : vector<128x256xf32> to vector<128x128xf32>
    %cst_121 = arith.constant 0.000000e+00 : f32
    %286 = vector.broadcast %cst_121 : f32 to vector<128x128xf32>
    %287 = arith.cmpf ogt, %284, %286 : vector<128x128xf32>
    %cst_122 = arith.constant 1.000000e+00 : f32
    %288 = vector.broadcast %cst_122 : f32 to vector<128x128xf32>
    %289 = arith.select %287, %284, %288 : vector<128x128xi1>, vector<128x128xf32>
    %290 = tpu.reciprocal %289 {approx = true} : vector<128x128xf32> -> vector<128x128xf32>
    %291 = arith.mulf %285, %290 : vector<128x128xf32>
    %cst_123 = arith.constant 0.000000e+00 : f32
    %292 = vector.broadcast %cst_123 : f32 to vector<128x128xf32>
    %293 = arith.select %287, %291, %292 : vector<128x128xi1>, vector<128x128xf32>
    %294 = arith.addf %293, %257 : vector<128x128xf32>
    %295 = arith.truncf %294 : vector<128x128xf32> to vector<128x128xbf16>
    %296 = arith.index_cast %c2_i32 : i32 to index
    %c0_124 = arith.constant 0 : index
    %c0_125 = arith.constant 0 : index
    %297 = vector.load %arg7[%296, %c0_124, %c0_125] : memref<3x128x128xbf16, #tpu.memory_space<vmem>>, vector<1x128x128xbf16>
    %298 = vector.shape_cast %297 : vector<1x128x128xbf16> to vector<128x128xbf16>
    %cst_126 = arith.constant dense<0.000000e+00> : vector<128x128xf32>
    %299 = tpu.matmul %295, %298, %cst_126 {dimension_numbers = #tpu.dot_dimension_numbers<[1], [0], [0], [1], [0, 0, 1, 1], [], []>} : vector<128x128xbf16>, vector<128x128xbf16>, vector<128x128xf32> -> vector<128x128xf32>
    %300 = arith.index_cast %c2_i32 : i32 to index
    %c0_127 = arith.constant 0 : index
    %c0_128 = arith.constant 0 : index
    %301 = vector.load %arg8[%300, %c0_127, %c0_128] : memref<3x1x128xf32, #tpu.memory_space<vmem>>, vector<1x1x128xf32>
    %302 = vector.shape_cast %301 : vector<1x1x128xf32> to vector<1x128xf32>
    %303 = vector.broadcast %302 : vector<1x128xf32> to vector<128x128xf32>
    %304 = arith.addf %299, %303 : vector<128x128xf32>
    %305 = arith.index_cast %c2_i32 : i32 to index
    %c0_129 = arith.constant 0 : index
    %c0_130 = arith.constant 0 : index
    %306 = vector.load %arg9[%305, %c0_129, %c0_130] : memref<3x1x128xf32, #tpu.memory_space<vmem>>, vector<1x1x128xf32>
    %307 = vector.shape_cast %306 : vector<1x1x128xf32> to vector<1x128xf32>
    %308 = arith.index_cast %c2_i32 : i32 to index
    %c0_131 = arith.constant 0 : index
    %c0_132 = arith.constant 0 : index
    %309 = vector.load %arg10[%308, %c0_131, %c0_132] : memref<3x1x128xf32, #tpu.memory_space<vmem>>, vector<1x1x128xf32>
    %310 = vector.shape_cast %309 : vector<1x1x128xf32> to vector<1x128xf32>
    %311 = tpu.iota {dimensions = array<i32: 1>} : vector<1x128xi32>
    %c64_i32_133 = arith.constant 64 : i32
    %312 = vector.broadcast %c64_i32_133 : i32 to vector<1x128xi32>
    %313 = arith.cmpi slt, %311, %312 : vector<1x128xi32>
    %314 = arith.extui %313 : vector<1x128xi1> to vector<1x128xi32>
    %315 = arith.sitofp %314 : vector<1x128xi32> to vector<1x128xf32>
    %316 = vector.broadcast %315 : vector<1x128xf32> to vector<128x128xf32>
    %317 = arith.mulf %304, %316 : vector<128x128xf32>
    %cst_134 = arith.constant dense<0.000000e+00> : vector<128xf32>
    %318 = vector.multi_reduction <add>, %317, %cst_134 [1] : vector<128x128xf32> to vector<128xf32>
    %319 = vector.shape_cast %318 : vector<128xf32> to vector<128x1xf32>
    %cst_135 = arith.constant 1.562500e-02 : f32
    %320 = vector.broadcast %cst_135 : f32 to vector<128x1xf32>
    %321 = arith.mulf %319, %320 : vector<128x1xf32>
    %322 = vector.broadcast %321 : vector<128x1xf32> to vector<128x128xf32>
    %323 = arith.subf %304, %322 : vector<128x128xf32>
    %324 = vector.broadcast %315 : vector<1x128xf32> to vector<128x128xf32>
    %325 = arith.mulf %323, %324 : vector<128x128xf32>
    %326 = arith.mulf %325, %325 : vector<128x128xf32>
    %cst_136 = arith.constant dense<0.000000e+00> : vector<128xf32>
    %327 = vector.multi_reduction <add>, %326, %cst_136 [1] : vector<128x128xf32> to vector<128xf32>
    %328 = vector.shape_cast %327 : vector<128xf32> to vector<128x1xf32>
    %cst_137 = arith.constant 1.562500e-02 : f32
    %329 = vector.broadcast %cst_137 : f32 to vector<128x1xf32>
    %330 = arith.mulf %328, %329 : vector<128x1xf32>
    %cst_138 = arith.constant 9.99999974E-6 : f32
    %331 = vector.broadcast %cst_138 : f32 to vector<128x1xf32>
    %332 = arith.addf %330, %331 : vector<128x1xf32>
    %333 = math.rsqrt %332 : vector<128x1xf32>
    %334 = vector.broadcast %333 : vector<128x1xf32> to vector<128x128xf32>
    %335 = arith.mulf %325, %334 : vector<128x128xf32>
    %336 = vector.broadcast %307 : vector<1x128xf32> to vector<128x128xf32>
    %337 = arith.mulf %335, %336 : vector<128x128xf32>
    %338 = vector.broadcast %310 : vector<1x128xf32> to vector<128x128xf32>
    %339 = arith.addf %337, %338 : vector<128x128xf32>
    %cst_139 = arith.constant 0.000000e+00 : f32
    %340 = vector.broadcast %cst_139 : f32 to vector<128x128xf32>
    %341 = arith.maximumf %339, %340 : vector<128x128xf32>
    %342 = arith.truncf %341 : vector<128x128xf32> to vector<128x128xbf16>
    %343 = arith.index_cast %c2_i32 : i32 to index
    %c0_140 = arith.constant 0 : index
    %c0_141 = arith.constant 0 : index
    %344 = vector.load %arg11[%343, %c0_140, %c0_141] : memref<3x128x128xbf16, #tpu.memory_space<vmem>>, vector<1x128x128xbf16>
    %345 = vector.shape_cast %344 : vector<1x128x128xbf16> to vector<128x128xbf16>
    %cst_142 = arith.constant dense<0.000000e+00> : vector<128x128xf32>
    %346 = tpu.matmul %342, %345, %cst_142 {dimension_numbers = #tpu.dot_dimension_numbers<[1], [0], [0], [1], [0, 0, 1, 1], [], []>} : vector<128x128xbf16>, vector<128x128xbf16>, vector<128x128xf32> -> vector<128x128xf32>
    %347 = arith.index_cast %c2_i32 : i32 to index
    %c0_143 = arith.constant 0 : index
    %c0_144 = arith.constant 0 : index
    %348 = vector.load %arg12[%347, %c0_143, %c0_144] : memref<3x1x128xf32, #tpu.memory_space<vmem>>, vector<1x1x128xf32>
    %349 = vector.shape_cast %348 : vector<1x1x128xf32> to vector<1x128xf32>
    %350 = vector.broadcast %349 : vector<1x128xf32> to vector<128x128xf32>
    %351 = arith.addf %346, %350 : vector<128x128xf32>
    %352 = arith.addf %220, %351 : vector<128x128xf32>
    %c2_i32_145 = arith.constant 2 : i32
    %c0_146 = arith.constant 0 : index
    %c0_147 = arith.constant 0 : index
    %c0_148 = arith.constant 0 : index
    %353 = vector.load %arg13[%c0_146, %c0_147, %c0_148] : memref<3x1x128xf32, #tpu.memory_space<vmem>>, vector<1x1x128xf32>
    %354 = vector.shape_cast %353 : vector<1x1x128xf32> to vector<1x128xf32>
    %c0_149 = arith.constant 0 : index
    %c0_150 = arith.constant 0 : index
    %c0_151 = arith.constant 0 : index
    %355 = vector.load %arg14[%c0_149, %c0_150, %c0_151] : memref<3x1x128xf32, #tpu.memory_space<vmem>>, vector<1x1x128xf32>
    %356 = vector.shape_cast %355 : vector<1x1x128xf32> to vector<1x128xf32>
    %357 = tpu.iota {dimensions = array<i32: 1>} : vector<1x128xi32>
    %c32_i32_152 = arith.constant 32 : i32
    %358 = vector.broadcast %c32_i32_152 : i32 to vector<1x128xi32>
    %359 = arith.cmpi slt, %357, %358 : vector<1x128xi32>
    %360 = arith.extui %359 : vector<1x128xi1> to vector<1x128xi32>
    %361 = arith.sitofp %360 : vector<1x128xi32> to vector<1x128xf32>
    %362 = vector.broadcast %361 : vector<1x128xf32> to vector<128x128xf32>
    %363 = arith.mulf %352, %362 : vector<128x128xf32>
    %cst_153 = arith.constant dense<0.000000e+00> : vector<128xf32>
    %364 = vector.multi_reduction <add>, %363, %cst_153 [1] : vector<128x128xf32> to vector<128xf32>
    %365 = vector.shape_cast %364 : vector<128xf32> to vector<128x1xf32>
    %cst_154 = arith.constant 3.125000e-02 : f32
    %366 = vector.broadcast %cst_154 : f32 to vector<128x1xf32>
    %367 = arith.mulf %365, %366 : vector<128x1xf32>
    %368 = vector.broadcast %367 : vector<128x1xf32> to vector<128x128xf32>
    %369 = arith.subf %352, %368 : vector<128x128xf32>
    %370 = vector.broadcast %361 : vector<1x128xf32> to vector<128x128xf32>
    %371 = arith.mulf %369, %370 : vector<128x128xf32>
    %372 = arith.mulf %371, %371 : vector<128x128xf32>
    %cst_155 = arith.constant dense<0.000000e+00> : vector<128xf32>
    %373 = vector.multi_reduction <add>, %372, %cst_155 [1] : vector<128x128xf32> to vector<128xf32>
    %374 = vector.shape_cast %373 : vector<128xf32> to vector<128x1xf32>
    %cst_156 = arith.constant 3.125000e-02 : f32
    %375 = vector.broadcast %cst_156 : f32 to vector<128x1xf32>
    %376 = arith.mulf %374, %375 : vector<128x1xf32>
    %cst_157 = arith.constant 9.99999974E-6 : f32
    %377 = vector.broadcast %cst_157 : f32 to vector<128x1xf32>
    %378 = arith.addf %376, %377 : vector<128x1xf32>
    %379 = math.rsqrt %378 : vector<128x1xf32>
    %380 = vector.broadcast %379 : vector<128x1xf32> to vector<128x128xf32>
    %381 = arith.mulf %371, %380 : vector<128x128xf32>
    %382 = vector.broadcast %354 : vector<1x128xf32> to vector<128x128xf32>
    %383 = arith.mulf %381, %382 : vector<128x128xf32>
    %384 = vector.broadcast %356 : vector<1x128xf32> to vector<128x128xf32>
    %385 = arith.addf %383, %384 : vector<128x128xf32>
    %cst_158 = arith.constant 0.000000e+00 : f32
    %386 = vector.broadcast %cst_158 : f32 to vector<128x128xf32>
    %387 = arith.maximumf %385, %386 : vector<128x128xf32>
    %c0_159 = arith.constant 0 : index
    %c0_160 = arith.constant 0 : index
    %c0_161 = arith.constant 0 : index
    %388 = vector.load %arg6[%c0_159, %c0_160, %c0_161] : memref<1x16x128xf32, #tpu.memory_space<vmem>>, vector<1x16x128xf32>
    %389 = vector.shape_cast %388 : vector<1x16x128xf32> to vector<16x128xf32>
    %cst_162 = arith.constant dense<0.000000e+00> : vector<16x128xf32>
    %390 = tpu.matmul %389, %387, %cst_162 {dimension_numbers = #tpu.dot_dimension_numbers<[1], [0], [0], [1], [0, 0, 1, 1], [], []>} : vector<16x128xf32>, vector<128x128xf32>, vector<16x128xf32> -> vector<16x128xf32>
    %c0_163 = arith.constant 0 : index
    %c0_164 = arith.constant 0 : index
    %391 = vector.load %arg15[%c0_163, %c0_164] : memref<1x128xf32, #tpu.memory_space<vmem>>, vector<1x128xf32>
    %392 = vector.broadcast %391 : vector<1x128xf32> to vector<16x128xf32>
    %393 = arith.mulf %390, %392 : vector<16x128xf32>
    %cst_165 = arith.constant dense<0.000000e+00> : vector<16xf32>
    %394 = vector.multi_reduction <add>, %393, %cst_165 [1] : vector<16x128xf32> to vector<16xf32>
    %395 = vector.shape_cast %394 : vector<16xf32> to vector<16x1xf32>
    %c0_166 = arith.constant 0 : index
    %c0_167 = arith.constant 0 : index
    %396 = vector.load %arg16[%c0_166, %c0_167] : memref<1x1xf32, #tpu.memory_space<vmem>>, vector<1x1xf32>
    %397 = vector.broadcast %396 : vector<1x1xf32> to vector<16x1xf32>
    %398 = arith.addf %395, %397 : vector<16x1xf32>
    %399 = vector.shape_cast %398 : vector<16x1xf32> to vector<16x1xf32>
    %400 = vector.broadcast %399 : vector<16x1xf32> to vector<16x128xf32>
    %c0_168 = arith.constant 0 : index
    %c0_169 = arith.constant 0 : index
    %c0_170 = arith.constant 0 : index
    %401 = vector.load %arg17[%c0_168, %c0_169, %c0_170] : memref<1x16x128xf32, #tpu.memory_space<vmem>>, vector<1x16x128xf32>
    %402 = vector.shape_cast %401 : vector<1x16x128xf32> to vector<16x128xf32>
    %403 = vector.shape_cast %400 : vector<16x128xf32> to vector<1x16x128xf32>
    tpu.vector_store %arg17[%c0_168, %c0_169, %c0_170], %403 {strides = array<i32>} : memref<1x16x128xf32, #tpu.memory_space<vmem>>, vector<1x16x128xf32>,
    return
  }
  func.func @transform_0(%arg0: i32, %arg1: memref<3xf32, #tpu.memory_space<smem>>) -> (i32, i32, i32) {
    %c0_i32 = arith.constant 0 : i32
    %c0_i32_0 = arith.constant 0 : i32
    %c0_i32_1 = arith.constant 0 : i32
    return %arg0, %c0_i32, %c0_i32_0 : i32, i32, i32
  }
  func.func @transform_1(%arg0: i32, %arg1: memref<3xf32, #tpu.memory_space<smem>>) -> (i32, i32, i32) {
    %c0_i32 = arith.constant 0 : i32
    %c0_i32_0 = arith.constant 0 : i32
    %c0_i32_1 = arith.constant 0 : i32
    return %arg0, %c0_i32, %c0_i32_0 : i32, i32, i32
  }
  func.func @transform_2(%arg0: i32, %arg1: memref<3xf32, #tpu.memory_space<smem>>) -> (i32, i32, i32) {
    %c0_i32 = arith.constant 0 : i32
    %c0_i32_0 = arith.constant 0 : i32
    %c0_i32_1 = arith.constant 0 : i32
    return %arg0, %c0_i32, %c0_i32_0 : i32, i32, i32
  }
  func.func @transform_3(%arg0: i32, %arg1: memref<3xf32, #tpu.memory_space<smem>>) -> (i32, i32, i32) {
    %c0_i32 = arith.constant 0 : i32
    %c0_i32_0 = arith.constant 0 : i32
    %c0_i32_1 = arith.constant 0 : i32
    return %arg0, %c0_i32, %c0_i32_0 : i32, i32, i32
  }
  func.func @transform_4(%arg0: i32, %arg1: memref<3xf32, #tpu.memory_space<smem>>) -> (i32, i32, i32) {
    %c0_i32 = arith.constant 0 : i32
    %c0_i32_0 = arith.constant 0 : i32
    %c0_i32_1 = arith.constant 0 : i32
    return %arg0, %c0_i32, %c0_i32_0 : i32, i32, i32
  }
  func.func @transform_5(%arg0: i32, %arg1: memref<3xf32, #tpu.memory_space<smem>>) -> (i32, i32, i32) {
    %c0_i32 = arith.constant 0 : i32
    %c0_i32_0 = arith.constant 0 : i32
    %c0_i32_1 = arith.constant 0 : i32
    %c0_i32_2 = arith.constant 0 : i32
    return %c0_i32, %c0_i32_0, %c0_i32_1 : i32, i32, i32
  }
  func.func @transform_6(%arg0: i32, %arg1: memref<3xf32, #tpu.memory_space<smem>>) -> (i32, i32, i32) {
    %c0_i32 = arith.constant 0 : i32
    %c0_i32_0 = arith.constant 0 : i32
    %c0_i32_1 = arith.constant 0 : i32
    %c0_i32_2 = arith.constant 0 : i32
    return %c0_i32, %c0_i32_0, %c0_i32_1 : i32, i32, i32
  }
  func.func @transform_7(%arg0: i32, %arg1: memref<3xf32, #tpu.memory_space<smem>>) -> (i32, i32, i32) {
    %c0_i32 = arith.constant 0 : i32
    %c0_i32_0 = arith.constant 0 : i32
    %c0_i32_1 = arith.constant 0 : i32
    %c0_i32_2 = arith.constant 0 : i32
    return %c0_i32, %c0_i32_0, %c0_i32_1 : i32, i32, i32
  }
  func.func @transform_8(%arg0: i32, %arg1: memref<3xf32, #tpu.memory_space<smem>>) -> (i32, i32, i32) {
    %c0_i32 = arith.constant 0 : i32
    %c0_i32_0 = arith.constant 0 : i32
    %c0_i32_1 = arith.constant 0 : i32
    %c0_i32_2 = arith.constant 0 : i32
    return %c0_i32, %c0_i32_0, %c0_i32_1 : i32, i32, i32
  }
  func.func @transform_9(%arg0: i32, %arg1: memref<3xf32, #tpu.memory_space<smem>>) -> (i32, i32, i32) {
    %c0_i32 = arith.constant 0 : i32
    %c0_i32_0 = arith.constant 0 : i32
    %c0_i32_1 = arith.constant 0 : i32
    %c0_i32_2 = arith.constant 0 : i32
    return %c0_i32, %c0_i32_0, %c0_i32_1 : i32, i32, i32
  }
  func.func @transform_10(%arg0: i32, %arg1: memref<3xf32, #tpu.memory_space<smem>>) -> (i32, i32, i32) {
    %c0_i32 = arith.constant 0 : i32
    %c0_i32_0 = arith.constant 0 : i32
    %c0_i32_1 = arith.constant 0 : i32
    %c0_i32_2 = arith.constant 0 : i32
    return %c0_i32, %c0_i32_0, %c0_i32_1 : i32, i32, i32
  }
  func.func @transform_11(%arg0: i32, %arg1: memref<3xf32, #tpu.memory_space<smem>>) -> (i32, i32, i32) {
    %c0_i32 = arith.constant 0 : i32
    %c0_i32_0 = arith.constant 0 : i32
    %c0_i32_1 = arith.constant 0 : i32
    %c0_i32_2 = arith.constant 0 : i32
    return %c0_i32, %c0_i32_0, %c0_i32_1 : i32, i32, i32
  }
  func.func @transform_12(%arg0: i32, %arg1: memref<3xf32, #tpu.memory_space<smem>>) -> (i32, i32, i32) {
    %c0_i32 = arith.constant 0 : i32
    %c0_i32_0 = arith.constant 0 : i32
    %c0_i32_1 = arith.constant 0 : i32
    %c0_i32_2 = arith.constant 0 : i32
    return %c0_i32, %c0_i32_0, %c0_i32_1 : i32, i32, i32
  }
  func.func @transform_13(%arg0: i32, %arg1: memref<3xf32, #tpu.memory_space<smem>>) -> (i32, i32) {
    %c0_i32 = arith.constant 0 : i32
    %c0_i32_0 = arith.constant 0 : i32
    %c0_i32_1 = arith.constant 0 : i32
    return %c0_i32, %c0_i32_0 : i32, i32
  }
  func.func @transform_14(%arg0: i32, %arg1: memref<3xf32, #tpu.memory_space<smem>>) -> (i32, i32) {
    %c0_i32 = arith.constant 0 : i32
    %c0_i32_0 = arith.constant 0 : i32
    %c0_i32_1 = arith.constant 0 : i32
    return %c0_i32, %c0_i32_0 : i32, i32
  }
  func.func @transform_15(%arg0: i32, %arg1: memref<3xf32, #tpu.memory_space<smem>>) -> (i32, i32, i32) {
    %c0_i32 = arith.constant 0 : i32
    %c0_i32_0 = arith.constant 0 : i32
    %c0_i32_1 = arith.constant 0 : i32
    return %arg0, %c0_i32, %c0_i32_0 : i32, i32, i32
  }
}

</mosaic_0001>

<bundles_post_ra>
// kernel: tpu_custom_call.1
= control target key start
LH: loop header
LB: loop body
LE: loop exit
PB: predicated region body
PF: predicated region fallthrough
CT: control target
= control target key end

     0   :  { %s7264_s26 = smov [#allocation3]   ;;  %s10734_s0 = inlined_call_operand.hbm [shape: f32[3], index: 0, kind: input, shape index: {}]   ;;  %s10735_s1 = inlined_call_operand.hbm [shape: f32[1,128,128], index: 1, kind: input, shape index: {}]   ;;  %s10736_s2 = inlined_call_operand.hbm [shape: f32[1,256,128], index: 2, kind: input, shape index: {}]   ;;  %s10737_s3 = inlined_call_operand.hbm [shape: bf16[1,256,128], index: 3, kind: input, shape index: {}]   ;;  %s10738_s4 = inlined_call_operand.hbm [shape: bf16[1,128,256], index: 4, kind: input, shape index: {}]   ;;  %s10739_s5 = inlined_call_operand.hbm [shape: f32[1,16,128], index: 5, kind: input, shape index: {}]   ;;  %s10740_s6 = inlined_call_operand.hbm [shape: bf16[3,128,128], index: 6, kind: input, shape index: {}]   ;;  %s10741_s7 = inlined_call_operand.vmem [shape: f32[3,1,128], index: 7, kind: input, shape index: {}]   ;;  %s10742_s8 = inlined_call_operand.vmem [shape: f32[3,1,128], index: 8, kind: input, shape index: {}]   ;;  %s10743_s9 = inlined_call_operand.vmem [shape: f32[3,1,128], index: 9, kind: input, shape index: {}]   ;;  %s10744_s10 = inlined_call_operand.hbm [shape: bf16[3,128,128], index: 10, kind: input, shape index: {}]   ;;  %s10745_s11 = inlined_call_operand.vmem [shape: f32[3,1,128], index: 11, kind: input, shape index: {}]   ;;  %s10746_s12 = inlined_call_operand.hbm [shape: f32[3,1,128], index: 12, kind: input, shape index: {}]   ;;  %s10747_s13 = inlined_call_operand.hbm [shape: f32[3,1,128], index: 13, kind: input, shape index: {}]   ;;  %s10748_s14 = inlined_call_operand.vmem [shape: f32[1,128], index: 14, kind: input, shape index: {}]   ;;  %s10749_s16 = inlined_call_operand.hbm [shape: f32[1,16,128], index: 16, kind: output, shape index: {}]   ;;  %s10750_s15 = inlined_call_operand.<no memory space> [shape: f32[1,1], index: 15, kind: input, shape index: {}]  }
   0x1   :  { %10851 = sst [smem:[#allocation62_spill]] %s10734_s0  ;;  %v26_v0 = vstv %s10750_s15 }
   0x2   :  { %10852 = sst [smem:[#allocation63_spill]] %s10743_s9  ;;  %27 = vst [vmem:[#allocation4] sm:$0x1] %v26_v0 }
   0x3   :  { %s10853_s23 = sld [smem:[#allocation62_spill]] }
   0x9   :  { %s22_s9 = sshll.u32 %s10853_s23, 4  ;;  %s23_s9 = int_to_ptr.hbm [resolvable:$true] %s22_s9 }
   0xa   :  { %25 = dma.hbm_to_smem %s23_s9, 16, %s7264_s26, [#allocation2] }
   0xb   :  { %7250 = dma.done.wait [#allocation2], 16 }
   0xc   :  { %7251 = vsyncadd [#allocation2], 4294967280 }
   0xd   :  { %30 = sfence }
   0xe   :  { %31 = vsyncpa [#allocation6], 0 }
   0xf   :  { %32 = vsyncpa [#allocation9], 0 }
  0x10   :  { %33 = vsyncpa [#allocation12], 0 }
  0x11   :  { %34 = vsyncpa [#allocation15], 0 }
  0x12   :  { %35 = vsyncpa [#allocation18], 0 }
  0x13   :  { %36 = vsyncpa [#allocation7], 0  ;;  %s54_s29 = sshll.u32 %s10736_s2, 4  ;;  %s7265_s30 = smov [#allocation8]   ;;  %s55_s29 = int_to_ptr.hbm [resolvable:$true] %s54_s29 }
  0x14   :  { %s56_s15 = sshll.u32 %s7265_s30, 4  ;;  %s80_s9 = sshll.u32 %s10738_s4, 4  ;;  %s57_s15 = int_to_ptr.vmem [resolvable:$true] %s56_s15  ;;  %s81_s9 = int_to_ptr.hbm [resolvable:$true] %s80_s9 }
  0x15   :  { %s7266_s18 = smov 128   ;;  %s7267_s19 = smov 8  }
  0x16   :  { %62 = dma.hbm_to_vmem [thread:$0]  %s55_s29, 4096, %s57_s15, [#allocation9], %s7266_s18, %s7266_s18, %s7267_s19  }
  0x17   :  { %s7268_s20 = smov [#allocation11]   ;;  %s106_s23 = sshll.u32 %s10740_s6, 4  ;;  %s107_s23 = int_to_ptr.hbm [resolvable:$true] %s106_s23 }
  0x18   :  { %s82_s21 = sshll.u32 %s7268_s20, 4  ;;  %s7269_s4 = smov [#allocation14]   ;;  %s83_s21 = int_to_ptr.vmem [resolvable:$true] %s82_s21 }
  0x19   :  { %88 = dma.hbm_to_vmem [thread:$0]  %s81_s9, 2048, %s83_s21, [#allocation12], %s7266_s18, %s7266_s18, %s7267_s19  }
  0x1a   :  { %s108_s24 = sshll.u32 %s7269_s4, 4  ;;  %s140_s27 = sshll.u32 %s10746_s12, 4  ;;  %s109_s24 = int_to_ptr.vmem [resolvable:$true] %s108_s24  ;;  %s141_s27 = int_to_ptr.hbm [resolvable:$true] %s140_s27 }
  0x1b   :  { %s7270_s28 = smov 64   ;;  %s7271_s29 = smov 4  }
  0x1c   :  { %114 = dma.hbm_to_vmem [thread:$0]  %s107_s23, 3072, %s109_s24, [#allocation15], %s7270_s28, %s7270_s28, %s7271_s29  }
  0x1d   :  { %s7272_s30 = smov [#allocation17]   ;;  %s7273_s0 = smov 16  }
  0x1e   :  { %s142_s15 = sshll.u32 %s7272_s30, 4  ;;  %s7274_s6 = smov 1   ;;  %s143_s15 = int_to_ptr.vmem [resolvable:$true] %s142_s15 }
  0x1f   :  { %148 = dma.hbm_to_vmem [thread:$0]  %s141_s27, 48, %s143_s15, [#allocation18], %s7273_s0, %s7273_s0, %s7274_s6  }
  0x20   :  { %s41_s12 = sshll.u32 %s10735_s1, 4  ;;  %s7275_s20 = smov [#allocation5]   ;;  %s42_s12 = int_to_ptr.hbm [resolvable:$true] %s41_s12 }
  0x21   :  { %s43_s21 = sshll.u32 %s7275_s20, 4  ;;  %s67_s23 = sshll.u32 %s10737_s3, 4  ;;  %s44_s21 = int_to_ptr.vmem [resolvable:$true] %s43_s21  ;;  %s68_s23 = int_to_ptr.hbm [resolvable:$true] %s67_s23 }
  0x22   :  { %49 = dma.hbm_to_vmem [thread:$0]  %s42_s12, 2048, %s44_s21, [#allocation6], %s7266_s18, %s7266_s18, %s7267_s19  }
  0x23   :  { %s7276_s4 = smov [#allocation10]   ;;  %s93_s27 = sshll.u32 %s10739_s5, 4  ;;  %s94_s27 = int_to_ptr.hbm [resolvable:$true] %s93_s27 }
  0x24   :  { %s69_s24 = sshll.u32 %s7276_s4, 4  ;;  %s125_s3 = sshll.u32 %s10744_s10, 4  ;;  %s70_s24 = int_to_ptr.vmem [resolvable:$true] %s69_s24  ;;  %s126_s3 = int_to_ptr.hbm [resolvable:$true] %s125_s3 }
  0x25   :  { %75 = dma.hbm_to_vmem [thread:$0]  %s68_s23, 2048, %s70_s24, [#allocation9], %s7270_s28, %s7270_s28, %s7271_s29  }
  0x26   :  { %s7277_s15 = smov [#allocation13]   ;;  %s7278_s9 = smov [#allocation16]  }
  0x27   :  { %s95_s17 = sshll.u32 %s7277_s15, 4  ;;  %s127_s5 = sshll.u32 %s7278_s9, 4  ;;  %s96_s17 = int_to_ptr.vmem [resolvable:$true] %s95_s17  ;;  %s128_s5 = int_to_ptr.vmem [resolvable:$true] %s127_s5 }
  0x28   :  { %101 = dma.hbm_to_vmem [thread:$0]  %s94_s27, 256, %s96_s17, [#allocation12], %s7266_s18, %s7266_s18, %s7267_s19  }
  0x29   :  { %s153_s21 = sshll.u32 %s10747_s13, 4  ;;  %s7279_s10 = smov [#allocation19]   ;;  %s154_s21 = int_to_ptr.hbm [resolvable:$true] %s153_s21 }
  0x2a   :  { %133 = dma.hbm_to_vmem [thread:$0]  %s126_s3, 3072, %s128_s5, [#allocation15], %s7270_s28, %s7270_s28, %s7271_s29  }
  0x2b   :  { %s155_s2 = sshll.u32 %s7279_s10, 4  ;;  %s156_s2 = int_to_ptr.vmem [resolvable:$true] %s155_s2 }
  0x2c   :  { %161 = dma.hbm_to_vmem [thread:$0]  %s154_s21, 48, %s156_s2, [#allocation18], %s7273_s0, %s7273_s0, %s7274_s6  }
  0x2d   :  { %7252 = dma.done.wait [#allocation6], 2048  }
  0x2e   :  { %7253 = vsyncadd [#allocation6], 4294965248 }
  0x2f   :  { %7254 = dma.done.wait [#allocation9], 6144  }
  0x30   :  { %7255 = vsyncadd [#allocation9], 4294961152 }
  0x31   :  { %7256 = dma.done.wait [#allocation12], 2304  }
  0x32   :  { %7257 = vsyncadd [#allocation12], 4294964992 }
  0x33   :  { %7258 = dma.done.wait [#allocation15], 6144  }
  0x34   :  { %7259 = vsyncadd [#allocation15], 4294961152 }
  0x35   :  { %7260 = dma.done.wait [#allocation18], 96  }
  0x36   :  { %7261 = vsyncadd [#allocation18], 4294967200  ;;  %v216_v1 = vld [vmem:[#allocation5 + $0x70] sm:$0xff]  ;;  %v217_v2 = vld [vmem:[#allocation5 + $0x78] sm:$0xff]  ;;  %s218_s13 = sld [smem:[#allocation3]]  ;;  %s7282_s0 = smov [#allocation20]  }
  0x37   :  { %v214_v3 = vld [vmem:[#allocation5 + $0x60] sm:$0xff]  ;;  %v306_v4 = vpack.c.bf16 %v217_v2, %v216_v1  ;;  %v215_v5 = vld [vmem:[#allocation5 + $0x68] sm:$0xff]  ;;  %v212_v7 = vld [vmem:[#allocation5 + $0x50] sm:$0xff]  ;;  %s10857_s4 = sld [smem:[#allocation63_spill]]  ;;  %s5824_s23 = sshll.u32 %s10749_s16, 4  ;;  %s5825_s23 = int_to_ptr.hbm [resolvable:$true] %s5824_s23 }
  0x38   :  { %v305_v6 = vpack.c.bf16 %v215_v5, %v214_v3  ;;  %v213_v8 = vld [vmem:[#allocation5 + $0x58] sm:$0xff]  ;;  %v210_v9 = vld [vmem:[#allocation5 + $0x40] sm:$0xff]  ;;  %v211_v10 = vld [vmem:[#allocation5 + $0x48] sm:$0xff]  ;;  %s6067_s26 = sld [smem:[#allocation3 + $0x1]] }
  0x39   :  { %403 = vmatpush.bf16.msra.mxu0 %v306_v4  ;;  %v304_v11 = vpack.c.bf16 %v213_v8, %v212_v7  ;;  %v208_v12 = vld [vmem:[#allocation5 + $0x30] sm:$0xff]  ;;  %v303_v13 = vpack.c.bf16 %v211_v10, %v210_v9  ;;  %v209_v14 = vld [vmem:[#allocation5 + $0x38] sm:$0xff]  ;;  %v206_v16 = vld [vmem:[#allocation5 + $0x20] sm:$0xff]  ;;  %s6168_s12 = sld [smem:[#allocation3 + $0x2]] }
  0x3a   :  { %v302_v15 = vpack.c.bf16 %v209_v14, %v208_v12  ;;  %v207_v17 = vld [vmem:[#allocation5 + $0x28] sm:$0xff]  ;;  %v204_v19 = vld [vmem:[#allocation5 + $0x10] sm:$0xff]  ;;  %v205_v20 = vld [vmem:[#allocation5 + $0x18] sm:$0xff] }
  0x3b   :  { %v301_v18 = vpack.c.bf16 %v207_v17, %v206_v16  ;;  %v300_v21 = vpack.c.bf16 %v205_v20, %v204_v19  ;;  %v202_v22 = vld [vmem:[#allocation5] sm:$0xff]  ;;  %v203_v23 = vld [vmem:[#allocation5 + $0x8] sm:$0xff]  ;;  %v6271_v27 = vld [vmem:[#allocation10 + $0x10] sm:$0xff] }
  0x3c   :  { %v299_v24 = vpack.c.bf16 %v203_v23, %v202_v22  ;;  %v6269_v25 = vld [vmem:[#allocation10] sm:$0xff]  ;;  %v6270_v26 = vld [vmem:[#allocation10 + $0x8] sm:$0xff]  ;;  %v6272_v28 = vld [vmem:[#allocation10 + $0x18] sm:$0xff]  ;;  %v7428_v38 = vstv %s218_s13 }
  0x3d   :  { %404 = vmatpush.bf16.msra.mxu0 %v305_v6  ;;  %v6273_v29 = vld [vmem:[#allocation10 + $0x20] sm:$0xff]  ;;  %v6274_v30 = vld [vmem:[#allocation10 + $0x28] sm:$0xff]  ;;  %v6275_v31 = vld [vmem:[#allocation10 + $0x30] sm:$0xff] }
  0x3e   :  { %v6276_v32 = vld [vmem:[#allocation10 + $0x38] sm:$0xff]  ;;  %v267_v33 = vld [vmem:[#allocation8] sm:$0xff]  ;;  %v268_v40 = vld [vmem:[#allocation8 + $0x8] sm:$0xff] }
  0x3f   :  { %v6277_v34 = vld [vmem:[#allocation10 + $0x40] sm:$0xff]  ;;  %v269_v47 = vld [vmem:[#allocation8 + $0x10] sm:$0xff]  ;;  %v6278_v50 = vld [vmem:[#allocation10 + $0x48] sm:$0xff] }
  0x40   :  { %v270_v57 = vld [vmem:[#allocation8 + $0x18] sm:$0xff]  ;;  %v271_v5 = vld [vmem:[#allocation8 + $0x20] sm:$0xff]  ;;  %v6279_v9 = vld [vmem:[#allocation10 + $0x50] sm:$0xff] }
  0x41   :  { %405 = vmatpush.bf16.msra.mxu0 %v304_v11  ;;  %v272_v16 = vld [vmem:[#allocation8 + $0x28] sm:$0xff] }
  0x45   :  { %406 = vmatpush.bf16.msra.mxu0 %v303_v13 }
  0x49   :  { %407 = vmatpush.bf16.msra.mxu0 %v302_v15 }
  0x4d   :  { %408 = vmatpush.bf16.msra.mxu0 %v301_v18 }
  0x51   :  { %409 = vmatpush.bf16.msra.mxu0 %v300_v21 }
  0x55   :  { %410 = vmatpush.bf16.msra.mxu0 %v299_v24 }
  0x58   :  { %411 = vmatmul.bf16.vlgmr.msra.gmra.mxu0 %v6269_v25 }
  0x68   :  { %416 = vmatmul.bf16.gmra.mxu0 %v6270_v26 }
  0x78   :  { %421 = vmatmul.bf16.gmra.mxu0 %v6271_v27 }
  0x88   :  { %426 = vmatmul.bf16.gmra.mxu0 %v6272_v28  ;;  %v273_v28 = vld [vmem:[#allocation8 + $0x30] sm:$0xff] }
  0x98   :  { %431 = vmatmul.bf16.gmra.mxu0 %v6273_v29 }
  0xa8   :  { %436 = vmatmul.bf16.gmra.mxu0 %v6274_v30 }
  0xb8   :  { %441 = vmatmul.bf16.gmra.mxu0 %v6275_v31 }
  0xc8   :  { %446 = vmatmul.bf16.gmra.mxu0 %v6276_v32  ;;  %v6280_v32 = vld [vmem:[#allocation10 + $0x58] sm:$0xff] }
  0xd5   :  { %v412_v35 = vpop.f32.mrf.mxu0 }
  0xd6   :  { %v413_v36 = vadd.f32 %v412_v35, %v267_v33 }
  0xd8   :  { %v492_v37 = vmax.f32 %v413_v36, 0.0  ;;  %451 = vmatmul.bf16.gmra.mxu0 %v6277_v34 }
  0xda   :  { %v524_v39 = vadd.f32 1e-07, %v492_v37 }
  0xdc   :  { %v557_v41 = vmul.f32 %v7428_v38, %v524_v39 }
  0xdd   :  { %v414_v42 = vpop.f32.mrf.mxu0 }
  0xde   :  { %v415_v43 = vadd.f32 %v414_v42, %v268_v40  ;;  %v5905_v44 = vclamps-f32 %v557_v41, 60.0  ;;  %v274_v40 = vld [vmem:[#allocation8 + $0x38] sm:$0xff] }
  0xe0   :  { %v493_v45 = vmax.f32 %v415_v43, 0.0  ;;  %v653_v48 = vmul.f32 1.442695, %v5905_v44 }
  0xe2   :  { %v525_v46 = vadd.f32 1e-07, %v493_v45  ;;  %6406 = vpow2.f32 %v653_v48 }
  0xe4   :  { %v558_v49 = vmul.f32 %v7428_v38, %v525_v46 }
  0xe5   :  { %v417_v51 = vpop.f32.mrf.mxu0 }
  0xe6   :  { %v5906_v52 = vclamps-f32 %v558_v49, 60.0  ;;  %v418_v53 = vadd.f32 %v417_v51, %v269_v47 }
  0xe8   :  { %v655_v54 = vmul.f32 1.442695, %v5906_v52  ;;  %v494_v55 = vmax.f32 %v418_v53, 0.0  ;;  %456 = vmatmul.bf16.gmra.mxu0 %v6278_v50  ;;  %v7433_v60 = vpop.eup %6406 }
  0xe9   :  { %v7440_v2 = vmul.f32 %v7433_v60, %v524_v39 }
  0xea   :  { %6408 = vpow2.f32 %v655_v54  ;;  %v526_v56 = vadd.f32 1e-07, %v494_v55  ;;  %v6281_v55 = vld [vmem:[#allocation10 + $0x60] sm:$0xff] }
  0xec   :  { %v559_v58 = vmul.f32 %v7428_v38, %v526_v56 }
  0xed   :  { %v419_v59 = vpop.f32.mrf.mxu0 }
  0xee   :  { %v420_v61 = vadd.f32 %v419_v59, %v270_v57  ;;  %v5907_v63 = vclamps-f32 %v559_v58, 60.0 }
  0xf0   :  { %v7435_v62 = vpop.eup %6408  ;;  %v495_v0 = vmax.f32 %v420_v61, 0.0  ;;  %v657_v7 = vmul.f32 1.442695, %v5907_v63 }
  0xf1   :  { %v749_v1 = vpack.c.bf16 %v7435_v62, %v7433_v60  ;;  %v7443_v3 = vmul.f32 %v7435_v62, %v525_v46  ;;  %v5955_v62 = vld [vmem:[#allocation11 + $0x20] sm:$0xf] }
  0xf2   :  { %v527_v4 = vadd.f32 1e-07, %v495_v0  ;;  %6410 = vpow2.f32 %v657_v7 }
  0xf3   :  { %v750_v6 = vpack.c.bf16 %v7443_v3, %v7440_v2 }
  0xf4   :  { %v560_v8 = vmul.f32 %v7428_v38, %v527_v4 }
  0xf5   :  { %v422_v10 = vpop.f32.mrf.mxu0 }
  0xf6   :  { %v5908_v11 = vclamps-f32 %v560_v8, 60.0  ;;  %v423_v12 = vadd.f32 %v422_v10, %v271_v5  ;;  %v6282_v8 = vld [vmem:[#allocation10 + $0x68] sm:$0xff] }
  0xf8   :  { %v659_v13 = vmul.f32 1.442695, %v5908_v11  ;;  %v496_v14 = vmax.f32 %v423_v12, 0.0  ;;  %461 = vmatmul.bf16.gmra.mxu0 %v6279_v9  ;;  %v7449_v19 = vpop.eup %6410  ;;  %v6283_v11 = vld [vmem:[#allocation10 + $0x70] sm:$0xff] }
  0xf9   :  { %v7456_v25 = vmul.f32 %v7449_v19, %v526_v56 }
  0xfa   :  { %6412 = vpow2.f32 %v659_v13  ;;  %v528_v15 = vadd.f32 1e-07, %v496_v14  ;;  %v280_v14 = vld [vmem:[#allocation8 + $0x68] sm:$0xff] }
  0xfc   :  { %v561_v17 = vmul.f32 %v7428_v38, %v528_v15 }
  0xfd   :  { %v424_v18 = vpop.f32.mrf.mxu0 }
  0xfe   :  { %v425_v20 = vadd.f32 %v424_v18, %v272_v16  ;;  %v5909_v22 = vclamps-f32 %v561_v17, 60.0  ;;  %v278_v17 = vld [vmem:[#allocation8 + $0x58] sm:$0xff]  ;;  %v281_v18 = vld [vmem:[#allocation8 + $0x70] sm:$0xff] }
 0x100   :  { %v7451_v21 = vpop.eup %6412  ;;  %v497_v23 = vmax.f32 %v425_v20, 0.0  ;;  %v661_v30 = vmul.f32 1.442695, %v5909_v22  ;;  %v6284_v22 = vld [vmem:[#allocation10 + $0x78] sm:$0xff] }
 0x101   :  { %v751_v24 = vpack.c.bf16 %v7451_v21, %v7449_v19  ;;  %v7459_v26 = vmul.f32 %v7451_v21, %v527_v4  ;;  %v5947_v21 = vld [vmem:[#allocation11 + $0x10] sm:$0xf] }
 0x102   :  { %v529_v27 = vadd.f32 1e-07, %v497_v23  ;;  %6414 = vpow2.f32 %v661_v30  ;;  %v277_v23 = vld [vmem:[#allocation8 + $0x50] sm:$0xff] }
 0x103   :  { %v752_v29 = vpack.c.bf16 %v7459_v26, %v7456_v25 }
 0x104   :  { %v562_v31 = vmul.f32 %v7428_v38, %v529_v27 }
 0x105   :  { %v427_v33 = vpop.f32.mrf.mxu0 }
 0x106   :  { %v5910_v34 = vclamps-f32 %v562_v31, 60.0  ;;  %v428_v35 = vadd.f32 %v427_v33, %v273_v28  ;;  %v275_v33 = vld [vmem:[#allocation8 + $0x40] sm:$0xff] }
 0x108   :  { %v663_v36 = vmul.f32 1.442695, %v5910_v34  ;;  %v498_v37 = vmax.f32 %v428_v35, 0.0  ;;  %466 = vmatmul.bf16.gmra.mxu0 %v6280_v32  ;;  %v7465_v43 = vpop.eup %6414  ;;  %v276_v32 = vld [vmem:[#allocation8 + $0x48] sm:$0xff] }
 0x109   :  { %v7472_v49 = vmul.f32 %v7465_v43, %v528_v15  ;;  %v279_v15 = vld [vmem:[#allocation8 + $0x60] sm:$0xff] }
 0x10a   :  { %6416 = vpow2.f32 %v663_v36  ;;  %v530_v39 = vadd.f32 1e-07, %v498_v37 }
 0x10c   :  { %v563_v41 = vmul.f32 %v7428_v38, %v530_v39 }
 0x10d   :  { %v429_v42 = vpop.f32.mrf.mxu0 }
 0x10e   :  { %v430_v44 = vadd.f32 %v429_v42, %v274_v40  ;;  %v5911_v46 = vclamps-f32 %v563_v41, 60.0 }
 0x110   :  { %v7467_v45 = vpop.eup %6416  ;;  %v499_v47 = vmax.f32 %v430_v44, 0.0  ;;  %v665_v53 = vmul.f32 1.442695, %v5911_v46  ;;  %v282_v44 = vld [vmem:[#allocation8 + $0x78] sm:$0xff] }
 0x111   :  { %v753_v48 = vpack.c.bf16 %v7467_v45, %v7465_v43  ;;  %v7475_v50 = vmul.f32 %v7467_v45, %v529_v27  ;;  %v6292_v43 = vld [vmem:[#allocation11 + $0x34] sm:$0xf0] }
 0x112   :  { %v531_v51 = vadd.f32 1e-07, %v499_v47  ;;  %6418 = vpow2.f32 %v665_v53 }
 0x113   :  { %v754_v52 = vpack.c.bf16 %v7475_v50, %v7472_v49  ;;  %v5971_v50 = vld [vmem:[#allocation11 + $0x40] sm:$0xf] }
 0x114   :  { %v564_v54 = vmul.f32 %v7428_v38, %v531_v51 }
 0x115   :  { %v432_v56 = vpop.f32.mrf.mxu0 }
 0x116   :  { %v5912_v57 = vclamps-f32 %v564_v54, 60.0  ;;  %v433_v42 = vadd.f32 %v432_v56, %v275_v33 }
 0x118   :  { %v667_v58 = vmul.f32 1.442695, %v5912_v57  ;;  %471 = vmatmul.bf16.gmra.mxu0 %v6281_v55  ;;  %v7480_v61 = vpop.eup %6418 }
 0x119   :  { %v7487_v4 = vmul.f32 %v7480_v61, %v530_v39 }
 0x11a   :  { %6420 = vpow2.f32 %v667_v58 }
 0x11d   :  { %v434_v59 = vpop.f32.mrf.mxu0 }
 0x11e   :  { %v435_v39 = vadd.f32 %v434_v59, %v276_v32 }
 0x120   :  { %v7482_v63 = vpop.eup %6420  ;;  %v501_v55 = vmax.f32 %v435_v39, 0.0 }
 0x121   :  { %v755_v0 = vpack.c.bf16 %v7482_v63, %v7480_v61  ;;  %v7490_v5 = vmul.f32 %v7482_v63, %v531_v51  ;;  %v5939_v61 = vld [vmem:[#allocation11] sm:$0xf]  ;;  %v6286_v63 = vld [vmem:[#allocation11 + $0x4] sm:$0xf0] }
 0x123   :  { %v756_v7 = vpack.c.bf16 %v7490_v5, %v7487_v4  ;;  %v7532_v4 = vor.u32 %v6286_v63, %v5939_v61 }
 0x125   :  { %v437_v9 = vpop.f32.mrf.mxu0 }
 0x126   :  { %v438_v34 = vadd.f32 %v437_v9, %v277_v23 }
 0x128   :  { %476 = vmatmul.bf16.gmra.mxu0 %v6282_v8  ;;  %v502_v46 = vmax.f32 %v438_v34, 0.0  ;;  %v500_v8 = vmax.f32 %v433_v42, 0.0 }
 0x12a   :  { %v534_v9 = vadd.f32 1e-07, %v502_v46 }
 0x12d   :  { %v439_v10 = vpop.f32.mrf.mxu0 }
 0x12e   :  { %v440_v30 = vadd.f32 %v439_v10, %v278_v17 }
 0x130   :  { %v503_v40 = vmax.f32 %v440_v30, 0.0 }
 0x132   :  { %v535_v57 = vadd.f32 1e-07, %v503_v40 }
 0x134   :  { %v568_v56 = vmul.f32 %v7428_v38, %v535_v57 }
 0x135   :  { %v442_v12 = vpop.f32.mrf.mxu0 }
 0x136   :  { %v443_v20 = vadd.f32 %v442_v12, %v279_v15  ;;  %v532_v15 = vadd.f32 1e-07, %v500_v8 }
 0x138   :  { %481 = vmatmul.bf16.gmra.mxu0 %v6283_v11  ;;  %v504_v35 = vmax.f32 %v443_v20, 0.0 }
 0x13a   :  { %v536_v47 = vadd.f32 1e-07, %v504_v35 }
 0x13c   :  { %v569_v10 = vmul.f32 %v7428_v38, %v536_v47 }
 0x13d   :  { %v444_v13 = vpop.f32.mrf.mxu0 }
 0x13e   :  { %v445_v16 = vadd.f32 %v444_v13, %v280_v14  ;;  %v533_v13 = vadd.f32 1e-07, %v501_v55  ;;  %v5917_v17 = vclamps-f32 %v569_v10, 60.0 }
 0x140   :  { %v505_v27 = vmax.f32 %v445_v16, 0.0  ;;  %v567_v16 = vmul.f32 %v7428_v38, %v534_v9  ;;  %v677_v33 = vmul.f32 1.442695, %v5917_v17 }
 0x142   :  { %v537_v37 = vadd.f32 1e-07, %v505_v27  ;;  %v566_v27 = vmul.f32 %v7428_v38, %v533_v13  ;;  %v5915_v32 = vclamps-f32 %v567_v16, 60.0 }
 0x144   :  { %v570_v53 = vmul.f32 %v7428_v38, %v537_v37  ;;  %v5914_v35 = vclamps-f32 %v566_v27, 60.0  ;;  %v673_v40 = vmul.f32 1.442695, %v5915_v32 }
 0x145   :  { %v447_v28 = vpop.f32.mrf.mxu0 }
 0x146   :  { %v448_v31 = vadd.f32 %v447_v28, %v281_v18  ;;  %v5918_v12 = vclamps-f32 %v570_v53, 60.0  ;;  %v5916_v28 = vclamps-f32 %v568_v56, 60.0  ;;  %v671_v46 = vmul.f32 1.442695, %v5914_v35  ;;  %v297_v35 = vld [vmem:[#allocation8 + $0xf0] sm:$0xff] }
 0x148   :  { %v506_v36 = vmax.f32 %v448_v31, 0.0  ;;  %486 = vmatmul.bf16.gmra.mxu0 %v6284_v22  ;;  %v679_v22 = vmul.f32 1.442695, %v5918_v12  ;;  %v565_v31 = vmul.f32 %v7428_v38, %v532_v15 }
 0x14a   :  { %v538_v41 = vadd.f32 1e-07, %v506_v36  ;;  %v675_v36 = vmul.f32 1.442695, %v5916_v28  ;;  %v5913_v39 = vclamps-f32 %v565_v31, 60.0 }
 0x14c   :  { %v571_v51 = vmul.f32 %v7428_v38, %v538_v41 }
 0x14d   :  { %v449_v54 = vpop.f32.mrf.mxu0 }
 0x14e   :  { %v450_v58 = vadd.f32 %v449_v54, %v282_v44  ;;  %v5919_v11 = vclamps-f32 %v571_v51, 60.0  ;;  %v669_v54 = vmul.f32 1.442695, %v5913_v39  ;;  %v293_v39 = vld [vmem:[#allocation8 + $0xd0] sm:$0xff] }
 0x150   :  { %v507_v59 = vmax.f32 %v450_v58, 0.0  ;;  %v681_v18 = vmul.f32 1.442695, %v5919_v11 }
 0x152   :  { %v539_v14 = vadd.f32 1e-07, %v507_v59  ;;  %6422 = vpow2.f32 %v681_v18 }
 0x153   :  { %6424 = vpow2.f32 %v679_v22 }
 0x154   :  { %v572_v20 = vmul.f32 %v7428_v38, %v539_v14 }
 0x155   :  { %v7500_v23 = vpop.f32.mrf.mxu0 }
 0x156   :  { %v5920_v30 = vclamps-f32 %v572_v20, 60.0 }
 0x158   :  { %v683_v34 = vmul.f32 1.442695, %v5920_v30  ;;  %v6423_v44 = vpop.eup %6422 }
 0x159   :  { %v6425_v51 = vpop.eup %6424  ;;  %v731_v58 = vmul.f32 %v6423_v44, %v538_v41 }
 0x15a   :  { %6426 = vpow2.f32 %v683_v34  ;;  %v730_v59 = vmul.f32 %v6425_v51, %v537_v37 }
 0x15b   :  { %6428 = vpow2.f32 %v677_v33 }
 0x15c   :  { %6430 = vpow2.f32 %v675_v36 }
 0x15d   :  { %v7504_v42 = vpop.f32.mrf.mxu0  ;;  %6432 = vpow2.f32 %v673_v40 }
 0x15e   :  { %6434 = vpow2.f32 %v671_v46 }
 0x15f   :  { %6436 = vpow2.f32 %v669_v54  ;;  %v291_v54 = vld [vmem:[#allocation8 + $0xc0] sm:$0xff] }
 0x160   :  { %v6427_v53 = vpop.eup %6426 }
 0x161   :  { %v763_v55 = vpack.c.bf16 %v6427_v53, %v6423_v44  ;;  %v732_v8 = vmul.f32 %v6427_v53, %v539_v14  ;;  %v6429_v10 = vpop.eup %6428  ;;  %v292_v53 = vld [vmem:[#allocation8 + $0xc8] sm:$0xff] }
 0x162   :  { %v6431_v12 = vpop.eup %6430  ;;  %v761_v16 = vpack.c.bf16 %v6425_v51, %v6429_v10  ;;  %v729_v17 = vmul.f32 %v6429_v10, %v536_v47 }
 0x163   :  { %861 = vmatpush.bf16.msra.mxu1 %v763_v55  ;;  %v764_v11 = vpack.c.bf16 %v732_v8, %v731_v58  ;;  %v6433_v18 = vpop.eup %6432  ;;  %v728_v22 = vmul.f32 %v6431_v12, %v535_v57 }
 0x164   :  { %v762_v20 = vpack.c.bf16 %v730_v59, %v729_v17  ;;  %v6435_v27 = vpop.eup %6434  ;;  %v759_v41 = vpack.c.bf16 %v6431_v12, %v6433_v18  ;;  %v727_v14 = vmul.f32 %v6433_v18, %v534_v9  ;;  %v295_v9 = vld [vmem:[#allocation8 + $0xe0] sm:$0xff]  ;;  %v298_v18 = vld [vmem:[#allocation8 + $0xf8] sm:$0xff] }
 0x165   :  { %v7506_v56 = vpop.f32.mrf.mxu0  ;;  %959 = vmatpush.bf16.msra.mxu3 %v764_v11  ;;  %v6437_v28 = vpop.eup %6436  ;;  %v726_v31 = vmul.f32 %v6435_v27, %v533_v13  ;;  %v290_v11 = vld [vmem:[#allocation8 + $0xb8] sm:$0xff] }
 0x166   :  { %v760_v30 = vpack.c.bf16 %v728_v22, %v727_v14  ;;  %v757_v32 = vpack.c.bf16 %v6435_v27, %v6437_v28  ;;  %v725_v33 = vmul.f32 %v6437_v28, %v532_v15  ;;  %v294_v15 = vld [vmem:[#allocation8 + $0xd8] sm:$0xff]  ;;  %v289_v27 = vld [vmem:[#allocation8 + $0xb0] sm:$0xff] }
 0x167   :  { %862 = vmatpush.bf16.msra.mxu1 %v761_v16  ;;  %v6296_v22 = vld [vmem:[#allocation11 + $0x54] sm:$0xf0] }
 0x168   :  { %v758_v34 = vpack.c.bf16 %v726_v31, %v725_v33  ;;  %v288_v33 = vld [vmem:[#allocation8 + $0xa8] sm:$0xff] }
 0x169   :  { %960 = vmatpush.bf16.msra.mxu3 %v762_v20  ;;  %v5979_v20 = vld [vmem:[#allocation11 + $0x50] sm:$0xf] }
 0x16b   :  { %863 = vmatpush.bf16.msra.mxu1 %v759_v41 }
 0x16d   :  { %v7508_v37 = vpop.f32.mrf.mxu0  ;;  %961 = vmatpush.bf16.msra.mxu3 %v760_v30 }
 0x16f   :  { %864 = vmatpush.bf16.msra.mxu1 %v757_v32 }
 0x171   :  { %962 = vmatpush.bf16.msra.mxu3 %v758_v34 }
 0x173   :  { %865 = vmatpush.bf16.msra.mxu1 %v755_v0 }
 0x175   :  { %v7513_v47 = vpop.f32.mrf.mxu0  ;;  %963 = vmatpush.bf16.msra.mxu3 %v756_v7  ;;  %v296_v7 = vld [vmem:[#allocation8 + $0xe8] sm:$0xff] }
 0x177   :  { %866 = vmatpush.bf16.msra.mxu1 %v753_v48 }
 0x179   :  { %964 = vmatpush.bf16.msra.mxu3 %v754_v52  ;;  %v6294_v52 = vld [vmem:[#allocation11 + $0x44] sm:$0xf0] }
 0x17a   :  { %v7556_v57 = vor.u32 %v6294_v52, %v5971_v50 }
 0x17b   :  { %867 = vmatpush.bf16.msra.mxu1 %v751_v24  ;;  %v6288_v24 = vld [vmem:[#allocation11 + $0x14] sm:$0xf0] }
 0x17c   :  { %v7544_v26 = vor.u32 %v6288_v24, %v5947_v21  ;;  %v7572_v21 = vor.u32 %v6296_v22, %v5979_v20 }
 0x17d   :  { %v7527_v0 = vpop.f32.mrf.mxu0  ;;  %965 = vmatpush.bf16.msra.mxu3 %v752_v29  ;;  %v5963_v29 = vld [vmem:[#allocation11 + $0x30] sm:$0xf] }
 0x17e   :  { %v7552_v48 = vor.u32 %v6292_v43, %v5963_v29  ;;  %v285_v29 = vld [vmem:[#allocation8 + $0x90] sm:$0xff]  ;;  %v465_v43 = vadd.f32 %v7527_v0, %v288_v33 }
 0x17f   :  { %868 = vmatpush.bf16.msra.mxu1 %v749_v1  ;;  %v6290_v1 = vld [vmem:[#allocation11 + $0x24] sm:$0xf0] }
 0x180   :  { %v7548_v3 = vor.u32 %v6290_v1, %v5955_v62  ;;  %v287_v62 = vld [vmem:[#allocation8 + $0xa0] sm:$0xff] }
 0x181   :  { %966 = vmatpush.bf16.msra.mxu3 %v750_v6 }
 0x182   :  { %869 = vmatmul.bf16.vlgmr.msra.gmra.mxu1 %v7532_v4 }
 0x184   :  { %967 = vmatmul.bf16.vlgmr.msra.gmra.mxu3 %v7532_v4 }
 0x185   :  { %v7542_v19 = vpop.f32.mrf.mxu0 }
 0x186   :  { %v468_v24 = vadd.f32 %v7542_v19, %v289_v27 }
 0x18d   :  { %v469_v25 = vpop.f32.mrf.mxu0 }
 0x18e   :  { %v470_v30 = vadd.f32 %v469_v25, %v290_v11 }
 0x190   :  { %v515_v50 = vmax.f32 %v470_v30, 0.0 }
 0x192   :  { %874 = vmatmul.bf16.gmra.mxu1 %v7544_v26 }
 0x194   :  { %972 = vmatmul.bf16.gmra.mxu3 %v7544_v26 }
 0x195   :  { %v472_v60 = vpop.f32.mrf.mxu0 }
 0x196   :  { %v473_v17 = vadd.f32 %v472_v60, %v291_v54 }
 0x198   :  { %v516_v60 = vmax.f32 %v473_v17, 0.0 }
 0x19d   :  { %v474_v2 = vpop.f32.mrf.mxu0 }
 0x19e   :  { %v475_v59 = vadd.f32 %v474_v2, %v292_v53 }
 0x1a0   :  { %v517_v34 = vmax.f32 %v475_v59, 0.0 }
 0x1a2   :  { %879 = vmatmul.bf16.gmra.mxu1 %v7548_v3  ;;  %v7580_v52 = vadd.f32 1e-07, %v517_v34 }
 0x1a4   :  { %977 = vmatmul.bf16.gmra.mxu3 %v7548_v3  ;;  %v582_v53 = vmul.f32 %v7428_v38, %v7580_v52 }
 0x1a5   :  { %v477_v6 = vpop.f32.mrf.mxu0 }
 0x1a6   :  { %v478_v55 = vadd.f32 %v477_v6, %v293_v39 }
 0x1a8   :  { %v518_v41 = vmax.f32 %v478_v55, 0.0 }
 0x1aa   :  { %v7575_v1 = vadd.f32 1e-07, %v518_v41 }
 0x1ac   :  { %v583_v0 = vmul.f32 %v7428_v38, %v7575_v1 }
 0x1ad   :  { %v479_v45 = vpop.f32.mrf.mxu0 }
 0x1ae   :  { %v480_v46 = vadd.f32 %v479_v45, %v294_v15  ;;  %v284_v15 = vld [vmem:[#allocation8 + $0x88] sm:$0xff] }
 0x1b0   :  { %v519_v12 = vmax.f32 %v480_v46, 0.0  ;;  %v513_v46 = vmax.f32 %v465_v43, 0.0 }
 0x1b2   :  { %884 = vmatmul.bf16.gmra.mxu1 %v7552_v48  ;;  %v7570_v61 = vadd.f32 1e-07, %v519_v12  ;;  %v5931_v12 = vclamps-f32 %v583_v0, 60.0  ;;  %v7606_v22 = vadd.f32 1e-07, %v513_v46 }
 0x1b4   :  { %982 = vmatmul.bf16.gmra.mxu3 %v7552_v48  ;;  %v584_v19 = vmul.f32 %v7428_v38, %v7570_v61 }
 0x1b5   :  { %v482_v49 = vpop.f32.mrf.mxu0 }
 0x1b6   :  { %v483_v36 = vadd.f32 %v482_v49, %v295_v9  ;;  %v286_v49 = vld [vmem:[#allocation8 + $0x98] sm:$0xff]  ;;  %v514_v9 = vmax.f32 %v468_v24, 0.0  ;;  %v5932_v54 = vclamps-f32 %v584_v19, 60.0 }
 0x1b8   :  { %v520_v58 = vmax.f32 %v483_v36, 0.0  ;;  %v7602_v11 = vadd.f32 1e-07, %v514_v9  ;;  %v707_v41 = vmul.f32 1.442695, %v5932_v54 }
 0x1ba   :  { %v7564_v14 = vadd.f32 1e-07, %v520_v58  ;;  %v455_v58 = vadd.f32 %v7504_v42, %v284_v15  ;;  %v5930_v42 = vclamps-f32 %v582_v53, 60.0  ;;  %v579_v33 = vmul.f32 %v7428_v38, %v7602_v11 }
 0x1bc   :  { %v585_v25 = vmul.f32 %v7428_v38, %v7564_v14  ;;  %v509_v24 = vmax.f32 %v455_v58, 0.0  ;;  %v5927_v19 = vclamps-f32 %v579_v33, 60.0 }
 0x1bd   :  { %v484_v5 = vpop.f32.mrf.mxu0 }
 0x1be   :  { %v485_v13 = vadd.f32 %v484_v5, %v296_v7  ;;  %v463_v7 = vadd.f32 %v7513_v47, %v287_v62  ;;  %v578_v62 = vmul.f32 %v7428_v38, %v7606_v22  ;;  %v7625_v9 = vadd.f32 1e-07, %v509_v24 }
 0x1c0   :  { %v521_v40 = vmax.f32 %v485_v13, 0.0  ;;  %v7588_v13 = vadd.f32 1e-07, %v516_v60 }
 0x1c2   :  { %889 = vmatmul.bf16.gmra.mxu1 %v7556_v57  ;;  %v7560_v10 = vadd.f32 1e-07, %v521_v40  ;;  %v458_v40 = vadd.f32 %v7506_v56, %v285_v29  ;;  %v581_v59 = vmul.f32 %v7428_v38, %v7588_v13  ;;  %v283_v56 = vld [vmem:[#allocation8 + $0x80] sm:$0xff] }
 0x1c4   :  { %987 = vmatmul.bf16.gmra.mxu3 %v7556_v57  ;;  %v586_v31 = vmul.f32 %v7428_v38, %v7560_v10  ;;  %v5929_v34 = vclamps-f32 %v581_v59, 60.0 }
 0x1c5   :  { %v487_v44 = vpop.f32.mrf.mxu0 }
 0x1c6   :  { %v488_v51 = vadd.f32 %v487_v44, %v297_v35  ;;  %v5934_v45 = vclamps-f32 %v586_v31, 60.0  ;;  %v5933_v35 = vclamps-f32 %v585_v25, 60.0  ;;  %v460_v44 = vadd.f32 %v7508_v37, %v286_v49  ;;  %v5987_v31 = vld [vmem:[#allocation11 + $0x60] sm:$0xf] }
 0x1c8   :  { %v522_v8 = vmax.f32 %v488_v51, 0.0  ;;  %v711_v47 = vmul.f32 1.442695, %v5934_v45  ;;  %v7597_v51 = vadd.f32 1e-07, %v515_v50  ;;  %v511_v20 = vmax.f32 %v460_v44, 0.0 }
 0x1c9   :  { %v709_v37 = vmul.f32 1.442695, %v5933_v35 }
 0x1ca   :  { %v7562_v16 = vadd.f32 1e-07, %v522_v8  ;;  %v512_v8 = vmax.f32 %v463_v7, 0.0  ;;  %v580_v27 = vmul.f32 %v7428_v38, %v7597_v51  ;;  %v7615_v60 = vadd.f32 1e-07, %v511_v20 }
 0x1cb   :  { %v701_v7 = vmul.f32 1.442695, %v5929_v34 }
 0x1cc   :  { %v587_v28 = vmul.f32 %v7428_v38, %v7562_v16  ;;  %v7611_v30 = vadd.f32 1e-07, %v512_v8 }
 0x1cd   :  { %v489_v32 = vpop.f32.mrf.mxu0 }
 0x1ce   :  { %v490_v63 = vadd.f32 %v489_v32, %v298_v18  ;;  %v5935_v2 = vclamps-f32 %v587_v28, 60.0  ;;  %v510_v18 = vmax.f32 %v458_v40, 0.0  ;;  %v453_v28 = vadd.f32 %v7500_v23, %v283_v56  ;;  %v6298_v32 = vld [vmem:[#allocation11 + $0x64] sm:$0xf0] }
 0x1cf   :  { %v7619_v23 = vor.u32 %v6298_v32, %v5987_v31  ;;  %v577_v50 = vmul.f32 %v7428_v38, %v7611_v30  ;;  %v5926_v40 = vclamps-f32 %v578_v62, 60.0  ;;  %v574_v56 = vmul.f32 %v7428_v38, %v7625_v9 }
 0x1d0   :  { %v523_v6 = vmax.f32 %v490_v63, 0.0  ;;  %v713_v36 = vmul.f32 1.442695, %v5935_v2  ;;  %v705_v63 = vmul.f32 1.442695, %v5931_v12  ;;  %v5928_v2 = vclamps-f32 %v580_v27, 60.0 }
 0x1d1   :  { %v508_v43 = vmax.f32 %v453_v28, 0.0  ;;  %v7621_v45 = vadd.f32 1e-07, %v510_v18  ;;  %v5922_v31 = vclamps-f32 %v574_v56, 60.0  ;;  %v5949_v56 = vld [vmem:[#allocation11 + $0x18] sm:$0xf0] }
 0x1d2   :  { %v7584_v5 = vadd.f32 1e-07, %v523_v6  ;;  %894 = vmatmul.bf16.gmra.mxu1 %v7572_v21  ;;  %6438 = vpow2.f32 %v713_v36  ;;  %v703_v6 = vmul.f32 1.442695, %v5930_v42  ;;  %v699_v44 = vmul.f32 1.442695, %v5928_v2 }
 0x1d3   :  { %6440 = vpow2.f32 %v711_v47  ;;  %v7632_v46 = vadd.f32 1e-07, %v508_v43 }
 0x1d4   :  { %v588_v39 = vmul.f32 %v7428_v38, %v7584_v5  ;;  %992 = vmatmul.bf16.gmra.mxu3 %v7572_v21 }
 0x1d5   :  { %v573_v20 = vmul.f32 %v7428_v38, %v7632_v46 }
 0x1d6   :  { %v5936_v55 = vclamps-f32 %v588_v39, 60.0  ;;  %v576_v39 = vmul.f32 %v7428_v38, %v7615_v60 }
 0x1d7   :  { %v5921_v62 = vclamps-f32 %v573_v20, 60.0 }
 0x1d8   :  { %v715_v17 = vmul.f32 1.442695, %v5936_v55  ;;  %v6439_v25 = vpop.eup %6438  ;;  %v697_v55 = vmul.f32 1.442695, %v5927_v19  ;;  %v5924_v12 = vclamps-f32 %v576_v39, 60.0 }
 0x1d9   :  { %v6441_v29 = vpop.eup %6440  ;;  %v747_v0 = vmul.f32 %v6439_v25, %v7562_v16  ;;  %v575_v16 = vmul.f32 %v7428_v38, %v7621_v45 }
 0x1da   :  { %6442 = vpow2.f32 %v715_v17  ;;  %v746_v53 = vmul.f32 %v6441_v29, %v7560_v10  ;;  %v691_v32 = vmul.f32 1.442695, %v5924_v12 }
 0x1db   :  { %6444 = vpow2.f32 %v709_v37  ;;  %v695_v37 = vmul.f32 1.442695, %v5926_v40  ;;  %v5923_v27 = vclamps-f32 %v575_v16, 60.0 }
 0x1dc   :  { %6446 = vpow2.f32 %v707_v41 }
 0x1dd   :  { %6448 = vpow2.f32 %v705_v63  ;;  %v6300_v63 = vld [vmem:[#allocation11 + $0x74] sm:$0xf0]  ;;  %v689_v38 = vmul.f32 1.442695, %v5923_v27 }
 0x1de   :  { %6450 = vpow2.f32 %v703_v6 }
 0x1df   :  { %6452 = vpow2.f32 %v701_v7 }
 0x1e0   :  { %v6443_v49 = vpop.eup %6442  ;;  %6454 = vpow2.f32 %v699_v44 }
 0x1e1   :  { %v779_v15 = vpack.c.bf16 %v6443_v49, %v6439_v25  ;;  %v748_v35 = vmul.f32 %v6443_v49, %v7584_v5  ;;  %v6445_v36 = vpop.eup %6444  ;;  %v5925_v5 = vclamps-f32 %v577_v50, 60.0  ;;  %6456 = vpow2.f32 %v697_v55  ;;  %v5941_v55 = vld [vmem:[#allocation11 + $0x8] sm:$0xf0] }
 0x1e2   :  { %899 = vmatmul.bf16.gmra.mxu1 %v7619_v23  ;;  %v6447_v54 = vpop.eup %6446  ;;  %v777_v58 = vpack.c.bf16 %v6441_v29, %v6445_v36  ;;  %v745_v8 = vmul.f32 %v6445_v36, %v7564_v14  ;;  %6458 = vpow2.f32 %v695_v37  ;;  %v685_v50 = vmul.f32 1.442695, %v5921_v62  ;;  %v5981_v62 = vld [vmem:[#allocation11 + $0x58] sm:$0xf0] }
 0x1e3   :  { %910 = vmatpush.bf16.msra.mxu2 %v779_v15  ;;  %v780_v47 = vpack.c.bf16 %v748_v35, %v747_v0  ;;  %v6449_v59 = vpop.eup %6448  ;;  %v744_v17 = vmul.f32 %v6447_v54, %v7570_v61  ;;  %v693_v42 = vmul.f32 1.442695, %v5925_v5  ;;  %v5995_v61 = vld [vmem:[#allocation11 + $0x70] sm:$0xf]  ;;  %v6285_v5 = vld [vmem:[#allocation11 + $0x4] sm:$0xf] }
 0x1e4   :  { %997 = vmatmul.bf16.gmra.mxu3 %v7619_v23  ;;  %v778_v10 = vpack.c.bf16 %v746_v53, %v745_v8  ;;  %v6451_v18 = vpop.eup %6450  ;;  %v775_v14 = vpack.c.bf16 %v6447_v54, %v6449_v59  ;;  %v743_v41 = vmul.f32 %v6449_v59, %v7575_v1  ;;  %v687_v1 = vmul.f32 1.442695, %v5922_v31 }
 0x1e5   :  { %1008 = vmatpush.bf16.msrb.mxu1 %v780_v47  ;;  %v6453_v28 = vpop.eup %6452  ;;  %v742_v34 = vmul.f32 %v6451_v18, %v7580_v52  ;;  %6460 = vpow2.f32 %v693_v42  ;;  %v7647_v29 = vor.u32 %v6300_v63, %v5995_v61  ;;  %v7659_v8 = vor.u32 %v6285_v5, %v5941_v55  ;;  %v6291_v42 = vld [vmem:[#allocation11 + $0x34] sm:$0xf] }
 0x1e6   :  { %v776_v33 = vpack.c.bf16 %v744_v17, %v743_v41  ;;  %v6455_v24 = vpop.eup %6454  ;;  %v773_v25 = vpack.c.bf16 %v6451_v18, %v6453_v28  ;;  %v741_v2 = vmul.f32 %v6453_v28, %v7588_v13  ;;  %6462 = vpow2.f32 %v691_v32  ;;  %v5957_v17 = vld [vmem:[#allocation11 + $0x28] sm:$0xf0]  ;;  %v6293_v32 = vld [vmem:[#allocation11 + $0x44] sm:$0xf] }
 0x1e7   :  { %911 = vmatpush.bf16.msra.mxu2 %v777_v58  ;;  %v6457_v6 = vpop.eup %6456  ;;  %v740_v49 = vmul.f32 %v6455_v24, %v7597_v51  ;;  %6464 = vpow2.f32 %v689_v38 }
 0x1e8   :  { %v774_v43 = vpack.c.bf16 %v742_v34, %v741_v2  ;;  %v6459_v52 = vpop.eup %6458  ;;  %v771_v19 = vpack.c.bf16 %v6455_v24, %v6457_v6  ;;  %v739_v7 = vmul.f32 %v6457_v6, %v7602_v11  ;;  %6466 = vpow2.f32 %v687_v1  ;;  %v6295_v24 = vld [vmem:[#allocation11 + $0x54] sm:$0xf]  ;;  %v6308_v6 = vld [vmem:[#allocation14 + $0x38] sm:$0xff]  ;;  %v6297_v1 = vld [vmem:[#allocation11 + $0x64] sm:$0xf] }
 0x1e9   :  { %1009 = vmatpush.bf16.msrb.mxu1 %v778_v10  ;;  %v738_v0 = vmul.f32 %v6459_v52, %v7606_v22  ;;  %6468 = vpow2.f32 %v685_v50  ;;  %v6289_v10 = vld [vmem:[#allocation11 + $0x24] sm:$0xf]  ;;  %v7699_v38 = vor.u32 %v6295_v24, %v5981_v62 }
 0x1ea   :  { %v772_v13 = vpack.c.bf16 %v740_v49, %v739_v7  ;;  %v7675_v18 = vor.u32 %v6289_v10, %v5957_v17  ;;  %v6307_v50 = vld [vmem:[#allocation14 + $0x30] sm:$0xff]  ;;  %v6306_v7 = vld [vmem:[#allocation14 + $0x28] sm:$0xff] }
 0x1eb   :  { %912 = vmatpush.bf16.msra.mxu2 %v775_v14  ;;  %v6461_v15 = vpop.eup %6460  ;;  %v5965_v14 = vld [vmem:[#allocation11 + $0x38] sm:$0xf0] }
 0x1ec   :  { %v6463_v35 = vpop.eup %6462  ;;  %v769_v51 = vpack.c.bf16 %v6459_v52, %v6461_v15  ;;  %v737_v36 = vmul.f32 %v6461_v15, %v7611_v30  ;;  %v7683_v41 = vor.u32 %v6291_v42, %v5965_v14  ;;  %v6299_v15 = vld [vmem:[#allocation11 + $0x74] sm:$0xf] }
 0x1ed   :  { %1010 = vmatpush.bf16.msrb.mxu1 %v776_v33  ;;  %v6465_v39 = vpop.eup %6464  ;;  %v736_v11 = vmul.f32 %v6463_v35, %v7615_v60  ;;  %v5973_v33 = vld [vmem:[#allocation11 + $0x48] sm:$0xf0] }
 0x1ee   :  { %v770_v40 = vpack.c.bf16 %v738_v0, %v737_v36  ;;  %v6467_v44 = vpop.eup %6466  ;;  %v767_v47 = vpack.c.bf16 %v6463_v35, %v6465_v39  ;;  %v735_v53 = vmul.f32 %v6465_v39, %v7621_v45  ;;  %v7691_v34 = vor.u32 %v6293_v32, %v5973_v33  ;;  %v6305_v0 = vld [vmem:[#allocation14 + $0x20] sm:$0xff]  ;;  %v6304_v39 = vld [vmem:[#allocation14 + $0x18] sm:$0xff] }
 0x1ef   :  { %913 = vmatpush.bf16.msra.mxu2 %v773_v25  ;;  %v6469_v54 = vpop.eup %6468  ;;  %v734_v16 = vmul.f32 %v6467_v44, %v7625_v9  ;;  %v6287_v9 = vld [vmem:[#allocation11 + $0x14] sm:$0xf] }
 0x1f0   :  { %v768_v22 = vpack.c.bf16 %v736_v11, %v735_v53  ;;  %v765_v58 = vpack.c.bf16 %v6467_v44, %v6469_v54  ;;  %v733_v30 = vmul.f32 %v6469_v54, %v7632_v46  ;;  %v7667_v12 = vor.u32 %v6287_v9, %v5949_v56  ;;  %v6302_v44 = vld [vmem:[#allocation14 + $0x8] sm:$0xff]  ;;  %v6301_v53 = vld [vmem:[#allocation14] sm:$0xff] }
 0x1f1   :  { %1011 = vmatpush.bf16.msrb.mxu1 %v774_v43  ;;  %v5989_v43 = vld [vmem:[#allocation11 + $0x68] sm:$0xf0] }
 0x1f2   :  { %904 = vmatmul.bf16.gmra.mxu1 %v7647_v29  ;;  %v766_v60 = vpack.c.bf16 %v734_v16, %v733_v30  ;;  %v7707_v49 = vor.u32 %v6297_v1, %v5989_v43 }
 0x1f3   :  { %914 = vmatpush.bf16.msra.mxu2 %v771_v19 }
 0x1f4   :  { %1002 = vmatmul.bf16.gmra.mxu3 %v7647_v29  ;;  %10854 = vst [vmem:[#allocation28_spill] sm:$0xff] %v7707_v49 }
 0x1f5   :  { %1012 = vmatpush.bf16.msrb.mxu1 %v772_v13  ;;  %v5997_v13 = vld [vmem:[#allocation11 + $0x78] sm:$0xf0] }
 0x1f6   :  { %v7715_v35 = vor.u32 %v6299_v15, %v5997_v13  ;;  %v6887_v13 = vld [vmem:[#allocation5 + $0x8] sm:$0xff] }
 0x1f7   :  { %915 = vmatpush.bf16.msra.mxu2 %v769_v51 }
 0x1f8   :  { %10855 = vst [vmem:[#allocation29_spill] sm:$0xff] %v7715_v35 }
 0x1f9   :  { %1013 = vmatpush.bf16.msrb.mxu1 %v770_v40  ;;  %v6303_v40 = vld [vmem:[#allocation14 + $0x10] sm:$0xff] }
 0x1fb   :  { %916 = vmatpush.bf16.msra.mxu2 %v767_v47 }
 0x1fd   :  { %1014 = vmatpush.bf16.msrb.mxu1 %v768_v22 }
 0x1ff   :  { %917 = vmatpush.bf16.msra.mxu2 %v765_v58  ;;  %v7661_v59 = vpop.f32.mrf.mxu1 }
 0x201   :  { %1015 = vmatpush.bf16.msrb.mxu1 %v766_v60 }
 0x202   :  { %918 = vmatmul.bf16.vlgmr.msra.gmra.mxu2 %v7659_v8 }
 0x203   :  { %1229 = vmatpush.bf16.msrb.mxu2 %v6308_v6 }
 0x204   :  { %1016 = vmatmul.bf16.vlgmr.msrb.gmra.mxu1 %v7659_v8 }
 0x207   :  { %v7665_v45 = vpop.f32.mrf.mxu1  ;;  %1230 = vmatpush.bf16.msrb.mxu2 %v6307_v50  ;;  %v968_v51 = vpop.f32.mrf.mxu3 }
 0x20b   :  { %1231 = vmatpush.bf16.msrb.mxu2 %v6306_v7  ;;  %v6886_v7 = vld [vmem:[#allocation5] sm:$0xff] }
 0x20f   :  { %v7669_v37 = vpop.f32.mrf.mxu1  ;;  %1232 = vmatpush.bf16.msrb.mxu2 %v6305_v0  ;;  %v970_v47 = vpop.f32.mrf.mxu3 }
 0x212   :  { %923 = vmatmul.bf16.gmra.mxu2 %v7667_v12 }
 0x213   :  { %1233 = vmatpush.bf16.msrb.mxu2 %v6304_v39 }
 0x214   :  { %1021 = vmatmul.bf16.gmra.mxu1 %v7667_v12 }
 0x217   :  { %v7673_v46 = vpop.f32.mrf.mxu1  ;;  %1234 = vmatpush.bf16.msrb.mxu2 %v6303_v40  ;;  %v973_v22 = vpop.f32.mrf.mxu3 }
 0x21b   :  { %1235 = vmatpush.bf16.msrb.mxu2 %v6302_v44 }
 0x21f   :  { %v7677_v20 = vpop.f32.mrf.mxu1  ;;  %1236 = vmatpush.bf16.msrb.mxu2 %v6301_v53  ;;  %v975_v30 = vpop.f32.mrf.mxu3 }
 0x222   :  { %928 = vmatmul.bf16.gmra.mxu2 %v7675_v18 }
 0x224   :  { %1026 = vmatmul.bf16.gmra.mxu1 %v7675_v18 }
 0x227   :  { %v7681_v27 = vpop.f32.mrf.mxu1  ;;  %v978_v33 = vpop.f32.mrf.mxu3 }
 0x22f   :  { %v7685_v28 = vpop.f32.mrf.mxu1  ;;  %v980_v40 = vpop.f32.mrf.mxu3 }
 0x232   :  { %933 = vmatmul.bf16.gmra.mxu2 %v7683_v41 }
 0x234   :  { %1031 = vmatmul.bf16.gmra.mxu1 %v7683_v41 }
 0x237   :  { %v7689_v31 = vpop.f32.mrf.mxu1 }
 0x23f   :  { %v7693_v61 = vpop.f32.mrf.mxu1 }
 0x242   :  { %938 = vmatmul.bf16.gmra.mxu2 %v7691_v34 }
 0x244   :  { %1036 = vmatmul.bf16.gmra.mxu1 %v7691_v34 }
 0x247   :  { %v7697_v63 = vpop.f32.mrf.mxu1 }
 0x24f   :  { %v7701_v25 = vpop.f32.mrf.mxu1 }
 0x252   :  { %943 = vmatmul.bf16.gmra.mxu2 %v7699_v38 }
 0x254   :  { %1041 = vmatmul.bf16.gmra.mxu1 %v7699_v38 }
 0x257   :  { %v7705_v2 = vpop.f32.mrf.mxu1 }
 0x25f   :  { %v7709_v52 = vpop.f32.mrf.mxu1 }
 0x262   :  { %948 = vmatmul.bf16.gmra.mxu2 %v7707_v49 }
 0x264   :  { %1046 = vmatmul.bf16.gmra.mxu1 %v7707_v49 }
 0x267   :  { %v7713_v19 = vpop.f32.mrf.mxu1 }
 0x26f   :  { %v7717_v36 = vpop.f32.mrf.mxu1 }
 0x272   :  { %953 = vmatmul.bf16.gmra.mxu2 %v7715_v35 }
 0x274   :  { %1051 = vmatmul.bf16.gmra.mxu1 %v7715_v35 }
 0x277   :  { %v7721_v11 = vpop.f32.mrf.mxu1 }
 0x281   :  { %v1017_v54 = vpop.f32.mrf.mxu1 }
 0x282   :  { %v1018_v56 = vadd.f32 %v1017_v54, %v968_v51 }
 0x285   :  { %v919_v16 = vpop.f32.mrf.mxu2 }
 0x286   :  { %v920_v5 = vadd.f32 %v919_v16, %v7661_v59 }
 0x288   :  { %vm1057_vm0 = vcmp.gt.f32.partialorder %v920_v5, 0.0 }
 0x289   :  { %v1073_v55 = vsel %vm1057_vm0, %v920_v5, 1.0  ;;  %v1019_v58 = vpop.f32.mrf.mxu1 }
 0x28a   :  { %6470 = vrcp.f32 %v1073_v55  ;;  %v1020_v24 = vadd.f32 %v1019_v58, %v970_v47 }
 0x28d   :  { %v921_v60 = vpop.f32.mrf.mxu2 }
 0x28e   :  { %v922_v9 = vadd.f32 %v921_v60, %v7665_v45 }
 0x290   :  { %vm1058_vm1 = vcmp.gt.f32.partialorder %v922_v9, 0.0  ;;  %v6471_v42 = vpop.eup %6470 }
 0x291   :  { %v1074_v10 = vsel %vm1058_vm1, %v922_v9, 1.0  ;;  %v1022_v17 = vpop.f32.mrf.mxu1  ;;  %v1105_v14 = vmul.f32 %v6471_v42, %v1018_v56  ;;  %v983_v42 = vpop.f32.mrf.mxu3 }
 0x292   :  { %6472 = vrcp.f32 %v1074_v10  ;;  %v1023_v44 = vadd.f32 %v1022_v17, %v973_v22  ;;  %v6888_v17 = vld [vmem:[#allocation5 + $0x10] sm:$0xff] }
 0x293   :  { %v1121_v6 = vsel %vm1057_vm0, %v1105_v14, 0.0 }
 0x294   :  { %v1137_v15 = vadd.f32 %v6886_v7, %v1121_v6 }
 0x295   :  { %v924_v32 = vpop.f32.mrf.mxu2 }
 0x296   :  { %v925_v59 = vadd.f32 %v924_v32, %v7669_v37  ;;  %v6889_v32 = vld [vmem:[#allocation5 + $0x18] sm:$0xff] }
 0x298   :  { %v6473_v62 = vpop.eup %6472  ;;  %vm1059_vm2 = vcmp.gt.f32.partialorder %v925_v59, 0.0 }
 0x299   :  { %v1106_v1 = vmul.f32 %v6473_v62, %v1020_v24  ;;  %v1075_v45 = vsel %vm1059_vm2, %v925_v59, 1.0  ;;  %v1024_v43 = vpop.f32.mrf.mxu1 }
 0x29a   :  { %6474 = vrcp.f32 %v1075_v45  ;;  %v1025_v58 = vadd.f32 %v1024_v43, %v975_v30  ;;  %v985_v43 = vpop.f32.mrf.mxu3 }
 0x29b   :  { %v1122_v50 = vsel %vm1058_vm1, %v1106_v1, 0.0 }
 0x29c   :  { %v1138_v0 = vadd.f32 %v6887_v13, %v1122_v50 }
 0x29d   :  { %v926_v51 = vpop.f32.mrf.mxu2 }
 0x29e   :  { %v927_v37 = vadd.f32 %v926_v51, %v7673_v46  ;;  %v1153_v39 = vpack.c.bf16 %v1138_v0, %v1137_v15 }
 0x2a0   :  { %vm1060_vm3 = vcmp.gt.f32.partialorder %v927_v37, 0.0  ;;  %1237 = vmatmul.bf16.vlgmr.msrb.gmra.mxu2 %v1153_v39  ;;  %v6475_v54 = vpop.eup %6474 }
 0x2a1   :  { %v1076_v47 = vsel %vm1060_vm3, %v927_v37, 1.0  ;;  %v1027_v53 = vpop.f32.mrf.mxu1  ;;  %v1107_v16 = vmul.f32 %v6475_v54, %v1023_v44  ;;  %v6890_v44 = vld [vmem:[#allocation5 + $0x20] sm:$0xff] }
 0x2a2   :  { %6476 = vrcp.f32 %v1076_v47  ;;  %v1028_v6 = vadd.f32 %v1027_v53, %v978_v33  ;;  %v6891_v53 = vld [vmem:[#allocation5 + $0x28] sm:$0xff] }
 0x2a3   :  { %v1123_v10 = vsel %vm1059_vm2, %v1107_v16, 0.0  ;;  %v988_v16 = vpop.f32.mrf.mxu3 }
 0x2a4   :  { %v1139_v14 = vadd.f32 %v6888_v17, %v1123_v10 }
 0x2a5   :  { %v929_v5 = vpop.f32.mrf.mxu2 }
 0x2a6   :  { %v930_v55 = vadd.f32 %v929_v5, %v7677_v20 }
 0x2a8   :  { %v6477_v60 = vpop.eup %6476  ;;  %vm1061_vm4 = vcmp.gt.f32.partialorder %v930_v55, 0.0 }
 0x2a9   :  { %v1108_v9 = vmul.f32 %v6477_v60, %v1025_v58  ;;  %v1077_v46 = vsel %vm1061_vm4, %v930_v55, 1.0  ;;  %v1029_v56 = vpop.f32.mrf.mxu1 }
 0x2aa   :  { %6478 = vrcp.f32 %v1077_v46  ;;  %v1030_v13 = vadd.f32 %v1029_v56, %v980_v40 }
 0x2ab   :  { %v1124_v22 = vsel %vm1060_vm3, %v1108_v9, 0.0 }
 0x2ac   :  { %v1140_v24 = vadd.f32 %v6889_v32, %v1124_v22  ;;  %v990_v22 = vpop.f32.mrf.mxu3 }
 0x2ad   :  { %v931_v62 = vpop.f32.mrf.mxu2 }
 0x2ae   :  { %v932_v20 = vadd.f32 %v931_v62, %v7681_v27  ;;  %v1154_v30 = vpack.c.bf16 %v1140_v24, %v1139_v14 }
 0x2b0   :  { %vm1062_vm5 = vcmp.gt.f32.partialorder %v932_v20, 0.0  ;;  %1242 = vmatmul.bf16.gmra.mxu2 %v1154_v30  ;;  %v6479_v59 = vpop.eup %6478 }
 0x2b1   :  { %v1078_v1 = vsel %vm1062_vm5, %v932_v20, 1.0  ;;  %v1032_v45 = vpop.f32.mrf.mxu1  ;;  %v1109_v50 = vmul.f32 %v6479_v59, %v1028_v6  ;;  %v6892_v20 = vld [vmem:[#allocation5 + $0x30] sm:$0xff]  ;;  %v6893_v6 = vld [vmem:[#allocation5 + $0x38] sm:$0xff] }
 0x2b2   :  { %6480 = vrcp.f32 %v1078_v1  ;;  %v1033_v58 = vadd.f32 %v1032_v45, %v983_v42 }
 0x2b3   :  { %v1125_v39 = vsel %vm1061_vm4, %v1109_v50, 0.0 }
 0x2b4   :  { %v1141_v47 = vadd.f32 %v6890_v44, %v1125_v39 }
 0x2b5   :  { %v934_v7 = vpop.f32.mrf.mxu2 }
 0x2b6   :  { %v935_v15 = vadd.f32 %v934_v7, %v7685_v28 }
 0x2b8   :  { %v6481_v0 = vpop.eup %6480  ;;  %vm1063_vm6 = vcmp.gt.f32.partialorder %v935_v15, 0.0 }
 0x2b9   :  { %v1110_v51 = vmul.f32 %v6481_v0, %v1030_v13  ;;  %v1079_v27 = vsel %vm1063_vm6, %v935_v15, 1.0  ;;  %v1034_v37 = vpop.f32.mrf.mxu1 }
 0x2ba   :  { %6482 = vrcp.f32 %v1079_v27  ;;  %v1035_v17 = vadd.f32 %v1034_v37, %v985_v43  ;;  %v993_v43 = vpop.f32.mrf.mxu3 }
 0x2bb   :  { %v1126_v33 = vsel %vm1062_vm5, %v1110_v51, 0.0 }
 0x2bc   :  { %v1142_v54 = vadd.f32 %v6891_v53, %v1126_v33 }
 0x2bd   :  { %v936_v5 = vpop.f32.mrf.mxu2 }
 0x2be   :  { %v937_v28 = vadd.f32 %v936_v5, %v7689_v31  ;;  %v1155_v40 = vpack.c.bf16 %v1142_v54, %v1141_v47 }
 0x2c0   :  { %vm1064_vm7 = vcmp.gt.f32.partialorder %v937_v28, 0.0  ;;  %1247 = vmatmul.bf16.gmra.mxu2 %v1155_v40  ;;  %v6483_v55 = vpop.eup %6482 }
 0x2c1   :  { %v1080_v60 = vsel %vm1064_vm7, %v937_v28, 1.0  ;;  %v1037_v9 = vpop.f32.mrf.mxu1  ;;  %v1111_v46 = vmul.f32 %v6483_v55, %v1033_v58  ;;  %v6895_v28 = vld [vmem:[#allocation5 + $0x48] sm:$0xff] }
 0x2c2   :  { %6484 = vrcp.f32 %v1080_v60  ;;  %v1038_v7 = vadd.f32 %v1037_v9, %v988_v16  ;;  %v995_v47 = vpop.f32.mrf.mxu3  ;;  %v6894_v16 = vld [vmem:[#allocation5 + $0x40] sm:$0xff] }
 0x2c3   :  { %v1127_v24 = vsel %vm1063_vm6, %v1111_v46, 0.0 }
 0x2c4   :  { %v1143_v30 = vadd.f32 %v6892_v20, %v1127_v24  ;;  %v6896_v20 = vld [vmem:[#allocation5 + $0x50] sm:$0xff] }
 0x2c5   :  { %v939_v56 = vpop.f32.mrf.mxu2 }
 0x2c6   :  { %v940_v10 = vadd.f32 %v939_v56, %v7693_v61 }
 0x2c8   :  { %v6485_v14 = vpop.eup %6484  ;;  %vm1065_vm8 = vcmp.gt.f32.partialorder %v940_v10, 0.0 }
 0x2c9   :  { %v1112_v32 = vmul.f32 %v6485_v14, %v1035_v17  ;;  %v1081_v31 = vsel %vm1065_vm8, %v940_v10, 1.0  ;;  %v1039_v62 = vpop.f32.mrf.mxu1 }
 0x2ca   :  { %6486 = vrcp.f32 %v1081_v31  ;;  %v1040_v27 = vadd.f32 %v1039_v62, %v990_v22  ;;  %v998_v56 = vpop.f32.mrf.mxu3 }
 0x2cb   :  { %v1128_v42 = vsel %vm1064_vm7, %v1112_v32, 0.0 }
 0x2cc   :  { %v1144_v1 = vadd.f32 %v6893_v6, %v1128_v42  ;;  %v6897_v6 = vld [vmem:[#allocation5 + $0x58] sm:$0xff] }
 0x2cd   :  { %v941_v45 = vpop.f32.mrf.mxu2 }
 0x2ce   :  { %v942_v61 = vadd.f32 %v941_v45, %v7697_v63  ;;  %v1156_v59 = vpack.c.bf16 %v1144_v1, %v1143_v30 }
 0x2d0   :  { %vm1066_vm9 = vcmp.gt.f32.partialorder %v942_v61, 0.0  ;;  %1252 = vmatmul.bf16.gmra.mxu2 %v1156_v59  ;;  %v6487_v13 = vpop.eup %6486 }
 0x2d1   :  { %v1082_v50 = vsel %vm1066_vm9, %v942_v61, 1.0  ;;  %v1042_v15 = vpop.f32.mrf.mxu1  ;;  %v1113_v0 = vmul.f32 %v6487_v13, %v1038_v7 }
 0x2d2   :  { %6488 = vrcp.f32 %v1082_v50  ;;  %v1043_v55 = vadd.f32 %v1042_v15, %v993_v43  ;;  %v1000_v43 = vpop.f32.mrf.mxu3 }
 0x2d3   :  { %v1129_v33 = vsel %vm1065_vm8, %v1113_v0, 0.0 }
 0x2d4   :  { %v1145_v5 = vadd.f32 %v6894_v16, %v1129_v33  ;;  %v6899_v16 = vld [vmem:[#allocation5 + $0x68] sm:$0xff] }
 0x2d5   :  { %v944_v51 = vpop.f32.mrf.mxu2 }
 0x2d6   :  { %v945_v37 = vadd.f32 %v944_v51, %v7701_v25 }
 0x2d8   :  { %v6489_v39 = vpop.eup %6488  ;;  %vm1067_vm10 = vcmp.gt.f32.partialorder %v945_v37, 0.0 }
 0x2d9   :  { %v1083_v63 = vsel %vm1067_vm10, %v945_v37, 1.0  ;;  %v1114_v44 = vmul.f32 %v6489_v39, %v1040_v27  ;;  %v1044_v53 = vpop.f32.mrf.mxu1 }
 0x2da   :  { %6490 = vrcp.f32 %v1083_v63  ;;  %v1045_v14 = vadd.f32 %v1044_v53, %v995_v47  ;;  %v1003_v39 = vpop.f32.mrf.mxu3  ;;  %v6898_v53 = vld [vmem:[#allocation5 + $0x60] sm:$0xff] }
 0x2db   :  { %v1130_v54 = vsel %vm1066_vm9, %v1114_v44, 0.0 }
 0x2dc   :  { %v1146_v40 = vadd.f32 %v6895_v28, %v1130_v54 }
 0x2dd   :  { %v946_v58 = vpop.f32.mrf.mxu2 }
 0x2de   :  { %v947_v60 = vadd.f32 %v946_v58, %v7705_v2  ;;  %v1157_v25 = vpack.c.bf16 %v1146_v40, %v1145_v5 }
 0x2e0   :  { %vm1068_vm11 = vcmp.gt.f32.partialorder %v947_v60, 0.0  ;;  %1257 = vmatmul.bf16.gmra.mxu2 %v1157_v25  ;;  %v6491_v46 = vpop.eup %6490 }
 0x2e1   :  { %v1084_v9 = vsel %vm1068_vm11, %v947_v60, 1.0  ;;  %v1047_v10 = vpop.f32.mrf.mxu1  ;;  %v1115_v22 = vmul.f32 %v6491_v46, %v1043_v55 }
 0x2e2   :  { %6492 = vrcp.f32 %v1084_v9  ;;  %v1048_v7 = vadd.f32 %v1047_v10, %v998_v56  ;;  %v1005_v9 = vpop.f32.mrf.mxu3 }
 0x2e3   :  { %v1131_v24 = vsel %vm1067_vm10, %v1115_v22, 0.0 }
 0x2e4   :  { %v1147_v30 = vadd.f32 %v6896_v20, %v1131_v24  ;;  %v6901_v24 = vld [vmem:[#allocation5 + $0x78] sm:$0xff] }
 0x2e5   :  { %v949_v17 = vpop.f32.mrf.mxu2  ;;  %v7774_v20 = vld [vmem:[%s10741_s7] ss:$0 sm:$0xff] }
 0x2e6   :  { %v950_v32 = vadd.f32 %v949_v17, %v7709_v52 }
 0x2e8   :  { %v6493_v31 = vpop.eup %6492  ;;  %vm1069_vm12 = vcmp.gt.f32.partialorder %v950_v32, 0.0 }
 0x2e9   :  { %v1085_v2 = vsel %vm1069_vm12, %v950_v32, 1.0  ;;  %v1116_v62 = vmul.f32 %v6493_v31, %v1045_v14  ;;  %v1049_v52 = vpop.f32.mrf.mxu1  ;;  %v6900_v32 = vld [vmem:[#allocation5 + $0x70] sm:$0xff] }
 0x2ea   :  { %6494 = vrcp.f32 %v1085_v2  ;;  %v1050_v51 = vadd.f32 %v1049_v52, %v1000_v43 }
 0x2eb   :  { %v1132_v42 = vsel %vm1068_vm11, %v1116_v62, 0.0  ;;  %v1280_v62 = vlaneseq }
 0x2ec   :  { %v1148_v1 = vadd.f32 %v6897_v6, %v1132_v42  ;;  %v7280_v6 = vmov 0.0  }
 0x2ed   :  { %v951_v45 = vpop.f32.mrf.mxu2  ;;  %v7769_v42 = vand.u32 127, %v1280_v62 }
 0x2ee   :  { %v952_v61 = vadd.f32 %v951_v45, %v7713_v19  ;;  %v1158_v59 = vpack.c.bf16 %v1148_v1, %v1147_v30 }
 0x2ef   :  { %vm1282_vm0 = vcmp.lt.s32.totalorder %v7769_v42, 64 }
 0x2f0   :  { %vm1070_vm13 = vcmp.gt.f32.partialorder %v952_v61, 0.0  ;;  %1262 = vmatmul.bf16.gmra.mxu2 %v1158_v59  ;;  %v6495_v15 = vpop.eup %6494  ;;  %v7778_v1 = vsel %vm1282_vm0, 1.0, %v7280_v6 }
 0x2f1   :  { %v1086_v50 = vsel %vm1070_vm13, %v952_v61, 1.0  ;;  %v1117_v13 = vmul.f32 %v6495_v15, %v1048_v7  ;;  %v1052_v33 = vpop.f32.mrf.mxu1  ;;  %10856 = vst [vmem:[#allocation30_spill] sm:$0xff] %v7778_v1 }
 0x2f2   :  { %6496 = vrcp.f32 %v1086_v50  ;;  %v1053_v60 = vadd.f32 %v1052_v33, %v1003_v39 }
 0x2f3   :  { %v1133_v19 = vsel %vm1069_vm12, %v1117_v13, 0.0 }
 0x2f4   :  { %v1149_v54 = vadd.f32 %v6898_v53, %v1133_v19 }
 0x2f5   :  { %v954_v0 = vpop.f32.mrf.mxu2 }
 0x2f6   :  { %v955_v27 = vadd.f32 %v954_v0, %v7717_v36 }
 0x2f8   :  { %v6497_v37 = vpop.eup %6496  ;;  %vm1071_vm14 = vcmp.gt.f32.partialorder %v955_v27, 0.0 }
 0x2f9   :  { %v1087_v63 = vsel %vm1071_vm14, %v955_v27, 1.0  ;;  %v1118_v44 = vmul.f32 %v6497_v37, %v1050_v51  ;;  %v1054_v55 = vpop.f32.mrf.mxu1 }
 0x2fa   :  { %6498 = vrcp.f32 %v1087_v63  ;;  %v1055_v56 = vadd.f32 %v1054_v55, %v1005_v9 }
 0x2fb   :  { %v1134_v47 = vsel %vm1070_vm13, %v1118_v44, 0.0 }
 0x2fc   :  { %v1150_v5 = vadd.f32 %v6899_v16, %v1134_v47 }
 0x2fd   :  { %v956_v28 = vpop.f32.mrf.mxu2 }
 0x2fe   :  { %v957_v40 = vadd.f32 %v956_v28, %v7721_v11  ;;  %v1159_v36 = vpack.c.bf16 %v1150_v5, %v1149_v54 }
 0x300   :  { %vm1072_vm15 = vcmp.gt.f32.partialorder %v957_v40, 0.0  ;;  %1267 = vmatmul.bf16.gmra.mxu2 %v1159_v36  ;;  %v6499_v25 = vpop.eup %6498 }
 0x301   :  { %v1088_v58 = vsel %vm1072_vm15, %v957_v40, 1.0  ;;  %v1119_v46 = vmul.f32 %v6499_v25, %v1053_v60 }
 0x302   :  { %6500 = vrcp.f32 %v1088_v58 }
 0x303   :  { %v1135_v22 = vsel %vm1071_vm14, %v1119_v46, 0.0 }
 0x304   :  { %v1151_v31 = vadd.f32 %v6900_v32, %v1135_v22 }
 0x308   :  { %v6501_v10 = vpop.eup %6500 }
 0x309   :  { %v1120_v17 = vmul.f32 %v6501_v10, %v1055_v56 }
 0x30b   :  { %v1136_v14 = vsel %vm1072_vm15, %v1120_v17, 0.0 }
 0x30c   :  { %v1152_v11 = vadd.f32 %v6901_v24, %v1136_v14 }
 0x30e   :  { %v1160_v2 = vpack.c.bf16 %v1152_v11, %v1151_v31 }
 0x310   :  { %1272 = vmatmul.bf16.gmra.mxu2 %v1160_v2 }
 0x323   :  { %v1238_v30 = vpop.f32.mrf.mxu2 }
 0x324   :  { %v1239_v45 = vadd.f32 %v7774_v20, %v1238_v30 }
 0x326   :  { %v1285_v61 = vmul.f32 %v7778_v1, %v1239_v45 }
 0x328   :  { %1301 = vadd.xlane.f32.xlu0 %v1285_v61 }
 0x32b   :  { %v1240_v59 = vpop.f32.mrf.mxu2 }
 0x32c   :  { %v1241_v43 = vadd.f32 %v7774_v20, %v1240_v59 }
 0x32e   :  { %v1286_v52 = vmul.f32 %v7778_v1, %v1241_v43 }
 0x330   :  { %1303 = vadd.xlane.f32.xlu0 %v1286_v52 }
 0x333   :  { %v1243_v50 = vpop.f32.mrf.mxu2 }
 0x334   :  { %v1244_v7 = vadd.f32 %v7774_v20, %v1243_v50 }
 0x336   :  { %v1287_v15 = vmul.f32 %v7778_v1, %v1244_v7 }
 0x338   :  { %1305 = vadd.xlane.f32.xlu1 %v1287_v15 }
 0x33b   :  { %v1245_v13 = vpop.f32.mrf.mxu2 }
 0x33c   :  { %v1246_v0 = vadd.f32 %v7774_v20, %v1245_v13 }
 0x33e   :  { %v1288_v51 = vmul.f32 %v7778_v1, %v1246_v0 }
 0x340   :  { %1307 = vadd.xlane.f32.xlu1 %v1288_v51 }
 0x343   :  { %v1248_v27 = vpop.f32.mrf.mxu2 }
 0x344   :  { %v1249_v37 = vadd.f32 %v7774_v20, %v1248_v27 }
 0x346   :  { %v1289_v39 = vmul.f32 %v7778_v1, %v1249_v37 }
 0x348   :  { %1309 = vadd.xlane.f32.xlu2 %v1289_v39 }
 0x34b   :  { %v1250_v33 = vpop.f32.mrf.mxu2 }
 0x34c   :  { %v7791_v19 = vadd.f32 %v7774_v20, %v1250_v33 }
 0x34e   :  { %v1290_v63 = vmul.f32 %v7778_v1, %v7791_v19 }
 0x350   :  { %1311 = vadd.xlane.f32.xlu2 %v1290_v63 }
 0x353   :  { %v1253_v44 = vpop.f32.mrf.mxu2 }
 0x354   :  { %v7796_v47 = vadd.f32 %v7774_v20, %v1253_v44 }
 0x356   :  { %v1291_v53 = vmul.f32 %v7778_v1, %v7796_v47 }
 0x358   :  { %1313 = vadd.xlane.f32.xlu0 %v1291_v53 }
 0x35b   :  { %v1255_v54 = vpop.f32.mrf.mxu2 }
 0x35c   :  { %v7801_v16 = vadd.f32 %v7774_v20, %v1255_v54 }
 0x35e   :  { %v1292_v5 = vmul.f32 %v7778_v1, %v7801_v16 }
 0x360   :  { %1315 = vadd.xlane.f32.xlu1 %v1292_v5 }
 0x363   :  { %v1258_v28 = vpop.f32.mrf.mxu2 }
 0x364   :  { %v7806_v40 = vadd.f32 %v7774_v20, %v1258_v28 }
 0x366   :  { %v1293_v36 = vmul.f32 %v7778_v1, %v7806_v40 }
 0x368   :  { %1317 = vadd.xlane.f32.xlu1 %v1293_v36 }
 0x36b   :  { %v1260_v58 = vpop.f32.mrf.mxu2 }
 0x36c   :  { %v7816_v17 = vadd.f32 %v7774_v20, %v1260_v58 }
 0x36e   :  { %v1294_v24 = vmul.f32 %v7778_v1, %v7816_v17 }
 0x373   :  { %v1263_v46 = vpop.f32.mrf.mxu2 }
 0x374   :  { %v7826_v30 = vadd.f32 %v7774_v20, %v1263_v46 }
 0x37b   :  { %v1265_v11 = vpop.f32.mrf.mxu2 }
 0x37c   :  { %v7836_v13 = vadd.f32 %v7774_v20, %v1265_v11 }
 0x37e   :  { %v1296_v39 = vmul.f32 %v7778_v1, %v7836_v13 }
 0x383   :  { %v1268_v15 = vpop.f32.mrf.mxu2 }
 0x384   :  { %v7846_v44 = vadd.f32 %v7774_v20, %v1268_v15 }
 0x386   :  { %v1297_v28 = vmul.f32 %v7778_v1, %v7846_v44 }
 0x38b   :  { %v1270_v54 = vpop.f32.mrf.mxu2 }
 0x39b   :  { %v1302_v60 = vpop.xlane.xlu0 %1301 }
 0x39c   :  { %v1333_v25 = vmul.f32 0.015625, %v1302_v60  ;;  %v7856_v60 = vadd.f32 %v7774_v20, %v1270_v54  ;;  %v6312_v54 = vld [vmem:[#allocation16 + $0x18] sm:$0xff] }
 0x39e   :  { %v1349_v9 = vsub.f32 %v1239_v45, %v1333_v25 }
 0x3a0   :  { %v7811_v55 = vmul.f32 %v7778_v1, %v1349_v9  ;;  %v1273_v9 = vpop.f32.mrf.mxu2 }
 0x3a2   :  { %v1381_v56 = vmul.f32 %v7811_v55, %v7811_v55 }
 0x3a3   :  { %v1304_v10 = vpop.xlane.xlu0 %1303 }
 0x3a4   :  { %v1334_v22 = vmul.f32 0.015625, %v1304_v10  ;;  %1397 = vadd.xlane.f32.xlu2 %v1381_v56  ;;  %v1298_v56 = vmul.f32 %v7778_v1, %v7856_v60 }
 0x3a6   :  { %v1350_v14 = vsub.f32 %v1241_v43, %v1334_v22  ;;  %v1295_v43 = vmul.f32 %v7778_v1, %v7826_v30 }
 0x3a8   :  { %v7819_v32 = vmul.f32 %v7778_v1, %v1350_v14  ;;  %v7867_v14 = vadd.f32 %v7774_v20, %v1273_v9 }
 0x3aa   :  { %v1382_v31 = vmul.f32 %v7819_v32, %v7819_v32  ;;  %v1299_v11 = vmul.f32 %v7778_v1, %v7867_v14 }
 0x3ab   :  { %v1306_v2 = vpop.xlane.xlu1 %1305 }
 0x3ac   :  { %v1335_v62 = vmul.f32 0.015625, %v1306_v2  ;;  %1399 = vadd.xlane.f32.xlu0 %v1382_v31  ;;  %1319 = vadd.xlane.f32.xlu2 %v1294_v24  ;;  %v1275_v2 = vpop.f32.mrf.mxu2 }
 0x3ae   :  { %v1351_v45 = vsub.f32 %v1244_v7, %v1335_v62 }
 0x3b0   :  { %v7829_v61 = vmul.f32 %v7778_v1, %v1351_v45 }
 0x3b2   :  { %v1383_v59 = vmul.f32 %v7829_v61, %v7829_v61 }
 0x3b3   :  { %v1308_v52 = vpop.xlane.xlu1 %1307 }
 0x3b4   :  { %v1336_v50 = vmul.f32 0.015625, %v1308_v52  ;;  %1401 = vadd.xlane.f32.xlu0 %v1383_v59  ;;  %1321 = vadd.xlane.f32.xlu2 %v1295_v43  ;;  %v7878_v59 = vadd.f32 %v7774_v20, %v1275_v2 }
 0x3b6   :  { %v1352_v51 = vsub.f32 %v1246_v0, %v1336_v50  ;;  %v1300_v50 = vmul.f32 %v7778_v1, %v7878_v59 }
 0x3b8   :  { %v7839_v7 = vmul.f32 %v7778_v1, %v1352_v51 }
 0x3ba   :  { %v1384_v27 = vmul.f32 %v7839_v7, %v7839_v7 }
 0x3bb   :  { %v1310_v33 = vpop.xlane.xlu2 %1309 }
 0x3bc   :  { %v1337_v63 = vmul.f32 0.015625, %v1310_v33  ;;  %1403 = vadd.xlane.f32.xlu1 %v1384_v27  ;;  %1323 = vadd.xlane.f32.xlu0 %v1296_v39  ;;  %v6316_v39 = vld [vmem:[#allocation16 + $0x38] sm:$0xff]  ;;  %v6315_v33 = vld [vmem:[#allocation16 + $0x30] sm:$0xff] }
 0x3bd   :  { %1767 = vmatpush.bf16.msrb.mxu3 %v6316_v39 }
 0x3be   :  { %v1353_v53 = vsub.f32 %v1249_v37, %v1337_v63  ;;  %v6314_v63 = vld [vmem:[#allocation16 + $0x28] sm:$0xff] }
 0x3c0   :  { %v7849_v0 = vmul.f32 %v7778_v1, %v1353_v53  ;;  %v6313_v53 = vld [vmem:[#allocation16 + $0x20] sm:$0xff] }
 0x3c1   :  { %1768 = vmatpush.bf16.msrb.mxu3 %v6315_v33 }
 0x3c2   :  { %v1385_v5 = vmul.f32 %v7849_v0, %v7849_v0 }
 0x3c3   :  { %v1312_v36 = vpop.xlane.xlu2 %1311 }
 0x3c4   :  { %v1338_v58 = vmul.f32 0.015625, %v1312_v36  ;;  %1405 = vadd.xlane.f32.xlu1 %v1385_v5  ;;  %1325 = vadd.xlane.f32.xlu0 %v1297_v28  ;;  %v6311_v5 = vld [vmem:[#allocation16 + $0x10] sm:$0xff]  ;;  %v6310_v28 = vld [vmem:[#allocation16 + $0x8] sm:$0xff] }
 0x3c5   :  { %1769 = vmatpush.bf16.msrb.mxu3 %v6314_v63 }
 0x3c6   :  { %v1354_v25 = vsub.f32 %v7791_v19, %v1338_v58 }
 0x3c8   :  { %v7860_v37 = vmul.f32 %v7778_v1, %v1354_v25  ;;  %v6309_v25 = vld [vmem:[#allocation16] sm:$0xff] }
 0x3c9   :  { %1770 = vmatpush.bf16.msrb.mxu3 %v6313_v53 }
 0x3ca   :  { %v1386_v46 = vmul.f32 %v7860_v37, %v7860_v37 }
 0x3cb   :  { %v1314_v10 = vpop.xlane.xlu0 %1313 }
 0x3cc   :  { %v1339_v22 = vmul.f32 0.015625, %v1314_v10  ;;  %1407 = vadd.xlane.f32.xlu2 %v1386_v46  ;;  %1327 = vadd.xlane.f32.xlu1 %v1298_v56 }
 0x3cd   :  { %1771 = vmatpush.bf16.msrb.mxu3 %v6312_v54 }
 0x3ce   :  { %v1355_v31 = vsub.f32 %v7796_v47, %v1339_v22 }
 0x3d0   :  { %v7871_v19 = vmul.f32 %v7778_v1, %v1355_v31 }
 0x3d1   :  { %1772 = vmatpush.bf16.msrb.mxu3 %v6311_v5 }
 0x3d2   :  { %v1387_v24 = vmul.f32 %v7871_v19, %v7871_v19 }
 0x3d3   :  { %v1316_v62 = vpop.xlane.xlu1 %1315 }
 0x3d4   :  { %v1340_v45 = vmul.f32 0.015625, %v1316_v62  ;;  %1409 = vadd.xlane.f32.xlu2 %v1387_v24  ;;  %1329 = vadd.xlane.f32.xlu1 %v1299_v11 }
 0x3d5   :  { %1773 = vmatpush.bf16.msrb.mxu3 %v6310_v28 }
 0x3d6   :  { %v1356_v43 = vsub.f32 %v7801_v16, %v1340_v45 }
 0x3d8   :  { %v7882_v47 = vmul.f32 %v7778_v1, %v1356_v43 }
 0x3d9   :  { %1774 = vmatpush.bf16.msrb.mxu3 %v6309_v25 }
 0x3da   :  { %v1388_v52 = vmul.f32 %v7882_v47, %v7882_v47 }
 0x3db   :  { %v1318_v15 = vpop.xlane.xlu1 %1317 }
 0x3dc   :  { %v1341_v51 = vmul.f32 0.015625, %v1318_v15  ;;  %1411 = vadd.xlane.f32.xlu0 %v1388_v52  ;;  %1331 = vadd.xlane.f32.xlu2 %v1300_v50 }
 0x3de   :  { %v1357_v27 = vsub.f32 %v7806_v40, %v1341_v51 }
 0x3e0   :  { %v7890_v20 = vmul.f32 %v7778_v1, %v1357_v27 }
 0x3e2   :  { %v1389_v16 = vmul.f32 %v7890_v20, %v7890_v20 }
 0x3e4   :  { %1413 = vadd.xlane.f32.xlu0 %v1389_v16 }
 0x417   :  { %v1398_v40 = vpop.xlane.xlu2 %1397 }
 0x418   :  { %v1429_v36 = vmul.f32 0.015625, %v1398_v40 }
 0x41a   :  { %v1445_v58 = vadd.f32 1e-05, %v1429_v36 }
 0x41c   :  { %6502 = vrsqrt.f32 %v1445_v58  ;;  %vm1467_vm2 = vweird.f32 %v1445_v58 }
 0x41f   :  { %v1400_v9 = vpop.xlane.xlu0 %1399  ;;  %v1320_v46 = vpop.xlane.xlu2 %1319 }
 0x420   :  { %v1430_v56 = vmul.f32 0.015625, %v1400_v9  ;;  %v1342_v10 = vmul.f32 0.015625, %v1320_v46 }
 0x422   :  { %v6503_v22 = vpop.eup %6502  ;;  %v1446_v31 = vadd.f32 1e-05, %v1430_v56  ;;  %v1358_v24 = vsub.f32 %v7816_v17, %v1342_v10 }
 0x423   :  { %v1462_v11 = vmul.f32 %v6503_v22, %v1445_v58  ;;  %vm1468_vm1 = vweird.f32 %v6503_v22  ;;  %v7910_v58 = vld [vmem:[%s10742_s8] ss:$0 sm:$0xff] }
 0x424   :  { %6504 = vrsqrt.f32 %v1446_v31  ;;  %v7896_v2 = vmul.f32 %v7778_v1, %v1358_v24  ;;  %vm1469_vm3 = vmor %vm1467_vm2, %vm1468_vm1  ;;  %vm1477_vm5 = vweird.f32 %v1446_v31 }
 0x425   :  { %v1463_v62 = vmul.f32 %v6503_v22, %v1462_v11 }
 0x426   :  { %v1390_v45 = vmul.f32 %v7896_v2, %v7896_v2 }
 0x427   :  { %v1464_v43 = vmul.f32 0.5, %v1463_v62  ;;  %v1402_v52 = vpop.xlane.xlu0 %1401  ;;  %v1322_v50 = vpop.xlane.xlu2 %1321 }
 0x428   :  { %v1431_v15 = vmul.f32 0.015625, %v1402_v52  ;;  %v1343_v51 = vmul.f32 0.015625, %v1322_v50  ;;  %1415 = vadd.xlane.f32.xlu1 %v1390_v45 }
 0x429   :  { %v1465_v27 = vsub.f32 1.5, %v1464_v43  ;;  %v7920_v43 = vld [vmem:[%s10857_s4] ss:$0 sm:$0xff] }
 0x42a   :  { %v6505_v16 = vpop.eup %6504  ;;  %v1447_v39 = vadd.f32 1e-05, %v1431_v15  ;;  %v1359_v17 = vsub.f32 %v7826_v30, %v1343_v51 }
 0x42b   :  { %v1466_v33 = vmul.f32 %v6503_v22, %v1465_v27  ;;  %v1472_v63 = vmul.f32 %v6505_v16, %v1446_v31  ;;  %vm1478_vm4 = vweird.f32 %v6505_v16 }
 0x42c   :  { %6506 = vrsqrt.f32 %v1447_v39  ;;  %v7902_v53 = vmul.f32 %v7778_v1, %v1359_v17  ;;  %vm1479_vm6 = vmor %vm1477_vm5, %vm1478_vm4  ;;  %vm1487_vm8 = vweird.f32 %v1447_v39 }
 0x42d   :  { %v1470_v54 = vsel %vm1469_vm3, %v6503_v22, %v1466_v33  ;;  %v1473_v5 = vmul.f32 %v6505_v16, %v1472_v63 }
 0x42e   :  { %v1391_v40 = vmul.f32 %v7902_v53, %v7902_v53  ;;  %v1621_v30 = vmul.f32 %v1470_v54, %v7811_v55 }
 0x42f   :  { %v1474_v28 = vmul.f32 0.5, %v1473_v5  ;;  %v1404_v36 = vpop.xlane.xlu1 %1403  ;;  %v1324_v25 = vpop.xlane.xlu0 %1323 }
 0x430   :  { %v1432_v9 = vmul.f32 0.015625, %v1404_v36  ;;  %v1344_v46 = vmul.f32 0.015625, %v1324_v25  ;;  %1417 = vadd.xlane.f32.xlu2 %v1391_v40  ;;  %v1640_v55 = vmul.f32 %v7910_v58, %v1621_v30 }
 0x431   :  { %v1475_v56 = vsub.f32 1.5, %v1474_v28 }
 0x432   :  { %v6507_v10 = vpop.eup %6506  ;;  %v1448_v22 = vadd.f32 1e-05, %v1432_v9  ;;  %v1360_v24 = vsub.f32 %v7836_v13, %v1344_v46  ;;  %v1659_v54 = vadd.f32 %v7920_v43, %v1640_v55 }
 0x433   :  { %v1476_v11 = vmul.f32 %v6505_v16, %v1475_v56  ;;  %v1482_v62 = vmul.f32 %v6507_v10, %v1447_v39  ;;  %vm1488_vm7 = vweird.f32 %v6507_v10 }
 0x434   :  { %6508 = vrsqrt.f32 %v1448_v22  ;;  %v7914_v45 = vmul.f32 %v7778_v1, %v1360_v24  ;;  %vm7929_vm9 = vmor %vm1487_vm8, %vm1488_vm7  ;;  %v1675_v46 = vmax.f32 %v1659_v54, 0.0  ;;  %vm1497_vm11 = vweird.f32 %v1448_v22 }
 0x435   :  { %v1480_v52 = vsel %vm1479_vm6, %v6505_v16, %v1476_v11  ;;  %v1483_v50 = vmul.f32 %v6507_v10, %v1482_v62 }
 0x436   :  { %v1392_v13 = vmul.f32 %v7914_v45, %v7914_v45  ;;  %v1622_v31 = vmul.f32 %v1480_v52, %v7819_v32 }
 0x437   :  { %v1484_v15 = vmul.f32 0.5, %v1483_v50  ;;  %v1406_v51 = vpop.xlane.xlu1 %1405  ;;  %v1326_v27 = vpop.xlane.xlu0 %1325 }
 0x438   :  { %v1433_v17 = vmul.f32 0.015625, %v1406_v51  ;;  %v1345_v33 = vmul.f32 0.015625, %v1326_v27  ;;  %1419 = vadd.xlane.f32.xlu0 %v1392_v13  ;;  %v1641_v63 = vmul.f32 %v7910_v58, %v1622_v31 }
 0x439   :  { %v1485_v5 = vsub.f32 1.5, %v1484_v15 }
 0x43a   :  { %v6509_v40 = vpop.eup %6508  ;;  %v1449_v16 = vadd.f32 1e-05, %v1433_v17  ;;  %v1361_v28 = vsub.f32 %v7846_v44, %v1345_v33  ;;  %v1660_v36 = vadd.f32 %v7920_v43, %v1641_v63 }
 0x43b   :  { %v1486_v25 = vmul.f32 %v6507_v10, %v1485_v5  ;;  %v1492_v32 = vmul.f32 %v6509_v40, %v1448_v22  ;;  %vm1498_vm10 = vweird.f32 %v6509_v40 }
 0x43c   :  { %6510 = vrsqrt.f32 %v1449_v16  ;;  %v1676_v30 = vmax.f32 %v1660_v36, 0.0  ;;  %v7934_v56 = vmul.f32 %v7778_v1, %v1361_v28  ;;  %vm1499_vm12 = vmor %vm1497_vm11, %vm1498_vm10  ;;  %vm1507_vm14 = vweird.f32 %v1449_v16 }
 0x43d   :  { %v1493_v24 = vmul.f32 %v6509_v40, %v1492_v32  ;;  %v1490_v11 = vsel %vm7929_vm9, %v6507_v10, %v1486_v25 }
 0x43e   :  { %v1691_v44 = vpack.c.bf16 %v1676_v30, %v1675_v46  ;;  %v1393_v62 = vmul.f32 %v7934_v56, %v7934_v56  ;;  %v1623_v31 = vmul.f32 %v1490_v11, %v7829_v61 }
 0x43f   :  { %v1494_v39 = vmul.f32 0.5, %v1493_v24  ;;  %v1408_v55 = vpop.xlane.xlu2 %1407  ;;  %v1328_v52 = vpop.xlane.xlu1 %1327 }
 0x440   :  { %v1434_v50 = vmul.f32 0.015625, %v1408_v55  ;;  %v1346_v13 = vmul.f32 0.015625, %v1328_v52  ;;  %1775 = vmatmul.bf16.vlgmr.msrb.gmra.mxu3 %v1691_v44  ;;  %1421 = vadd.xlane.f32.xlu1 %v1393_v62  ;;  %v1642_v54 = vmul.f32 %v7910_v58, %v1623_v31 }
 0x441   :  { %v1495_v15 = vsub.f32 1.5, %v1494_v39 }
 0x442   :  { %v6511_v51 = vpop.eup %6510  ;;  %v1450_v27 = vadd.f32 1e-05, %v1434_v50  ;;  %v1362_v17 = vsub.f32 %v7856_v60, %v1346_v13  ;;  %v1661_v30 = vadd.f32 %v7920_v43, %v1642_v54 }
 0x443   :  { %v1496_v10 = vmul.f32 %v6509_v40, %v1495_v15  ;;  %v1502_v33 = vmul.f32 %v6511_v51, %v1449_v16  ;;  %vm1508_vm13 = vweird.f32 %v6511_v51 }
 0x444   :  { %6512 = vrsqrt.f32 %v1450_v27  ;;  %v7943_v63 = vmul.f32 %v7778_v1, %v1362_v17  ;;  %vm7953_vm15 = vmor %vm1507_vm14, %vm1508_vm13  ;;  %v1677_v52 = vmax.f32 %v1661_v30, 0.0  ;;  %vm1517_vm1 = vweird.f32 %v1450_v27 }
 0x445   :  { %v1503_v5 = vmul.f32 %v6511_v51, %v1502_v33  ;;  %v1500_v28 = vsel %vm1499_vm12, %v6509_v40, %v1496_v10 }
 0x446   :  { %v1394_v61 = vmul.f32 %v7943_v63, %v7943_v63  ;;  %v1624_v36 = vmul.f32 %v1500_v28, %v7839_v7 }
 0x447   :  { %v1504_v25 = vmul.f32 0.5, %v1503_v5  ;;  %v1410_v32 = vpop.xlane.xlu2 %1409  ;;  %v1330_v60 = vpop.xlane.xlu1 %1329 }
 0x448   :  { %v1435_v9 = vmul.f32 0.015625, %v1410_v32  ;;  %v1347_v22 = vmul.f32 0.015625, %v1330_v60  ;;  %1423 = vadd.xlane.f32.xlu2 %v1394_v61  ;;  %v1643_v46 = vmul.f32 %v7910_v58, %v1624_v36 }
 0x449   :  { %v1505_v24 = vsub.f32 1.5, %v1504_v25 }
 0x44a   :  { %v6513_v11 = vpop.eup %6512  ;;  %v1451_v44 = vadd.f32 1e-05, %v1435_v9  ;;  %v1363_v40 = vsub.f32 %v7867_v14, %v1347_v22  ;;  %v1662_v62 = vadd.f32 %v7920_v43, %v1643_v46 }
 0x44b   :  { %v1506_v39 = vmul.f32 %v6511_v51, %v1505_v24  ;;  %v1512_v7 = vmul.f32 %v6513_v11, %v1450_v27  ;;  %vm1518_vm0 = vweird.f32 %v6513_v11 }
 0x44c   :  { %6514 = vrsqrt.f32 %v1451_v44  ;;  %v1678_v50 = vmax.f32 %v1662_v62, 0.0  ;;  %v7958_v13 = vmul.f32 %v7778_v1, %v1363_v40  ;;  %vm1519_vm2 = vmor %vm1517_vm1, %vm1518_vm0  ;;  %vm1527_vm4 = vweird.f32 %v1451_v44 }
 0x44d   :  { %v1513_v31 = vmul.f32 %v6513_v11, %v1512_v7  ;;  %v1510_v15 = vsel %vm7953_vm15, %v6511_v51, %v1506_v39 }
 0x44e   :  { %v1692_v14 = vpack.c.bf16 %v1678_v50, %v1677_v52  ;;  %v1395_v17 = vmul.f32 %v7958_v13, %v7958_v13  ;;  %v1625_v28 = vmul.f32 %v1510_v15, %v7849_v0 }
 0x44f   :  { %v1514_v16 = vmul.f32 0.5, %v1513_v31  ;;  %v1412_v10 = vpop.xlane.xlu0 %1411  ;;  %v1332_v33 = vpop.xlane.xlu2 %1331 }
 0x450   :  { %v1436_v54 = vmul.f32 0.015625, %v1412_v10  ;;  %v1348_v5 = vmul.f32 0.015625, %v1332_v33  ;;  %1780 = vmatmul.bf16.gmra.mxu3 %v1692_v14  ;;  %1425 = vadd.xlane.f32.xlu0 %v1395_v17  ;;  %v1644_v22 = vmul.f32 %v7910_v58, %v1625_v28 }
 0x451   :  { %v1515_v61 = vsub.f32 1.5, %v1514_v16 }
 0x452   :  { %v6515_v36 = vpop.eup %6514  ;;  %v1452_v25 = vadd.f32 1e-05, %v1436_v54  ;;  %v1364_v32 = vsub.f32 %v7878_v59, %v1348_v5  ;;  %v1663_v27 = vadd.f32 %v7920_v43, %v1644_v22 }
 0x453   :  { %v1516_v51 = vmul.f32 %v6513_v11, %v1515_v61  ;;  %v1522_v60 = vmul.f32 %v6515_v36, %v1451_v44  ;;  %vm1528_vm3 = vweird.f32 %v6515_v36 }
 0x454   :  { %6516 = vrsqrt.f32 %v1452_v25  ;;  %v7967_v9 = vmul.f32 %v7778_v1, %v1364_v32  ;;  %vm1529_vm5 = vmor %vm1527_vm4, %vm1528_vm3  ;;  %vm1537_vm7 = vweird.f32 %v1452_v25 }
 0x455   :  { %v1523_v46 = vmul.f32 %v6515_v36, %v1522_v60  ;;  %v1520_v30 = vsel %vm1519_vm2, %v6513_v11, %v1516_v51  ;;  %v1679_v11 = vmax.f32 %v1663_v27, 0.0 }
 0x456   :  { %v1396_v0 = vmul.f32 %v7967_v9, %v7967_v9  ;;  %v1626_v24 = vmul.f32 %v1520_v30, %v7860_v37 }
 0x457   :  { %v1524_v40 = vmul.f32 0.5, %v1523_v46 }
 0x458   :  { %1427 = vadd.xlane.f32.xlu1 %v1396_v0  ;;  %v1645_v59 = vmul.f32 %v7910_v58, %v1626_v24 }
 0x459   :  { %v1525_v62 = vsub.f32 1.5, %v1524_v40 }
 0x45a   :  { %v6517_v39 = vpop.eup %6516  ;;  %v1664_v7 = vadd.f32 %v7920_v43, %v1645_v59 }
 0x45b   :  { %v1526_v55 = vmul.f32 %v6515_v36, %v1525_v62  ;;  %v1532_v52 = vmul.f32 %v6517_v39, %v1452_v25  ;;  %vm1538_vm6 = vweird.f32 %v6517_v39 }
 0x45c   :  { %v1680_v50 = vmax.f32 %v1664_v7, 0.0  ;;  %vm1539_vm8 = vmor %vm1537_vm7, %vm1538_vm6 }
 0x45d   :  { %v1533_v31 = vmul.f32 %v6517_v39, %v1532_v52  ;;  %v1530_v15 = vsel %vm1529_vm5, %v6515_v36, %v1526_v55 }
 0x45e   :  { %v1693_v37 = vpack.c.bf16 %v1680_v50, %v1679_v11  ;;  %v1627_v17 = vmul.f32 %v1530_v15, %v7871_v19  ;;  %v1414_v19 = vpop.xlane.xlu0 %1413 }
 0x45f   :  { %v1534_v14 = vmul.f32 0.5, %v1533_v31  ;;  %v1437_v60 = vmul.f32 0.015625, %v1414_v19 }
 0x460   :  { %1785 = vmatmul.bf16.gmra.mxu3 %v1693_v37  ;;  %v1646_v33 = vmul.f32 %v7910_v58, %v1627_v17 }
 0x461   :  { %v1535_v16 = vsub.f32 1.5, %v1534_v14  ;;  %v1453_v22 = vadd.f32 1e-05, %v1437_v60 }
 0x462   :  { %v1665_v28 = vadd.f32 %v7920_v43, %v1646_v33 }
 0x463   :  { %v1536_v10 = vmul.f32 %v6517_v39, %v1535_v16  ;;  %6518 = vrsqrt.f32 %v1453_v22  ;;  %vm1547_vm10 = vweird.f32 %v1453_v22 }
 0x464   :  { %v1681_v36 = vmax.f32 %v1665_v28, 0.0 }
 0x465   :  { %v1540_v54 = vsel %vm1539_vm8, %v6517_v39, %v1536_v10 }
 0x466   :  { %v1628_v44 = vmul.f32 %v1540_v54, %v7882_v47 }
 0x468   :  { %v1647_v5 = vmul.f32 %v7910_v58, %v1628_v44 }
 0x469   :  { %v6519_v25 = vpop.eup %6518 }
 0x46a   :  { %v1666_v61 = vadd.f32 %v7920_v43, %v1647_v5  ;;  %v1542_v46 = vmul.f32 %v6519_v25, %v1453_v22  ;;  %vm1548_vm9 = vweird.f32 %v6519_v25 }
 0x46b   :  { %vm1549_vm11 = vmor %vm1547_vm10, %vm1548_vm9 }
 0x46c   :  { %v1682_v32 = vmax.f32 %v1666_v61, 0.0  ;;  %v1543_v30 = vmul.f32 %v6519_v25, %v1542_v46 }
 0x46e   :  { %v1694_v51 = vpack.c.bf16 %v1682_v32, %v1681_v36  ;;  %v1544_v47 = vmul.f32 0.5, %v1543_v30 }
 0x470   :  { %1790 = vmatmul.bf16.gmra.mxu3 %v1694_v51  ;;  %v1545_v59 = vsub.f32 1.5, %v1544_v47 }
 0x472   :  { %v1546_v39 = vmul.f32 %v6519_v25, %v1545_v59 }
 0x474   :  { %v1550_v11 = vsel %vm1549_vm11, %v6519_v25, %v1546_v39 }
 0x475   :  { %v1629_v14 = vmul.f32 %v1550_v11, %v7890_v20 }
 0x477   :  { %v1648_v44 = vmul.f32 %v7910_v58, %v1629_v14 }
 0x479   :  { %v1667_v19 = vadd.f32 %v7920_v43, %v1648_v44 }
 0x49b   :  { %v1416_v0 = vpop.xlane.xlu1 %1415 }
 0x49c   :  { %v1438_v24 = vmul.f32 0.015625, %v1416_v0 }
 0x49e   :  { %v1454_v40 = vadd.f32 1e-05, %v1438_v24  ;;  %v1683_v24 = vmax.f32 %v1667_v19, 0.0 }
 0x4a0   :  { %6520 = vrsqrt.f32 %v1454_v40  ;;  %vm1557_vm13 = vweird.f32 %v1454_v40 }
 0x4a3   :  { %v1418_v27 = vpop.xlane.xlu2 %1417 }
 0x4a4   :  { %v1439_v62 = vmul.f32 0.015625, %v1418_v27 }
 0x4a6   :  { %v6521_v7 = vpop.eup %6520  ;;  %v1455_v55 = vadd.f32 1e-05, %v1439_v62 }
 0x4a7   :  { %v1552_v52 = vmul.f32 %v6521_v7, %v1454_v40  ;;  %vm1558_vm12 = vweird.f32 %v6521_v7 }
 0x4a8   :  { %6522 = vrsqrt.f32 %v1455_v55  ;;  %vm1559_vm14 = vmor %vm1557_vm13, %vm1558_vm12  ;;  %vm1567_vm0 = vweird.f32 %v1455_v55 }
 0x4a9   :  { %v1553_v50 = vmul.f32 %v6521_v7, %v1552_v52 }
 0x4ab   :  { %v1554_v31 = vmul.f32 0.5, %v1553_v50  ;;  %v1420_v15 = vpop.xlane.xlu0 %1419 }
 0x4ac   :  { %v1440_v37 = vmul.f32 0.015625, %v1420_v15 }
 0x4ad   :  { %v1555_v17 = vsub.f32 1.5, %v1554_v31 }
 0x4ae   :  { %v6523_v16 = vpop.eup %6522  ;;  %v1456_v10 = vadd.f32 1e-05, %v1440_v37 }
 0x4af   :  { %v1556_v33 = vmul.f32 %v6521_v7, %v1555_v17  ;;  %v1562_v54 = vmul.f32 %v6523_v16, %v1455_v55  ;;  %vm1568_vm15 = vweird.f32 %v6523_v16 }
 0x4b0   :  { %6524 = vrsqrt.f32 %v1456_v10  ;;  %vm1569_vm1 = vmor %vm1567_vm0, %vm1568_vm15  ;;  %vm1577_vm3 = vweird.f32 %v1456_v10 }
 0x4b1   :  { %v1560_v5 = vsel %vm1559_vm14, %v6521_v7, %v1556_v33  ;;  %v1563_v28 = vmul.f32 %v6523_v16, %v1562_v54 }
 0x4b2   :  { %v1630_v61 = vmul.f32 %v1560_v5, %v7896_v2 }
 0x4b3   :  { %v1564_v36 = vmul.f32 0.5, %v1563_v28  ;;  %v1422_v32 = vpop.xlane.xlu1 %1421 }
 0x4b4   :  { %v1441_v51 = vmul.f32 0.015625, %v1422_v32  ;;  %v1649_v20 = vmul.f32 %v7910_v58, %v1630_v61 }
 0x4b5   :  { %v1565_v60 = vsub.f32 1.5, %v1564_v36 }
 0x4b6   :  { %v6525_v22 = vpop.eup %6524  ;;  %v1457_v25 = vadd.f32 1e-05, %v1441_v51  ;;  %v1668_v46 = vadd.f32 %v7920_v43, %v1649_v20 }
 0x4b7   :  { %v1566_v30 = vmul.f32 %v6523_v16, %v1565_v60  ;;  %v1572_v0 = vmul.f32 %v6525_v22, %v1456_v10  ;;  %vm1578_vm2 = vweird.f32 %v6525_v22 }
 0x4b8   :  { %6526 = vrsqrt.f32 %v1457_v25  ;;  %v1684_v2 = vmax.f32 %v1668_v46, 0.0  ;;  %vm1579_vm4 = vmor %vm1577_vm3, %vm1578_vm2  ;;  %vm1587_vm6 = vweird.f32 %v1457_v25 }
 0x4b9   :  { %v1570_v47 = vsel %vm1569_vm1, %v6523_v16, %v1566_v30  ;;  %v1573_v40 = vmul.f32 %v6525_v22, %v1572_v0  ;;  %vm1820_vm1 = vcmp.lt.s32.totalorder %v7769_v42, 32 }
 0x4ba   :  { %v1695_v59 = vpack.c.bf16 %v1684_v2, %v1683_v24  ;;  %v1631_v7 = vmul.f32 %v1570_v47, %v7902_v53 }
 0x4bb   :  { %v1574_v27 = vmul.f32 0.5, %v1573_v40  ;;  %v1424_v62 = vpop.xlane.xlu2 %1423 }
 0x4bc   :  { %v1442_v39 = vmul.f32 0.015625, %v1424_v62  ;;  %1795 = vmatmul.bf16.gmra.mxu3 %v1695_v59  ;;  %v1650_v15 = vmul.f32 %v7910_v58, %v1631_v7 }
 0x4bd   :  { %v1575_v52 = vsub.f32 1.5, %v1574_v27 }
 0x4be   :  { %v6527_v11 = vpop.eup %6526  ;;  %v1458_v50 = vadd.f32 1e-05, %v1442_v39  ;;  %v1669_v44 = vadd.f32 %v7920_v43, %v1650_v15 }
 0x4bf   :  { %v1576_v31 = vmul.f32 %v6525_v22, %v1575_v52  ;;  %v1582_v55 = vmul.f32 %v6527_v11, %v1457_v25  ;;  %vm1588_vm5 = vweird.f32 %v6527_v11 }
 0x4c0   :  { %6528 = vrsqrt.f32 %v1458_v50  ;;  %vm1589_vm7 = vmor %vm1587_vm6, %vm1588_vm5  ;;  %v1685_v51 = vmax.f32 %v1669_v44, 0.0  ;;  %vm1597_vm9 = vweird.f32 %v1458_v50 }
 0x4c1   :  { %v1580_v37 = vsel %vm1579_vm4, %v6525_v22, %v1576_v31  ;;  %v1583_v14 = vmul.f32 %v6527_v11, %v1582_v55 }
 0x4c2   :  { %v1632_v17 = vmul.f32 %v1580_v37, %v7914_v45 }
 0x4c3   :  { %v1584_v16 = vmul.f32 0.5, %v1583_v14  ;;  %v1426_v33 = vpop.xlane.xlu0 %1425 }
 0x4c4   :  { %v1443_v54 = vmul.f32 0.015625, %v1426_v33  ;;  %v1651_v53 = vmul.f32 %v7910_v58, %v1632_v17 }
 0x4c5   :  { %v1585_v5 = vsub.f32 1.5, %v1584_v16 }
 0x4c6   :  { %v6529_v28 = vpop.eup %6528  ;;  %v1459_v10 = vadd.f32 1e-05, %v1443_v54  ;;  %v1670_v61 = vadd.f32 %v7920_v43, %v1651_v53 }
 0x4c7   :  { %v1586_v36 = vmul.f32 %v6527_v11, %v1585_v5  ;;  %v1592_v32 = vmul.f32 %v6529_v28, %v1458_v50  ;;  %vm1598_vm8 = vweird.f32 %v6529_v28 }
 0x4c8   :  { %6530 = vrsqrt.f32 %v1459_v10  ;;  %v1686_v45 = vmax.f32 %v1670_v61, 0.0  ;;  %vm1599_vm10 = vmor %vm1597_vm9, %vm1598_vm8  ;;  %vm1607_vm12 = vweird.f32 %v1459_v10 }
 0x4c9   :  { %v1590_v20 = vsel %vm1589_vm7, %v6527_v11, %v1586_v36  ;;  %v1593_v19 = vmul.f32 %v6529_v28, %v1592_v32 }
 0x4ca   :  { %v1696_v60 = vpack.c.bf16 %v1686_v45, %v1685_v51  ;;  %v1633_v0 = vmul.f32 %v1590_v20, %v7934_v56 }
 0x4cb   :  { %v1594_v22 = vmul.f32 0.5, %v1593_v19  ;;  %v1428_v46 = vpop.xlane.xlu1 %1427 }
 0x4cc   :  { %v1444_v30 = vmul.f32 0.015625, %v1428_v46  ;;  %1800 = vmatmul.bf16.gmra.mxu3 %v1696_v60  ;;  %v1652_v59 = vmul.f32 %v7910_v58, %v1633_v0 }
 0x4cd   :  { %v1595_v24 = vsub.f32 1.5, %v1594_v22 }
 0x4ce   :  { %v6531_v2 = vpop.eup %6530  ;;  %v1460_v47 = vadd.f32 1e-05, %v1444_v30  ;;  %v1671_v56 = vadd.f32 %v7920_v43, %v1652_v59 }
 0x4cf   :  { %v1596_v40 = vmul.f32 %v6529_v28, %v1595_v24  ;;  %v1602_v25 = vmul.f32 %v6531_v2, %v1459_v10  ;;  %vm1608_vm11 = vweird.f32 %v6531_v2 }
 0x4d0   :  { %6532 = vrsqrt.f32 %v1460_v47  ;;  %vm1609_vm13 = vmor %vm1607_vm12, %vm1608_vm11  ;;  %v1687_v37 = vmax.f32 %v1671_v56, 0.0  ;;  %vm1617_vm15 = vweird.f32 %v1460_v47 }
 0x4d1   :  { %v1600_v27 = vsel %vm1599_vm10, %v6529_v28, %v1596_v40  ;;  %v1603_v62 = vmul.f32 %v6531_v2, %v1602_v25  ;;  %v8013_v40 = vsel %vm1820_vm1, 1.0, %v7280_v6 }
 0x4d2   :  { %v1634_v39 = vmul.f32 %v1600_v27, %v7943_v63  ;;  %10863 = vst [vmem:[#allocation32_spill] sm:$0xff] %v8013_v40 }
 0x4d3   :  { %v1604_v7 = vmul.f32 0.5, %v1603_v62 }
 0x4d4   :  { %v1653_v52 = vmul.f32 %v7910_v58, %v1634_v39 }
 0x4d5   :  { %v1605_v11 = vsub.f32 1.5, %v1604_v7 }
 0x4d6   :  { %v6533_v31 = vpop.eup %6532  ;;  %v1672_v55 = vadd.f32 %v7920_v43, %v1653_v52 }
 0x4d7   :  { %v1606_v50 = vmul.f32 %v6531_v2, %v1605_v11  ;;  %v1612_v15 = vmul.f32 %v6533_v31, %v1460_v47  ;;  %vm1618_vm14 = vweird.f32 %v6533_v31 }
 0x4d8   :  { %v1688_v14 = vmax.f32 %v1672_v55, 0.0  ;;  %vm1619_vm0 = vmor %vm1617_vm15, %vm1618_vm14 }
 0x4d9   :  { %v1610_v17 = vsel %vm1609_vm13, %v6531_v2, %v1606_v50  ;;  %v1613_v16 = vmul.f32 %v6533_v31, %v1612_v15 }
 0x4da   :  { %v1697_v33 = vpack.c.bf16 %v1688_v14, %v1687_v37  ;;  %v1635_v54 = vmul.f32 %v1610_v17, %v7958_v13  ;;  %v1776_v13 = vpop.f32.mrf.mxu3 }
 0x4db   :  { %v1614_v63 = vmul.f32 0.5, %v1613_v16 }
 0x4dc   :  { %1805 = vmatmul.bf16.gmra.mxu3 %v1697_v33  ;;  %v1654_v5 = vmul.f32 %v7910_v58, %v1635_v54 }
 0x4dd   :  { %v1615_v53 = vsub.f32 1.5, %v1614_v63 }
 0x4de   :  { %v1673_v36 = vadd.f32 %v7920_v43, %v1654_v5 }
 0x4df   :  { %v1616_v44 = vmul.f32 %v6533_v31, %v1615_v53 }
 0x4e0   :  { %v1689_v51 = vmax.f32 %v1673_v36, 0.0 }
 0x4e1   :  { %v1620_v28 = vsel %vm1619_vm0, %v6533_v31, %v1616_v44 }
 0x4e2   :  { %v1636_v10 = vmul.f32 %v1620_v28, %v7967_v9  ;;  %v1778_v19 = vpop.f32.mrf.mxu3 }
 0x4e4   :  { %v1655_v61 = vmul.f32 %v7910_v58, %v1636_v10  ;;  %v6389_v58 = vld [vmem:[%s10745_s11] ss:$0 sm:$0xff] }
 0x4e5   :  { %v8041_v17 = vadd.f32 %v6389_v58, %v1776_v13  ;;  %v8071_v13 = vadd.f32 %v6389_v58, %v1778_v19 }
 0x4e6   :  { %v1674_v32 = vadd.f32 %v7920_v43, %v1655_v61 }
 0x4e7   :  { %10870 = vst [vmem:[#allocation39_spill] sm:$0xff] %v8041_v17  ;;  %v1823_v54 = vmul.f32 %v8013_v40, %v8041_v17 }
 0x4e8   :  { %v1690_v45 = vmax.f32 %v1674_v32, 0.0  ;;  %10878 = vst [vmem:[#allocation47_spill] sm:$0xff] %v8071_v13 }
 0x4ea   :  { %v1698_v20 = vpack.c.bf16 %v1690_v45, %v1689_v51  ;;  %v1781_v60 = vpop.f32.mrf.mxu3 }
 0x4eb   :  { %v8063_v32 = vadd.f32 %v6389_v58, %v1781_v60 }
 0x4ec   :  { %1810 = vmatmul.bf16.gmra.mxu3 %v1698_v20 }
 0x4ed   :  { %10876 = vst [vmem:[#allocation45_spill] sm:$0xff] %v8063_v32  ;;  %v1825_v45 = vmul.f32 %v8013_v40, %v8063_v32 }
 0x4f2   :  { %v1783_v22 = vpop.f32.mrf.mxu3 }
 0x4f3   :  { %v8069_v20 = vadd.f32 %v6389_v58, %v1783_v22 }
 0x4f5   :  { %10877 = vst [vmem:[#allocation46_spill] sm:$0xff] %v8069_v20 }
 0x4fa   :  { %v1786_v46 = vpop.f32.mrf.mxu3 }
 0x4fb   :  { %v8061_v36 = vadd.f32 %v6389_v58, %v1786_v46  ;;  %v1824_v46 = vmul.f32 %v8013_v40, %v8071_v13 }
 0x4fd   :  { %10875 = vst [vmem:[#allocation44_spill] sm:$0xff] %v8061_v36  ;;  %v1827_v51 = vmul.f32 %v8013_v40, %v8061_v36 }
 0x502   :  { %v1788_v30 = vpop.f32.mrf.mxu3 }
 0x503   :  { %v8033_v55 = vadd.f32 %v6389_v58, %v1788_v30  ;;  %v1826_v30 = vmul.f32 %v8013_v40, %v8069_v20 }
 0x505   :  { %10868 = vst [vmem:[#allocation37_spill] sm:$0xff] %v8033_v55  ;;  %v1828_v37 = vmul.f32 %v8013_v40, %v8033_v55 }
 0x50a   :  { %v1791_v0 = vpop.f32.mrf.mxu3 }
 0x50b   :  { %v8025_v6 = vadd.f32 %v6389_v58, %v1791_v0 }
 0x50d   :  { %10866 = vst [vmem:[#allocation35_spill] sm:$0xff] %v8025_v6  ;;  %v1829_v31 = vmul.f32 %v8013_v40, %v8025_v6 }
 0x512   :  { %v1793_v24 = vpop.f32.mrf.mxu3 }
 0x513   :  { %v8055_v28 = vadd.f32 %v6389_v58, %v1793_v24 }
 0x515   :  { %10874 = vst [vmem:[#allocation43_spill] sm:$0xff] %v8055_v28  ;;  %v1830_v61 = vmul.f32 %v8013_v40, %v8055_v28 }
 0x53f   :  { %v1796_v2 = vpop.f32.mrf.mxu3 }
 0x540   :  { %v8043_v16 = vadd.f32 %v6389_v58, %v1796_v2 }
 0x542   :  { %10871 = vst [vmem:[#allocation40_spill] sm:$0xff] %v8043_v16  ;;  %v1831_v44 = vmul.f32 %v8013_v40, %v8043_v16 }
 0x547   :  { %v1798_v9 = vpop.f32.mrf.mxu3 }
 0x548   :  { %v8053_v5 = vadd.f32 %v6389_v58, %v1798_v9 }
 0x54a   :  { %10873 = vst [vmem:[#allocation42_spill] sm:$0xff] %v8053_v5  ;;  %v1832_v10 = vmul.f32 %v8013_v40, %v8053_v5 }
 0x54f   :  { %v1801_v43 = vpop.f32.mrf.mxu3 }
 0x550   :  { %v8010_v47 = vadd.f32 %v6389_v58, %v1801_v43 }
 0x552   :  { %10862 = vst [vmem:[#allocation31_spill] sm:$0xff] %v8010_v47  ;;  %v1833_v25 = vmul.f32 %v8013_v40, %v8010_v47 }
 0x554   :  { %1859 = vadd.xlane.f32.xlu0 %v1833_v25 }
 0x557   :  { %v1803_v59 = vpop.f32.mrf.mxu3 }
 0x558   :  { %v8017_v27 = vadd.f32 %v6389_v58, %v1803_v59 }
 0x55a   :  { %10864 = vst [vmem:[#allocation33_spill] sm:$0xff] %v8017_v27  ;;  %v1834_v62 = vmul.f32 %v8013_v40, %v8017_v27 }
 0x55c   :  { %1861 = vadd.xlane.f32.xlu1 %v1834_v62 }
 0x55f   :  { %v1806_v39 = vpop.f32.mrf.mxu3 }
 0x560   :  { %v8021_v7 = vadd.f32 %v6389_v58, %v1806_v39 }
 0x562   :  { %10865 = vst [vmem:[#allocation34_spill] sm:$0xff] %v8021_v7  ;;  %v1835_v42 = vmul.f32 %v8013_v40, %v8021_v7 }
 0x564   :  { %1863 = vadd.xlane.f32.xlu1 %v1835_v42 }
 0x567   :  { %v1808_v52 = vpop.f32.mrf.mxu3 }
 0x568   :  { %v8027_v56 = vadd.f32 %v6389_v58, %v1808_v52 }
 0x56a   :  { %10867 = vst [vmem:[#allocation36_spill] sm:$0xff] %v8027_v56  ;;  %v1836_v11 = vmul.f32 %v8013_v40, %v8027_v56 }
 0x56c   :  { %1865 = vadd.xlane.f32.xlu2 %v1836_v11  ;;  %1851 = vadd.xlane.f32.xlu1 %v1829_v31 }
 0x56f   :  { %v1811_v50 = vpop.f32.mrf.mxu3 }
 0x570   :  { %v8035_v15 = vadd.f32 %v6389_v58, %v1811_v50 }
 0x572   :  { %10869 = vst [vmem:[#allocation38_spill] sm:$0xff] %v8035_v15  ;;  %v1837_v14 = vmul.f32 %v8013_v40, %v8035_v15 }
 0x574   :  { %1849 = vadd.xlane.f32.xlu1 %v1828_v37  ;;  %1867 = vadd.xlane.f32.xlu2 %v1837_v14 }
 0x577   :  { %v1813_v33 = vpop.f32.mrf.mxu3 }
 0x578   :  { %v8045_v63 = vadd.f32 %v6389_v58, %v1813_v33 }
 0x57a   :  { %10872 = vst [vmem:[#allocation41_spill] sm:$0xff] %v8045_v63  ;;  %v1838_v53 = vmul.f32 %v8013_v40, %v8045_v63 }
 0x57c   :  { %1839 = vadd.xlane.f32.xlu1 %v1823_v54  ;;  %1869 = vadd.xlane.f32.xlu0 %v1838_v53 }
 0x57d   :  { %1855 = vadd.xlane.f32.xlu2 %v1831_v44 }
 0x584   :  { %1857 = vadd.xlane.f32.xlu0 %v1832_v10 }
 0x585   :  { %1853 = vadd.xlane.f32.xlu2 %v1830_v61 }
 0x58c   :  { %1847 = vadd.xlane.f32.xlu0 %v1827_v51 }
 0x58d   :  { %1843 = vadd.xlane.f32.xlu2 %v1825_v45 }
 0x594   :  { %1845 = vadd.xlane.f32.xlu0 %v1826_v30 }
 0x595   :  { %1841 = vadd.xlane.f32.xlu2 %v1824_v46 }
 0x5c7   :  { %v1860_v60 = vpop.xlane.xlu0 %1859 }
 0x5c8   :  { %v1881_v0 = vmul.f32 0.03125, %v1860_v60 }
 0x5ca   :  { %v1897_v24 = vsub.f32 %v8010_v47, %v1881_v0 }
 0x5cc   :  { %v8079_v2 = vmul.f32 %v8013_v40, %v1897_v24 }
 0x5ce   :  { %v1929_v22 = vmul.f32 %v8079_v2, %v8079_v2 }
 0x5cf   :  { %v1862_v19 = vpop.xlane.xlu1 %1861 }
 0x5d0   :  { %v1882_v9 = vmul.f32 0.03125, %v1862_v19  ;;  %1955 = vadd.xlane.f32.xlu1 %v1929_v22 }
 0x5d2   :  { %v1898_v58 = vsub.f32 %v8017_v27, %v1882_v9 }
 0x5d4   :  { %v8085_v43 = vmul.f32 %v8013_v40, %v1898_v58 }
 0x5d6   :  { %v1930_v25 = vmul.f32 %v8085_v43, %v8085_v43 }
 0x5d7   :  { %v1864_v59 = vpop.xlane.xlu1 %1863 }
 0x5d8   :  { %v1883_v62 = vmul.f32 0.03125, %v1864_v59  ;;  %1957 = vadd.xlane.f32.xlu2 %v1930_v25 }
 0x5da   :  { %v1899_v39 = vsub.f32 %v8021_v7, %v1883_v62 }
 0x5dc   :  { %v8091_v42 = vmul.f32 %v8013_v40, %v1899_v39 }
 0x5de   :  { %v1931_v52 = vmul.f32 %v8091_v42, %v8091_v42 }
 0x5df   :  { %v1866_v11 = vpop.xlane.xlu2 %1865  ;;  %v1852_v31 = vpop.xlane.xlu1 %1851 }
 0x5e0   :  { %v1884_v50 = vmul.f32 0.03125, %v1866_v11  ;;  %v1877_v37 = vmul.f32 0.03125, %v1852_v31  ;;  %1959 = vadd.xlane.f32.xlu2 %v1931_v52 }
 0x5e2   :  { %v1900_v14 = vsub.f32 %v8027_v56, %v1884_v50  ;;  %v1893_v33 = vsub.f32 %v8025_v6, %v1877_v37 }
 0x5e4   :  { %v8098_v54 = vmul.f32 %v8013_v40, %v1900_v14  ;;  %v8101_v53 = vmul.f32 %v8013_v40, %v1893_v33 }
 0x5e6   :  { %v1932_v44 = vmul.f32 %v8098_v54, %v8098_v54  ;;  %v1925_v10 = vmul.f32 %v8101_v53, %v8101_v53 }
 0x5e7   :  { %v1868_v61 = vpop.xlane.xlu2 %1867  ;;  %v1850_v51 = vpop.xlane.xlu1 %1849 }
 0x5e8   :  { %v1885_v45 = vmul.f32 0.03125, %v1868_v61  ;;  %v1876_v30 = vmul.f32 0.03125, %v1850_v51  ;;  %1961 = vadd.xlane.f32.xlu0 %v1932_v44  ;;  %1947 = vadd.xlane.f32.xlu2 %v1925_v10 }
 0x5ea   :  { %v1901_v46 = vsub.f32 %v8035_v15, %v1885_v45  ;;  %v1892_v60 = vsub.f32 %v8033_v55, %v1876_v30 }
 0x5ec   :  { %v8110_v0 = vmul.f32 %v8013_v40, %v1901_v46  ;;  %v8113_v24 = vmul.f32 %v8013_v40, %v1892_v60 }
 0x5ee   :  { %v1933_v22 = vmul.f32 %v8110_v0, %v8110_v0  ;;  %v1924_v19 = vmul.f32 %v8113_v24, %v8113_v24 }
 0x5ef   :  { %v1870_v9 = vpop.xlane.xlu0 %1869  ;;  %v1840_v58 = vpop.xlane.xlu1 %1839 }
 0x5f0   :  { %v1886_v25 = vmul.f32 0.03125, %v1870_v9  ;;  %v1856_v59 = vpop.xlane.xlu2 %1855  ;;  %v1871_v62 = vmul.f32 0.03125, %v1840_v58  ;;  %1963 = vadd.xlane.f32.xlu0 %v1933_v22  ;;  %1945 = vadd.xlane.f32.xlu2 %v1924_v19 }
 0x5f1   :  { %v1879_v39 = vmul.f32 0.03125, %v1856_v59 }
 0x5f2   :  { %v1902_v52 = vsub.f32 %v8045_v63, %v1886_v25  ;;  %v1887_v11 = vsub.f32 %v8041_v17, %v1871_v62  ;;  %v8207_v17 = vld [vmem:[#allocation17 + $0x1] ss:$0 sm:$0xff] }
 0x5f3   :  { %v1895_v31 = vsub.f32 %v8043_v16, %v1879_v39 }
 0x5f4   :  { %v8123_v50 = vmul.f32 %v8013_v40, %v1902_v52  ;;  %v8126_v37 = vmul.f32 %v8013_v40, %v1887_v11 }
 0x5f5   :  { %v8129_v14 = vmul.f32 %v8013_v40, %v1895_v31 }
 0x5f6   :  { %v1934_v33 = vmul.f32 %v8123_v50, %v8123_v50  ;;  %v1919_v44 = vmul.f32 %v8126_v37, %v8126_v37 }
 0x5f7   :  { %v1858_v10 = vpop.xlane.xlu0 %1857  ;;  %v1927_v61 = vmul.f32 %v8129_v14, %v8129_v14 }
 0x5f8   :  { %v1880_v51 = vmul.f32 0.03125, %v1858_v10  ;;  %v1854_v45 = vpop.xlane.xlu2 %1853  ;;  %1965 = vadd.xlane.f32.xlu1 %v1934_v33  ;;  %1935 = vadd.xlane.f32.xlu2 %v1919_v44 }
 0x5f9   :  { %v1878_v30 = vmul.f32 0.03125, %v1854_v45  ;;  %1951 = vadd.xlane.f32.xlu0 %v1927_v61 }
 0x5fa   :  { %v1896_v46 = vsub.f32 %v8053_v5, %v1880_v51 }
 0x5fb   :  { %v1894_v60 = vsub.f32 %v8055_v28, %v1878_v30 }
 0x5fc   :  { %v8140_v22 = vmul.f32 %v8013_v40, %v1896_v46 }
 0x5fd   :  { %v8143_v19 = vmul.f32 %v8013_v40, %v1894_v60 }
 0x5fe   :  { %v1928_v9 = vmul.f32 %v8140_v22, %v8140_v22 }
 0x5ff   :  { %v1848_v58 = vpop.xlane.xlu0 %1847  ;;  %v1926_v25 = vmul.f32 %v8143_v19, %v8143_v19 }
 0x600   :  { %v1875_v59 = vmul.f32 0.03125, %v1848_v58  ;;  %v1844_v62 = vpop.xlane.xlu2 %1843  ;;  %1953 = vadd.xlane.f32.xlu1 %v1928_v9 }
 0x601   :  { %v1873_v39 = vmul.f32 0.03125, %v1844_v62  ;;  %1949 = vadd.xlane.f32.xlu0 %v1926_v25 }
 0x602   :  { %v1891_v52 = vsub.f32 %v8061_v36, %v1875_v59 }
 0x603   :  { %v1889_v11 = vsub.f32 %v8063_v32, %v1873_v39 }
 0x604   :  { %v8152_v31 = vmul.f32 %v8013_v40, %v1891_v52 }
 0x605   :  { %v8155_v33 = vmul.f32 %v8013_v40, %v1889_v11 }
 0x606   :  { %v1923_v44 = vmul.f32 %v8152_v31, %v8152_v31 }
 0x607   :  { %v1846_v10 = vpop.xlane.xlu0 %1845  ;;  %v1921_v61 = vmul.f32 %v8155_v33, %v8155_v33 }
 0x608   :  { %v1874_v51 = vmul.f32 0.03125, %v1846_v10  ;;  %v1842_v45 = vpop.xlane.xlu2 %1841  ;;  %1943 = vadd.xlane.f32.xlu1 %v1923_v44 }
 0x609   :  { %v1872_v30 = vmul.f32 0.03125, %v1842_v45  ;;  %1939 = vadd.xlane.f32.xlu0 %v1921_v61 }
 0x60a   :  { %v1890_v46 = vsub.f32 %v8069_v20, %v1874_v51 }
 0x60b   :  { %v1888_v60 = vsub.f32 %v8071_v13, %v1872_v30 }
 0x60c   :  { %v8164_v9 = vmul.f32 %v8013_v40, %v1890_v46 }
 0x60d   :  { %v8167_v58 = vmul.f32 %v8013_v40, %v1888_v60 }
 0x60e   :  { %v1922_v25 = vmul.f32 %v8164_v9, %v8164_v9 }
 0x60f   :  { %v1920_v59 = vmul.f32 %v8167_v58, %v8167_v58 }
 0x610   :  { %1941 = vadd.xlane.f32.xlu1 %v1922_v25 }
 0x611   :  { %1937 = vadd.xlane.f32.xlu0 %v1920_v59 }
 0x643   :  { %v1956_v62 = vpop.xlane.xlu1 %1955 }
 0x644   :  { %v1977_v39 = vmul.f32 0.03125, %v1956_v62 }
 0x646   :  { %v1993_v52 = vadd.f32 1e-05, %v1977_v39 }
 0x648   :  { %6534 = vrsqrt.f32 %v1993_v52  ;;  %vm2105_vm5 = vweird.f32 %v1993_v52 }
 0x64b   :  { %v1958_v11 = vpop.xlane.xlu2 %1957 }
 0x64c   :  { %v1978_v44 = vmul.f32 0.03125, %v1958_v11 }
 0x64e   :  { %v1994_v10 = vadd.f32 1e-05, %v1978_v44  ;;  %v6535_v61 = vpop.eup %6534 }
 0x64f   :  { %v2100_v45 = vmul.f32 %v6535_v61, %v1993_v52  ;;  %vm2106_vm2 = vweird.f32 %v6535_v61 }
 0x650   :  { %6536 = vrsqrt.f32 %v1994_v10  ;;  %vm2115_vm4 = vweird.f32 %v1994_v10  ;;  %vm2107_vm7 = vmor %vm2105_vm5, %vm2106_vm2 }
 0x651   :  { %v2101_v20 = vmul.f32 %v6535_v61, %v2100_v45 }
 0x653   :  { %v1960_v51 = vpop.xlane.xlu2 %1959  ;;  %v2102_v32 = vmul.f32 0.5, %v2101_v20 }
 0x654   :  { %v1979_v30 = vmul.f32 0.03125, %v1960_v51 }
 0x655   :  { %v2103_v45 = vsub.f32 1.5, %v2102_v32 }
 0x656   :  { %v6537_v46 = vpop.eup %6536  ;;  %v8173_v60 = vadd.f32 1e-05, %v1979_v30 }
 0x657   :  { %v2110_v13 = vmul.f32 %v6537_v46, %v1994_v10  ;;  %vm2116_vm3 = vweird.f32 %v6537_v46 }
 0x658   :  { %6538 = vrsqrt.f32 %v8173_v60  ;;  %vm2117_vm6 = vmor %vm2115_vm4, %vm2116_vm3  ;;  %vm2125_vm9 = vweird.f32 %v8173_v60 }
 0x659   :  { %v2111_v25 = vmul.f32 %v6537_v46, %v2110_v13 }
 0x65b   :  { %v2112_v59 = vmul.f32 0.5, %v2111_v25  ;;  %v1962_v62 = vpop.xlane.xlu0 %1961  ;;  %v1948_v39 = vpop.xlane.xlu2 %1947 }
 0x65c   :  { %v1980_v36 = vmul.f32 0.03125, %v1962_v62  ;;  %v1973_v11 = vmul.f32 0.03125, %v1948_v39 }
 0x65d   :  { %v2113_v51 = vsub.f32 1.5, %v2112_v59 }
 0x65e   :  { %v8176_v44 = vpop.eup %6538  ;;  %v8178_v28 = vadd.f32 1e-05, %v1980_v36  ;;  %v8180_v5 = vadd.f32 1e-05, %v1973_v11  ;;  %v2104_v36 = vmul.f32 %v6535_v61, %v2103_v45 }
 0x65f   :  { %v2120_v30 = vmul.f32 %v8176_v44, %v8173_v60  ;;  %v2114_v20 = vmul.f32 %v6537_v46, %v2113_v51  ;;  %vm2126_vm8 = vweird.f32 %v8176_v44 }
 0x660   :  { %6540 = vrsqrt.f32 %v8178_v28  ;;  %vm8220_vm10 = vmor %vm2125_vm9, %vm2126_vm8  ;;  %vm2135_vm11 = vweird.f32 %v8178_v28  ;;  %vm2065_vm13 = vweird.f32 %v8180_v5 }
 0x661   :  { %v2121_v13 = vmul.f32 %v8176_v44, %v2120_v30  ;;  %6542 = vrsqrt.f32 %v8180_v5  ;;  %v2118_v51 = vsel %vm2117_vm6, %v6537_v46, %v2114_v20 }
 0x663   :  { %v1964_v25 = vpop.xlane.xlu0 %1963  ;;  %v1946_v62 = vpop.xlane.xlu2 %1945  ;;  %v2122_v39 = vmul.f32 0.5, %v2121_v13  ;;  %v2108_v13 = vsel %vm2107_vm7, %v6535_v61, %v2104_v36 }
 0x664   :  { %v1981_v11 = vmul.f32 0.03125, %v1964_v25  ;;  %v1972_v63 = vmul.f32 0.03125, %v1946_v62  ;;  %v2169_v46 = vmul.f32 %v2108_v13, %v8079_v2 }
 0x665   :  { %v2123_v25 = vsub.f32 1.5, %v2122_v39 }
 0x666   :  { %v8187_v59 = vpop.eup %6540  ;;  %v8189_v32 = vadd.f32 1e-05, %v1981_v11  ;;  %v8191_v16 = vadd.f32 1e-05, %v1972_v63  ;;  %v2170_v63 = vmul.f32 %v2118_v51, %v8085_v43 }
 0x667   :  { %v8193_v30 = vpop.eup %6542  ;;  %v2130_v45 = vmul.f32 %v8187_v59, %v8178_v28  ;;  %v2124_v20 = vmul.f32 %v8176_v44, %v2123_v25  ;;  %vm2136_vm12 = vweird.f32 %v8187_v59 }
 0x668   :  { %6544 = vrsqrt.f32 %v8189_v32  ;;  %v2060_v52 = vmul.f32 %v8193_v30, %v8180_v5  ;;  %v2189_v51 = vmul.f32 %v8207_v17, %v2170_v63  ;;  %v2188_v63 = vmul.f32 %v8207_v17, %v2169_v46  ;;  %vm8270_vm15 = vmor %vm2135_vm11, %vm2136_vm12 }
 0x669   :  { %v2131_v10 = vmul.f32 %v8187_v59, %v2130_v45  ;;  %6546 = vrsqrt.f32 %v8191_v16  ;;  %v2128_v60 = vsel %vm8220_vm10, %v8176_v44, %v2124_v20  ;;  %vm2066_vm0 = vweird.f32 %v8193_v30 }
 0x66a   :  { %v2061_v15 = vmul.f32 %v8193_v30, %v2060_v52  ;;  %v2171_v25 = vmul.f32 %v2128_v60, %v8091_v42  ;;  %vm2145_vm1 = vweird.f32 %v8189_v32  ;;  %vm8313_vm3 = vmor %vm2065_vm13, %vm2066_vm0  ;;  %vm2055_vm11 = vweird.f32 %v8191_v16 }
 0x66b   :  { %v1936_v62 = vpop.xlane.xlu2 %1935  ;;  %v1966_v11 = vpop.xlane.xlu1 %1965  ;;  %v2132_v45 = vmul.f32 0.5, %v2131_v10 }
 0x66c   :  { %v1952_v61 = vpop.xlane.xlu0 %1951  ;;  %v1967_v36 = vmul.f32 0.03125, %v1936_v62  ;;  %v1982_v39 = vmul.f32 0.03125, %v1966_v11  ;;  %v8232_v62 = vld [vmem:[#allocation19 + $0x1] ss:$0 sm:$0xff] }
 0x66d   :  { %v1975_v55 = vmul.f32 0.03125, %v1952_v61  ;;  %v2133_v11 = vsub.f32 1.5, %v2132_v45  ;;  %v2062_v61 = vmul.f32 0.5, %v2061_v15  ;;  %v8247_v45 = vadd.f32 %v8232_v62, %v2188_v63 }
 0x66e   :  { %v8210_v56 = vpop.eup %6544  ;;  %v8213_v43 = vadd.f32 1e-05, %v1967_v36  ;;  %v8215_v2 = vadd.f32 1e-05, %v1982_v39  ;;  %v8241_v39 = vadd.f32 %v8232_v62, %v2189_v51 }
 0x66f   :  { %v8218_v13 = vpop.eup %6546  ;;  %v2140_v10 = vmul.f32 %v8210_v56, %v8189_v32  ;;  %v8226_v52 = vadd.f32 1e-05, %v1975_v55  ;;  %10882 = vst [vmem:[#allocation49_spill] sm:$0xff] %v8247_v45  ;;  %v2063_v6 = vsub.f32 1.5, %v2062_v61  ;;  %vm2146_vm14 = vweird.f32 %v8210_v56 }
 0x670   :  { %6548 = vrsqrt.f32 %v8213_v43  ;;  %v2050_v55 = vmul.f32 %v8218_v13, %v8191_v16  ;;  %10881 = vst [vmem:[#allocation48_spill] sm:$0xff] %v8241_v39  ;;  %v2190_v61 = vmul.f32 %v8207_v17, %v2171_v25  ;;  %vm8288_vm2 = vmor %vm2145_vm1, %vm2146_vm14  ;;  %vm2155_vm5 = vweird.f32 %v8215_v2 }
 0x671   :  { %v2141_v36 = vmul.f32 %v8210_v56, %v2140_v10  ;;  %6550 = vrsqrt.f32 %v8226_v52  ;;  %v2134_v10 = vmul.f32 %v8187_v59, %v2133_v11  ;;  %vm2085_vm4 = vweird.f32 %v8226_v52 }
 0x672   :  { %6552 = vrsqrt.f32 %v8215_v2  ;;  %v2051_v42 = vmul.f32 %v8218_v13, %v2050_v55  ;;  %vm2056_vm8 = vweird.f32 %v8218_v13 }
 0x673   :  { %v2142_v44 = vmul.f32 0.5, %v2141_v36  ;;  %v1954_v20 = vpop.xlane.xlu1 %1953  ;;  %v2138_v25 = vsel %vm8270_vm15, %v8187_v59, %v2134_v10 }
 0x674   :  { %v1950_v15 = vpop.xlane.xlu0 %1949  ;;  %v1976_v46 = vmul.f32 0.03125, %v1954_v20  ;;  %v8280_v20 = vmul.f32 %v8193_v30, %v2063_v6  ;;  %v10887_v6 = vmax.f32 %v8241_v39, 0.0 }
 0x675   :  { %v2143_v7 = vsub.f32 1.5, %v2142_v44  ;;  %v1974_v27 = vmul.f32 0.03125, %v1950_v15  ;;  %v2172_v15 = vmul.f32 %v2138_v25, %v8098_v54 }
 0x676   :  { %v8250_v51 = vpop.eup %6548  ;;  %v8254_v60 = vadd.f32 1e-05, %v1976_v46  ;;  %v2052_v46 = vmul.f32 0.5, %v2051_v42 }
 0x677   :  { %v8257_v40 = vpop.eup %6550  ;;  %v2144_v63 = vmul.f32 %v8210_v56, %v2143_v7  ;;  %v8261_v11 = vadd.f32 1e-05, %v1974_v27  ;;  %v10769_v27 = vmax.f32 %v8247_v45, 0.0  ;;  %v2000_v59 = vmul.f32 %v8250_v51, %v8213_v43 }
 0x678   :  { %v8264_v44 = vpop.eup %6552  ;;  %v2080_v7 = vmul.f32 %v8257_v40, %v8226_v52  ;;  %6554 = vrsqrt.f32 %v8254_v60  ;;  %v2053_v1 = vsub.f32 1.5, %v2052_v46  ;;  %vm2086_vm7 = vweird.f32 %v8257_v40 }
 0x679   :  { %v2150_v28 = vmul.f32 %v8264_v44, %v8215_v2  ;;  %6556 = vrsqrt.f32 %v8261_v11  ;;  %v8298_v32 = vpack.c.bf16 %v10887_v6, %v10769_v27  ;;  %v2148_v55 = vsel %vm8288_vm2, %v8210_v56, %v2144_v63  ;;  %vm8364_vm12 = vmor %vm2085_vm4, %vm2086_vm7 }
 0x67a   :  { %v2081_v36 = vmul.f32 %v8257_v40, %v2080_v7  ;;  %v8307_v7 = vadd.f32 %v8232_v62, %v2190_v61  ;;  %v2173_v45 = vmul.f32 %v2148_v55, %v8110_v0  ;;  %vm2156_vm6 = vweird.f32 %v8264_v44  ;;  %vm8427_vm2 = vmor %vm2055_vm11, %vm2056_vm8 }
 0x67b   :  { %v2151_v10 = vmul.f32 %v8264_v44, %v2150_v28  ;;  %v1944_v42 = vpop.xlane.xlu1 %1943  ;;  %vm2157_vm9 = vmor %vm2155_vm5, %vm2156_vm6  ;;  %vm2075_vm10 = vweird.f32 %v8261_v11  ;;  %vm2095_vm13 = vweird.f32 %v8254_v60 }
 0x67c   :  { %10888 = vst [vmem:[#allocation50_spill] sm:$0xff] %v8307_v7  ;;  %v2082_v27 = vmul.f32 0.5, %v2081_v36  ;;  %v1940_v56 = vpop.xlane.xlu0 %1939  ;;  %v1971_v63 = vmul.f32 0.03125, %v1944_v42  ;;  %v2001_v42 = vmul.f32 %v8250_v51, %v2000_v59 }
 0x67d   :  { %v2152_v28 = vmul.f32 0.5, %v2151_v10  ;;  %v1969_v5 = vmul.f32 0.03125, %v1940_v56  ;;  %v8346_v56 = vmul.f32 %v8218_v13, %v2053_v1 }
 0x67e   :  { %v8324_v47 = vpop.eup %6554  ;;  %v2083_v39 = vsub.f32 1.5, %v2082_v27  ;;  %v8326_v36 = vadd.f32 1e-05, %v1971_v63  ;;  %v2191_v27 = vmul.f32 %v8207_v17, %v2172_v15  ;;  %v8354_v15 = vmul.f32 0.5, %v2001_v42 }
 0x67f   :  { %v2153_v54 = vsub.f32 1.5, %v2152_v28  ;;  %v2090_v25 = vmul.f32 %v8324_v47, %v8254_v60  ;;  %v8333_v10 = vpop.eup %6556  ;;  %v8335_v61 = vadd.f32 1e-05, %v1969_v5  ;;  %vm2096_vm14 = vweird.f32 %v8324_v47 }
 0x680   :  { %6558 = vrsqrt.f32 %v8326_v36  ;;  %v2084_v0 = vmul.f32 %v8257_v40, %v2083_v39  ;;  %v2070_v59 = vmul.f32 %v8333_v10, %v8261_v11  ;;  %v2192_v39 = vmul.f32 %v8207_v17, %v2173_v45  ;;  %vm2097_vm0 = vmor %vm2095_vm13, %vm2096_vm14 }
 0x681   :  { %v2154_v55 = vmul.f32 %v8264_v44, %v2153_v54  ;;  %v2091_v63 = vmul.f32 %v8324_v47, %v2090_v25  ;;  %6560 = vrsqrt.f32 %v8335_v61  ;;  %vm2076_vm15 = vweird.f32 %v8333_v10 }
 0x682   :  { %v2071_v5 = vmul.f32 %v8333_v10, %v2070_v59  ;;  %v2088_v25 = vsel %vm8364_vm12, %v8257_v40, %v2084_v0  ;;  %v8378_v49 = vadd.f32 %v8232_v62, %v2192_v39  ;;  %v8392_v2 = vadd.f32 %v8232_v62, %v2191_v27  ;;  %vm2077_vm1 = vmor %vm2075_vm10, %vm2076_vm15 }
 0x683   :  { %v2158_v28 = vsel %vm2157_vm9, %v8264_v44, %v2154_v55  ;;  %v1942_v1 = vpop.xlane.xlu1 %1941  ;;  %v2092_v45 = vmul.f32 0.5, %v2091_v63  ;;  %v10896_v11 = vsel %vm8313_vm3, %v8193_v30, %v8280_v20  ;;  %vm2045_vm3 = vweird.f32 %v8326_v36 }
 0x684   :  { %v1938_v42 = vpop.xlane.xlu0 %1937  ;;  %v1970_v44 = vmul.f32 0.03125, %v1942_v1  ;;  %v2174_v54 = vmul.f32 %v2158_v28, %v8123_v50  ;;  %v2072_v55 = vmul.f32 0.5, %v2071_v5  ;;  %10893 = vst [vmem:[#allocation51_spill] sm:$0xff] %v8378_v49  ;;  %v10780_v27 = vmax.f32 %v8378_v49, 0.0 }
 0x685   :  { %v1968_v59 = vmul.f32 0.03125, %v1938_v42  ;;  %v2093_v46 = vsub.f32 1.5, %v2092_v45  ;;  %10895 = vst [vmem:[#allocation53_spill] sm:$0xff] %v8392_v2  ;;  %vm2025_vm7 = vweird.f32 %v8335_v61  ;;  %vm2006_vm9 = vweird.f32 %v8250_v51 }
 0x686   :  { %v6559_v52 = vpop.eup %6558  ;;  %v8374_v35 = vadd.f32 1e-05, %v1970_v44  ;;  %v2193_v63 = vmul.f32 %v8207_v17, %v2174_v54  ;;  %v2073_v1 = vsub.f32 1.5, %v2072_v55  ;;  %vm2005_vm10 = vweird.f32 %v8213_v43 }
 0x687   :  { %v2040_v50 = vmul.f32 %v6559_v52, %v8326_v36  ;;  %v8382_v28 = vadd.f32 1e-05, %v1968_v59  ;;  %v8384_v40 = vpop.eup %6560  ;;  %v2094_v0 = vmul.f32 %v8324_v47, %v2093_v46  ;;  %v2167_v46 = vmul.f32 %v2088_v25, %v8129_v14  ;;  %vm8481_vm11 = vmor %vm2005_vm10, %vm2006_vm9 }
 0x688   :  { %6562 = vrsqrt.f32 %v8374_v35  ;;  %v8389_v5 = vadd.f32 %v8232_v62, %v2193_v63  ;;  %v2074_v39 = vmul.f32 %v8333_v10, %v2073_v1  ;;  %v2020_v45 = vmul.f32 %v8384_v40, %v8335_v61 }
 0x689   :  { %v2041_v42 = vmul.f32 %v6559_v52, %v2040_v50  ;;  %v2098_v44 = vsel %vm2097_vm0, %v8324_v47, %v2094_v0  ;;  %6564 = vrsqrt.f32 %v8382_v28  ;;  %v10781_v47 = vmax.f32 %v8392_v2, 0.0 }
 0x68a   :  { %10894 = vst [vmem:[#allocation52_spill] sm:$0xff] %v8389_v5  ;;  %v10779_v54 = vmax.f32 %v8389_v5, 0.0  ;;  %v2078_v60 = vsel %vm2077_vm1, %v8333_v10, %v2074_v39  ;;  %v2021_v55 = vmul.f32 %v8384_v40, %v2020_v45  ;;  %v2168_v63 = vmul.f32 %v2098_v44, %v8140_v22  ;;  %v6929_v5 = vld [vmem:[#allocation8 + $0x50] sm:$0xff] }
 0x68b   :  { %v2042_v59 = vmul.f32 0.5, %v2041_v42  ;;  %v2165_v25 = vmul.f32 %v10896_v11, %v8101_v53  ;;  %v2166_v10 = vmul.f32 %v2078_v60, %v8143_v19  ;;  %vm2046_vm4 = vweird.f32 %v6559_v52 }
 0x68c   :  { %v2237_v14 = vpack.c.bf16 %v10779_v54, %v10780_v27  ;;  %v2022_v1 = vmul.f32 0.5, %v2021_v55  ;;  %v2187_v0 = vmul.f32 %v8207_v17, %v2168_v63  ;;  %v2058_v53 = vsel %vm8427_vm2, %v8218_v13, %v8346_v56  ;;  %vm2047_vm6 = vmor %vm2045_vm3, %vm2046_vm4  ;;  %v6918_v54 = vld [vmem:[#allocation8 + $0x28] sm:$0xff] }
 0x68d   :  { %v2043_v50 = vsub.f32 1.5, %v2042_v59  ;;  %v2003_v19 = vsub.f32 1.5, %v8354_v15  ;;  %v2186_v16 = vmul.f32 %v8207_v17, %v2167_v46  ;;  %vm2026_vm5 = vweird.f32 %v8384_v40 }
 0x68e   :  { %v8432_v6 = vpop.eup %6562  ;;  %2238 = vmatpush.bf16.msrb.mxu0 %v2237_v14  ;;  %v2023_v30 = vsub.f32 1.5, %v2022_v1  ;;  %v10899_v42 = vmax.f32 %v8307_v7, 0.0  ;;  %v8449_v56 = vadd.f32 %v8232_v62, %v2187_v0  ;;  %v2184_v36 = vmul.f32 %v8207_v17, %v2165_v25  ;;  %vm8456_vm8 = vmor %vm2025_vm7, %vm2026_vm5 }
 0x68f   :  { %v2044_v20 = vmul.f32 %v6559_v52, %v2043_v50  ;;  %v2030_v39 = vmul.f32 %v8432_v6, %v8374_v35  ;;  %v6565_v45 = vpop.eup %6564  ;;  %v2185_v15 = vmul.f32 %v8207_v17, %v2166_v10  ;;  %v8462_v63 = vadd.f32 %v8232_v62, %v2186_v16 }
 0x690   :  { %v2236_v13 = vpack.c.bf16 %v10781_v47, %v10899_v42  ;;  %10900 = vst [vmem:[#allocation54_spill] sm:$0xff] %v8449_v56  ;;  %v2024_v46 = vmul.f32 %v8384_v40, %v2023_v30  ;;  %v2010_v60 = vmul.f32 %v6565_v45, %v8382_v28  ;;  %v2164_v11 = vmul.f32 %v2058_v53, %v8113_v24  ;;  %v6904_v53 = vld [vmem:[#allocation10 + $0x10] sm:$0xff] }
 0x691   :  { %v2048_v44 = vsel %vm2047_vm6, %v6559_v52, %v2044_v20  ;;  %v2031_v59 = vmul.f32 %v8432_v6, %v2030_v39  ;;  %10903 = vst [vmem:[#allocation55_spill] sm:$0xff] %v8462_v63  ;;  %v2004_v25 = vmul.f32 %v8250_v51, %v2003_v19  ;;  %v10782_v22 = vmax.f32 %v8449_v56, 0.0  ;;  %v6931_v56 = vld [vmem:[#allocation8 + $0x48] sm:$0xff] }
 0x692   :  { %2239 = vmatpush.bf16.msrb.mxu0 %v2236_v13  ;;  %v2163_v14 = vmul.f32 %v2048_v44, %v8152_v31  ;;  %v2028_v61 = vsel %vm8456_vm8, %v8384_v40, %v2024_v46  ;;  %v2011_v52 = vmul.f32 %v6565_v45, %v2010_v60  ;;  %v8473_v1 = vadd.f32 %v8232_v62, %v2185_v15 }
 0x693   :  { %v2032_v10 = vmul.f32 0.5, %v2031_v59  ;;  %v8478_v31 = vadd.f32 %v8232_v62, %v2184_v36  ;;  %v2161_v0 = vmul.f32 %v2028_v61, %v8155_v33  ;;  %vm2036_vm12 = vweird.f32 %v8432_v6 }
 0x694   :  { %10904 = vst [vmem:[#allocation56_spill] sm:$0xff] %v8473_v1  ;;  %v2182_v50 = vmul.f32 %v8207_v17, %v2163_v14  ;;  %v2012_v24 = vmul.f32 0.5, %v2011_v52  ;;  %v10783_v19 = vmax.f32 %v8462_v63, 0.0  ;;  %v2183_v16 = vmul.f32 %v8207_v17, %v2164_v11 }
 0x695   :  { %10905 = vst [vmem:[#allocation57_spill] sm:$0xff] %v8478_v31  ;;  %v2033_v40 = vsub.f32 1.5, %v2032_v10  ;;  %v2008_v43 = vsel %vm8481_vm11, %v8250_v51, %v2004_v25  ;;  %vm2016_vm13 = vweird.f32 %v6565_v45  ;;  %vm2035_vm14 = vweird.f32 %v8374_v35 }
 0x696   :  { %2240 = vmatpush.bf16.msrb.mxu0 %v8298_v32  ;;  %v2013_v30 = vsub.f32 1.5, %v2012_v24  ;;  %v2234_v20 = vpack.c.bf16 %v10782_v22, %v10783_v19  ;;  %v10784_v32 = vmax.f32 %v8473_v1, 0.0  ;;  %v8500_v39 = vadd.f32 %v8232_v62, %v2182_v50  ;;  %vm2037_vm0 = vmor %vm2035_vm14, %vm2036_vm12  ;;  %v6920_v22 = vld [vmem:[#allocation10 + $0x58] sm:$0xff] }
 0x697   :  { %v2034_v33 = vmul.f32 %v8432_v6, %v2033_v40  ;;  %vm2015_vm15 = vweird.f32 %v8382_v28  ;;  %v2180_v51 = vmul.f32 %v8207_v17, %v2161_v0  ;;  %v10785_v13 = vmax.f32 %v8478_v31, 0.0  ;;  %v6902_v0 = vld [vmem:[#allocation10] sm:$0xff]  ;;  %v6905_v40 = vld [vmem:[#allocation10 + $0x18] sm:$0xff] }
 0x698   :  { %10908 = vst [vmem:[#allocation58_spill] sm:$0xff] %v8500_v39  ;;  %v2014_v42 = vmul.f32 %v6565_v45, %v2013_v30  ;;  %vm2017_vm1 = vmor %vm2015_vm15, %vm2016_vm13  ;;  %v8507_v36 = vadd.f32 %v8232_v62, %v2183_v16  ;;  %v2159_v15 = vmul.f32 %v2008_v43, %v8126_v37  ;;  %v10787_v60 = vmax.f32 %v8500_v39, 0.0  ;;  %v6906_v16 = vld [vmem:[#allocation10 + $0x20] sm:$0xff]  ;;  %v6907_v43 = vld [vmem:[#allocation10 + $0x28] sm:$0xff] }
 0x699   :  { %v2038_v35 = vsel %vm2037_vm0, %v8432_v6, %v2034_v33  ;;  %v2233_v28 = vpack.c.bf16 %v10784_v32, %v10785_v13  ;;  %v8519_v59 = vadd.f32 %v8232_v62, %v2180_v51  ;;  %v6908_v30 = vld [vmem:[#allocation10 + $0x30] sm:$0xff]  ;;  %v6909_v33 = vld [vmem:[#allocation10 + $0x38] sm:$0xff] }
 0x69a   :  { %2241 = vmatpush.bf16.msrb.mxu0 %v2234_v20  ;;  %10909 = vst [vmem:[#allocation59_spill] sm:$0xff] %v8507_v36  ;;  %v2018_v46 = vsel %vm2017_vm1, %v6565_v45, %v2014_v42  ;;  %v2162_v44 = vmul.f32 %v2038_v35, %v8164_v9  ;;  %v10786_v37 = vmax.f32 %v8507_v36, 0.0  ;;  %v2178_v45 = vmul.f32 %v8207_v17, %v2159_v15  ;;  %v6910_v42 = vld [vmem:[#allocation8] sm:$0xff]  ;;  %v6921_v13 = vld [vmem:[#allocation8 + $0x38] sm:$0xff] }
 0x69b   :  { %v2160_v6 = vmul.f32 %v2018_v46, %v8167_v58  ;;  %v10789_v25 = vmax.f32 %v8519_v59, 0.0  ;;  %v6911_v15 = vld [vmem:[#allocation10 + $0x40] sm:$0xff]  ;;  %v8549_v46 = vstv %s6067_s26 }
 0x69c   :  { %v2181_v55 = vmul.f32 %v8207_v17, %v2162_v44  ;;  %v2232_v58 = vpack.c.bf16 %v10786_v37, %v10787_v60  ;;  %v8537_v52 = vadd.f32 %v8232_v62, %v2178_v45 }
 0x69d   :  { %v2179_v9 = vmul.f32 %v8207_v17, %v2160_v6 }
 0x69e   :  { %2242 = vmatpush.bf16.msrb.mxu0 %v2233_v28  ;;  %v8525_v14 = vadd.f32 %v8232_v62, %v2181_v55  ;;  %v10791_v50 = vmax.f32 %v8537_v52, 0.0  ;;  %v6912_v55 = vld [vmem:[#allocation8 + $0x8] sm:$0xff] }
 0x69f   :  { %v8532_v11 = vadd.f32 %v8232_v62, %v2179_v9  ;;  %v6903_v62 = vld [vmem:[#allocation10 + $0x8] sm:$0xff] }
 0x6a0   :  { %10910 = vst [vmem:[#allocation60_spill] sm:$0xff] %v8525_v14  ;;  %v10788_v61 = vmax.f32 %v8525_v14, 0.0 }
 0x6a1   :  { %v10790_v10 = vmax.f32 %v8532_v11, 0.0 }
 0x6a2   :  { %2243 = vmatpush.bf16.msrb.mxu0 %v2232_v58  ;;  %v2231_v17 = vpack.c.bf16 %v10788_v61, %v10789_v25  ;;  %v6924_v25 = vld [vmem:[#allocation10 + $0x70] sm:$0xff] }
 0x6a3   :  { %v2230_v24 = vpack.c.bf16 %v10790_v10, %v10791_v50  ;;  %v6925_v50 = vld [vmem:[#allocation8 + $0x68] sm:$0xff] }
 0x6a6   :  { %2244 = vmatpush.bf16.msrb.mxu0 %v2231_v17 }
 0x6aa   :  { %2245 = vmatpush.bf16.msrb.mxu0 %v2230_v24 }
 0x6ad   :  { %2246 = vmatmul.bf16.vlgmr.msrb.gmra.mxu0 %v6902_v0 }
 0x6bd   :  { %2251 = vmatmul.bf16.gmra.mxu0 %v6903_v62 }
 0x6cd   :  { %2256 = vmatmul.bf16.gmra.mxu0 %v6904_v53 }
 0x6dd   :  { %2261 = vmatmul.bf16.gmra.mxu0 %v6905_v40  ;;  %v6913_v40 = vld [vmem:[#allocation8 + $0x10] sm:$0xff] }
 0x6ed   :  { %2266 = vmatmul.bf16.gmra.mxu0 %v6906_v16 }
 0x6fd   :  { %2271 = vmatmul.bf16.gmra.mxu0 %v6907_v43 }
 0x70d   :  { %2276 = vmatmul.bf16.gmra.mxu0 %v6908_v30 }
 0x71d   :  { %2281 = vmatmul.bf16.gmra.mxu0 %v6909_v33  ;;  %v6914_v33 = vld [vmem:[#allocation10 + $0x48] sm:$0xff] }
 0x72a   :  { %v2247_v20 = vpop.f32.mrf.mxu0 }
 0x72b   :  { %v2248_v51 = vadd.f32 %v6910_v42, %v2247_v20 }
 0x72d   :  { %v2327_v35 = vmax.f32 %v2248_v51, 0.0  ;;  %2286 = vmatmul.bf16.gmra.mxu0 %v6911_v15  ;;  %v6915_v15 = vld [vmem:[#allocation8 + $0x18] sm:$0xff] }
 0x72f   :  { %v2359_v44 = vadd.f32 1e-07, %v2327_v35 }
 0x731   :  { %v2392_v28 = vmul.f32 %v8549_v46, %v2359_v44 }
 0x732   :  { %v2249_v6 = vpop.f32.mrf.mxu0 }
 0x733   :  { %v2250_v45 = vadd.f32 %v6912_v55, %v2249_v6  ;;  %v6068_v9 = vclamps-f32 %v2392_v28, 60.0 }
 0x735   :  { %v2328_v58 = vmax.f32 %v2250_v45, 0.0  ;;  %v2488_v24 = vmul.f32 1.442695, %v6068_v9 }
 0x737   :  { %v2360_v17 = vadd.f32 1e-07, %v2328_v58  ;;  %6566 = vpow2.f32 %v2488_v24 }
 0x739   :  { %v2393_v0 = vmul.f32 %v8549_v46, %v2360_v17 }
 0x73a   :  { %v2252_v62 = vpop.f32.mrf.mxu0 }
 0x73b   :  { %v6069_v53 = vclamps-f32 %v2393_v0, 60.0  ;;  %v2253_v16 = vadd.f32 %v6913_v40, %v2252_v62  ;;  %v6926_v62 = vld [vmem:[#allocation8 + $0x60] sm:$0xff] }
 0x73d   :  { %v2490_v43 = vmul.f32 1.442695, %v6069_v53  ;;  %v2329_v30 = vmax.f32 %v2253_v16, 0.0  ;;  %2291 = vmatmul.bf16.gmra.mxu0 %v6914_v33  ;;  %v8554_v35 = vpop.eup %6566 }
 0x73e   :  { %v8559_v9 = vmul.f32 %v8554_v35, %v2359_v44 }
 0x73f   :  { %6568 = vpow2.f32 %v2490_v43  ;;  %v2361_v20 = vadd.f32 1e-07, %v2329_v30  ;;  %v6916_v30 = vld [vmem:[#allocation8 + $0x20] sm:$0xff] }
 0x741   :  { %v2394_v42 = vmul.f32 %v8549_v46, %v2361_v20 }
 0x742   :  { %v2254_v51 = vpop.f32.mrf.mxu0 }
 0x743   :  { %v2255_v28 = vadd.f32 %v6915_v15, %v2254_v51  ;;  %v6070_v55 = vclamps-f32 %v2394_v42, 60.0  ;;  %v6917_v51 = vld [vmem:[#allocation10 + $0x50] sm:$0xff] }
 0x745   :  { %v8556_v6 = vpop.eup %6568  ;;  %v2330_v45 = vmax.f32 %v2255_v28, 0.0  ;;  %v2492_v53 = vmul.f32 1.442695, %v6070_v55 }
 0x746   :  { %v8562_v58 = vmul.f32 %v8556_v6, %v2360_v17 }
 0x747   :  { %v2362_v0 = vadd.f32 1e-07, %v2330_v45  ;;  %6570 = vpow2.f32 %v2492_v53 }
 0x749   :  { %v2395_v40 = vmul.f32 %v8549_v46, %v2362_v0 }
 0x74a   :  { %v2257_v16 = vpop.f32.mrf.mxu0 }
 0x74b   :  { %v6071_v43 = vclamps-f32 %v2395_v40, 60.0  ;;  %v2258_v33 = vadd.f32 %v6916_v30, %v2257_v16 }
 0x74d   :  { %v2494_v44 = vmul.f32 1.442695, %v6071_v43  ;;  %v2331_v42 = vmax.f32 %v2258_v33, 0.0  ;;  %2296 = vmatmul.bf16.gmra.mxu0 %v6917_v51  ;;  %v8570_v45 = vpop.eup %6570  ;;  %v6927_v43 = vld [vmem:[#allocation8 + $0x58] sm:$0xff] }
 0x74e   :  { %v8575_v16 = vmul.f32 %v8570_v45, %v2361_v20 }
 0x74f   :  { %6572 = vpow2.f32 %v2494_v44  ;;  %v2363_v17 = vadd.f32 1e-07, %v2331_v42 }
 0x751   :  { %v2396_v15 = vmul.f32 %v8549_v46, %v2363_v17 }
 0x752   :  { %v2259_v28 = vpop.f32.mrf.mxu0 }
 0x753   :  { %v2260_v55 = vadd.f32 %v6918_v54, %v2259_v28  ;;  %v6072_v47 = vclamps-f32 %v2396_v15, 60.0  ;;  %v6919_v15 = vld [vmem:[#allocation8 + $0x30] sm:$0xff] }
 0x755   :  { %v8572_v27 = vpop.eup %6572  ;;  %v2332_v40 = vmax.f32 %v2260_v55, 0.0  ;;  %v2496_v44 = vmul.f32 1.442695, %v6072_v47 }
 0x756   :  { %v8578_v53 = vmul.f32 %v8572_v27, %v2362_v0 }
 0x757   :  { %v2364_v30 = vadd.f32 1e-07, %v2332_v40  ;;  %6574 = vpow2.f32 %v2496_v44 }
 0x759   :  { %v2397_v54 = vmul.f32 %v8549_v46, %v2364_v30 }
 0x75a   :  { %v2262_v42 = vpop.f32.mrf.mxu0 }
 0x75b   :  { %v6073_v51 = vclamps-f32 %v2397_v54, 60.0  ;;  %v2263_v28 = vadd.f32 %v6919_v15, %v2262_v42 }
 0x75d   :  { %v2498_v20 = vmul.f32 1.442695, %v6073_v51  ;;  %v2333_v55 = vmax.f32 %v2263_v28, 0.0  ;;  %2301 = vmatmul.bf16.gmra.mxu0 %v6920_v22  ;;  %v8586_v32 = vpop.eup %6574  ;;  %v6928_v22 = vld [vmem:[#allocation8 + $0x70] sm:$0xff] }
 0x75e   :  { %v8591_v42 = vmul.f32 %v8586_v32, %v2363_v17 }
 0x75f   :  { %6576 = vpow2.f32 %v2498_v20  ;;  %v2365_v0 = vadd.f32 1e-07, %v2333_v55 }
 0x761   :  { %v2398_v19 = vmul.f32 %v8549_v46, %v2365_v0 }
 0x762   :  { %v2264_v40 = vpop.f32.mrf.mxu0 }
 0x763   :  { %v2265_v47 = vadd.f32 %v6921_v13, %v2264_v40  ;;  %v6074_v60 = vclamps-f32 %v2398_v19, 60.0  ;;  %v6922_v40 = vld [vmem:[#allocation10 + $0x60] sm:$0xff] }
 0x765   :  { %v8588_v37 = vpop.eup %6576  ;;  %v2334_v54 = vmax.f32 %v2265_v47, 0.0  ;;  %v2500_v28 = vmul.f32 1.442695, %v6074_v60 }
 0x766   :  { %v8594_v44 = vmul.f32 %v8588_v37, %v2364_v30 }
 0x767   :  { %v2366_v51 = vadd.f32 1e-07, %v2334_v54  ;;  %6578 = vpow2.f32 %v2500_v28 }
 0x769   :  { %v2399_v13 = vmul.f32 %v8549_v46, %v2366_v51 }
 0x76a   :  { %v2267_v20 = vpop.f32.mrf.mxu0 }
 0x76b   :  { %v6075_v55 = vclamps-f32 %v2399_v13, 60.0 }
 0x76d   :  { %v2502_v19 = vmul.f32 1.442695, %v6075_v55  ;;  %2306 = vmatmul.bf16.gmra.mxu0 %v6922_v40  ;;  %v8601_v30 = vpop.eup %6578  ;;  %v6923_v55 = vld [vmem:[#allocation10 + $0x68] sm:$0xff] }
 0x76e   :  { %v8606_v54 = vmul.f32 %v8601_v30, %v2365_v0 }
 0x76f   :  { %6580 = vpow2.f32 %v2502_v19 }
 0x772   :  { %v2269_v17 = vpop.f32.mrf.mxu0 }
 0x775   :  { %v8603_v47 = vpop.eup %6580 }
 0x776   :  { %v8609_v61 = vmul.f32 %v8603_v47, %v2366_v51 }
 0x77a   :  { %v2272_v13 = vpop.f32.mrf.mxu0 }
 0x77b   :  { %v2273_v28 = vadd.f32 %v6929_v5, %v2272_v13 }
 0x77d   :  { %2311 = vmatmul.bf16.gmra.mxu0 %v6923_v55  ;;  %v6930_v55 = vld [vmem:[#allocation10 + $0x78] sm:$0xff] }
 0x782   :  { %v2274_v19 = vpop.f32.mrf.mxu0 }
 0x783   :  { %v2275_v15 = vadd.f32 %v6927_v43, %v2274_v19 }
 0x785   :  { %v2338_v63 = vmax.f32 %v2275_v15, 0.0 }
 0x787   :  { %v2370_v5 = vadd.f32 1e-07, %v2338_v63 }
 0x78a   :  { %v2277_v40 = vpop.f32.mrf.mxu0 }
 0x78b   :  { %v2278_v24 = vadd.f32 %v6926_v62, %v2277_v40  ;;  %v2337_v62 = vmax.f32 %v2273_v28, 0.0 }
 0x78d   :  { %2316 = vmatmul.bf16.gmra.mxu0 %v6924_v25  ;;  %v2339_v49 = vmax.f32 %v2278_v24, 0.0  ;;  %v2270_v25 = vadd.f32 %v6931_v56, %v2269_v17  ;;  %v6933_v24 = vld [vmem:[#allocation8 + $0x78] sm:$0xff]  ;;  %v2369_v19 = vadd.f32 1e-07, %v2337_v62 }
 0x78f   :  { %v2371_v40 = vadd.f32 1e-07, %v2339_v49 }
 0x792   :  { %v2279_v10 = vpop.f32.mrf.mxu0 }
 0x793   :  { %v2280_v0 = vadd.f32 %v6925_v50, %v2279_v10  ;;  %v6932_v10 = vld [vmem:[#allocation8 + $0x40] sm:$0xff] }
 0x794   :  { %v2268_v50 = vadd.f32 %v6932_v10, %v2267_v20  ;;  %v2403_v20 = vmul.f32 %v8549_v46, %v2370_v5 }
 0x795   :  { %v2340_v51 = vmax.f32 %v2280_v0, 0.0 }
 0x796   :  { %v2335_v13 = vmax.f32 %v2268_v50, 0.0  ;;  %v6079_v62 = vclamps-f32 %v2403_v20, 60.0 }
 0x797   :  { %v2372_v7 = vadd.f32 1e-07, %v2340_v51  ;;  %v2404_v51 = vmul.f32 %v8549_v46, %v2371_v40 }
 0x798   :  { %v2367_v28 = vadd.f32 1e-07, %v2335_v13 }
 0x799   :  { %v2405_v43 = vmul.f32 %v8549_v46, %v2372_v7  ;;  %v6080_v10 = vclamps-f32 %v2404_v51, 60.0 }
 0x79a   :  { %v2282_v33 = vpop.f32.mrf.mxu0 }
 0x79b   :  { %v2283_v60 = vadd.f32 %v6928_v22, %v2282_v33  ;;  %v2336_v22 = vmax.f32 %v2270_v25, 0.0 }
 0x79d   :  { %v2341_v2 = vmax.f32 %v2283_v60, 0.0  ;;  %2321 = vmatmul.bf16.gmra.mxu0 %v6930_v55  ;;  %v2368_v17 = vadd.f32 1e-07, %v2336_v22  ;;  %v2402_v55 = vmul.f32 %v8549_v46, %v2369_v19 }
 0x79f   :  { %v2373_v1 = vadd.f32 1e-07, %v2341_v2  ;;  %v6081_v2 = vclamps-f32 %v2405_v43, 60.0  ;;  %v2401_v50 = vmul.f32 %v8549_v46, %v2368_v17  ;;  %v2400_v43 = vmul.f32 %v8549_v46, %v2367_v28 }
 0x7a0   :  { %v6078_v22 = vclamps-f32 %v2402_v55, 60.0 }
 0x7a1   :  { %v2406_v0 = vmul.f32 %v8549_v46, %v2373_v1  ;;  %v2514_v25 = vmul.f32 1.442695, %v6081_v2  ;;  %v6077_v13 = vclamps-f32 %v2401_v50, 60.0  ;;  %v6076_v51 = vclamps-f32 %v2400_v43, 60.0 }
 0x7a2   :  { %v2284_v33 = vpop.f32.mrf.mxu0 }
 0x7a3   :  { %v2285_v60 = vadd.f32 %v6933_v24, %v2284_v33  ;;  %v6082_v56 = vclamps-f32 %v2406_v0, 60.0  ;;  %v2512_v24 = vmul.f32 1.442695, %v6080_v10  ;;  %v2506_v39 = vmul.f32 1.442695, %v6077_v13 }
 0x7a4   :  { %v2504_v14 = vmul.f32 1.442695, %v6076_v51 }
 0x7a5   :  { %v2342_v15 = vmax.f32 %v2285_v60, 0.0  ;;  %v2516_v31 = vmul.f32 1.442695, %v6082_v56  ;;  %v2508_v56 = vmul.f32 1.442695, %v6078_v22 }
 0x7a7   :  { %v2374_v49 = vadd.f32 1e-07, %v2342_v15  ;;  %6582 = vpow2.f32 %v2516_v31  ;;  %v2510_v15 = vmul.f32 1.442695, %v6079_v62 }
 0x7a8   :  { %6584 = vpow2.f32 %v2514_v25 }
 0x7a9   :  { %v2407_v63 = vmul.f32 %v8549_v46, %v2374_v49 }
 0x7aa   :  { %v8621_v33 = vpop.f32.mrf.mxu0 }
 0x7ab   :  { %v6083_v0 = vclamps-f32 %v2407_v63, 60.0 }
 0x7ad   :  { %v2518_v60 = vmul.f32 1.442695, %v6083_v0  ;;  %v6583_v36 = vpop.eup %6582 }
 0x7ae   :  { %v6585_v20 = vpop.eup %6584  ;;  %v2566_v55 = vmul.f32 %v6583_v36, %v2373_v1 }
 0x7af   :  { %6586 = vpow2.f32 %v2518_v60  ;;  %v2565_v25 = vmul.f32 %v6585_v20, %v2372_v7 }
 0x7b0   :  { %6588 = vpow2.f32 %v2512_v24 }
 0x7b1   :  { %6590 = vpow2.f32 %v2510_v15 }
 0x7b2   :  { %v8625_v2 = vpop.f32.mrf.mxu0  ;;  %6592 = vpow2.f32 %v2508_v56 }
 0x7b3   :  { %6594 = vpow2.f32 %v2506_v39 }
 0x7b4   :  { %6596 = vpow2.f32 %v2504_v14 }
 0x7b5   :  { %v6587_v63 = vpop.eup %6586 }
 0x7b6   :  { %v2567_v10 = vmul.f32 %v6587_v63, %v2374_v49  ;;  %v2598_v31 = vpack.c.bf16 %v6587_v63, %v6583_v36  ;;  %v6589_v0 = vpop.eup %6588 }
 0x7b7   :  { %v6591_v62 = vpop.eup %6590  ;;  %v2564_v43 = vmul.f32 %v6589_v0, %v2371_v40  ;;  %v2596_v24 = vpack.c.bf16 %v6585_v20, %v6589_v0  ;;  %v6936_v0 = vld [vmem:[#allocation8 + $0xd8] sm:$0xff] }
 0x7b8   :  { %v2599_v50 = vpack.c.bf16 %v2567_v10, %v2566_v55  ;;  %2616 = vmatpush.bf16.msra.mxu1 %v2598_v31  ;;  %v6593_v60 = vpop.eup %6592  ;;  %v2563_v13 = vmul.f32 %v6591_v62, %v2370_v5  ;;  %v10911_v5 = vpack.c.bf16 %v8603_v47, %v8601_v30  ;;  %v10915_v55 = vpack.c.bf16 %v8572_v27, %v8570_v45 }
 0x7b9   :  { %v2597_v15 = vpack.c.bf16 %v2565_v25, %v2564_v43  ;;  %v6595_v51 = vpop.eup %6594  ;;  %v2562_v1 = vmul.f32 %v6593_v60, %v2369_v19  ;;  %v2594_v36 = vpack.c.bf16 %v6591_v62, %v6593_v60  ;;  %v10912_v19 = vpack.c.bf16 %v8609_v61, %v8606_v54  ;;  %v6938_v43 = vld [vmem:[#allocation8 + $0xd0] sm:$0xff] }
 0x7ba   :  { %v8627_v22 = vpop.f32.mrf.mxu0  ;;  %2714 = vmatpush.bf16.msra.mxu3 %v2599_v50  ;;  %v6597_v49 = vpop.eup %6596  ;;  %v2561_v39 = vmul.f32 %v6595_v51, %v2368_v17  ;;  %v10913_v17 = vpack.c.bf16 %v8588_v37, %v8586_v32  ;;  %v10916_v47 = vpack.c.bf16 %v8578_v53, %v8575_v16  ;;  %v10917_v61 = vpack.c.bf16 %v8556_v6, %v8554_v35  ;;  %v6934_v53 = vld [vmem:[#allocation8 + $0xe8] sm:$0xff]  ;;  %v6937_v50 = vld [vmem:[#allocation8 + $0xf0] sm:$0xff] }
 0x7bb   :  { %v2595_v7 = vpack.c.bf16 %v2563_v13, %v2562_v1  ;;  %v2560_v56 = vmul.f32 %v6597_v49, %v2367_v28  ;;  %v2592_v14 = vpack.c.bf16 %v6595_v51, %v6597_v49  ;;  %v10914_v28 = vpack.c.bf16 %v8594_v44, %v8591_v42  ;;  %v6935_v44 = vld [vmem:[#allocation8 + $0xe0] sm:$0xff]  ;;  %v6939_v51 = vld [vmem:[#allocation8 + $0xc8] sm:$0xff] }
 0x7bc   :  { %2617 = vmatpush.bf16.msra.mxu1 %v2596_v24  ;;  %v10918_v32 = vpack.c.bf16 %v8562_v58, %v8559_v9 }
 0x7bd   :  { %v2593_v40 = vpack.c.bf16 %v2561_v39, %v2560_v56  ;;  %v6940_v39 = vld [vmem:[#allocation8 + $0xc0] sm:$0xff] }
 0x7be   :  { %2715 = vmatpush.bf16.msra.mxu3 %v2597_v15 }
 0x7c0   :  { %2618 = vmatpush.bf16.msra.mxu1 %v2594_v36 }
 0x7c2   :  { %v8629_v63 = vpop.f32.mrf.mxu0  ;;  %2716 = vmatpush.bf16.msra.mxu3 %v2595_v7 }
 0x7c4   :  { %2619 = vmatpush.bf16.msra.mxu1 %v2592_v14 }
 0x7c6   :  { %2717 = vmatpush.bf16.msra.mxu3 %v2593_v40 }
 0x7c8   :  { %2620 = vmatpush.bf16.msra.mxu1 %v10911_v5 }
 0x7ca   :  { %v8634_v20 = vpop.f32.mrf.mxu0  ;;  %2718 = vmatpush.bf16.msra.mxu3 %v10912_v19 }
 0x7cc   :  { %2621 = vmatpush.bf16.msra.mxu1 %v10913_v17  ;;  %v6941_v17 = vld [vmem:[#allocation8 + $0xb8] sm:$0xff] }
 0x7ce   :  { %2719 = vmatpush.bf16.msra.mxu3 %v10914_v28 }
 0x7d0   :  { %2622 = vmatpush.bf16.msra.mxu1 %v10915_v55 }
 0x7d2   :  { %v2299_v30 = vpop.f32.mrf.mxu0  ;;  %2720 = vmatpush.bf16.msra.mxu3 %v10916_v47 }
 0x7d4   :  { %2623 = vmatpush.bf16.msra.mxu1 %v10917_v61  ;;  %v6942_v61 = vld [vmem:[#allocation8 + $0xf8] sm:$0xff] }
 0x7d6   :  { %2721 = vmatpush.bf16.msra.mxu3 %v10918_v32 }
 0x7d7   :  { %2624 = vmatmul.bf16.vlgmr.msra.gmra.mxu1 %v7532_v4 }
 0x7d9   :  { %2722 = vmatmul.bf16.vlgmr.msra.gmra.mxu3 %v7532_v4 }
 0x7da   :  { %v2302_v37 = vpop.f32.mrf.mxu0 }
 0x7e2   :  { %v2304_v27 = vpop.f32.mrf.mxu0 }
 0x7e3   :  { %v2305_v28 = vadd.f32 %v6941_v17, %v2304_v27 }
 0x7e7   :  { %2629 = vmatmul.bf16.gmra.mxu1 %v7544_v26 }
 0x7e9   :  { %2727 = vmatmul.bf16.gmra.mxu3 %v7544_v26 }
 0x7ea   :  { %v2307_v45 = vpop.f32.mrf.mxu0 }
 0x7eb   :  { %v2308_v7 = vadd.f32 %v6940_v39, %v2307_v45 }
 0x7ed   :  { %v2351_v45 = vmax.f32 %v2308_v7, 0.0 }
 0x7f2   :  { %v2309_v16 = vpop.f32.mrf.mxu0 }
 0x7f3   :  { %v2310_v1 = vadd.f32 %v6939_v51, %v2309_v16  ;;  %v6943_v16 = vld [vmem:[#allocation8 + $0xb0] sm:$0xff] }
 0x7f5   :  { %v2352_v55 = vmax.f32 %v2310_v1, 0.0 }
 0x7f7   :  { %2634 = vmatmul.bf16.gmra.mxu1 %v7548_v3  ;;  %v8683_v27 = vadd.f32 1e-07, %v2352_v55 }
 0x7f9   :  { %2732 = vmatmul.bf16.gmra.mxu3 %v7548_v3 }
 0x7fa   :  { %v2312_v35 = vpop.f32.mrf.mxu0 }
 0x7fb   :  { %v2313_v24 = vadd.f32 %v6938_v43, %v2312_v35  ;;  %v2303_v35 = vadd.f32 %v6943_v16, %v2302_v37  ;;  %v6945_v37 = vld [vmem:[#allocation8 + $0xa0] sm:$0xff] }
 0x7fd   :  { %v2353_v56 = vmax.f32 %v2313_v24, 0.0 }
 0x802   :  { %v2314_v6 = vpop.f32.mrf.mxu0 }
 0x803   :  { %v2315_v25 = vadd.f32 %v6936_v0, %v2314_v6  ;;  %v8679_v6 = vadd.f32 1e-07, %v2353_v56 }
 0x805   :  { %v2354_v36 = vmax.f32 %v2315_v25, 0.0  ;;  %v2298_v25 = vadd.f32 %v6945_v37, %v8634_v20  ;;  %v2418_v43 = vmul.f32 %v8549_v46, %v8679_v6  ;;  %v2417_v20 = vmul.f32 %v8549_v46, %v8683_v27 }
 0x807   :  { %2639 = vmatmul.bf16.gmra.mxu1 %v7552_v48  ;;  %v8677_v47 = vadd.f32 1e-07, %v2354_v36  ;;  %v6094_v55 = vclamps-f32 %v2418_v43, 60.0 }
 0x809   :  { %2737 = vmatmul.bf16.gmra.mxu3 %v7552_v48 }
 0x80a   :  { %v2317_v9 = vpop.f32.mrf.mxu0 }
 0x80b   :  { %v2318_v54 = vadd.f32 %v6935_v44, %v2317_v9 }
 0x80d   :  { %v2355_v60 = vmax.f32 %v2318_v54, 0.0 }
 0x80f   :  { %v8671_v14 = vadd.f32 1e-07, %v2355_v60 }
 0x811   :  { %v2420_v9 = vmul.f32 %v8549_v46, %v8671_v14 }
 0x812   :  { %v2319_v58 = vpop.f32.mrf.mxu0 }
 0x813   :  { %v2320_v42 = vadd.f32 %v6934_v53, %v2319_v58 }
 0x815   :  { %v2356_v10 = vmax.f32 %v2320_v42, 0.0  ;;  %v6944_v42 = vld [vmem:[#allocation8 + $0xa8] sm:$0xff] }
 0x816   :  { %v2300_v44 = vadd.f32 %v6944_v42, %v2299_v30  ;;  %v6096_v30 = vclamps-f32 %v2420_v9, 60.0  ;;  %v6093_v9 = vclamps-f32 %v2417_v20, 60.0 }
 0x817   :  { %2644 = vmatmul.bf16.gmra.mxu1 %v7556_v57  ;;  %v8667_v15 = vadd.f32 1e-07, %v2356_v10  ;;  %v2350_v10 = vmax.f32 %v2305_v28, 0.0 }
 0x818   :  { %v2348_v1 = vmax.f32 %v2300_v44, 0.0 }
 0x819   :  { %2742 = vmatmul.bf16.gmra.mxu3 %v7556_v57  ;;  %v2421_v5 = vmul.f32 %v8549_v46, %v8667_v15  ;;  %v8696_v39 = vadd.f32 1e-07, %v2350_v10 }
 0x81a   :  { %v2322_v31 = vpop.f32.mrf.mxu0 }
 0x81b   :  { %v2323_v62 = vadd.f32 %v6937_v50, %v2322_v31  ;;  %v6097_v54 = vclamps-f32 %v2421_v5, 60.0  ;;  %v2419_v31 = vmul.f32 %v8549_v46, %v8677_v47  ;;  %v2349_v50 = vmax.f32 %v2303_v35, 0.0 }
 0x81d   :  { %v2357_v13 = vmax.f32 %v2323_v62, 0.0  ;;  %v8689_v62 = vadd.f32 1e-07, %v2351_v45  ;;  %v2546_v36 = vmul.f32 1.442695, %v6097_v54  ;;  %v6095_v7 = vclamps-f32 %v2419_v31, 60.0 }
 0x81e   :  { %v8701_v17 = vadd.f32 1e-07, %v2349_v50  ;;  %v8706_v45 = vadd.f32 1e-07, %v2348_v1  ;;  %v2540_v31 = vmul.f32 1.442695, %v6094_v55 }
 0x81f   :  { %v8669_v49 = vadd.f32 1e-07, %v2357_v13  ;;  %v6946_v13 = vld [vmem:[#allocation8 + $0x98] sm:$0xff]  ;;  %v2416_v28 = vmul.f32 %v8549_v46, %v8689_v62 }
 0x820   :  { %v2295_v51 = vadd.f32 %v6946_v13, %v8629_v63  ;;  %v2544_v63 = vmul.f32 1.442695, %v6096_v30  ;;  %v2414_v10 = vmul.f32 %v8549_v46, %v8701_v17  ;;  %v2413_v43 = vmul.f32 %v8549_v46, %v8706_v45 }
 0x821   :  { %v2422_v40 = vmul.f32 %v8549_v46, %v8669_v49 }
 0x822   :  { %v2324_v19 = vpop.f32.mrf.mxu0  ;;  %v2346_v35 = vmax.f32 %v2295_v51, 0.0  ;;  %v6089_v55 = vclamps-f32 %v2413_v43, 60.0 }
 0x823   :  { %v2325_v32 = vadd.f32 %v6942_v61, %v2324_v19  ;;  %v6098_v58 = vclamps-f32 %v2422_v40, 60.0  ;;  %v6947_v40 = vld [vmem:[#allocation8 + $0x90] sm:$0xff]  ;;  %v2347_v19 = vmax.f32 %v2298_v25, 0.0 }
 0x824   :  { %v2293_v5 = vadd.f32 %v6947_v40, %v8627_v22  ;;  %v2415_v22 = vmul.f32 %v8549_v46, %v8696_v39  ;;  %v8715_v25 = vadd.f32 1e-07, %v2346_v35 }
 0x825   :  { %v2358_v53 = vmax.f32 %v2325_v32, 0.0  ;;  %v2548_v24 = vmul.f32 1.442695, %v6098_v58  ;;  %v6948_v32 = vld [vmem:[#allocation8 + $0x88] sm:$0xff]  ;;  %v2542_v58 = vmul.f32 1.442695, %v6095_v7 }
 0x826   :  { %v2290_v16 = vadd.f32 %v6948_v32, %v8625_v2  ;;  %v2345_v44 = vmax.f32 %v2293_v5, 0.0  ;;  %v8711_v54 = vadd.f32 1e-07, %v2347_v19  ;;  %v6092_v2 = vclamps-f32 %v2416_v28, 60.0 }
 0x827   :  { %v2390_v0 = vadd.f32 1e-07, %v2358_v53  ;;  %2649 = vmatmul.bf16.gmra.mxu1 %v7572_v21  ;;  %6598 = vpow2.f32 %v2548_v24  ;;  %v6949_v53 = vld [vmem:[#allocation8 + $0x80] sm:$0xff]  ;;  %v6091_v30 = vclamps-f32 %v2415_v22, 60.0  ;;  %v2538_v24 = vmul.f32 1.442695, %v6093_v9 }
 0x828   :  { %6600 = vpow2.f32 %v2546_v36  ;;  %v2288_v42 = vadd.f32 %v6949_v53, %v8621_v33  ;;  %v2344_v37 = vmax.f32 %v2290_v16, 0.0  ;;  %v8719_v13 = vadd.f32 1e-07, %v2345_v44 }
 0x829   :  { %v2423_v60 = vmul.f32 %v8549_v46, %v2390_v0  ;;  %2747 = vmatmul.bf16.gmra.mxu3 %v7572_v21  ;;  %v2412_v1 = vmul.f32 %v8549_v46, %v8711_v54  ;;  %v6090_v36 = vclamps-f32 %v2414_v10, 60.0  ;;  %v2536_v20 = vmul.f32 1.442695, %v6092_v2 }
 0x82a   :  { %v8723_v7 = vadd.f32 1e-07, %v2344_v37  ;;  %v2411_v28 = vmul.f32 %v8549_v46, %v8715_v25  ;;  %v2530_v44 = vmul.f32 1.442695, %v6089_v55 }
 0x82b   :  { %v6099_v56 = vclamps-f32 %v2423_v60, 60.0  ;;  %v2343_v60 = vmax.f32 %v2288_v42, 0.0  ;;  %v2532_v22 = vmul.f32 1.442695, %v6090_v36 }
 0x82c   :  { %v2409_v42 = vmul.f32 %v8549_v46, %v8723_v7 }
 0x82d   :  { %v2550_v61 = vmul.f32 1.442695, %v6099_v56  ;;  %v6599_v50 = vpop.eup %6598 }
 0x82e   :  { %v6601_v33 = vpop.eup %6600  ;;  %v2582_v56 = vmul.f32 %v6599_v50, %v8669_v49  ;;  %v2410_v49 = vmul.f32 %v8549_v46, %v8719_v13 }
 0x82f   :  { %6602 = vpow2.f32 %v2550_v61  ;;  %v8729_v61 = vadd.f32 1e-07, %v2343_v60  ;;  %v2581_v32 = vmul.f32 %v6601_v33, %v8667_v15  ;;  %v6087_v15 = vclamps-f32 %v2411_v28, 60.0 }
 0x830   :  { %6604 = vpow2.f32 %v2544_v63  ;;  %v2534_v63 = vmul.f32 1.442695, %v6091_v30 }
 0x831   :  { %6606 = vpow2.f32 %v2542_v58  ;;  %v2408_v37 = vmul.f32 %v8549_v46, %v8729_v61  ;;  %v2526_v60 = vmul.f32 1.442695, %v6087_v15 }
 0x832   :  { %6608 = vpow2.f32 %v2540_v31 }
 0x833   :  { %6610 = vpow2.f32 %v2538_v24  ;;  %v6084_v36 = vclamps-f32 %v2408_v37, 60.0 }
 0x834   :  { %6612 = vpow2.f32 %v2536_v20 }
 0x835   :  { %v6603_v51 = vpop.eup %6602  ;;  %6614 = vpow2.f32 %v2534_v63  ;;  %v2520_v55 = vmul.f32 1.442695, %v6084_v36 }
 0x836   :  { %v2583_v40 = vmul.f32 %v6603_v51, %v2390_v0  ;;  %v2614_v5 = vpack.c.bf16 %v6603_v51, %v6599_v50  ;;  %v6605_v19 = vpop.eup %6604  ;;  %v6088_v0 = vclamps-f32 %v2412_v1, 60.0  ;;  %v6086_v50 = vclamps-f32 %v2410_v49, 60.0 }
 0x837   :  { %2654 = vmatmul.bf16.gmra.mxu1 %v7619_v23  ;;  %v6607_v35 = vpop.eup %6606  ;;  %v2580_v9 = vmul.f32 %v6605_v19, %v8671_v14  ;;  %v2612_v58 = vpack.c.bf16 %v6601_v33, %v6605_v19  ;;  %6616 = vpow2.f32 %v2532_v22  ;;  %v6085_v33 = vclamps-f32 %v2409_v42, 60.0 }
 0x838   :  { %v2615_v16 = vpack.c.bf16 %v2583_v40, %v2582_v56  ;;  %2665 = vmatpush.bf16.msra.mxu2 %v2614_v5  ;;  %v6609_v53 = vpop.eup %6608  ;;  %v2579_v10 = vmul.f32 %v6607_v35, %v8677_v47  ;;  %v2528_v43 = vmul.f32 1.442695, %v6088_v0  ;;  %6618 = vpow2.f32 %v2530_v44 }
 0x839   :  { %2752 = vmatmul.bf16.gmra.mxu3 %v7619_v23  ;;  %v2613_v2 = vpack.c.bf16 %v2581_v32, %v2580_v9  ;;  %v6611_v31 = vpop.eup %6610  ;;  %v2578_v14 = vmul.f32 %v6609_v53, %v8679_v6  ;;  %v2610_v30 = vpack.c.bf16 %v6607_v35, %v6609_v53  ;;  %v2524_v20 = vmul.f32 1.442695, %v6086_v50 }
 0x83a   :  { %2763 = vmatpush.bf16.msrb.mxu1 %v2615_v16  ;;  %v6613_v24 = vpop.eup %6612  ;;  %v2577_v51 = vmul.f32 %v6611_v31, %v8683_v27  ;;  %6620 = vpow2.f32 %v2528_v43  ;;  %v2522_v6 = vmul.f32 1.442695, %v6085_v33  ;;  %v6324_v33 = vld [vmem:[#allocation14 + $0x78] sm:$0xff] }
 0x83b   :  { %v2611_v47 = vpack.c.bf16 %v2579_v10, %v2578_v14  ;;  %v6615_v1 = vpop.eup %6614  ;;  %v2576_v46 = vmul.f32 %v6613_v24, %v8689_v62  ;;  %v2608_v56 = vpack.c.bf16 %v6611_v31, %v6613_v24  ;;  %6622 = vpow2.f32 %v2526_v60 }
 0x83c   :  { %2666 = vmatpush.bf16.msra.mxu2 %v2612_v58  ;;  %v2575_v5 = vmul.f32 %v6615_v1, %v8696_v39  ;;  %6624 = vpow2.f32 %v2524_v20 }
 0x83d   :  { %v6617_v40 = vpop.eup %6616  ;;  %v2609_v19 = vpack.c.bf16 %v2577_v51, %v2576_v46  ;;  %6626 = vpow2.f32 %v2522_v6  ;;  %v10919_v51 = vld [vmem:[#allocation28_spill] sm:$0xff]  ;;  %v10920_v46 = vld [vmem:[#allocation29_spill] sm:$0xff] }
 0x83e   :  { %2764 = vmatpush.bf16.msrb.mxu1 %v2613_v2  ;;  %v6619_v28 = vpop.eup %6618  ;;  %v2574_v27 = vmul.f32 %v6617_v40, %v8701_v17  ;;  %v2606_v63 = vpack.c.bf16 %v6615_v1, %v6617_v40  ;;  %6628 = vpow2.f32 %v2520_v55  ;;  %v6323_v1 = vld [vmem:[#allocation14 + $0x70] sm:$0xff]  ;;  %v6321_v40 = vld [vmem:[#allocation14 + $0x60] sm:$0xff] }
 0x83f   :  { %v2573_v62 = vmul.f32 %v6619_v28, %v8706_v45 }
 0x840   :  { %2667 = vmatpush.bf16.msra.mxu2 %v2610_v30  ;;  %v6621_v32 = vpop.eup %6620  ;;  %v2607_v16 = vpack.c.bf16 %v2575_v5, %v2574_v27 }
 0x841   :  { %v6623_v35 = vpop.eup %6622  ;;  %v2572_v39 = vmul.f32 %v6621_v32, %v8711_v54  ;;  %v2604_v49 = vpack.c.bf16 %v6619_v28, %v6621_v32  ;;  %v6319_v28 = vld [vmem:[#allocation14 + $0x50] sm:$0xff] }
 0x842   :  { %2765 = vmatpush.bf16.msrb.mxu1 %v2611_v47  ;;  %v6625_v0 = vpop.eup %6624  ;;  %v2571_v17 = vmul.f32 %v6623_v35, %v8715_v25 }
 0x843   :  { %v2605_v22 = vpack.c.bf16 %v2573_v62, %v2572_v39  ;;  %v6627_v9 = vpop.eup %6626  ;;  %v2570_v58 = vmul.f32 %v6625_v0, %v8719_v13  ;;  %v2602_v45 = vpack.c.bf16 %v6623_v35, %v6625_v0 }
 0x844   :  { %2668 = vmatpush.bf16.msra.mxu2 %v2608_v56  ;;  %v6629_v53 = vpop.eup %6628  ;;  %v2569_v42 = vmul.f32 %v6627_v9, %v8723_v7  ;;  %v6322_v56 = vld [vmem:[#allocation14 + $0x68] sm:$0xff] }
 0x845   :  { %v2603_v15 = vpack.c.bf16 %v2571_v17, %v2570_v58  ;;  %v2568_v44 = vmul.f32 %v6629_v53, %v8729_v61  ;;  %v2600_v54 = vpack.c.bf16 %v6627_v9, %v6629_v53 }
 0x846   :  { %2766 = vmatpush.bf16.msrb.mxu1 %v2609_v19  ;;  %v6320_v19 = vld [vmem:[#allocation14 + $0x58] sm:$0xff] }
 0x847   :  { %2659 = vmatmul.bf16.gmra.mxu1 %v7647_v29  ;;  %v2601_v10 = vpack.c.bf16 %v2569_v42, %v2568_v44 }
 0x848   :  { %2669 = vmatpush.bf16.msra.mxu2 %v2606_v63  ;;  %v6318_v63 = vld [vmem:[#allocation14 + $0x48] sm:$0xff] }
 0x849   :  { %2757 = vmatmul.bf16.gmra.mxu3 %v7647_v29 }
 0x84a   :  { %2767 = vmatpush.bf16.msrb.mxu1 %v2607_v16  ;;  %v6317_v16 = vld [vmem:[#allocation14 + $0x40] sm:$0xff] }
 0x84c   :  { %2670 = vmatpush.bf16.msra.mxu2 %v2604_v49 }
 0x84e   :  { %2768 = vmatpush.bf16.msrb.mxu1 %v2605_v22 }
 0x850   :  { %2671 = vmatpush.bf16.msra.mxu2 %v2602_v45 }
 0x852   :  { %2769 = vmatpush.bf16.msrb.mxu1 %v2603_v15 }
 0x854   :  { %2672 = vmatpush.bf16.msra.mxu2 %v2600_v54  ;;  %v2625_v2 = vpop.f32.mrf.mxu1 }
 0x856   :  { %2770 = vmatpush.bf16.msrb.mxu1 %v2601_v10 }
 0x857   :  { %2673 = vmatmul.bf16.vlgmr.msra.gmra.mxu2 %v7659_v8 }
 0x858   :  { %2986 = vmatpush.bf16.msrb.mxu2 %v6324_v33 }
 0x859   :  { %2771 = vmatmul.bf16.vlgmr.msrb.gmra.mxu1 %v7659_v8 }
 0x85c   :  { %v2627_v25 = vpop.f32.mrf.mxu1  ;;  %2987 = vmatpush.bf16.msrb.mxu2 %v6323_v1  ;;  %v2723_v36 = vpop.f32.mrf.mxu3 }
 0x860   :  { %2988 = vmatpush.bf16.msrb.mxu2 %v6322_v56  ;;  %v10921_v56 = vmax.f32 %v8537_v52, 0.0 }
 0x864   :  { %v8756_v13 = vpop.f32.mrf.mxu1  ;;  %v2725_v5 = vpop.f32.mrf.mxu3  ;;  %2989 = vmatpush.bf16.msrb.mxu2 %v6321_v40 }
 0x867   :  { %2678 = vmatmul.bf16.gmra.mxu2 %v7667_v12 }
 0x868   :  { %2990 = vmatpush.bf16.msrb.mxu2 %v6320_v19  ;;  %v10922_v19 = vmax.f32 %v8532_v11, 0.0 }
 0x869   :  { %2776 = vmatmul.bf16.gmra.mxu1 %v7667_v12 }
 0x86c   :  { %v8760_v7 = vpop.f32.mrf.mxu1  ;;  %v2728_v27 = vpop.f32.mrf.mxu3  ;;  %2991 = vmatpush.bf16.msrb.mxu2 %v6319_v28 }
 0x870   :  { %2992 = vmatpush.bf16.msrb.mxu2 %v6318_v63 }
 0x874   :  { %v8762_v61 = vpop.f32.mrf.mxu1  ;;  %2993 = vmatpush.bf16.msrb.mxu2 %v6317_v16  ;;  %v2730_v49 = vpop.f32.mrf.mxu3 }
 0x877   :  { %2683 = vmatmul.bf16.gmra.mxu2 %v7675_v18 }
 0x879   :  { %2781 = vmatmul.bf16.gmra.mxu1 %v7675_v18 }
 0x87c   :  { %v8766_v31 = vpop.f32.mrf.mxu1  ;;  %v2733_v44 = vpop.f32.mrf.mxu3 }
 0x884   :  { %v8768_v37 = vpop.f32.mrf.mxu1  ;;  %v2735_v63 = vpop.f32.mrf.mxu3 }
 0x887   :  { %2688 = vmatmul.bf16.gmra.mxu2 %v7683_v41 }
 0x889   :  { %2786 = vmatmul.bf16.gmra.mxu1 %v7683_v41 }
 0x88c   :  { %v8772_v50 = vpop.f32.mrf.mxu1 }
 0x894   :  { %v8774_v43 = vpop.f32.mrf.mxu1 }
 0x897   :  { %2693 = vmatmul.bf16.gmra.mxu2 %v7691_v34 }
 0x899   :  { %2791 = vmatmul.bf16.gmra.mxu1 %v7691_v34 }
 0x89c   :  { %v8778_v14 = vpop.f32.mrf.mxu1 }
 0x8a4   :  { %v8780_v30 = vpop.f32.mrf.mxu1 }
 0x8a7   :  { %2698 = vmatmul.bf16.gmra.mxu2 %v7699_v38 }
 0x8a9   :  { %2796 = vmatmul.bf16.gmra.mxu1 %v7699_v38 }
 0x8ac   :  { %v8784_v24 = vpop.f32.mrf.mxu1 }
 0x8b4   :  { %v8786_v60 = vpop.f32.mrf.mxu1 }
 0x8b7   :  { %2703 = vmatmul.bf16.gmra.mxu2 %v10919_v51 }
 0x8b9   :  { %2801 = vmatmul.bf16.gmra.mxu1 %v10919_v51 }
 0x8bc   :  { %v8790_v47 = vpop.f32.mrf.mxu1 }
 0x8c4   :  { %v8792_v20 = vpop.f32.mrf.mxu1 }
 0x8c7   :  { %2708 = vmatmul.bf16.gmra.mxu2 %v10920_v46 }
 0x8c9   :  { %2806 = vmatmul.bf16.gmra.mxu1 %v10920_v46 }
 0x8cc   :  { %v8796_v6 = vpop.f32.mrf.mxu1 }
 0x8d6   :  { %v2772_v55 = vpop.f32.mrf.mxu1 }
 0x8d7   :  { %v2773_v22 = vadd.f32 %v2772_v55, %v2723_v36 }
 0x8da   :  { %v2674_v32 = vpop.f32.mrf.mxu2 }
 0x8db   :  { %v2675_v62 = vadd.f32 %v2674_v32, %v2625_v2 }
 0x8dd   :  { %vm2812_vm2 = vcmp.gt.f32.partialorder %v2675_v62, 0.0 }
 0x8de   :  { %v2828_v35 = vsel %vm2812_vm2, %v2675_v62, 1.0  ;;  %v2774_v39 = vpop.f32.mrf.mxu1 }
 0x8df   :  { %6630 = vrcp.f32 %v2828_v35  ;;  %v2775_v54 = vadd.f32 %v2774_v39, %v2725_v5 }
 0x8e2   :  { %v2676_v0 = vpop.f32.mrf.mxu2 }
 0x8e3   :  { %v2677_v17 = vadd.f32 %v2676_v0, %v2627_v25 }
 0x8e5   :  { %vm2813_vm4 = vcmp.gt.f32.partialorder %v2677_v17, 0.0  ;;  %v6631_v45 = vpop.eup %6630 }
 0x8e6   :  { %v2829_v9 = vsel %vm2813_vm4, %v2677_v17, 1.0  ;;  %v2777_v58 = vpop.f32.mrf.mxu1  ;;  %v2860_v53 = vmul.f32 %v6631_v45, %v2773_v22 }
 0x8e7   :  { %6632 = vrcp.f32 %v2829_v9  ;;  %v2778_v32 = vadd.f32 %v2777_v58, %v2728_v27  ;;  %v10923_v58 = vmax.f32 %v8519_v59, 0.0 }
 0x8e8   :  { %v2876_v2 = vsel %vm2812_vm2, %v2860_v53, 0.0  ;;  %v2738_v53 = vpop.f32.mrf.mxu3 }
 0x8e9   :  { %v2892_v40 = vadd.f32 %v2876_v2, %v10921_v56 }
 0x8ea   :  { %v2679_v42 = vpop.f32.mrf.mxu2 }
 0x8eb   :  { %v2680_v15 = vadd.f32 %v2679_v42, %v8756_v13 }
 0x8ed   :  { %v6633_v10 = vpop.eup %6632  ;;  %vm2814_vm3 = vcmp.gt.f32.partialorder %v2680_v15, 0.0 }
 0x8ee   :  { %v2861_v33 = vmul.f32 %v6633_v10, %v2775_v54  ;;  %v2830_v25 = vsel %vm2814_vm3, %v2680_v15, 1.0  ;;  %v2779_v1 = vpop.f32.mrf.mxu1  ;;  %v10924_v54 = vld [vmem:[#allocation60_spill] sm:$0xff] }
 0x8ef   :  { %6634 = vrcp.f32 %v2830_v25  ;;  %v2780_v11 = vadd.f32 %v2779_v1, %v2730_v49  ;;  %v10925_v10 = vmax.f32 %v10924_v54, 0.0 }
 0x8f0   :  { %v2877_v36 = vsel %vm2813_vm4, %v2861_v33, 0.0  ;;  %v2740_v56 = vpop.f32.mrf.mxu3 }
 0x8f1   :  { %v2893_v28 = vadd.f32 %v2877_v36, %v10922_v19 }
 0x8f2   :  { %v2681_v13 = vpop.f32.mrf.mxu2 }
 0x8f3   :  { %v2908_v55 = vpack.c.bf16 %v2893_v28, %v2892_v40  ;;  %v2682_v5 = vadd.f32 %v2681_v13, %v8760_v7 }
 0x8f5   :  { %vm2815_vm5 = vcmp.gt.f32.partialorder %v2682_v5, 0.0  ;;  %2994 = vmatmul.bf16.vlgmr.msrb.gmra.mxu2 %v2908_v55  ;;  %v6635_v35 = vpop.eup %6634 }
 0x8f6   :  { %v2831_v62 = vsel %vm2815_vm5, %v2682_v5, 1.0  ;;  %v2782_v16 = vpop.f32.mrf.mxu1  ;;  %v2862_v39 = vmul.f32 %v6635_v35, %v2778_v32 }
 0x8f7   :  { %6636 = vrcp.f32 %v2831_v62  ;;  %v2783_v15 = vadd.f32 %v2782_v16, %v2733_v44  ;;  %v10926_v62 = vld [vmem:[#allocation58_spill] sm:$0xff] }
 0x8f8   :  { %v2878_v22 = vsel %vm2814_vm3, %v2862_v39, 0.0  ;;  %v10927_v16 = vmax.f32 %v10926_v62, 0.0  ;;  %v10928_v39 = vld [vmem:[#allocation59_spill] sm:$0xff] }
 0x8f9   :  { %v2894_v42 = vadd.f32 %v2878_v22, %v10923_v58 }
 0x8fa   :  { %v2684_v52 = vpop.f32.mrf.mxu2 }
 0x8fb   :  { %v2685_v0 = vadd.f32 %v2684_v52, %v8762_v61  ;;  %v10929_v52 = vmax.f32 %v10928_v39, 0.0 }
 0x8fd   :  { %v6637_v17 = vpop.eup %6636  ;;  %vm2816_vm6 = vcmp.gt.f32.partialorder %v2685_v0, 0.0 }
 0x8fe   :  { %v2863_v9 = vmul.f32 %v6637_v17, %v2780_v11  ;;  %v2832_v7 = vsel %vm2816_vm6, %v2685_v0, 1.0  ;;  %v2784_v45 = vpop.f32.mrf.mxu1  ;;  %v2743_v17 = vpop.f32.mrf.mxu3 }
 0x8ff   :  { %6638 = vrcp.f32 %v2832_v7  ;;  %v2785_v28 = vadd.f32 %v2784_v45, %v2735_v63 }
 0x900   :  { %v2879_v27 = vsel %vm2815_vm5, %v2863_v9, 0.0 }
 0x901   :  { %v2895_v2 = vadd.f32 %v2879_v27, %v10925_v10 }
 0x902   :  { %v2686_v61 = vpop.f32.mrf.mxu2 }
 0x903   :  { %v2687_v49 = vadd.f32 %v2686_v61, %v8766_v31  ;;  %v2909_v33 = vpack.c.bf16 %v2895_v2, %v2894_v42 }
 0x905   :  { %vm2817_vm7 = vcmp.gt.f32.partialorder %v2687_v49, 0.0  ;;  %2999 = vmatmul.bf16.gmra.mxu2 %v2909_v33  ;;  %v6639_v36 = vpop.eup %6638 }
 0x906   :  { %v2833_v25 = vsel %vm2817_vm7, %v2687_v49, 1.0  ;;  %v2787_v1 = vpop.f32.mrf.mxu1  ;;  %v2864_v40 = vmul.f32 %v6639_v36, %v2783_v15  ;;  %v2745_v54 = vpop.f32.mrf.mxu3  ;;  %v10930_v15 = vld [vmem:[#allocation57_spill] sm:$0xff]  ;;  %v10932_v36 = vld [vmem:[#allocation56_spill] sm:$0xff] }
 0x907   :  { %6640 = vrcp.f32 %v2833_v25  ;;  %v2788_v0 = vadd.f32 %v2787_v1, %v2738_v53  ;;  %v10931_v25 = vmax.f32 %v10930_v15, 0.0 }
 0x908   :  { %v2880_v55 = vsel %vm2816_vm6, %v2864_v40, 0.0  ;;  %v10933_v40 = vmax.f32 %v10932_v36, 0.0 }
 0x909   :  { %v2896_v35 = vadd.f32 %v2880_v55, %v10927_v16 }
 0x90a   :  { %v2689_v59 = vpop.f32.mrf.mxu2 }
 0x90b   :  { %v2690_v19 = vadd.f32 %v2689_v59, %v8768_v37 }
 0x90d   :  { %v6641_v13 = vpop.eup %6640  ;;  %vm2818_vm8 = vcmp.gt.f32.partialorder %v2690_v19, 0.0 }
 0x90e   :  { %v2865_v31 = vmul.f32 %v6641_v13, %v2785_v28  ;;  %v2834_v5 = vsel %vm2818_vm8, %v2690_v19, 1.0  ;;  %v2789_v32 = vpop.f32.mrf.mxu1  ;;  %v2748_v19 = vpop.f32.mrf.mxu3 }
 0x90f   :  { %6642 = vrcp.f32 %v2834_v5  ;;  %v2790_v10 = vadd.f32 %v2789_v32, %v2740_v56 }
 0x910   :  { %v2881_v44 = vsel %vm2817_vm7, %v2865_v31, 0.0 }
 0x911   :  { %v2897_v11 = vadd.f32 %v2881_v44, %v10929_v52 }
 0x912   :  { %v2691_v37 = vpop.f32.mrf.mxu2 }
 0x913   :  { %v2692_v63 = vadd.f32 %v2691_v37, %v8772_v50  ;;  %v2910_v22 = vpack.c.bf16 %v2897_v11, %v2896_v35 }
 0x915   :  { %vm2819_vm9 = vcmp.gt.f32.partialorder %v2692_v63, 0.0  ;;  %3004 = vmatmul.bf16.gmra.mxu2 %v2910_v22  ;;  %v6643_v45 = vpop.eup %6642 }
 0x916   :  { %v2835_v9 = vsel %vm2819_vm9, %v2692_v63, 1.0  ;;  %v2792_v7 = vpop.f32.mrf.mxu1  ;;  %v2866_v27 = vmul.f32 %v6643_v45, %v2788_v0  ;;  %v2750_v11 = vpop.f32.mrf.mxu3 }
 0x917   :  { %6644 = vrcp.f32 %v2835_v9  ;;  %v2793_v55 = vadd.f32 %v2792_v7, %v2743_v17  ;;  %v10934_v17 = vld [vmem:[#allocation55_spill] sm:$0xff]  ;;  %v10936_v9 = vld [vmem:[#allocation54_spill] sm:$0xff] }
 0x918   :  { %v2882_v61 = vsel %vm2818_vm8, %v2866_v27, 0.0  ;;  %v10935_v22 = vmax.f32 %v10934_v17, 0.0  ;;  %v10937_v7 = vmax.f32 %v10936_v9, 0.0 }
 0x919   :  { %v2898_v1 = vadd.f32 %v2882_v61, %v10931_v25 }
 0x91a   :  { %v2694_v58 = vpop.f32.mrf.mxu2 }
 0x91b   :  { %v2695_v42 = vadd.f32 %v2694_v58, %v8774_v43 }
 0x91d   :  { %v6645_v2 = vpop.eup %6644  ;;  %vm2820_vm10 = vcmp.gt.f32.partialorder %v2695_v42, 0.0 }
 0x91e   :  { %v2867_v50 = vmul.f32 %v6645_v2, %v2790_v10  ;;  %v2836_v49 = vsel %vm2820_vm10, %v2695_v42, 1.0  ;;  %v2794_v33 = vpop.f32.mrf.mxu1  ;;  %v2753_v2 = vpop.f32.mrf.mxu3 }
 0x91f   :  { %6646 = vrcp.f32 %v2836_v49  ;;  %v2795_v62 = vadd.f32 %v2794_v33, %v2745_v54 }
 0x920   :  { %v2883_v53 = vsel %vm2819_vm9, %v2867_v50, 0.0 }
 0x921   :  { %v2899_v59 = vadd.f32 %v2883_v53, %v10933_v40  ;;  %v10938_v40 = vld [vmem:[#allocation49_spill] sm:$0xff] }
 0x922   :  { %v2696_v43 = vpop.f32.mrf.mxu2 }
 0x923   :  { %v2697_v56 = vadd.f32 %v2696_v43, %v8778_v14  ;;  %v2911_v28 = vpack.c.bf16 %v2899_v59, %v2898_v1  ;;  %v10939_v59 = vmax.f32 %v10938_v40, 0.0 }
 0x925   :  { %vm2821_vm11 = vcmp.gt.f32.partialorder %v2697_v56, 0.0  ;;  %3009 = vmatmul.bf16.gmra.mxu2 %v2911_v28  ;;  %v6647_v5 = vpop.eup %6646 }
 0x926   :  { %v2837_v13 = vsel %vm2821_vm11, %v2697_v56, 1.0  ;;  %v2797_v31 = vpop.f32.mrf.mxu1  ;;  %v2868_v32 = vmul.f32 %v6647_v5, %v2793_v55  ;;  %v10940_v56 = vld [vmem:[#allocation48_spill] sm:$0xff] }
 0x927   :  { %6648 = vrcp.f32 %v2837_v13  ;;  %v2798_v54 = vadd.f32 %v2797_v31, %v2748_v19  ;;  %v10941_v28 = vmax.f32 %v10940_v56, 0.0  ;;  %v2755_v31 = vpop.f32.mrf.mxu3 }
 0x928   :  { %v2884_v39 = vsel %vm2820_vm10, %v2868_v32, 0.0 }
 0x929   :  { %v2900_v0 = vadd.f32 %v2884_v39, %v10935_v22 }
 0x92a   :  { %v2699_v44 = vpop.f32.mrf.mxu2 }
 0x92b   :  { %v2700_v16 = vadd.f32 %v2699_v44, %v8780_v30 }
 0x92d   :  { %v6649_v35 = vpop.eup %6648  ;;  %vm2822_vm12 = vcmp.gt.f32.partialorder %v2700_v16, 0.0 }
 0x92e   :  { %v2838_v14 = vsel %vm2822_vm12, %v2700_v16, 1.0  ;;  %v2869_v52 = vmul.f32 %v6649_v35, %v2795_v62  ;;  %v2799_v37 = vpop.f32.mrf.mxu1 }
 0x92f   :  { %6650 = vrcp.f32 %v2838_v14  ;;  %v2800_v33 = vadd.f32 %v2799_v37, %v2750_v11  ;;  %v2758_v11 = vpop.f32.mrf.mxu3 }
 0x930   :  { %v2885_v63 = vsel %vm2821_vm11, %v2869_v52, 0.0 }
 0x931   :  { %v2901_v45 = vadd.f32 %v2885_v63, %v10937_v7 }
 0x932   :  { %v2701_v27 = vpop.f32.mrf.mxu2 }
 0x933   :  { %v2702_v30 = vadd.f32 %v2701_v27, %v8784_v24  ;;  %v2912_v58 = vpack.c.bf16 %v2901_v45, %v2900_v0  ;;  %v10942_v0 = vld [vmem:[#allocation50_spill] sm:$0xff]  ;;  %v10944_v45 = vld [vmem:[#allocation53_spill] sm:$0xff] }
 0x934   :  { %v10943_v9 = vmax.f32 %v10942_v0, 0.0  ;;  %v10945_v27 = vmax.f32 %v10944_v45, 0.0 }
 0x935   :  { %vm2823_vm13 = vcmp.gt.f32.partialorder %v2702_v30, 0.0  ;;  %3014 = vmatmul.bf16.gmra.mxu2 %v2912_v58  ;;  %v6651_v10 = vpop.eup %6650 }
 0x936   :  { %v2839_v42 = vsel %vm2823_vm13, %v2702_v30, 1.0  ;;  %v2802_v61 = vpop.f32.mrf.mxu1  ;;  %v2870_v50 = vmul.f32 %v6651_v10, %v2798_v54 }
 0x937   :  { %6652 = vrcp.f32 %v2839_v42  ;;  %v2803_v44 = vadd.f32 %v2802_v61, %v2753_v2  ;;  %v2760_v61 = vpop.f32.mrf.mxu3 }
 0x938   :  { %v2886_v25 = vsel %vm2822_vm12, %v2870_v50, 0.0 }
 0x939   :  { %v2902_v43 = vadd.f32 %v2886_v25, %v10939_v59 }
 0x93a   :  { %v2704_v49 = vpop.f32.mrf.mxu2 }
 0x93b   :  { %v2705_v53 = vadd.f32 %v2704_v49, %v8786_v60 }
 0x93d   :  { %v6653_v15 = vpop.eup %6652  ;;  %vm2824_vm14 = vcmp.gt.f32.partialorder %v2705_v53, 0.0 }
 0x93e   :  { %v2840_v24 = vsel %vm2824_vm14, %v2705_v53, 1.0  ;;  %v2871_v1 = vmul.f32 %v6653_v15, %v2800_v33  ;;  %v2804_v5 = vpop.f32.mrf.mxu1 }
 0x93f   :  { %6654 = vrcp.f32 %v2840_v24  ;;  %v2805_v39 = vadd.f32 %v2804_v5, %v2755_v31 }
 0x940   :  { %v2887_v36 = vsel %vm2823_vm13, %v2871_v1, 0.0  ;;  %v10946_v1 = vld [vmem:[#allocation51_spill] sm:$0xff] }
 0x941   :  { %v2903_v19 = vadd.f32 %v2887_v36, %v10941_v28  ;;  %v10947_v36 = vmax.f32 %v10946_v1, 0.0  ;;  %v8877_v28 = vld [vmem:[%s10741_s7 + $0x1] ss:$0 sm:$0xff] }
 0x942   :  { %v2706_v13 = vpop.f32.mrf.mxu2 }
 0x943   :  { %v2707_v55 = vadd.f32 %v2706_v13, %v8790_v47  ;;  %v2913_v60 = vpack.c.bf16 %v2903_v19, %v2902_v43 }
 0x945   :  { %vm2825_vm15 = vcmp.gt.f32.partialorder %v2707_v55, 0.0  ;;  %3019 = vmatmul.bf16.gmra.mxu2 %v2913_v60  ;;  %v6655_v62 = vpop.eup %6654 }
 0x946   :  { %v2841_v32 = vsel %vm2825_vm15, %v2707_v55, 1.0  ;;  %v2872_v16 = vmul.f32 %v6655_v62, %v2803_v44  ;;  %v2807_v37 = vpop.f32.mrf.mxu1  ;;  %v10950_v55 = vld [vmem:[#allocation30_spill] sm:$0xff] }
 0x947   :  { %6656 = vrcp.f32 %v2841_v32  ;;  %v2808_v10 = vadd.f32 %v2807_v37, %v2758_v11 }
 0x948   :  { %v2888_v47 = vsel %vm2824_vm14, %v2872_v16, 0.0 }
 0x949   :  { %v2904_v7 = vadd.f32 %v2888_v47, %v10943_v9 }
 0x94a   :  { %v2709_v35 = vpop.f32.mrf.mxu2 }
 0x94b   :  { %v2710_v14 = vadd.f32 %v2709_v35, %v8792_v20 }
 0x94d   :  { %v6657_v52 = vpop.eup %6656  ;;  %vm2826_vm0 = vcmp.gt.f32.partialorder %v2710_v14, 0.0 }
 0x94e   :  { %v2842_v63 = vsel %vm2826_vm0, %v2710_v14, 1.0  ;;  %v2873_v17 = vmul.f32 %v6657_v52, %v2805_v39  ;;  %v2809_v50 = vpop.f32.mrf.mxu1 }
 0x94f   :  { %6658 = vrcp.f32 %v2842_v63  ;;  %v2810_v33 = vadd.f32 %v2809_v50, %v2760_v61 }
 0x950   :  { %v2889_v22 = vsel %vm2825_vm15, %v2873_v17, 0.0 }
 0x951   :  { %v2905_v30 = vadd.f32 %v2889_v22, %v10945_v27 }
 0x952   :  { %v2711_v58 = vpop.f32.mrf.mxu2 }
 0x953   :  { %v2712_v20 = vadd.f32 %v2711_v58, %v8796_v6  ;;  %v2914_v42 = vpack.c.bf16 %v2905_v30, %v2904_v7  ;;  %v10948_v6 = vld [vmem:[#allocation52_spill] sm:$0xff] }
 0x954   :  { %v10949_v59 = vmax.f32 %v10948_v6, 0.0 }
 0x955   :  { %vm2827_vm1 = vcmp.gt.f32.partialorder %v2712_v20, 0.0  ;;  %3024 = vmatmul.bf16.gmra.mxu2 %v2914_v42  ;;  %v6659_v2 = vpop.eup %6658 }
 0x956   :  { %v2843_v54 = vsel %vm2827_vm1, %v2712_v20, 1.0  ;;  %v2874_v49 = vmul.f32 %v6659_v2, %v2808_v10 }
 0x957   :  { %6660 = vrcp.f32 %v2843_v54 }
 0x958   :  { %v2890_v15 = vsel %vm2826_vm0, %v2874_v49, 0.0 }
 0x959   :  { %v2906_v40 = vadd.f32 %v2890_v15, %v10947_v36 }
 0x95d   :  { %v6661_v53 = vpop.eup %6660 }
 0x95e   :  { %v2875_v25 = vmul.f32 %v6661_v53, %v2810_v33 }
 0x960   :  { %v2891_v24 = vsel %vm2827_vm1, %v2875_v25, 0.0 }
 0x961   :  { %v2907_v43 = vadd.f32 %v2891_v24, %v10949_v59 }
 0x963   :  { %v2915_v56 = vpack.c.bf16 %v2907_v43, %v2906_v40 }
 0x965   :  { %3029 = vmatmul.bf16.gmra.mxu2 %v2915_v56 }
 0x978   :  { %v2995_v19 = vpop.f32.mrf.mxu2 }
 0x979   :  { %v2996_v13 = vadd.f32 %v8877_v28, %v2995_v19 }
 0x97b   :  { %v3039_v60 = vmul.f32 %v10950_v55, %v2996_v13 }
 0x97d   :  { %3055 = vadd.xlane.f32.xlu1 %v3039_v60 }
 0x980   :  { %v2997_v31 = vpop.f32.mrf.mxu2 }
 0x981   :  { %v2998_v5 = vadd.f32 %v8877_v28, %v2997_v31 }
 0x983   :  { %v3040_v32 = vmul.f32 %v10950_v55, %v2998_v5 }
 0x985   :  { %3057 = vadd.xlane.f32.xlu2 %v3040_v32 }
 0x988   :  { %v3000_v44 = vpop.f32.mrf.mxu2 }
 0x989   :  { %v3001_v62 = vadd.f32 %v8877_v28, %v3000_v44 }
 0x98b   :  { %v3041_v16 = vmul.f32 %v10950_v55, %v3001_v62 }
 0x98d   :  { %3059 = vadd.xlane.f32.xlu0 %v3041_v16 }
 0x990   :  { %v3002_v35 = vpop.f32.mrf.mxu2 }
 0x991   :  { %v3003_v39 = vadd.f32 %v8877_v28, %v3002_v35 }
 0x993   :  { %v3042_v14 = vmul.f32 %v10950_v55, %v3003_v39 }
 0x995   :  { %3061 = vadd.xlane.f32.xlu1 %v3042_v14 }
 0x998   :  { %v3005_v52 = vpop.f32.mrf.mxu2 }
 0x999   :  { %v3006_v11 = vadd.f32 %v8877_v28, %v3005_v52 }
 0x99b   :  { %v3043_v37 = vmul.f32 %v10950_v55, %v3006_v11 }
 0x99d   :  { %3063 = vadd.xlane.f32.xlu2 %v3043_v37 }
 0x9a0   :  { %v3007_v47 = vpop.f32.mrf.mxu2 }
 0x9a1   :  { %v8890_v63 = vadd.f32 %v8877_v28, %v3007_v47 }
 0x9a3   :  { %v3044_v17 = vmul.f32 %v10950_v55, %v8890_v63 }
 0x9a5   :  { %3065 = vadd.xlane.f32.xlu0 %v3044_v17 }
 0x9a8   :  { %v3010_v22 = vpop.f32.mrf.mxu2 }
 0x9a9   :  { %v8895_v0 = vadd.f32 %v8877_v28, %v3010_v22 }
 0x9ab   :  { %v3045_v9 = vmul.f32 %v10950_v55, %v8895_v0 }
 0x9ad   :  { %3067 = vadd.xlane.f32.xlu1 %v3045_v9 }
 0x9b0   :  { %v3012_v7 = vpop.f32.mrf.mxu2 }
 0x9b1   :  { %v8900_v45 = vadd.f32 %v8877_v28, %v3012_v7 }
 0x9b3   :  { %v3046_v27 = vmul.f32 %v10950_v55, %v8900_v45 }
 0x9b5   :  { %3069 = vadd.xlane.f32.xlu2 %v3046_v27 }
 0x9b8   :  { %v3015_v30 = vpop.f32.mrf.mxu2 }
 0x9b9   :  { %v8905_v58 = vadd.f32 %v8877_v28, %v3015_v30 }
 0x9bb   :  { %v3047_v20 = vmul.f32 %v10950_v55, %v8905_v58 }
 0x9bd   :  { %3071 = vadd.xlane.f32.xlu2 %v3047_v20 }
 0x9c0   :  { %v3017_v42 = vpop.f32.mrf.mxu2 }
 0x9c1   :  { %v8915_v15 = vadd.f32 %v8877_v28, %v3017_v42 }
 0x9c3   :  { %v3048_v36 = vmul.f32 %v10950_v55, %v8915_v15 }
 0x9c8   :  { %v3020_v50 = vpop.f32.mrf.mxu2 }
 0x9c9   :  { %v8925_v43 = vadd.f32 %v8877_v28, %v3020_v50 }
 0x9cb   :  { %v3049_v60 = vmul.f32 %v10950_v55, %v8925_v43 }
 0x9d0   :  { %v3022_v40 = vpop.f32.mrf.mxu2 }
 0x9d1   :  { %v8935_v44 = vadd.f32 %v8877_v28, %v3022_v40 }
 0x9d3   :  { %v3050_v14 = vmul.f32 %v10950_v55, %v8935_v44 }
 0x9d8   :  { %v3025_v32 = vpop.f32.mrf.mxu2 }
 0x9d9   :  { %v8945_v47 = vadd.f32 %v8877_v28, %v3025_v32 }
 0x9db   :  { %v3051_v7 = vmul.f32 %v10950_v55, %v8945_v47 }
 0x9e0   :  { %v3027_v22 = vpop.f32.mrf.mxu2 }
 0x9e1   :  { %v8955_v20 = vadd.f32 %v8877_v28, %v3027_v22 }
 0x9f0   :  { %v3056_v54 = vpop.xlane.xlu1 %3055 }
 0x9f1   :  { %v3087_v10 = vmul.f32 0.015625, %v3056_v54  ;;  %v3030_v54 = vpop.f32.mrf.mxu2 }
 0x9f3   :  { %v3103_v2 = vsub.f32 %v2996_v13, %v3087_v10 }
 0x9f5   :  { %v8910_v61 = vmul.f32 %v10950_v55, %v3103_v2  ;;  %v3052_v2 = vmul.f32 %v10950_v55, %v8955_v20 }
 0x9f7   :  { %v3135_v49 = vmul.f32 %v8910_v61, %v8910_v61 }
 0x9f8   :  { %v3058_v33 = vpop.xlane.xlu2 %3057 }
 0x9f9   :  { %v3088_v53 = vmul.f32 0.015625, %v3058_v33  ;;  %3151 = vadd.xlane.f32.xlu0 %v3135_v49  ;;  %v8966_v33 = vadd.f32 %v8877_v28, %v3030_v54 }
 0x9fb   :  { %v3104_v25 = vsub.f32 %v2998_v5, %v3088_v53 }
 0x9fd   :  { %v8918_v24 = vmul.f32 %v10950_v55, %v3104_v25 }
 0x9ff   :  { %v3136_v1 = vmul.f32 %v8918_v24, %v8918_v24 }
 0xa00   :  { %v3060_v6 = vpop.xlane.xlu0 %3059 }
 0xa01   :  { %v3089_v59 = vmul.f32 0.015625, %v3060_v6  ;;  %3153 = vadd.xlane.f32.xlu1 %v3136_v1  ;;  %3073 = vadd.xlane.f32.xlu0 %v3048_v36  ;;  %v3053_v1 = vmul.f32 %v10950_v55, %v8966_v33  ;;  %v3032_v36 = vpop.f32.mrf.mxu2 }
 0xa03   :  { %v3105_v56 = vsub.f32 %v3001_v62, %v3089_v59  ;;  %v8977_v59 = vadd.f32 %v8877_v28, %v3032_v36 }
 0xa05   :  { %v8928_v19 = vmul.f32 %v10950_v55, %v3105_v56 }
 0xa07   :  { %v3137_v13 = vmul.f32 %v8928_v19, %v8928_v19 }
 0xa08   :  { %v3062_v31 = vpop.xlane.xlu1 %3061 }
 0xa09   :  { %v3090_v5 = vmul.f32 0.015625, %v3062_v31  ;;  %3155 = vadd.xlane.f32.xlu1 %v3137_v13  ;;  %3075 = vadd.xlane.f32.xlu0 %v3049_v60  ;;  %v3054_v60 = vmul.f32 %v10950_v55, %v8977_v59 }
 0xa0b   :  { %v3106_v16 = vsub.f32 %v3003_v39, %v3090_v5 }
 0xa0d   :  { %v8938_v62 = vmul.f32 %v10950_v55, %v3106_v16  ;;  %v6332_v16 = vld [vmem:[#allocation16 + $0x78] sm:$0xff] }
 0xa0e   :  { %3523 = vmatpush.bf16.msrb.mxu3 %v6332_v16 }
 0xa0f   :  { %v3138_v35 = vmul.f32 %v8938_v62, %v8938_v62 }
 0xa10   :  { %v3064_v52 = vpop.xlane.xlu2 %3063 }
 0xa11   :  { %v3091_v37 = vmul.f32 0.015625, %v3064_v52  ;;  %3157 = vadd.xlane.f32.xlu2 %v3138_v35  ;;  %3077 = vadd.xlane.f32.xlu1 %v3050_v14  ;;  %v6331_v35 = vld [vmem:[#allocation16 + $0x70] sm:$0xff]  ;;  %v6330_v14 = vld [vmem:[#allocation16 + $0x68] sm:$0xff] }
 0xa12   :  { %3524 = vmatpush.bf16.msrb.mxu3 %v6331_v35 }
 0xa13   :  { %v3107_v17 = vsub.f32 %v3006_v11, %v3091_v37 }
 0xa15   :  { %v8948_v39 = vmul.f32 %v10950_v55, %v3107_v17  ;;  %v6329_v17 = vld [vmem:[#allocation16 + $0x60] sm:$0xff] }
 0xa16   :  { %3525 = vmatpush.bf16.msrb.mxu3 %v6330_v14 }
 0xa17   :  { %v3139_v9 = vmul.f32 %v8948_v39, %v8948_v39 }
 0xa18   :  { %v3066_v27 = vpop.xlane.xlu0 %3065 }
 0xa19   :  { %v3092_v30 = vmul.f32 0.015625, %v3066_v27  ;;  %3159 = vadd.xlane.f32.xlu2 %v3139_v9  ;;  %3079 = vadd.xlane.f32.xlu1 %v3051_v7 }
 0xa1a   :  { %3526 = vmatpush.bf16.msrb.mxu3 %v6329_v17 }
 0xa1b   :  { %v3108_v42 = vsub.f32 %v8890_v63, %v3092_v30 }
 0xa1d   :  { %v8959_v11 = vmul.f32 %v10950_v55, %v3108_v42  ;;  %v6327_v42 = vld [vmem:[#allocation16 + $0x50] sm:$0xff] }
 0xa1f   :  { %v3140_v10 = vmul.f32 %v8959_v11, %v8959_v11 }
 0xa20   :  { %v3068_v50 = vpop.xlane.xlu1 %3067 }
 0xa21   :  { %v3093_v49 = vmul.f32 0.015625, %v3068_v50  ;;  %3161 = vadd.xlane.f32.xlu0 %v3140_v10  ;;  %3081 = vadd.xlane.f32.xlu2 %v3052_v2 }
 0xa23   :  { %v3109_v53 = vsub.f32 %v8895_v0, %v3093_v49 }
 0xa25   :  { %v8970_v63 = vmul.f32 %v10950_v55, %v3109_v53 }
 0xa27   :  { %v3141_v25 = vmul.f32 %v8970_v63, %v8970_v63 }
 0xa28   :  { %v3070_v40 = vpop.xlane.xlu2 %3069 }
 0xa29   :  { %v3094_v6 = vmul.f32 0.015625, %v3070_v40  ;;  %3163 = vadd.xlane.f32.xlu0 %v3141_v25  ;;  %3083 = vadd.xlane.f32.xlu2 %v3053_v1  ;;  %v6326_v25 = vld [vmem:[#allocation16 + $0x48] sm:$0xff] }
 0xa2b   :  { %v3110_v56 = vsub.f32 %v8900_v45, %v3094_v6 }
 0xa2d   :  { %v8981_v0 = vmul.f32 %v10950_v55, %v3110_v56 }
 0xa2f   :  { %v3142_v13 = vmul.f32 %v8981_v0, %v8981_v0 }
 0xa30   :  { %v3072_v31 = vpop.xlane.xlu2 %3071 }
 0xa31   :  { %v3095_v5 = vmul.f32 0.015625, %v3072_v31  ;;  %3165 = vadd.xlane.f32.xlu1 %v3142_v13  ;;  %3085 = vadd.xlane.f32.xlu0 %v3054_v60 }
 0xa33   :  { %v3111_v32 = vsub.f32 %v8905_v58, %v3095_v5  ;;  %v6328_v58 = vld [vmem:[#allocation16 + $0x58] sm:$0xff] }
 0xa34   :  { %3527 = vmatpush.bf16.msrb.mxu3 %v6328_v58 }
 0xa35   :  { %v8989_v28 = vmul.f32 %v10950_v55, %v3111_v32 }
 0xa37   :  { %v3143_v45 = vmul.f32 %v8989_v28, %v8989_v28 }
 0xa38   :  { %3528 = vmatpush.bf16.msrb.mxu3 %v6327_v42 }
 0xa39   :  { %3167 = vadd.xlane.f32.xlu1 %v3143_v45 }
 0xa3c   :  { %3529 = vmatpush.bf16.msrb.mxu3 %v6326_v25  ;;  %v9015_v25 = vld [vmem:[%s10857_s4 + $0x1] ss:$0 sm:$0xff] }
 0xa6c   :  { %v3152_v52 = vpop.xlane.xlu0 %3151 }
 0xa6d   :  { %v3183_v37 = vmul.f32 0.015625, %v3152_v52 }
 0xa6f   :  { %v3199_v22 = vadd.f32 1e-05, %v3183_v37 }
 0xa71   :  { %6662 = vrsqrt.f32 %v3199_v22  ;;  %vm3221_vm4 = vweird.f32 %v3199_v22 }
 0xa74   :  { %v3154_v9 = vpop.xlane.xlu1 %3153  ;;  %v3074_v7 = vpop.xlane.xlu0 %3073 }
 0xa75   :  { %v3184_v27 = vmul.f32 0.015625, %v3154_v9  ;;  %v3096_v30 = vmul.f32 0.015625, %v3074_v7 }
 0xa77   :  { %v6663_v54 = vpop.eup %6662  ;;  %v3200_v10 = vadd.f32 1e-05, %v3184_v27  ;;  %v3112_v2 = vsub.f32 %v8915_v15, %v3096_v30  ;;  %v6325_v15 = vld [vmem:[#allocation16 + $0x40] sm:$0xff] }
 0xa78   :  { %v3216_v50 = vmul.f32 %v6663_v54, %v3199_v22  ;;  %vm3222_vm2 = vweird.f32 %v6663_v54  ;;  %3530 = vmatpush.bf16.msrb.mxu3 %v6325_v15 }
 0xa79   :  { %6664 = vrsqrt.f32 %v3200_v10  ;;  %v8995_v49 = vmul.f32 %v10950_v55, %v3112_v2  ;;  %vm3223_vm3 = vmor %vm3221_vm4, %vm3222_vm2  ;;  %vm3231_vm6 = vweird.f32 %v3200_v10 }
 0xa7a   :  { %v3217_v53 = vmul.f32 %v6663_v54, %v3216_v50 }
 0xa7b   :  { %v3144_v1 = vmul.f32 %v8995_v49, %v8995_v49 }
 0xa7c   :  { %v3218_v36 = vmul.f32 0.5, %v3217_v53  ;;  %v3156_v40 = vpop.xlane.xlu1 %3155  ;;  %v3076_v6 = vpop.xlane.xlu0 %3075 }
 0xa7d   :  { %v3185_v56 = vmul.f32 0.015625, %v3156_v40  ;;  %v3097_v13 = vmul.f32 0.015625, %v3076_v6  ;;  %3169 = vadd.xlane.f32.xlu2 %v3144_v1 }
 0xa7e   :  { %v3219_v60 = vsub.f32 1.5, %v3218_v36 }
 0xa7f   :  { %v6665_v31 = vpop.eup %6664  ;;  %v3201_v5 = vadd.f32 1e-05, %v3185_v56  ;;  %v3113_v32 = vsub.f32 %v8925_v43, %v3097_v13  ;;  %v9008_v43 = vld [vmem:[%s10742_s8 + $0x1] ss:$0 sm:$0xff] }
 0xa80   :  { %v3220_v45 = vmul.f32 %v6663_v54, %v3219_v60  ;;  %v3226_v16 = vmul.f32 %v6665_v31, %v3200_v10  ;;  %vm3232_vm5 = vweird.f32 %v6665_v31 }
 0xa81   :  { %6666 = vrsqrt.f32 %v3201_v5  ;;  %v9001_v35 = vmul.f32 %v10950_v55, %v3113_v32  ;;  %vm3233_vm7 = vmor %vm3231_vm6, %vm3232_vm5  ;;  %vm3241_vm9 = vweird.f32 %v3201_v5 }
 0xa82   :  { %v3224_v14 = vsel %vm3223_vm3, %v6663_v54, %v3220_v45  ;;  %v3227_v52 = vmul.f32 %v6665_v31, %v3226_v16 }
 0xa83   :  { %v3145_v37 = vmul.f32 %v9001_v35, %v9001_v35  ;;  %v3375_v22 = vmul.f32 %v3224_v14, %v8910_v61 }
 0xa84   :  { %v3228_v17 = vmul.f32 0.5, %v3227_v52  ;;  %v3158_v58 = vpop.xlane.xlu2 %3157  ;;  %v3078_v9 = vpop.xlane.xlu1 %3077 }
 0xa85   :  { %v3186_v7 = vmul.f32 0.015625, %v3158_v58  ;;  %v3098_v27 = vmul.f32 0.015625, %v3078_v9  ;;  %3171 = vadd.xlane.f32.xlu0 %v3145_v37  ;;  %v3394_v1 = vmul.f32 %v9008_v43, %v3375_v22 }
 0xa86   :  { %v3229_v30 = vsub.f32 1.5, %v3228_v17 }
 0xa87   :  { %v6667_v42 = vpop.eup %6666  ;;  %v3202_v54 = vadd.f32 1e-05, %v3186_v7  ;;  %v3114_v2 = vsub.f32 %v8935_v44, %v3098_v27  ;;  %v3413_v60 = vadd.f32 %v9015_v25, %v3394_v1 }
 0xa88   :  { %v3230_v50 = vmul.f32 %v6665_v31, %v3229_v30  ;;  %v3236_v53 = vmul.f32 %v6667_v42, %v3201_v5  ;;  %vm3242_vm8 = vweird.f32 %v6667_v42 }
 0xa89   :  { %6668 = vrsqrt.f32 %v3202_v54  ;;  %v9019_v61 = vmul.f32 %v10950_v55, %v3114_v2  ;;  %vm3243_vm10 = vmor %vm3241_vm9, %vm3242_vm8  ;;  %v3429_v58 = vmax.f32 %v3413_v60, 0.0  ;;  %vm3251_vm12 = vweird.f32 %v3202_v54 }
 0xa8a   :  { %v3234_v36 = vsel %vm3233_vm7, %v6665_v31, %v3230_v50  ;;  %v3237_v40 = vmul.f32 %v6667_v42, %v3236_v53 }
 0xa8b   :  { %v3376_v6 = vmul.f32 %v3234_v36, %v8918_v24  ;;  %v3146_v44 = vmul.f32 %v9019_v61, %v9019_v61 }
 0xa8c   :  { %v3238_v10 = vmul.f32 0.5, %v3237_v40  ;;  %v3160_v56 = vpop.xlane.xlu2 %3159  ;;  %v3080_v13 = vpop.xlane.xlu1 %3079 }
 0xa8d   :  { %v3395_v15 = vmul.f32 %v9008_v43, %v3376_v6  ;;  %v3187_v32 = vmul.f32 0.015625, %v3160_v56  ;;  %v3099_v45 = vmul.f32 0.015625, %v3080_v13  ;;  %3173 = vadd.xlane.f32.xlu1 %v3146_v44 }
 0xa8e   :  { %v3239_v16 = vsub.f32 1.5, %v3238_v10 }
 0xa8f   :  { %v6669_v14 = vpop.eup %6668  ;;  %v3414_v31 = vadd.f32 %v9015_v25, %v3395_v15  ;;  %v3203_v52 = vadd.f32 1e-05, %v3187_v32  ;;  %v3115_v24 = vsub.f32 %v8945_v47, %v3099_v45 }
 0xa90   :  { %v3240_v37 = vmul.f32 %v6667_v42, %v3239_v16  ;;  %v3246_v17 = vmul.f32 %v6669_v14, %v3202_v54  ;;  %vm3252_vm11 = vweird.f32 %v6669_v14 }
 0xa91   :  { %6670 = vrsqrt.f32 %v3203_v52  ;;  %v3430_v9 = vmax.f32 %v3414_v31, 0.0  ;;  %v9029_v22 = vmul.f32 %v10950_v55, %v3115_v24  ;;  %vm3253_vm13 = vmor %vm3251_vm12, %vm3252_vm11  ;;  %vm3261_vm15 = vweird.f32 %v3203_v52 }
 0xa92   :  { %v3244_v7 = vsel %vm3243_vm10, %v6667_v42, %v3240_v37  ;;  %v3247_v27 = vmul.f32 %v6669_v14, %v3246_v17 }
 0xa93   :  { %v3445_v30 = vpack.c.bf16 %v3430_v9, %v3429_v58  ;;  %v3147_v2 = vmul.f32 %v9029_v22, %v9029_v22  ;;  %v3377_v47 = vmul.f32 %v3244_v7, %v8928_v19 }
 0xa94   :  { %v3248_v50 = vmul.f32 0.5, %v3247_v27  ;;  %v3162_v53 = vpop.xlane.xlu0 %3161  ;;  %v3082_v1 = vpop.xlane.xlu2 %3081 }
 0xa95   :  { %v3188_v5 = vmul.f32 0.015625, %v3162_v53  ;;  %v3100_v36 = vmul.f32 0.015625, %v3082_v1  ;;  %3531 = vmatmul.bf16.vlgmr.msrb.gmra.mxu3 %v3445_v30  ;;  %3175 = vadd.xlane.f32.xlu2 %v3147_v2  ;;  %v3396_v19 = vmul.f32 %v9008_v43, %v3377_v47 }
 0xa96   :  { %v3249_v40 = vsub.f32 1.5, %v3248_v50 }
 0xa97   :  { %v6671_v6 = vpop.eup %6670  ;;  %v3204_v44 = vadd.f32 1e-05, %v3188_v5  ;;  %v3116_v42 = vsub.f32 %v8955_v20, %v3100_v36  ;;  %v3415_v17 = vadd.f32 %v9015_v25, %v3396_v19 }
 0xa98   :  { %v3250_v10 = vmul.f32 %v6669_v14, %v3249_v40  ;;  %v3256_v56 = vmul.f32 %v6671_v6, %v3203_v52  ;;  %vm3262_vm14 = vweird.f32 %v6671_v6 }
 0xa99   :  { %6672 = vrsqrt.f32 %v3204_v44  ;;  %v9036_v13 = vmul.f32 %v10950_v55, %v3116_v42  ;;  %vm3263_vm0 = vmor %vm3261_vm15, %vm3262_vm14  ;;  %v3431_v2 = vmax.f32 %v3415_v17, 0.0  ;;  %vm3271_vm2 = vweird.f32 %v3204_v44 }
 0xa9a   :  { %v3254_v60 = vsel %vm3253_vm13, %v6669_v14, %v3250_v10  ;;  %v3257_v15 = vmul.f32 %v6671_v6, %v3256_v56 }
 0xa9b   :  { %v3378_v32 = vmul.f32 %v3254_v60, %v8938_v62  ;;  %v3148_v45 = vmul.f32 %v9036_v13, %v9036_v13 }
 0xa9c   :  { %v3258_v16 = vmul.f32 0.5, %v3257_v15  ;;  %v3164_v31 = vpop.xlane.xlu0 %3163  ;;  %v3084_v20 = vpop.xlane.xlu2 %3083 }
 0xa9d   :  { %v3189_v24 = vmul.f32 0.015625, %v3164_v31  ;;  %v3101_v54 = vmul.f32 0.015625, %v3084_v20  ;;  %3177 = vadd.xlane.f32.xlu0 %v3148_v45  ;;  %v3397_v37 = vmul.f32 %v9008_v43, %v3378_v32 }
 0xa9e   :  { %v3259_v58 = vsub.f32 1.5, %v3258_v16 }
 0xa9f   :  { %v6673_v9 = vpop.eup %6672  ;;  %v3205_v14 = vadd.f32 1e-05, %v3189_v24  ;;  %v3117_v7 = vsub.f32 %v8966_v33, %v3101_v54  ;;  %v3416_v62 = vadd.f32 %v9015_v25, %v3397_v37 }
 0xaa0   :  { %v3260_v27 = vmul.f32 %v6671_v6, %v3259_v58  ;;  %v3266_v30 = vmul.f32 %v6673_v9, %v3204_v44  ;;  %vm3272_vm1 = vweird.f32 %v6673_v9 }
 0xaa1   :  { %6674 = vrsqrt.f32 %v3205_v14  ;;  %v3432_v50 = vmax.f32 %v3416_v62, 0.0  ;;  %v9047_v53 = vmul.f32 %v10950_v55, %v3117_v7  ;;  %vm3273_vm4 = vmor %vm3271_vm2, %vm3272_vm1  ;;  %vm3281_vm5 = vweird.f32 %v3205_v14 }
 0xaa2   :  { %v3264_v1 = vsel %vm3263_vm0, %v6671_v6, %v3260_v27  ;;  %v3267_v47 = vmul.f32 %v6673_v9, %v3266_v30 }
 0xaa3   :  { %v3446_v5 = vpack.c.bf16 %v3432_v50, %v3431_v2  ;;  %v3149_v36 = vmul.f32 %v9047_v53, %v9047_v53  ;;  %v3379_v10 = vmul.f32 %v3264_v1, %v8948_v39 }
 0xaa4   :  { %v3268_v40 = vmul.f32 0.5, %v3267_v47  ;;  %v3166_v33 = vpop.xlane.xlu1 %3165  ;;  %v3086_v42 = vpop.xlane.xlu0 %3085 }
 0xaa5   :  { %v3190_v52 = vmul.f32 0.015625, %v3166_v33  ;;  %v3102_v56 = vmul.f32 0.015625, %v3086_v42  ;;  %3536 = vmatmul.bf16.gmra.mxu3 %v3446_v5  ;;  %3179 = vadd.xlane.f32.xlu1 %v3149_v36  ;;  %v3398_v39 = vmul.f32 %v9008_v43, %v3379_v10 }
 0xaa6   :  { %v3269_v19 = vsub.f32 1.5, %v3268_v40 }
 0xaa7   :  { %v6675_v60 = vpop.eup %6674  ;;  %v3206_v15 = vadd.f32 1e-05, %v3190_v52  ;;  %v3118_v6 = vsub.f32 %v8977_v59, %v3102_v56  ;;  %v3417_v44 = vadd.f32 %v9015_v25, %v3398_v39 }
 0xaa8   :  { %v3270_v32 = vmul.f32 %v6673_v9, %v3269_v19  ;;  %v3276_v45 = vmul.f32 %v6675_v60, %v3205_v14  ;;  %vm3282_vm3 = vweird.f32 %v6675_v60 }
 0xaa9   :  { %6676 = vrsqrt.f32 %v3206_v15  ;;  %v9054_v16 = vmul.f32 %v10950_v55, %v3118_v6  ;;  %vm3283_vm6 = vmor %vm3281_vm5, %vm3282_vm3  ;;  %v3433_v27 = vmax.f32 %v3417_v44, 0.0  ;;  %vm3291_vm8 = vweird.f32 %v3206_v15 }
 0xaaa   :  { %v3274_v31 = vsel %vm3273_vm4, %v6673_v9, %v3270_v32  ;;  %v3277_v20 = vmul.f32 %v6675_v60, %v3276_v45 }
 0xaab   :  { %v3380_v24 = vmul.f32 %v3274_v31, %v8959_v11  ;;  %v3150_v54 = vmul.f32 %v9054_v16, %v9054_v16 }
 0xaac   :  { %v3278_v37 = vmul.f32 0.5, %v3277_v20 }
 0xaad   :  { %3181 = vadd.xlane.f32.xlu2 %v3150_v54  ;;  %v3399_v59 = vmul.f32 %v9008_v43, %v3380_v24 }
 0xaae   :  { %v3279_v17 = vsub.f32 1.5, %v3278_v37 }
 0xaaf   :  { %v6677_v58 = vpop.eup %6676  ;;  %v3418_v7 = vadd.f32 %v9015_v25, %v3399_v59 }
 0xab0   :  { %v3280_v62 = vmul.f32 %v6675_v60, %v3279_v17  ;;  %v3286_v9 = vmul.f32 %v6677_v58, %v3206_v15  ;;  %vm3292_vm7 = vweird.f32 %v6677_v58 }
 0xab1   :  { %v3434_v11 = vmax.f32 %v3418_v7, 0.0  ;;  %vm3293_vm9 = vmor %vm3291_vm8, %vm3292_vm7 }
 0xab2   :  { %v3284_v30 = vsel %vm3283_vm6, %v6675_v60, %v3280_v62  ;;  %v3287_v2 = vmul.f32 %v6677_v58, %v3286_v9  ;;  %v3168_v60 = vpop.xlane.xlu1 %3167 }
 0xab3   :  { %v3447_v50 = vpack.c.bf16 %v3434_v11, %v3433_v27  ;;  %v3381_v47 = vmul.f32 %v3284_v30, %v8970_v63  ;;  %v3191_v6 = vmul.f32 0.015625, %v3168_v60 }
 0xab4   :  { %v3288_v1 = vmul.f32 0.5, %v3287_v2 }
 0xab5   :  { %3541 = vmatmul.bf16.gmra.mxu3 %v3447_v50  ;;  %v3400_v40 = vmul.f32 %v9008_v43, %v3381_v47  ;;  %v3207_v32 = vadd.f32 1e-05, %v3191_v6 }
 0xab6   :  { %v3289_v5 = vsub.f32 1.5, %v3288_v1 }
 0xab7   :  { %v3419_v10 = vadd.f32 %v9015_v25, %v3400_v40  ;;  %6678 = vrsqrt.f32 %v3207_v32  ;;  %vm3301_vm11 = vweird.f32 %v3207_v32 }
 0xab8   :  { %v3290_v36 = vmul.f32 %v6677_v58, %v3289_v5 }
 0xab9   :  { %v3435_v56 = vmax.f32 %v3419_v10, 0.0 }
 0xaba   :  { %v3294_v33 = vsel %vm3293_vm9, %v6677_v58, %v3290_v36 }
 0xabb   :  { %v3382_v14 = vmul.f32 %v3294_v33, %v8981_v0 }
 0xabd   :  { %v3401_v42 = vmul.f32 %v9008_v43, %v3382_v14  ;;  %v6679_v15 = vpop.eup %6678 }
 0xabe   :  { %v3296_v45 = vmul.f32 %v6679_v15, %v3207_v32  ;;  %vm3302_vm10 = vweird.f32 %v6679_v15 }
 0xabf   :  { %v3420_v52 = vadd.f32 %v9015_v25, %v3401_v42  ;;  %vm3303_vm12 = vmor %vm3301_vm11, %vm3302_vm10 }
 0xac0   :  { %v3297_v39 = vmul.f32 %v6679_v15, %v3296_v45 }
 0xac1   :  { %v3436_v19 = vmax.f32 %v3420_v52, 0.0 }
 0xac2   :  { %v3298_v0 = vmul.f32 0.5, %v3297_v39 }
 0xac3   :  { %v3448_v63 = vpack.c.bf16 %v3436_v19, %v3435_v56 }
 0xac4   :  { %v3299_v54 = vsub.f32 1.5, %v3298_v0 }
 0xac5   :  { %3546 = vmatmul.bf16.gmra.mxu3 %v3448_v63 }
 0xac6   :  { %v3300_v44 = vmul.f32 %v6679_v15, %v3299_v54 }
 0xac8   :  { %v3304_v62 = vsel %vm3303_vm12, %v6679_v15, %v3300_v44 }
 0xac9   :  { %v3383_v30 = vmul.f32 %v3304_v62, %v8989_v28 }
 0xacb   :  { %v3402_v40 = vmul.f32 %v9008_v43, %v3383_v30 }
 0xacd   :  { %v3421_v19 = vadd.f32 %v9015_v25, %v3402_v40 }
 0xacf   :  { %v3437_v39 = vmax.f32 %v3421_v19, 0.0 }
 0xaf0   :  { %v3170_v31 = vpop.xlane.xlu2 %3169 }
 0xaf1   :  { %v3192_v20 = vmul.f32 0.015625, %v3170_v31 }
 0xaf3   :  { %v3208_v24 = vadd.f32 1e-05, %v3192_v20 }
 0xaf5   :  { %6680 = vrsqrt.f32 %v3208_v24  ;;  %vm3311_vm14 = vweird.f32 %v3208_v24 }
 0xaf8   :  { %v3172_v37 = vpop.xlane.xlu0 %3171 }
 0xaf9   :  { %v3193_v59 = vmul.f32 0.015625, %v3172_v37 }
 0xafb   :  { %v6681_v17 = vpop.eup %6680  ;;  %v3209_v58 = vadd.f32 1e-05, %v3193_v59 }
 0xafc   :  { %v3306_v7 = vmul.f32 %v6681_v17, %v3208_v24  ;;  %vm3312_vm13 = vweird.f32 %v6681_v17 }
 0xafd   :  { %6682 = vrsqrt.f32 %v3209_v58  ;;  %vm3313_vm15 = vmor %vm3311_vm14, %vm3312_vm13  ;;  %vm3321_vm1 = vweird.f32 %v3209_v58 }
 0xafe   :  { %v3307_v9 = vmul.f32 %v6681_v17, %v3306_v7 }
 0xb00   :  { %v3308_v27 = vmul.f32 0.5, %v3307_v9  ;;  %v3174_v11 = vpop.xlane.xlu1 %3173 }
 0xb01   :  { %v3194_v2 = vmul.f32 0.015625, %v3174_v11 }
 0xb02   :  { %v3309_v50 = vsub.f32 1.5, %v3308_v27 }
 0xb03   :  { %v6683_v1 = vpop.eup %6682  ;;  %v3210_v47 = vadd.f32 1e-05, %v3194_v2 }
 0xb04   :  { %v3310_v5 = vmul.f32 %v6681_v17, %v3309_v50  ;;  %v3316_v36 = vmul.f32 %v6683_v1, %v3209_v58  ;;  %vm3322_vm0 = vweird.f32 %v6683_v1 }
 0xb05   :  { %6684 = vrsqrt.f32 %v3210_v47  ;;  %vm3323_vm2 = vmor %vm3321_vm1, %vm3322_vm0  ;;  %vm3331_vm3 = vweird.f32 %v3210_v47 }
 0xb06   :  { %v3314_v33 = vsel %vm3313_vm15, %v6681_v17, %v3310_v5  ;;  %v3317_v14 = vmul.f32 %v6683_v1, %v3316_v36 }
 0xb07   :  { %v3384_v42 = vmul.f32 %v3314_v33, %v8995_v49 }
 0xb08   :  { %v3318_v10 = vmul.f32 0.5, %v3317_v14  ;;  %v3176_v52 = vpop.xlane.xlu2 %3175 }
 0xb09   :  { %v3195_v56 = vmul.f32 0.015625, %v3176_v52  ;;  %v3403_v28 = vmul.f32 %v9008_v43, %v3384_v42 }
 0xb0a   :  { %v3319_v63 = vsub.f32 1.5, %v3318_v10 }
 0xb0b   :  { %v6685_v60 = vpop.eup %6684  ;;  %v3211_v6 = vadd.f32 1e-05, %v3195_v56  ;;  %v3422_v32 = vadd.f32 %v9015_v25, %v3403_v28 }
 0xb0c   :  { %v3320_v15 = vmul.f32 %v6683_v1, %v3319_v63  ;;  %v3326_v45 = vmul.f32 %v6685_v60, %v3210_v47  ;;  %vm3332_vm4 = vweird.f32 %v6685_v60 }
 0xb0d   :  { %6686 = vrsqrt.f32 %v3211_v6  ;;  %v3438_v49 = vmax.f32 %v3422_v32, 0.0  ;;  %vm3333_vm5 = vmor %vm3331_vm3, %vm3332_vm4  ;;  %vm3341_vm7 = vweird.f32 %v3211_v6 }
 0xb0e   :  { %v3324_v31 = vsel %vm3323_vm2, %v6683_v1, %v3320_v15  ;;  %v3327_v20 = vmul.f32 %v6685_v60, %v3326_v45 }
 0xb0f   :  { %v3449_v0 = vpack.c.bf16 %v3438_v49, %v3437_v39  ;;  %v3385_v37 = vmul.f32 %v3324_v31, %v9001_v35 }
 0xb10   :  { %v3328_v24 = vmul.f32 0.5, %v3327_v20  ;;  %v3178_v54 = vpop.xlane.xlu0 %3177 }
 0xb11   :  { %v3196_v59 = vmul.f32 0.015625, %v3178_v54  ;;  %3551 = vmatmul.bf16.gmra.mxu3 %v3449_v0  ;;  %v3404_v9 = vmul.f32 %v9008_v43, %v3385_v37 }
 0xb12   :  { %v3329_v44 = vsub.f32 1.5, %v3328_v24 }
 0xb13   :  { %v6687_v17 = vpop.eup %6686  ;;  %v3212_v7 = vadd.f32 1e-05, %v3196_v59  ;;  %v3423_v5 = vadd.f32 %v9015_v25, %v3404_v9 }
 0xb14   :  { %v3330_v62 = vmul.f32 %v6685_v60, %v3329_v44  ;;  %v3336_v58 = vmul.f32 %v6687_v17, %v3211_v6  ;;  %vm3342_vm6 = vweird.f32 %v6687_v17 }
 0xb15   :  { %6688 = vrsqrt.f32 %v3212_v7  ;;  %vm3343_vm8 = vmor %vm3341_vm7, %vm3342_vm6  ;;  %v3439_v10 = vmax.f32 %v3423_v5, 0.0  ;;  %vm3351_vm10 = vweird.f32 %v3212_v7 }
 0xb16   :  { %v3334_v27 = vsel %vm3333_vm5, %v6685_v60, %v3330_v62  ;;  %v3337_v11 = vmul.f32 %v6687_v17, %v3336_v58 }
 0xb17   :  { %v3386_v30 = vmul.f32 %v3334_v27, %v9019_v61 }
 0xb18   :  { %v3338_v2 = vmul.f32 0.5, %v3337_v11  ;;  %v3180_v50 = vpop.xlane.xlu1 %3179 }
 0xb19   :  { %v3197_v35 = vmul.f32 0.015625, %v3180_v50  ;;  %v3405_v1 = vmul.f32 %v9008_v43, %v3386_v30 }
 0xb1a   :  { %v3339_v36 = vsub.f32 1.5, %v3338_v2 }
 0xb1b   :  { %v6689_v40 = vpop.eup %6688  ;;  %v3213_v47 = vadd.f32 1e-05, %v3197_v35  ;;  %v3424_v33 = vadd.f32 %v9015_v25, %v3405_v1 }
 0xb1c   :  { %v3340_v14 = vmul.f32 %v6687_v17, %v3339_v36  ;;  %v3346_v42 = vmul.f32 %v6689_v40, %v3212_v7  ;;  %vm3352_vm9 = vweird.f32 %v6689_v40 }
 0xb1d   :  { %6690 = vrsqrt.f32 %v3213_v47  ;;  %v3440_v61 = vmax.f32 %v3424_v33, 0.0  ;;  %vm3353_vm11 = vmor %vm3351_vm10, %vm3352_vm9  ;;  %vm3361_vm13 = vweird.f32 %v3213_v47 }
 0xb1e   :  { %v3344_v52 = vsel %vm3343_vm8, %v6687_v17, %v3340_v14  ;;  %v3347_v56 = vmul.f32 %v6689_v40, %v3346_v42 }
 0xb1f   :  { %v3450_v28 = vpack.c.bf16 %v3440_v61, %v3439_v10  ;;  %v3387_v60 = vmul.f32 %v3344_v52, %v9029_v22  ;;  %v3532_v10 = vpop.f32.mrf.mxu3 }
 0xb20   :  { %v3348_v19 = vmul.f32 0.5, %v3347_v56  ;;  %v3182_v63 = vpop.xlane.xlu2 %3181 }
 0xb21   :  { %v3198_v32 = vmul.f32 0.015625, %v3182_v63  ;;  %3556 = vmatmul.bf16.gmra.mxu3 %v3450_v28  ;;  %v3406_v31 = vmul.f32 %v9008_v43, %v3387_v60 }
 0xb22   :  { %v3349_v15 = vsub.f32 1.5, %v3348_v19 }
 0xb23   :  { %v6691_v45 = vpop.eup %6690  ;;  %v3214_v39 = vadd.f32 1e-05, %v3198_v32  ;;  %v3425_v37 = vadd.f32 %v9015_v25, %v3406_v31 }
 0xb24   :  { %v3350_v49 = vmul.f32 %v6689_v40, %v3349_v15  ;;  %v3356_v6 = vmul.f32 %v6691_v45, %v3213_v47  ;;  %vm3362_vm12 = vweird.f32 %v6691_v45 }
 0xb25   :  { %6692 = vrsqrt.f32 %v3214_v39  ;;  %vm3363_vm14 = vmor %vm3361_vm13, %vm3362_vm12  ;;  %v3441_v58 = vmax.f32 %v3425_v37, 0.0  ;;  %vm3371_vm0 = vweird.f32 %v3214_v39 }
 0xb26   :  { %v3354_v20 = vsel %vm3353_vm11, %v6689_v40, %v3350_v49  ;;  %v3357_v0 = vmul.f32 %v6691_v45, %v3356_v6  ;;  %v10953_v49 = vld [vmem:[#allocation32_spill] sm:$0xff] }
 0xb27   :  { %v3388_v24 = vmul.f32 %v3354_v20, %v9036_v13  ;;  %v9093_v61 = vpop.f32.mrf.mxu3 }
 0xb28   :  { %v3358_v54 = vmul.f32 0.5, %v3357_v0  ;;  %v10954_v0 = vld [vmem:[#allocation33_spill] sm:$0xff] }
 0xb29   :  { %v3407_v22 = vmul.f32 %v9008_v43, %v3388_v24 }
 0xb2a   :  { %v3359_v59 = vsub.f32 1.5, %v3358_v54 }
 0xb2b   :  { %v6693_v44 = vpop.eup %6692  ;;  %v3426_v17 = vadd.f32 %v9015_v25, %v3407_v22 }
 0xb2c   :  { %v3360_v7 = vmul.f32 %v6691_v45, %v3359_v59  ;;  %v3366_v62 = vmul.f32 %v6693_v44, %v3214_v39  ;;  %vm3372_vm15 = vweird.f32 %v6693_v44  ;;  %v10956_v59 = vld [vmem:[#allocation34_spill] sm:$0xff] }
 0xb2d   :  { %v3442_v9 = vmax.f32 %v3426_v17, 0.0  ;;  %vm3373_vm1 = vmor %vm3371_vm0, %vm3372_vm15 }
 0xb2e   :  { %v3364_v27 = vsel %vm3363_vm14, %v6691_v45, %v3360_v7  ;;  %v3367_v11 = vmul.f32 %v6693_v44, %v3366_v62  ;;  %v10951_v45 = vld [vmem:[#allocation31_spill] sm:$0xff] }
 0xb2f   :  { %v3451_v30 = vpack.c.bf16 %v3442_v9, %v3441_v58  ;;  %v3389_v2 = vmul.f32 %v3364_v27, %v9047_v53  ;;  %v3537_v52 = vpop.f32.mrf.mxu3  ;;  %v10958_v58 = vld [vmem:[#allocation35_spill] sm:$0xff] }
 0xb30   :  { %v3368_v13 = vmul.f32 0.5, %v3367_v11  ;;  %v10960_v11 = vld [vmem:[#allocation36_spill] sm:$0xff] }
 0xb31   :  { %3561 = vmatmul.bf16.gmra.mxu3 %v3451_v30  ;;  %v3408_v1 = vmul.f32 %v9008_v43, %v3389_v2 }
 0xb32   :  { %v3369_v50 = vsub.f32 1.5, %v3368_v13 }
 0xb33   :  { %v3427_v47 = vadd.f32 %v9015_v25, %v3408_v1  ;;  %v10962_v1 = vld [vmem:[#allocation37_spill] sm:$0xff] }
 0xb34   :  { %v3370_v35 = vmul.f32 %v6693_v44, %v3369_v50 }
 0xb35   :  { %v3443_v14 = vmax.f32 %v3427_v47, 0.0 }
 0xb36   :  { %v3374_v5 = vsel %vm3373_vm1, %v6693_v44, %v3370_v35 }
 0xb37   :  { %v3390_v36 = vmul.f32 %v3374_v5, %v9054_v16  ;;  %v9095_v56 = vpop.f32.mrf.mxu3 }
 0xb39   :  { %v3409_v40 = vmul.f32 %v9008_v43, %v3390_v36 }
 0xb3b   :  { %v3428_v33 = vadd.f32 %v9015_v25, %v3409_v40  ;;  %v6395_v25 = vld [vmem:[%s10745_s11 + $0x1] ss:$0 sm:$0xff]  ;;  %v10964_v40 = vld [vmem:[#allocation38_spill] sm:$0xff] }
 0xb3d   :  { %v3444_v42 = vmax.f32 %v3428_v33, 0.0  ;;  %v3533_v33 = vadd.f32 %v6395_v25, %v3532_v10 }
 0xb3f   :  { %v3452_v53 = vpack.c.bf16 %v3444_v42, %v3443_v14  ;;  %v3542_v28 = vpop.f32.mrf.mxu3 }
 0xb41   :  { %3566 = vmatmul.bf16.gmra.mxu3 %v3452_v53 }
 0xb47   :  { %v3544_v19 = vpop.f32.mrf.mxu3 }
 0xb48   :  { %v3545_v13 = vadd.f32 %v6395_v25, %v3544_v19 }
 0xb4a   :  { %v9126_v5 = vadd.f32 %v3545_v13, %v10962_v1  ;;  %v10978_v13 = vld [vmem:[#allocation45_spill] sm:$0xff]  ;;  %v10980_v1 = vld [vmem:[#allocation46_spill] sm:$0xff] }
 0xb4c   :  { %10963 = vst [vmem:[#allocation56_spill] sm:$0xff] %v9126_v5  ;;  %v3597_v14 = vmul.f32 %v10953_v49, %v9126_v5 }
 0xb4f   :  { %v3547_v63 = vpop.f32.mrf.mxu3 }
 0xb50   :  { %v3548_v17 = vadd.f32 %v6395_v25, %v3547_v63  ;;  %v10966_v63 = vld [vmem:[#allocation39_spill] sm:$0xff] }
 0xb52   :  { %v9116_v9 = vadd.f32 %v3548_v17, %v10958_v58  ;;  %v10974_v17 = vld [vmem:[#allocation43_spill] sm:$0xff]  ;;  %v3538_v58 = vadd.f32 %v6395_v25, %v3537_v52 }
 0xb54   :  { %10959 = vst [vmem:[#allocation59_spill] sm:$0xff] %v9116_v9  ;;  %v3598_v50 = vmul.f32 %v10953_v49, %v9116_v9 }
 0xb57   :  { %v3549_v16 = vpop.f32.mrf.mxu3 }
 0xb94   :  { %v3552_v60 = vpop.f32.mrf.mxu3 }
 0xb95   :  { %v3553_v53 = vadd.f32 %v6395_v25, %v3552_v60 }
 0xb9c   :  { %v3554_v43 = vpop.f32.mrf.mxu3 }
 0xb9d   :  { %v3555_v10 = vadd.f32 %v6395_v25, %v3554_v43  ;;  %v3543_v43 = vadd.f32 %v6395_v25, %v3542_v28 }
 0xba4   :  { %v3557_v32 = vpop.f32.mrf.mxu3 }
 0xba5   :  { %v3558_v15 = vadd.f32 %v6395_v25, %v3557_v32  ;;  %v9136_v32 = vadd.f32 %v3533_v33, %v10966_v63 }
 0xba7   :  { %v9101_v39 = vadd.f32 %v3558_v15, %v10951_v45  ;;  %10967 = vst [vmem:[#allocation54_spill] sm:$0xff] %v9136_v32  ;;  %v10968_v45 = vld [vmem:[#allocation40_spill] sm:$0xff] }
 0xba9   :  { %10952 = vst [vmem:[#allocation28_spill] sm:$0xff] %v9101_v39  ;;  %v3602_v6 = vmul.f32 %v10953_v49, %v9101_v39 }
 0xbab   :  { %3628 = vadd.xlane.f32.xlu1 %v3602_v6  ;;  %v9139_v6 = vadd.f32 %v3553_v53, %v10968_v45 }
 0xbac   :  { %v3559_v31 = vpop.f32.mrf.mxu3 }
 0xbad   :  { %v3560_v20 = vadd.f32 %v6395_v25, %v3559_v31  ;;  %10969 = vst [vmem:[#allocation49_spill] sm:$0xff] %v9139_v6  ;;  %v10970_v31 = vld [vmem:[#allocation41_spill] sm:$0xff] }
 0xbaf   :  { %v9106_v24 = vadd.f32 %v3560_v20, %v10954_v0  ;;  %v3592_v0 = vmul.f32 %v10953_v49, %v9136_v32 }
 0xbb1   :  { %10955 = vst [vmem:[#allocation60_spill] sm:$0xff] %v9106_v24  ;;  %v3603_v54 = vmul.f32 %v10953_v49, %v9106_v24 }
 0xbb3   :  { %3630 = vadd.xlane.f32.xlu2 %v3603_v54  ;;  %v3550_v54 = vadd.f32 %v6395_v25, %v3549_v16 }
 0xbb4   :  { %v3562_v22 = vpop.f32.mrf.mxu3 }
 0xbb5   :  { %v3563_v37 = vadd.f32 %v6395_v25, %v3562_v22  ;;  %v3600_v22 = vmul.f32 %v10953_v49, %v9139_v6 }
 0xbb7   :  { %v9111_v44 = vadd.f32 %v3563_v37, %v10956_v59  ;;  %v10972_v37 = vld [vmem:[#allocation42_spill] sm:$0xff] }
 0xbb8   :  { %v9151_v59 = vadd.f32 %v3555_v10, %v10972_v37 }
 0xbb9   :  { %10957 = vst [vmem:[#allocation58_spill] sm:$0xff] %v9111_v44  ;;  %v3604_v7 = vmul.f32 %v10953_v49, %v9111_v44 }
 0xbba   :  { %10973 = vst [vmem:[#allocation50_spill] sm:$0xff] %v9151_v59 }
 0xbbb   :  { %3632 = vadd.xlane.f32.xlu2 %v3604_v7  ;;  %v9154_v7 = vadd.f32 %v3550_v54, %v10974_v17 }
 0xbbc   :  { %v3564_v62 = vpop.f32.mrf.mxu3 }
 0xbbd   :  { %v3565_v27 = vadd.f32 %v6395_v25, %v3564_v62  ;;  %10975 = vst [vmem:[#allocation53_spill] sm:$0xff] %v9154_v7  ;;  %v3601_v62 = vmul.f32 %v10953_v49, %v9151_v59  ;;  %v3599_v16 = vmul.f32 %v10953_v49, %v9154_v7 }
 0xbbf   :  { %v9119_v30 = vadd.f32 %v3565_v27, %v10960_v11  ;;  %v10976_v27 = vld [vmem:[#allocation44_spill] sm:$0xff] }
 0xbc0   :  { %v9161_v11 = vadd.f32 %v3543_v43, %v10976_v27 }
 0xbc1   :  { %10961 = vst [vmem:[#allocation57_spill] sm:$0xff] %v9119_v30  ;;  %v3605_v2 = vmul.f32 %v10953_v49, %v9119_v30 }
 0xbc2   :  { %10977 = vst [vmem:[#allocation51_spill] sm:$0xff] %v9161_v11  ;;  %v3596_v28 = vmul.f32 %v10953_v49, %v9161_v11 }
 0xbc3   :  { %3634 = vadd.xlane.f32.xlu0 %v3605_v2  ;;  %3620 = vadd.xlane.f32.xlu2 %v3598_v50  ;;  %v9164_v2 = vadd.f32 %v3538_v58, %v10978_v13  ;;  %v3540_v50 = vadd.f32 %v6395_v25, %v9095_v56 }
 0xbc4   :  { %v3567_v35 = vpop.f32.mrf.mxu3 }
 0xbc5   :  { %v3568_v36 = vadd.f32 %v6395_v25, %v3567_v35  ;;  %10979 = vst [vmem:[#allocation52_spill] sm:$0xff] %v9164_v2  ;;  %v3535_v35 = vadd.f32 %v6395_v25, %v9093_v61  ;;  %v3594_v52 = vmul.f32 %v10953_v49, %v9164_v2 }
 0xbc7   :  { %v9129_v47 = vadd.f32 %v3568_v36, %v10964_v40  ;;  %v9173_v36 = vadd.f32 %v3540_v50, %v10980_v1  ;;  %v10982_v40 = vld [vmem:[#allocation47_spill] sm:$0xff] }
 0xbc8   :  { %v9176_v33 = vadd.f32 %v3535_v35, %v10982_v40 }
 0xbc9   :  { %10965 = vst [vmem:[#allocation55_spill] sm:$0xff] %v9129_v47  ;;  %v3606_v42 = vmul.f32 %v10953_v49, %v9129_v47 }
 0xbca   :  { %10981 = vst [vmem:[#allocation31_spill] sm:$0xff] %v9173_v36  ;;  %v3593_v56 = vmul.f32 %v10953_v49, %v9176_v33 }
 0xbcb   :  { %3618 = vadd.xlane.f32.xlu2 %v3597_v14  ;;  %3636 = vadd.xlane.f32.xlu0 %v3606_v42  ;;  %10983 = vst [vmem:[#allocation33_spill] sm:$0xff] %v9176_v33  ;;  %v3595_v14 = vmul.f32 %v10953_v49, %v9173_v36 }
 0xbcc   :  { %v3569_v19 = vpop.f32.mrf.mxu3 }
 0xbcd   :  { %v3570_v15 = vadd.f32 %v6395_v25, %v3569_v19 }
 0xbcf   :  { %v9142_v20 = vadd.f32 %v3570_v15, %v10970_v31 }
 0xbd1   :  { %10971 = vst [vmem:[#allocation48_spill] sm:$0xff] %v9142_v20  ;;  %v3607_v60 = vmul.f32 %v10953_v49, %v9142_v20 }
 0xbd3   :  { %3608 = vadd.xlane.f32.xlu2 %v3592_v0  ;;  %3638 = vadd.xlane.f32.xlu1 %v3607_v60 }
 0xbd4   :  { %3624 = vadd.xlane.f32.xlu0 %v3600_v22 }
 0xbdb   :  { %3626 = vadd.xlane.f32.xlu1 %v3601_v62 }
 0xbdc   :  { %3622 = vadd.xlane.f32.xlu0 %v3599_v16 }
 0xbe3   :  { %3616 = vadd.xlane.f32.xlu1 %v3596_v28 }
 0xbe4   :  { %3612 = vadd.xlane.f32.xlu0 %v3594_v52 }
 0xbeb   :  { %3614 = vadd.xlane.f32.xlu1 %v3595_v14 }
 0xbec   :  { %3610 = vadd.xlane.f32.xlu0 %v3593_v56 }
 0xc1e   :  { %v3629_v61 = vpop.xlane.xlu1 %3628 }
 0xc1f   :  { %v3650_v25 = vmul.f32 0.03125, %v3629_v61 }
 0xc21   :  { %v3666_v42 = vsub.f32 %v9101_v39, %v3650_v25 }
 0xc23   :  { %v9184_v53 = vmul.f32 %v10953_v49, %v3666_v42 }
 0xc25   :  { %v3698_v19 = vmul.f32 %v9184_v53, %v9184_v53 }
 0xc26   :  { %v3631_v63 = vpop.xlane.xlu2 %3630 }
 0xc27   :  { %v3651_v15 = vmul.f32 0.03125, %v3631_v63  ;;  %3724 = vadd.xlane.f32.xlu2 %v3698_v19 }
 0xc29   :  { %v3667_v45 = vsub.f32 %v9106_v24, %v3651_v15 }
 0xc2b   :  { %v9190_v31 = vmul.f32 %v10953_v49, %v3667_v45 }
 0xc2d   :  { %v3699_v10 = vmul.f32 %v9190_v31, %v9190_v31 }
 0xc2e   :  { %v3633_v0 = vpop.xlane.xlu2 %3632 }
 0xc2f   :  { %v3652_v60 = vmul.f32 0.03125, %v3633_v0  ;;  %3726 = vadd.xlane.f32.xlu0 %v3699_v10 }
 0xc31   :  { %v3668_v54 = vsub.f32 %v9111_v44, %v3652_v60 }
 0xc33   :  { %v9196_v22 = vmul.f32 %v10953_v49, %v3668_v54 }
 0xc35   :  { %v3700_v37 = vmul.f32 %v9196_v22, %v9196_v22 }
 0xc36   :  { %v3635_v17 = vpop.xlane.xlu0 %3634  ;;  %v3621_v43 = vpop.xlane.xlu2 %3620 }
 0xc37   :  { %v3653_v62 = vmul.f32 0.03125, %v3635_v17  ;;  %v3646_v58 = vmul.f32 0.03125, %v3621_v43  ;;  %3728 = vadd.xlane.f32.xlu0 %v3700_v37 }
 0xc39   :  { %v3669_v16 = vsub.f32 %v9119_v30, %v3653_v62  ;;  %v3662_v27 = vsub.f32 %v9116_v9, %v3646_v58 }
 0xc3b   :  { %v9203_v13 = vmul.f32 %v10953_v49, %v3669_v16  ;;  %v9206_v50 = vmul.f32 %v10953_v49, %v3662_v27 }
 0xc3d   :  { %v3701_v28 = vmul.f32 %v9203_v13, %v9203_v13  ;;  %v3694_v35 = vmul.f32 %v9206_v50, %v9206_v50 }
 0xc3e   :  { %v3637_v52 = vpop.xlane.xlu0 %3636  ;;  %v3619_v1 = vpop.xlane.xlu2 %3618 }
 0xc3f   :  { %v3654_v40 = vmul.f32 0.03125, %v3637_v52  ;;  %v3645_v14 = vmul.f32 0.03125, %v3619_v1  ;;  %3730 = vadd.xlane.f32.xlu1 %v3701_v28  ;;  %3716 = vadd.xlane.f32.xlu0 %v3694_v35 }
 0xc41   :  { %v3670_v56 = vsub.f32 %v9129_v47, %v3654_v40  ;;  %v3661_v61 = vsub.f32 %v9126_v5, %v3645_v14  ;;  %v9310_v47 = vld [vmem:[#allocation17 + $0x2] ss:$0 sm:$0xff] }
 0xc43   :  { %v9215_v25 = vmul.f32 %v10953_v49, %v3670_v56  ;;  %v9218_v42 = vmul.f32 %v10953_v49, %v3661_v61 }
 0xc45   :  { %v3702_v19 = vmul.f32 %v9215_v25, %v9215_v25  ;;  %v3693_v63 = vmul.f32 %v9218_v42, %v9218_v42 }
 0xc46   :  { %v3639_v15 = vpop.xlane.xlu1 %3638  ;;  %v3609_v45 = vpop.xlane.xlu2 %3608 }
 0xc47   :  { %v3655_v10 = vmul.f32 0.03125, %v3639_v15  ;;  %v3625_v0 = vpop.xlane.xlu0 %3624  ;;  %v3640_v60 = vmul.f32 0.03125, %v3609_v45  ;;  %3732 = vadd.xlane.f32.xlu1 %v3702_v19  ;;  %3714 = vadd.xlane.f32.xlu0 %v3693_v63 }
 0xc48   :  { %v3648_v54 = vmul.f32 0.03125, %v3625_v0 }
 0xc49   :  { %v3671_v37 = vsub.f32 %v9142_v20, %v3655_v10  ;;  %v3656_v17 = vsub.f32 %v9136_v32, %v3640_v60 }
 0xc4a   :  { %v3664_v43 = vsub.f32 %v9139_v6, %v3648_v54 }
 0xc4b   :  { %v9228_v62 = vmul.f32 %v10953_v49, %v3671_v37  ;;  %v9231_v58 = vmul.f32 %v10953_v49, %v3656_v17 }
 0xc4c   :  { %v9234_v16 = vmul.f32 %v10953_v49, %v3664_v43 }
 0xc4d   :  { %v3703_v27 = vmul.f32 %v9228_v62, %v9228_v62  ;;  %v3688_v28 = vmul.f32 %v9231_v58, %v9231_v58 }
 0xc4e   :  { %v3627_v35 = vpop.xlane.xlu1 %3626  ;;  %v3696_v52 = vmul.f32 %v9234_v16, %v9234_v16 }
 0xc4f   :  { %v3649_v1 = vmul.f32 0.03125, %v3627_v35  ;;  %v3623_v40 = vpop.xlane.xlu0 %3622  ;;  %3734 = vadd.xlane.f32.xlu2 %v3703_v27  ;;  %3704 = vadd.xlane.f32.xlu0 %v3688_v28 }
 0xc50   :  { %v3647_v14 = vmul.f32 0.03125, %v3623_v40  ;;  %3720 = vadd.xlane.f32.xlu1 %v3696_v52 }
 0xc51   :  { %v3665_v56 = vsub.f32 %v9151_v59, %v3649_v1 }
 0xc52   :  { %v3663_v61 = vsub.f32 %v9154_v7, %v3647_v14 }
 0xc53   :  { %v9245_v19 = vmul.f32 %v10953_v49, %v3665_v56 }
 0xc54   :  { %v9248_v63 = vmul.f32 %v10953_v49, %v3663_v61 }
 0xc55   :  { %v3697_v15 = vmul.f32 %v9245_v19, %v9245_v19 }
 0xc56   :  { %v3617_v45 = vpop.xlane.xlu1 %3616  ;;  %v3695_v10 = vmul.f32 %v9248_v63, %v9248_v63 }
 0xc57   :  { %v3644_v0 = vmul.f32 0.03125, %v3617_v45  ;;  %v3613_v60 = vpop.xlane.xlu0 %3612  ;;  %3722 = vadd.xlane.f32.xlu2 %v3697_v15 }
 0xc58   :  { %v3642_v54 = vmul.f32 0.03125, %v3613_v60  ;;  %3718 = vadd.xlane.f32.xlu1 %v3695_v10 }
 0xc59   :  { %v3660_v37 = vsub.f32 %v9161_v11, %v3644_v0 }
 0xc5a   :  { %v3658_v17 = vsub.f32 %v9164_v2, %v3642_v54 }
 0xc5b   :  { %v9257_v43 = vmul.f32 %v10953_v49, %v3660_v37 }
 0xc5c   :  { %v9260_v27 = vmul.f32 %v10953_v49, %v3658_v17 }
 0xc5d   :  { %v3692_v28 = vmul.f32 %v9257_v43, %v9257_v43 }
 0xc5e   :  { %v3615_v35 = vpop.xlane.xlu1 %3614  ;;  %v3690_v52 = vmul.f32 %v9260_v27, %v9260_v27 }
 0xc5f   :  { %v3643_v1 = vmul.f32 0.03125, %v3615_v35  ;;  %v3611_v40 = vpop.xlane.xlu0 %3610  ;;  %3712 = vadd.xlane.f32.xlu2 %v3692_v28 }
 0xc60   :  { %v3641_v14 = vmul.f32 0.03125, %v3611_v40  ;;  %3708 = vadd.xlane.f32.xlu1 %v3690_v52 }
 0xc61   :  { %v3659_v56 = vsub.f32 %v9173_v36, %v3643_v1 }
 0xc62   :  { %v3657_v61 = vsub.f32 %v9176_v33, %v3641_v14 }
 0xc63   :  { %v9269_v15 = vmul.f32 %v10953_v49, %v3659_v56 }
 0xc64   :  { %v9272_v45 = vmul.f32 %v10953_v49, %v3657_v61 }
 0xc65   :  { %v3691_v10 = vmul.f32 %v9269_v15, %v9269_v15 }
 0xc66   :  { %v3689_v0 = vmul.f32 %v9272_v45, %v9272_v45 }
 0xc67   :  { %3710 = vadd.xlane.f32.xlu2 %v3691_v10 }
 0xc68   :  { %3706 = vadd.xlane.f32.xlu1 %v3689_v0 }
 0xc9a   :  { %v3725_v60 = vpop.xlane.xlu2 %3724 }
 0xc9b   :  { %v3746_v54 = vmul.f32 0.03125, %v3725_v60 }
 0xc9d   :  { %v3762_v37 = vadd.f32 1e-05, %v3746_v54 }
 0xc9f   :  { %6694 = vrsqrt.f32 %v3762_v37  ;;  %vm3874_vm3 = vweird.f32 %v3762_v37 }
 0xca2   :  { %v3727_v17 = vpop.xlane.xlu0 %3726 }
 0xca3   :  { %v3747_v28 = vmul.f32 0.03125, %v3727_v17 }
 0xca5   :  { %v3763_v35 = vadd.f32 1e-05, %v3747_v28  ;;  %v6695_v52 = vpop.eup %6694 }
 0xca6   :  { %v3869_v14 = vmul.f32 %v6695_v52, %v3762_v37  ;;  %vm3875_vm2 = vweird.f32 %v6695_v52 }
 0xca7   :  { %6696 = vrsqrt.f32 %v3763_v35  ;;  %vm3876_vm5 = vmor %vm3874_vm3, %vm3875_vm2  ;;  %vm3884_vm6 = vweird.f32 %v3763_v35 }
 0xca8   :  { %v3870_v10 = vmul.f32 %v6695_v52, %v3869_v14 }
 0xcaa   :  { %v3729_v1 = vpop.xlane.xlu0 %3728  ;;  %v3871_v9 = vmul.f32 0.5, %v3870_v10 }
 0xcab   :  { %v3748_v40 = vmul.f32 0.03125, %v3729_v1 }
 0xcac   :  { %v3872_v59 = vsub.f32 1.5, %v3871_v9 }
 0xcad   :  { %v6697_v56 = vpop.eup %6696  ;;  %v9278_v61 = vadd.f32 1e-05, %v3748_v40 }
 0xcae   :  { %v3879_v32 = vmul.f32 %v6697_v56, %v3763_v35  ;;  %vm3885_vm4 = vweird.f32 %v6697_v56 }
 0xcaf   :  { %6698 = vrsqrt.f32 %v9278_v61  ;;  %vm3886_vm7 = vmor %vm3884_vm6, %vm3885_vm4  ;;  %vm3894_vm9 = vweird.f32 %v9278_v61 }
 0xcb0   :  { %v3880_v0 = vmul.f32 %v6697_v56, %v3879_v32 }
 0xcb2   :  { %v3731_v36 = vpop.xlane.xlu1 %3730  ;;  %v3717_v60 = vpop.xlane.xlu0 %3716  ;;  %v3881_v17 = vmul.f32 0.5, %v3880_v0 }
 0xcb3   :  { %v3749_v54 = vmul.f32 0.03125, %v3731_v36  ;;  %v3742_v2 = vmul.f32 0.03125, %v3717_v60 }
 0xcb4   :  { %v3882_v14 = vsub.f32 1.5, %v3881_v17 }
 0xcb5   :  { %v9281_v28 = vpop.eup %6698  ;;  %v9283_v5 = vadd.f32 1e-05, %v3749_v54  ;;  %v9285_v1 = vadd.f32 1e-05, %v3742_v2  ;;  %v3873_v54 = vmul.f32 %v6695_v52, %v3872_v59 }
 0xcb6   :  { %v3889_v40 = vmul.f32 %v9281_v28, %v9278_v61  ;;  %v3883_v33 = vmul.f32 %v6697_v56, %v3882_v14  ;;  %vm3895_vm8 = vweird.f32 %v9281_v28 }
 0xcb7   :  { %6700 = vrsqrt.f32 %v9283_v5  ;;  %v3877_v14 = vsel %vm3876_vm5, %v6695_v52, %v3873_v54  ;;  %vm9329_vm10 = vmor %vm3894_vm9, %vm3895_vm8  ;;  %vm3904_vm11 = vweird.f32 %v9283_v5  ;;  %vm3834_vm13 = vweird.f32 %v9285_v1 }
 0xcb8   :  { %6702 = vrsqrt.f32 %v9285_v1  ;;  %v3890_v32 = vmul.f32 %v9281_v28, %v3889_v40  ;;  %v3887_v37 = vsel %vm3886_vm7, %v6697_v56, %v3883_v33 }
 0xcb9   :  { %v3939_v11 = vmul.f32 %v3887_v37, %v9190_v31 }
 0xcba   :  { %v3733_v36 = vpop.xlane.xlu1 %3732  ;;  %v3715_v10 = vpop.xlane.xlu0 %3714  ;;  %v3891_v20 = vmul.f32 0.5, %v3890_v32 }
 0xcbb   :  { %v3750_v0 = vmul.f32 0.03125, %v3733_v36  ;;  %v3741_v60 = vmul.f32 0.03125, %v3715_v10  ;;  %v3958_v37 = vmul.f32 %v9310_v47, %v3939_v11 }
 0xcbc   :  { %v3892_v32 = vsub.f32 1.5, %v3891_v20 }
 0xcbd   :  { %v9292_v2 = vpop.eup %6700  ;;  %v9294_v6 = vadd.f32 1e-05, %v3750_v0  ;;  %v9296_v9 = vadd.f32 1e-05, %v3741_v60  ;;  %v3938_v60 = vmul.f32 %v3877_v14, %v9184_v53 }
 0xcbe   :  { %v9298_v17 = vpop.eup %6702  ;;  %v3899_v40 = vmul.f32 %v9292_v2, %v9283_v5  ;;  %v3893_v33 = vmul.f32 %v9281_v28, %v3892_v32  ;;  %vm3905_vm12 = vweird.f32 %v9292_v2 }
 0xcbf   :  { %v3829_v59 = vmul.f32 %v9298_v17, %v9285_v1  ;;  %6704 = vrsqrt.f32 %v9294_v6  ;;  %v3957_v14 = vmul.f32 %v9310_v47, %v3938_v60  ;;  %vm3835_vm14 = vweird.f32 %v9298_v17  ;;  %vm9373_vm15 = vmor %vm3904_vm11, %vm3905_vm12 }
 0xcc0   :  { %6706 = vrsqrt.f32 %v9296_v9  ;;  %v3900_v36 = vmul.f32 %v9292_v2, %v3899_v40  ;;  %vm9384_vm1 = vmor %vm3834_vm13, %vm3835_vm14  ;;  %vm3914_vm2 = vweird.f32 %v9294_v6  ;;  %vm3824_vm8 = vweird.f32 %v9296_v9 }
 0xcc1   :  { %v3830_v10 = vmul.f32 %v9298_v17, %v3829_v59 }
 0xcc2   :  { %v3705_v0 = vpop.xlane.xlu0 %3704  ;;  %v3735_v35 = vpop.xlane.xlu2 %3734  ;;  %v3901_v20 = vmul.f32 0.5, %v3900_v36 }
 0xcc3   :  { %v3721_v7 = vpop.xlane.xlu1 %3720  ;;  %v3751_v30 = vmul.f32 0.03125, %v3735_v35  ;;  %v3736_v56 = vmul.f32 0.03125, %v3705_v0  ;;  %v3831_v40 = vmul.f32 0.5, %v3830_v10 }
 0xcc4   :  { %v3744_v44 = vmul.f32 0.03125, %v3721_v7  ;;  %v9325_v7 = vld [vmem:[#allocation19 + $0x2] ss:$0 sm:$0xff] }
 0xcc5   :  { %v9312_v52 = vpop.eup %6704  ;;  %v9322_v59 = vadd.f32 1e-05, %v3751_v30  ;;  %v3902_v30 = vsub.f32 1.5, %v3901_v20  ;;  %v9340_v10 = vadd.f32 1e-05, %v3736_v56  ;;  %v3832_v0 = vsub.f32 1.5, %v3831_v40 }
 0xcc6   :  { %v9316_v54 = vpop.eup %6706  ;;  %v3909_v53 = vmul.f32 %v9312_v52, %v9294_v6  ;;  %v9320_v31 = vadd.f32 1e-05, %v3744_v44  ;;  %v3897_v44 = vsel %vm9329_vm10, %v9281_v28, %v3893_v33  ;;  %v9345_v24 = vadd.f32 %v9325_v7, %v3957_v14 }
 0xcc7   :  { %v3819_v61 = vmul.f32 %v9316_v54, %v9296_v9  ;;  %v9348_v28 = vadd.f32 %v9325_v7, %v3958_v37  ;;  %v3940_v33 = vmul.f32 %v3897_v44, %v9196_v22  ;;  %v3903_v40 = vmul.f32 %v9292_v2, %v3902_v30 }
 0xcc8   :  { %v3910_v36 = vmul.f32 %v9312_v52, %v3909_v53  ;;  %6708 = vrsqrt.f32 %v9320_v31  ;;  %10986 = vst [vmem:[#allocation34_spill] sm:$0xff] %v9345_v24  ;;  %v3833_v14 = vmul.f32 %v9298_v17, %v3832_v0  ;;  %vm3915_vm0 = vweird.f32 %v9312_v52 }
 0xcc9   :  { %6710 = vrsqrt.f32 %v9322_v59  ;;  %10987 = vst [vmem:[#allocation35_spill] sm:$0xff] %v9348_v28  ;;  %v3820_v32 = vmul.f32 %v9316_v54, %v3819_v61  ;;  %vm9396_vm4 = vmor %vm3914_vm2, %vm3915_vm0  ;;  %v10995_v49 = vmax.f32 %v9348_v28, 0.0  ;;  %vm3825_vm3 = vweird.f32 %v9316_v54 }
 0xcca   :  { %v3911_v11 = vmul.f32 0.5, %v3910_v36  ;;  %v3723_v35 = vpop.xlane.xlu2 %3722  ;;  %6712 = vrsqrt.f32 %v9340_v10  ;;  %vm3854_vm5 = vweird.f32 %v9320_v31  ;;  %vm3924_vm7 = vweird.f32 %v9322_v59  ;;  %vm9501_vm2 = vmor %vm3824_vm8, %vm3825_vm3 }
 0xccb   :  { %v3719_v60 = vpop.xlane.xlu1 %3718  ;;  %v3745_v53 = vmul.f32 0.03125, %v3723_v35  ;;  %v3821_v5 = vmul.f32 0.5, %v3820_v32 }
 0xccc   :  { %v3912_v20 = vsub.f32 1.5, %v3911_v11  ;;  %v3743_v56 = vmul.f32 0.03125, %v3719_v60  ;;  %v3959_v11 = vmul.f32 %v9310_v47, %v3940_v33  ;;  %v3907_v60 = vsel %vm9373_vm15, %v9292_v2, %v3903_v40 }
 0xccd   :  { %v9355_v36 = vadd.f32 1e-05, %v3745_v53 }
 0xcce   :  { %v9357_v35 = vpop.eup %6708  ;;  %v9362_v22 = vadd.f32 1e-05, %v3743_v56  ;;  %v3913_v0 = vmul.f32 %v9312_v52, %v3912_v20  ;;  %v3837_v20 = vsel %vm9384_vm1, %v9298_v17, %v3833_v14  ;;  %v3941_v17 = vmul.f32 %v3907_v60, %v9203_v13 }
 0xccf   :  { %v3849_v37 = vmul.f32 %v9357_v35, %v9320_v31  ;;  %6714 = vrsqrt.f32 %v9355_v36  ;;  %v6711_v61 = vpop.eup %6710  ;;  %v9411_v53 = vadd.f32 %v9325_v7, %v3959_v11  ;;  %vm3855_vm9 = vweird.f32 %v9357_v35 }
 0xcd0   :  { %6716 = vrsqrt.f32 %v9362_v22  ;;  %v3919_v30 = vmul.f32 %v6711_v61, %v9322_v59  ;;  %v9394_v44 = vpop.eup %6712  ;;  %v3917_v6 = vsel %vm9396_vm4, %v9312_v52, %v3913_v0  ;;  %vm3925_vm6 = vweird.f32 %v6711_v61  ;;  %vm9472_vm0 = vmor %vm3854_vm5, %vm3855_vm9 }
 0xcd1   :  { %v3850_v56 = vmul.f32 %v9357_v35, %v3849_v37  ;;  %v10994_v37 = vmax.f32 %v9345_v24, 0.0  ;;  %10996 = vst [vmem:[#allocation36_spill] sm:$0xff] %v9411_v53  ;;  %v3769_v13 = vmul.f32 %v9394_v44, %v9340_v10  ;;  %v3942_v60 = vmul.f32 %v3917_v6, %v9215_v25  ;;  %vm3926_vm10 = vmor %vm3924_vm7, %vm3925_vm6 }
 0xcd2   :  { %v3713_v33 = vpop.xlane.xlu2 %3712  ;;  %v3920_v40 = vmul.f32 %v6711_v61, %v3919_v30  ;;  %v9416_v30 = vmul.f32 %v3837_v20, %v9206_v50  ;;  %v3960_v20 = vmul.f32 %v9310_v47, %v3941_v17  ;;  %vm3864_vm12 = vweird.f32 %v9355_v36 }
 0xcd3   :  { %v3709_v1 = vpop.xlane.xlu1 %3708  ;;  %v3740_v32 = vmul.f32 0.03125, %v3713_v33  ;;  %v9404_v39 = vpack.c.bf16 %v10995_v49, %v10994_v37  ;;  %v3822_v33 = vsub.f32 1.5, %v3821_v5  ;;  %v3851_v24 = vmul.f32 0.5, %v3850_v56 }
 0xcd4   :  { %v3738_v14 = vmul.f32 0.03125, %v3709_v1  ;;  %v3921_v28 = vmul.f32 0.5, %v3920_v40  ;;  %v3770_v1 = vmul.f32 %v9394_v44, %v3769_v13  ;;  %v3961_v37 = vmul.f32 %v9310_v47, %v3942_v60 }
 0xcd5   :  { %v9413_v55 = vpop.eup %6714  ;;  %v9426_v11 = vadd.f32 1e-05, %v3740_v32  ;;  %v9438_v2 = vmul.f32 %v9316_v54, %v3822_v33  ;;  %v3852_v25 = vsub.f32 1.5, %v3851_v24  ;;  %vm3844_vm14 = vweird.f32 %v9362_v22 }
 0xcd6   :  { %v9418_v49 = vpop.eup %6716  ;;  %v3859_v52 = vmul.f32 %v9413_v55, %v9355_v36  ;;  %v9424_v0 = vadd.f32 1e-05, %v3738_v14  ;;  %v3922_v50 = vsub.f32 1.5, %v3921_v28  ;;  %vm3865_vm11 = vweird.f32 %v9413_v55 }
 0xcd7   :  { %v3839_v5 = vmul.f32 %v9418_v49, %v9362_v22  ;;  %vm3845_vm13 = vweird.f32 %v9418_v49  ;;  %vm9461_vm15 = vmor %vm3864_vm12, %vm3865_vm11  ;;  %v3827_v9 = vsel %vm9501_vm2, %v9316_v54, %v9438_v2  ;;  %vm3774_vm4 = vweird.f32 %v9340_v10 }
 0xcd8   :  { %v3860_v56 = vmul.f32 %v9413_v55, %v3859_v52  ;;  %6718 = vrsqrt.f32 %v9424_v0  ;;  %v3923_v40 = vmul.f32 %v6711_v61, %v3922_v50  ;;  %vm9488_vm1 = vmor %vm3844_vm14, %vm3845_vm13  ;;  %vm3775_vm6 = vweird.f32 %v9394_v44 }
 0xcd9   :  { %v3840_v28 = vmul.f32 %v9418_v49, %v3839_v5  ;;  %6720 = vrsqrt.f32 %v9426_v11  ;;  %v3853_v5 = vmul.f32 %v9357_v35, %v3852_v25  ;;  %vm3794_vm7 = vweird.f32 %v9424_v0  ;;  %vm9567_vm14 = vmor %vm3774_vm4, %vm3775_vm6 }
 0xcda   :  { %v3861_v59 = vmul.f32 0.5, %v3860_v56  ;;  %v3711_v32 = vpop.xlane.xlu2 %3710  ;;  %v3927_v17 = vsel %vm3926_vm10, %v6711_v61, %v3923_v40  ;;  %vm3814_vm9 = vweird.f32 %v9426_v11 }
 0xcdb   :  { %v3841_v6 = vmul.f32 0.5, %v3840_v28  ;;  %v3707_v14 = vpop.xlane.xlu1 %3706  ;;  %v3739_v33 = vmul.f32 0.03125, %v3711_v32  ;;  %v3943_v24 = vmul.f32 %v3927_v17, %v9228_v62  ;;  %v3771_v32 = vmul.f32 0.5, %v3770_v1 }
 0xcdc   :  { %v3862_v52 = vsub.f32 1.5, %v3861_v59  ;;  %v3737_v50 = vmul.f32 0.03125, %v3707_v14  ;;  %v9481_v17 = vadd.f32 %v9325_v7, %v3961_v37 }
 0xcdd   :  { %v3842_v13 = vsub.f32 1.5, %v3841_v6  ;;  %v9450_v56 = vadd.f32 1e-05, %v3739_v33  ;;  %v3962_v61 = vmul.f32 %v9310_v47, %v3943_v24  ;;  %v3857_v6 = vsel %vm9472_vm0, %v9357_v35, %v3853_v5 }
 0xcde   :  { %v9452_v46 = vpop.eup %6718  ;;  %v3863_v60 = vmul.f32 %v9413_v55, %v3862_v52  ;;  %v9457_v62 = vadd.f32 1e-05, %v3737_v50  ;;  %11001 = vst [vmem:[#allocation37_spill] sm:$0xff] %v9481_v17  ;;  %v3953_v5 = vmul.f32 %v9310_v47, %v9416_v30 }
 0xcdf   :  { %v3843_v40 = vmul.f32 %v9418_v49, %v3842_v13  ;;  %v3789_v36 = vmul.f32 %v9452_v46, %v9424_v0  ;;  %6722 = vrsqrt.f32 %v9450_v56  ;;  %v6721_v28 = vpop.eup %6720  ;;  %v9510_v24 = vadd.f32 %v9325_v7, %v3962_v61 }
 0xce0   :  { %v3867_v22 = vsel %vm9461_vm15, %v9413_v55, %v3863_v60  ;;  %6724 = vrsqrt.f32 %v9457_v62  ;;  %v3809_v14 = vmul.f32 %v6721_v28, %v9426_v11  ;;  %v9495_v55 = vadd.f32 %v9325_v7, %v3960_v20 }
 0xce1   :  { %v3790_v1 = vmul.f32 %v9452_v46, %v3789_v36  ;;  %v3847_v35 = vsel %vm9488_vm1, %v9418_v49, %v3843_v40  ;;  %v3937_v33 = vmul.f32 %v3867_v22, %v9245_v19  ;;  %11007 = vst [vmem:[#allocation39_spill] sm:$0xff] %v9510_v24  ;;  %v10827_v20 = vmax.f32 %v9411_v53, 0.0 }
 0xce2   :  { %11004 = vst [vmem:[#allocation38_spill] sm:$0xff] %v9495_v55  ;;  %v3810_v50 = vmul.f32 %v6721_v28, %v3809_v14  ;;  %v3936_v13 = vmul.f32 %v3857_v6, %v9234_v16  ;;  %v3772_v49 = vsub.f32 1.5, %v3771_v32  ;;  %v10825_v19 = vmax.f32 %v9481_v17, 0.0  ;;  %v6977_v17 = vld [vmem:[#allocation8 + $0x50] sm:$0xff] }
 0xce3   :  { %v3791_v52 = vmul.f32 0.5, %v3790_v1  ;;  %v10824_v61 = vmax.f32 %v9510_v24, 0.0  ;;  %v3935_v40 = vmul.f32 %v3847_v35, %v9248_v63  ;;  %v10826_v54 = vmax.f32 %v9495_v55, 0.0 }
 0xce4   :  { %v3811_v36 = vmul.f32 0.5, %v3810_v50  ;;  %vm3795_vm3 = vweird.f32 %v9452_v46  ;;  %v3956_v59 = vmul.f32 %v9310_v47, %v3937_v33  ;;  %vm3815_vm5 = vweird.f32 %v6721_v28 }
 0xce5   :  { %v6723_v60 = vpop.eup %6722  ;;  %v3792_v25 = vsub.f32 1.5, %v3791_v52  ;;  %v4006_v16 = vpack.c.bf16 %v10824_v61, %v10825_v19  ;;  %v3955_v31 = vmul.f32 %v9310_v47, %v3936_v13  ;;  %vm9537_vm8 = vmor %vm3794_vm7, %vm3795_vm3  ;;  %v3954_v35 = vmul.f32 %v9310_v47, %v3935_v40 }
 0xce6   :  { %v6725_v2 = vpop.eup %6724  ;;  %v3799_v30 = vmul.f32 %v6723_v60, %v9450_v56  ;;  %v3812_v22 = vsub.f32 1.5, %v3811_v36  ;;  %v3933_v33 = vmul.f32 %v3827_v9, %v9218_v42  ;;  %vm3816_vm10 = vmor %vm3814_vm9, %vm3815_vm5  ;;  %v4005_v0 = vpack.c.bf16 %v10826_v54, %v10827_v20  ;;  %v6966_v54 = vld [vmem:[#allocation8 + $0x28] sm:$0xff] }
 0xce7   :  { %v3793_v32 = vmul.f32 %v9452_v46, %v3792_v25  ;;  %v3779_v63 = vmul.f32 %v6725_v2, %v9457_v62  ;;  %4007 = vmatpush.bf16.msra.mxu0 %v4006_v16  ;;  %v9549_v50 = vadd.f32 %v9325_v7, %v3956_v59  ;;  %v3773_v13 = vmul.f32 %v9394_v44, %v3772_v49 }
 0xce8   :  { %v3800_v6 = vmul.f32 %v6723_v60, %v3799_v30  ;;  %v3813_v14 = vmul.f32 %v6721_v28, %v3812_v22  ;;  %vm3805_vm11 = vweird.f32 %v6723_v60  ;;  %v9557_v36 = vadd.f32 %v9325_v7, %v3955_v31 }
 0xce9   :  { %v3780_v37 = vmul.f32 %v6725_v2, %v3779_v63  ;;  %11010 = vst [vmem:[#allocation40_spill] sm:$0xff] %v9549_v50  ;;  %v3797_v11 = vsel %vm9537_vm8, %v9452_v46, %v3793_v32  ;;  %vm3785_vm12 = vweird.f32 %v6725_v2  ;;  %vm3804_vm13 = vweird.f32 %v9450_v56 }
 0xcea   :  { %v3801_v52 = vmul.f32 0.5, %v3800_v6  ;;  %v3817_v25 = vsel %vm3816_vm10, %v6721_v28, %v3813_v14  ;;  %11011 = vst [vmem:[#allocation41_spill] sm:$0xff] %v9557_v36  ;;  %v9561_v49 = vadd.f32 %v9325_v7, %v3954_v35  ;;  %v10828_v16 = vmax.f32 %v9549_v50, 0.0  ;;  %vm3806_vm0 = vmor %vm3804_vm13, %vm3805_vm11 }
 0xceb   :  { %v3781_v40 = vmul.f32 0.5, %v3780_v37  ;;  %v3932_v42 = vmul.f32 %v3817_v25, %v9257_v43  ;;  %4008 = vmatpush.bf16.msra.mxu0 %v4005_v0  ;;  %v3930_v43 = vmul.f32 %v3797_v11, %v9260_v27  ;;  %vm3784_vm15 = vweird.f32 %v9457_v62 }
 0xcec   :  { %v3802_v9 = vsub.f32 1.5, %v3801_v52  ;;  %11012 = vst [vmem:[#allocation42_spill] sm:$0xff] %v9561_v49  ;;  %vm3786_vm1 = vmor %vm3784_vm15, %vm3785_vm12  ;;  %v10829_v10 = vmax.f32 %v9557_v36, 0.0  ;;  %v9578_v22 = vadd.f32 %v9325_v7, %v3953_v5  ;;  %v3952_v27 = vmul.f32 %v9310_v47, %v3933_v33 }
 0xced   :  { %v3782_v30 = vsub.f32 1.5, %v3781_v40  ;;  %v3951_v59 = vmul.f32 %v9310_v47, %v3932_v42  ;;  %v3777_v63 = vsel %vm9567_vm14, %v9394_v44, %v3773_v13  ;;  %v10830_v62 = vmax.f32 %v9561_v49, 0.0 }
 0xcee   :  { %v3803_v28 = vmul.f32 %v6723_v60, %v3802_v9  ;;  %11015 = vst [vmem:[#allocation43_spill] sm:$0xff] %v9578_v22  ;;  %v3949_v1 = vmul.f32 %v9310_v47, %v3930_v43  ;;  %v3928_v44 = vmul.f32 %v3777_v63, %v9231_v58  ;;  %v6950_v43 = vld [vmem:[#allocation10] sm:$0xff]  ;;  %v6957_v63 = vld [vmem:[#allocation10 + $0x38] sm:$0xff] }
 0xcef   :  { %v3783_v32 = vmul.f32 %v6725_v2, %v3782_v30  ;;  %4009 = vmatpush.bf16.msra.mxu0 %v9404_v39  ;;  %v4003_v39 = vpack.c.bf16 %v10828_v16, %v10829_v10  ;;  %v9592_v5 = vadd.f32 %v9325_v7, %v3951_v59  ;;  %v6952_v59 = vld [vmem:[#allocation10 + $0x10] sm:$0xff]  ;;  %v6968_v10 = vld [vmem:[#allocation10 + $0x58] sm:$0xff] }
 0xcf0   :  { %v3807_v56 = vsel %vm3806_vm0, %v6723_v60, %v3803_v28  ;;  %v9610_v33 = vadd.f32 %v9325_v7, %v3949_v1  ;;  %v3947_v13 = vmul.f32 %v9310_v47, %v3928_v44  ;;  %v6951_v28 = vld [vmem:[#allocation10 + $0x8] sm:$0xff]  ;;  %v6959_v1 = vld [vmem:[#allocation10 + $0x40] sm:$0xff] }
 0xcf1   :  { %v3787_v6 = vsel %vm3786_vm1, %v6725_v2, %v3783_v32  ;;  %v3931_v31 = vmul.f32 %v3807_v56, %v9269_v15  ;;  %11016 = vst [vmem:[#allocation44_spill] sm:$0xff] %v9592_v5  ;;  %v10831_v15 = vmax.f32 %v9578_v22, 0.0  ;;  %v9599_v2 = vadd.f32 %v9325_v7, %v3952_v27  ;;  %v6953_v32 = vld [vmem:[#allocation10 + $0x18] sm:$0xff]  ;;  %v6955_v56 = vld [vmem:[#allocation10 + $0x28] sm:$0xff]  ;;  %v6956_v27 = vld [vmem:[#allocation10 + $0x30] sm:$0xff] }
 0xcf2   :  { %v3929_v60 = vmul.f32 %v3787_v6, %v9272_v45  ;;  %v10833_v35 = vmax.f32 %v9592_v5, 0.0  ;;  %11019 = vst [vmem:[#allocation47_spill] sm:$0xff] %v9610_v33  ;;  %v10835_v25 = vmax.f32 %v9610_v33, 0.0  ;;  %v9629_v9 = vadd.f32 %v9325_v7, %v3947_v13  ;;  %v6960_v13 = vld [vmem:[#allocation8 + $0x8] sm:$0xff] }
 0xcf3   :  { %v3950_v14 = vmul.f32 %v9310_v47, %v3931_v31  ;;  %4010 = vmatpush.bf16.msra.mxu0 %v4003_v39  ;;  %11017 = vst [vmem:[#allocation45_spill] sm:$0xff] %v9599_v2  ;;  %v4002_v37 = vpack.c.bf16 %v10830_v62, %v10831_v15  ;;  %v10832_v52 = vmax.f32 %v9599_v2, 0.0  ;;  %v6958_v31 = vld [vmem:[#allocation8] sm:$0xff] }
 0xcf4   :  { %v3948_v58 = vmul.f32 %v9310_v47, %v3929_v60  ;;  %v10837_v30 = vmax.f32 %v9629_v9, 0.0 }
 0xcf5   :  { %v9602_v45 = vadd.f32 %v9325_v7, %v3950_v14  ;;  %v4001_v11 = vpack.c.bf16 %v10832_v52, %v10833_v35  ;;  %v9637_v14 = vstv %s6168_s12  ;;  %v6969_v52 = vld [vmem:[#allocation8 + $0x38] sm:$0xff] }
 0xcf6   :  { %v9622_v40 = vadd.f32 %v9325_v7, %v3948_v58  ;;  %v6954_v7 = vld [vmem:[#allocation10 + $0x20] sm:$0xff] }
 0xcf7   :  { %11018 = vst [vmem:[#allocation46_spill] sm:$0xff] %v9602_v45  ;;  %4011 = vmatpush.bf16.msra.mxu0 %v4002_v37  ;;  %v10834_v0 = vmax.f32 %v9602_v45, 0.0 }
 0xcf8   :  { %11020 = vst [vmem:[#allocation61_spill] sm:$0xff] %v9622_v40  ;;  %v10836_v47 = vmax.f32 %v9622_v40, 0.0 }
 0xcf9   :  { %v4000_v42 = vpack.c.bf16 %v10834_v0, %v10835_v25 }
 0xcfa   :  { %v3999_v46 = vpack.c.bf16 %v10836_v47, %v10837_v30  ;;  %v6972_v47 = vld [vmem:[#allocation10 + $0x70] sm:$0xff] }
 0xcfb   :  { %4012 = vmatpush.bf16.msra.mxu0 %v4001_v11 }
 0xcff   :  { %4013 = vmatpush.bf16.msra.mxu0 %v4000_v42 }
 0xd03   :  { %4014 = vmatpush.bf16.msra.mxu0 %v3999_v46 }
 0xd06   :  { %4015 = vmatmul.bf16.vlgmr.msra.gmra.mxu0 %v6950_v43 }
 0xd16   :  { %4020 = vmatmul.bf16.gmra.mxu0 %v6951_v28 }
 0xd26   :  { %4025 = vmatmul.bf16.gmra.mxu0 %v6952_v59 }
 0xd36   :  { %4030 = vmatmul.bf16.gmra.mxu0 %v6953_v32 }
 0xd46   :  { %4035 = vmatmul.bf16.gmra.mxu0 %v6954_v7 }
 0xd56   :  { %4040 = vmatmul.bf16.gmra.mxu0 %v6955_v56  ;;  %v6961_v56 = vld [vmem:[#allocation8 + $0x10] sm:$0xff] }
 0xd66   :  { %4045 = vmatmul.bf16.gmra.mxu0 %v6956_v27 }
 0xd76   :  { %4050 = vmatmul.bf16.gmra.mxu0 %v6957_v63 }
 0xd83   :  { %v4016_v6 = vpop.f32.mrf.mxu0 }
 0xd84   :  { %v4017_v60 = vadd.f32 %v6958_v31, %v4016_v6  ;;  %v6962_v31 = vld [vmem:[#allocation10 + $0x48] sm:$0xff] }
 0xd86   :  { %v4096_v39 = vmax.f32 %v4017_v60, 0.0  ;;  %4055 = vmatmul.bf16.gmra.mxu0 %v6959_v1 }
 0xd88   :  { %v4128_v44 = vadd.f32 1e-07, %v4096_v39 }
 0xd8a   :  { %v4161_v37 = vmul.f32 %v9637_v14, %v4128_v44 }
 0xd8b   :  { %v4018_v58 = vpop.f32.mrf.mxu0 }
 0xd8c   :  { %v4019_v11 = vadd.f32 %v6960_v13, %v4018_v58  ;;  %v6169_v42 = vclamps-f32 %v4161_v37, 60.0  ;;  %v6963_v58 = vld [vmem:[#allocation8 + $0x18] sm:$0xff] }
 0xd8e   :  { %v4097_v46 = vmax.f32 %v4019_v11, 0.0  ;;  %v4257_v28 = vmul.f32 1.442695, %v6169_v42 }
 0xd90   :  { %v4129_v43 = vadd.f32 1e-07, %v4097_v46  ;;  %6726 = vpow2.f32 %v4257_v28 }
 0xd92   :  { %v4162_v59 = vmul.f32 %v9637_v14, %v4129_v43 }
 0xd93   :  { %v4021_v32 = vpop.f32.mrf.mxu0 }
 0xd94   :  { %v6170_v7 = vclamps-f32 %v4162_v59, 60.0  ;;  %v4022_v27 = vadd.f32 %v6961_v56, %v4021_v32  ;;  %v6973_v56 = vld [vmem:[#allocation8 + $0x68] sm:$0xff]  ;;  %v6974_v32 = vld [vmem:[#allocation8 + $0x60] sm:$0xff] }
 0xd96   :  { %v4259_v63 = vmul.f32 1.442695, %v6170_v7  ;;  %v4098_v6 = vmax.f32 %v4022_v27, 0.0  ;;  %4060 = vmatmul.bf16.gmra.mxu0 %v6962_v31  ;;  %v9642_v37 = vpop.eup %6726 }
 0xd97   :  { %v9647_v59 = vmul.f32 %v9642_v37, %v4128_v44 }
 0xd98   :  { %6728 = vpow2.f32 %v4259_v63  ;;  %v4130_v60 = vadd.f32 1e-07, %v4098_v6 }
 0xd9a   :  { %v4163_v39 = vmul.f32 %v9637_v14, %v4130_v60 }
 0xd9b   :  { %v4023_v1 = vpop.f32.mrf.mxu0 }
 0xd9c   :  { %v4024_v13 = vadd.f32 %v6963_v58, %v4023_v1  ;;  %v6171_v42 = vclamps-f32 %v4163_v39, 60.0  ;;  %v6964_v39 = vld [vmem:[#allocation8 + $0x20] sm:$0xff] }
 0xd9e   :  { %v9644_v11 = vpop.eup %6728  ;;  %v4099_v46 = vmax.f32 %v4024_v13, 0.0  ;;  %v4261_v27 = vmul.f32 1.442695, %v6171_v42  ;;  %v6965_v13 = vld [vmem:[#allocation10 + $0x50] sm:$0xff] }
 0xd9f   :  { %v9650_v28 = vmul.f32 %v9644_v11, %v4129_v43 }
 0xda0   :  { %v4131_v7 = vadd.f32 1e-07, %v4099_v46  ;;  %6730 = vpow2.f32 %v4261_v27 }
 0xda2   :  { %v4164_v63 = vmul.f32 %v9637_v14, %v4131_v7 }
 0xda3   :  { %v4026_v6 = vpop.f32.mrf.mxu0 }
 0xda4   :  { %v6172_v31 = vclamps-f32 %v4164_v63, 60.0  ;;  %v4027_v1 = vadd.f32 %v6964_v39, %v4026_v6 }
 0xda6   :  { %v4263_v44 = vmul.f32 1.442695, %v6172_v31  ;;  %v4100_v58 = vmax.f32 %v4027_v1, 0.0  ;;  %4065 = vmatmul.bf16.gmra.mxu0 %v6965_v13  ;;  %v9658_v19 = vpop.eup %6730 }
 0xda7   :  { %v9663_v6 = vmul.f32 %v9658_v19, %v4130_v60 }
 0xda8   :  { %6732 = vpow2.f32 %v4263_v44  ;;  %v4132_v43 = vadd.f32 1e-07, %v4100_v58 }
 0xdaa   :  { %v4165_v61 = vmul.f32 %v9637_v14, %v4132_v43 }
 0xdab   :  { %v4028_v46 = vpop.f32.mrf.mxu0 }
 0xdac   :  { %v4029_v42 = vadd.f32 %v6966_v54, %v4028_v46  ;;  %v6173_v16 = vclamps-f32 %v4165_v61, 60.0  ;;  %v6967_v61 = vld [vmem:[#allocation8 + $0x30] sm:$0xff] }
 0xdae   :  { %v9660_v20 = vpop.eup %6732  ;;  %v4101_v63 = vmax.f32 %v4029_v42, 0.0  ;;  %v4265_v44 = vmul.f32 1.442695, %v6173_v16 }
 0xdaf   :  { %v9666_v27 = vmul.f32 %v9660_v20, %v4131_v7 }
 0xdb0   :  { %v4133_v39 = vadd.f32 1e-07, %v4101_v63  ;;  %6734 = vpow2.f32 %v4265_v44 }
 0xdb2   :  { %v4166_v54 = vmul.f32 %v9637_v14, %v4133_v39 }
 0xdb3   :  { %v4031_v58 = vpop.f32.mrf.mxu0 }
 0xdb4   :  { %v6174_v13 = vclamps-f32 %v4166_v54, 60.0  ;;  %v4032_v46 = vadd.f32 %v6967_v61, %v4031_v58  ;;  %v6975_v61 = vld [vmem:[#allocation8 + $0x58] sm:$0xff] }
 0xdb6   :  { %v4267_v60 = vmul.f32 1.442695, %v6174_v13  ;;  %v4102_v42 = vmax.f32 %v4032_v46, 0.0  ;;  %4070 = vmatmul.bf16.gmra.mxu0 %v6968_v10  ;;  %v9674_v15 = vpop.eup %6734 }
 0xdb7   :  { %v9679_v58 = vmul.f32 %v9674_v15, %v4132_v43 }
 0xdb8   :  { %6736 = vpow2.f32 %v4267_v60  ;;  %v4134_v7 = vadd.f32 1e-07, %v4102_v42 }
 0xdba   :  { %v4167_v62 = vmul.f32 %v9637_v14, %v4134_v7 }
 0xdbb   :  { %v4033_v63 = vpop.f32.mrf.mxu0 }
 0xdbc   :  { %v4034_v16 = vadd.f32 %v6969_v52, %v4033_v63  ;;  %v6175_v0 = vclamps-f32 %v4167_v62, 60.0  ;;  %v6970_v63 = vld [vmem:[#allocation10 + $0x60] sm:$0xff] }
 0xdbe   :  { %v9676_v35 = vpop.eup %6736  ;;  %v4103_v54 = vmax.f32 %v4034_v16, 0.0  ;;  %v4269_v46 = vmul.f32 1.442695, %v6175_v0  ;;  %v6976_v0 = vld [vmem:[#allocation8 + $0x70] sm:$0xff] }
 0xdbf   :  { %v9682_v44 = vmul.f32 %v9676_v35, %v4133_v39 }
 0xdc0   :  { %v4135_v13 = vadd.f32 1e-07, %v4103_v54  ;;  %6738 = vpow2.f32 %v4269_v46 }
 0xdc2   :  { %v4168_v52 = vmul.f32 %v9637_v14, %v4135_v13 }
 0xdc3   :  { %v4036_v60 = vpop.f32.mrf.mxu0 }
 0xdc4   :  { %v6176_v42 = vclamps-f32 %v4168_v52, 60.0 }
 0xdc6   :  { %v4271_v62 = vmul.f32 1.442695, %v6176_v42  ;;  %4075 = vmatmul.bf16.gmra.mxu0 %v6970_v63  ;;  %v9689_v39 = vpop.eup %6738  ;;  %v6971_v42 = vld [vmem:[#allocation10 + $0x68] sm:$0xff] }
 0xdc7   :  { %v9694_v54 = vmul.f32 %v9689_v39, %v4134_v7 }
 0xdc8   :  { %6740 = vpow2.f32 %v4271_v62 }
 0xdcb   :  { %v4038_v43 = vpop.f32.mrf.mxu0 }
 0xdce   :  { %v9691_v16 = vpop.eup %6740 }
 0xdcf   :  { %v9697_v25 = vmul.f32 %v9691_v16, %v4135_v13 }
 0xdd3   :  { %v4041_v52 = vpop.f32.mrf.mxu0 }
 0xdd4   :  { %v4042_v46 = vadd.f32 %v6977_v17, %v4041_v52 }
 0xdd6   :  { %4080 = vmatmul.bf16.gmra.mxu0 %v6971_v42  ;;  %v6978_v42 = vld [vmem:[#allocation10 + $0x78] sm:$0xff] }
 0xddb   :  { %v4043_v62 = vpop.f32.mrf.mxu0 }
 0xddc   :  { %v4044_v10 = vadd.f32 %v6975_v61, %v4043_v62 }
 0xdde   :  { %v4107_v49 = vmax.f32 %v4044_v10, 0.0 }
 0xde3   :  { %v4046_v63 = vpop.f32.mrf.mxu0 }
 0xde4   :  { %v4047_v1 = vadd.f32 %v6974_v32, %v4046_v63  ;;  %v4106_v63 = vmax.f32 %v4042_v46, 0.0 }
 0xde6   :  { %4085 = vmatmul.bf16.gmra.mxu0 %v6972_v47  ;;  %v4108_v55 = vmax.f32 %v4047_v1, 0.0  ;;  %v6979_v47 = vld [vmem:[#allocation8 + $0x48] sm:$0xff]  ;;  %v9710_v1 = vadd.f32 1e-07, %v4107_v49 }
 0xde7   :  { %v4039_v36 = vadd.f32 %v6979_v47, %v4038_v43  ;;  %v9712_v43 = vadd.f32 1e-07, %v4106_v63 }
 0xde9   :  { %v4171_v49 = vmul.f32 %v9637_v14, %v9712_v43 }
 0xdeb   :  { %v4048_v30 = vpop.f32.mrf.mxu0 }
 0xdec   :  { %v4049_v7 = vadd.f32 %v6973_v56, %v4048_v30  ;;  %v6980_v56 = vld [vmem:[#allocation8 + $0x40] sm:$0xff] }
 0xded   :  { %v4037_v32 = vadd.f32 %v6980_v56, %v4036_v60 }
 0xdee   :  { %v4109_v13 = vmax.f32 %v4049_v7, 0.0  ;;  %v9705_v7 = vadd.f32 1e-07, %v4108_v55 }
 0xdef   :  { %v4104_v62 = vmax.f32 %v4037_v32, 0.0 }
 0xdf0   :  { %v9703_v50 = vadd.f32 1e-07, %v4109_v13  ;;  %v4172_v13 = vmul.f32 %v9637_v14, %v9710_v1 }
 0xdf2   :  { %v4174_v17 = vmul.f32 %v9637_v14, %v9703_v50 }
 0xdf3   :  { %v4051_v31 = vpop.f32.mrf.mxu0 }
 0xdf4   :  { %v4052_v24 = vadd.f32 %v6976_v0, %v4051_v31  ;;  %v6981_v0 = vld [vmem:[#allocation8 + $0x78] sm:$0xff]  ;;  %v6182_v60 = vclamps-f32 %v4174_v17, 60.0  ;;  %v6180_v17 = vclamps-f32 %v4172_v13, 60.0 }
 0xdf6   :  { %v4110_v53 = vmax.f32 %v4052_v24, 0.0  ;;  %4090 = vmatmul.bf16.gmra.mxu0 %v6978_v42  ;;  %v4105_v24 = vmax.f32 %v4039_v36, 0.0  ;;  %v9720_v36 = vadd.f32 1e-07, %v4104_v62  ;;  %v4283_v63 = vmul.f32 1.442695, %v6182_v60 }
 0xdf7   :  { %v4279_v5 = vmul.f32 1.442695, %v6180_v17 }
 0xdf8   :  { %v4142_v30 = vadd.f32 1e-07, %v4110_v53  ;;  %v4173_v53 = vmul.f32 %v9637_v14, %v9705_v7  ;;  %v9716_v46 = vadd.f32 1e-07, %v4105_v24  ;;  %v4169_v62 = vmul.f32 %v9637_v14, %v9720_v36 }
 0xdfa   :  { %v4175_v61 = vmul.f32 %v9637_v14, %v4142_v30  ;;  %v6181_v47 = vclamps-f32 %v4173_v53, 60.0  ;;  %v6177_v45 = vclamps-f32 %v4169_v62, 60.0 }
 0xdfb   :  { %v4053_v31 = vpop.f32.mrf.mxu0 }
 0xdfc   :  { %v4054_v52 = vadd.f32 %v6981_v0, %v4053_v31  ;;  %v6183_v10 = vclamps-f32 %v4175_v61, 60.0  ;;  %v4170_v61 = vmul.f32 %v9637_v14, %v9716_v46  ;;  %v6982_v0 = vld [vmem:[#allocation8 + $0x80] sm:$0xff]  ;;  %v4281_v22 = vmul.f32 1.442695, %v6181_v47 }
 0xdfe   :  { %v4111_v55 = vmax.f32 %v4054_v52, 0.0  ;;  %v4285_v56 = vmul.f32 1.442695, %v6183_v10  ;;  %v6178_v10 = vclamps-f32 %v4170_v61, 60.0 }
 0xe00   :  { %v4143_v42 = vadd.f32 1e-07, %v4111_v55  ;;  %v6179_v55 = vclamps-f32 %v4171_v49, 60.0  ;;  %6742 = vpow2.f32 %v4285_v56  ;;  %v6983_v49 = vld [vmem:[#allocation8 + $0x88] sm:$0xff] }
 0xe01   :  { %6744 = vpow2.f32 %v4283_v63  ;;  %v4273_v63 = vmul.f32 1.442695, %v6177_v45 }
 0xe02   :  { %v4176_v32 = vmul.f32 %v9637_v14, %v4143_v42  ;;  %v4277_v33 = vmul.f32 1.442695, %v6179_v55 }
 0xe03   :  { %v4056_v31 = vpop.f32.mrf.mxu0 }
 0xe04   :  { %v6184_v24 = vclamps-f32 %v4176_v32, 60.0  ;;  %v4057_v52 = vadd.f32 %v6982_v0, %v4056_v31  ;;  %v4275_v0 = vmul.f32 1.442695, %v6178_v10 }
 0xe06   :  { %v4287_v2 = vmul.f32 1.442695, %v6184_v24  ;;  %v4112_v53 = vmax.f32 %v4057_v52, 0.0  ;;  %v6743_v31 = vpop.eup %6742 }
 0xe07   :  { %v6745_v56 = vpop.eup %6744  ;;  %v4335_v17 = vmul.f32 %v6743_v31, %v4142_v30 }
 0xe08   :  { %6746 = vpow2.f32 %v4287_v2  ;;  %v9729_v60 = vadd.f32 1e-07, %v4112_v53  ;;  %v4334_v53 = vmul.f32 %v6745_v56, %v9703_v50 }
 0xe09   :  { %6748 = vpow2.f32 %v4281_v22 }
 0xe0a   :  { %v4177_v13 = vmul.f32 %v9637_v14, %v9729_v60  ;;  %6750 = vpow2.f32 %v4279_v5 }
 0xe0b   :  { %v4058_v32 = vpop.f32.mrf.mxu0  ;;  %6752 = vpow2.f32 %v4277_v33 }
 0xe0c   :  { %v4059_v47 = vadd.f32 %v6983_v49, %v4058_v32  ;;  %v6185_v61 = vclamps-f32 %v4177_v13, 60.0  ;;  %6754 = vpow2.f32 %v4275_v0 }
 0xe0d   :  { %6756 = vpow2.f32 %v4273_v63 }
 0xe0e   :  { %v6747_v24 = vpop.eup %6746  ;;  %v4113_v2 = vmax.f32 %v4059_v47, 0.0  ;;  %v4289_v5 = vmul.f32 1.442695, %v6185_v61 }
 0xe0f   :  { %v4336_v52 = vmul.f32 %v6747_v24, %v4143_v42  ;;  %v4367_v62 = vpack.c.bf16 %v6747_v24, %v6743_v31  ;;  %v6749_v55 = vpop.eup %6748  ;;  %v6984_v31 = vld [vmem:[#allocation8 + $0x90] sm:$0xff] }
 0xe10   :  { %v4145_v22 = vadd.f32 1e-07, %v4113_v2  ;;  %v6751_v10 = vpop.eup %6750  ;;  %v4333_v45 = vmul.f32 %v6749_v55, %v9705_v7  ;;  %v4365_v13 = vpack.c.bf16 %v6745_v56, %v6749_v55  ;;  %6758 = vpow2.f32 %v4289_v5  ;;  %v6985_v5 = vld [vmem:[#allocation8 + $0x98] sm:$0xff] }
 0xe11   :  { %v4368_v40 = vpack.c.bf16 %v4336_v52, %v4335_v17  ;;  %4385 = vmatpush.bf16.msra.mxu1 %v4367_v62  ;;  %v6753_v30 = vpop.eup %6752  ;;  %v4332_v0 = vmul.f32 %v6751_v10, %v9710_v1 }
 0xe12   :  { %v4178_v32 = vmul.f32 %v9637_v14, %v4145_v22  ;;  %v4366_v50 = vpack.c.bf16 %v4334_v53, %v4333_v45  ;;  %v6755_v47 = vpop.eup %6754  ;;  %v4331_v61 = vmul.f32 %v6753_v30, %v9712_v43  ;;  %v4363_v2 = vpack.c.bf16 %v6751_v10, %v6753_v30 }
 0xe13   :  { %v4061_v33 = vpop.f32.mrf.mxu0  ;;  %4483 = vmatpush.bf16.msra.mxu3 %v4368_v40  ;;  %v6757_v7 = vpop.eup %6756  ;;  %v4330_v56 = vmul.f32 %v6755_v47, %v9716_v46 }
 0xe14   :  { %v6186_v42 = vclamps-f32 %v4178_v32, 60.0  ;;  %v4062_v49 = vadd.f32 %v6984_v31, %v4061_v33  ;;  %v4364_v17 = vpack.c.bf16 %v4332_v0, %v4331_v61  ;;  %v4329_v1 = vmul.f32 %v6757_v7, %v9720_v36 }
 0xe15   :  { %4386 = vmatpush.bf16.msra.mxu1 %v4365_v13  ;;  %v4361_v55 = vpack.c.bf16 %v6755_v47, %v6757_v7  ;;  %v6986_v47 = vld [vmem:[#allocation8 + $0xa0] sm:$0xff]  ;;  %v11024_v61 = vpack.c.bf16 %v9682_v44, %v9679_v58  ;;  %v11027_v58 = vpack.c.bf16 %v9644_v11, %v9642_v37 }
 0xe16   :  { %v4291_v24 = vmul.f32 1.442695, %v6186_v42  ;;  %v4114_v63 = vmax.f32 %v4062_v49, 0.0  ;;  %v9741_v53 = vpop.eup %6758  ;;  %v4362_v10 = vpack.c.bf16 %v4330_v56, %v4329_v1  ;;  %v11021_v42 = vpack.c.bf16 %v9691_v16, %v9689_v39  ;;  %v6987_v56 = vld [vmem:[#allocation8 + $0xa8] sm:$0xff] }
 0xe17   :  { %4484 = vmatpush.bf16.msra.mxu3 %v4366_v50  ;;  %v9747_v46 = vmul.f32 %v9741_v53, %v9729_v60 }
 0xe18   :  { %6760 = vpow2.f32 %v4291_v24  ;;  %v4146_v40 = vadd.f32 1e-07, %v4114_v63  ;;  %v11023_v63 = vpack.c.bf16 %v9676_v35, %v9674_v15  ;;  %v11026_v15 = vpack.c.bf16 %v9666_v27, %v9663_v6 }
 0xe19   :  { %4387 = vmatpush.bf16.msra.mxu1 %v4363_v2  ;;  %v11028_v6 = vpack.c.bf16 %v9650_v28, %v9647_v59 }
 0xe1a   :  { %v4179_v52 = vmul.f32 %v9637_v14, %v4146_v40 }
 0xe1b   :  { %v4063_v62 = vpop.f32.mrf.mxu0  ;;  %4485 = vmatpush.bf16.msra.mxu3 %v4364_v17 }
 0xe1c   :  { %v4064_v43 = vadd.f32 %v6985_v5, %v4063_v62  ;;  %v6187_v45 = vclamps-f32 %v4179_v52, 60.0 }
 0xe1d   :  { %4388 = vmatpush.bf16.msra.mxu1 %v4361_v55 }
 0xe1e   :  { %v9743_v32 = vpop.eup %6760  ;;  %v4115_v33 = vmax.f32 %v4064_v43, 0.0  ;;  %v4293_v49 = vmul.f32 1.442695, %v6187_v45  ;;  %v6988_v43 = vld [vmem:[#allocation8 + $0xb0] sm:$0xff] }
 0xe1f   :  { %v9750_v13 = vmul.f32 %v9743_v32, %v4145_v22  ;;  %4486 = vmatpush.bf16.msra.mxu3 %v4362_v10  ;;  %v4369_v36 = vpack.c.bf16 %v9743_v32, %v9741_v53  ;;  %v11022_v22 = vpack.c.bf16 %v9697_v25, %v9694_v54  ;;  %v11025_v25 = vpack.c.bf16 %v9660_v20, %v9658_v19 }
 0xe20   :  { %v4147_v30 = vadd.f32 1e-07, %v4115_v33  ;;  %6762 = vpow2.f32 %v4293_v49  ;;  %v6989_v49 = vld [vmem:[#allocation8 + $0xb8] sm:$0xff] }
 0xe21   :  { %4389 = vmatpush.bf16.msra.mxu1 %v11021_v42  ;;  %v4370_v31 = vpack.c.bf16 %v9750_v13, %v9747_v46 }
 0xe22   :  { %v4180_v0 = vmul.f32 %v9637_v14, %v4147_v30 }
 0xe23   :  { %v4066_v60 = vpop.f32.mrf.mxu0  ;;  %4487 = vmatpush.bf16.msra.mxu3 %v11022_v22 }
 0xe24   :  { %v6188_v50 = vclamps-f32 %v4180_v0, 60.0  ;;  %v4067_v24 = vadd.f32 %v6986_v47, %v4066_v60 }
 0xe25   :  { %4390 = vmatpush.bf16.msra.mxu1 %v11023_v63 }
 0xe26   :  { %v4295_v39 = vmul.f32 1.442695, %v6188_v50  ;;  %v4116_v16 = vmax.f32 %v4067_v24, 0.0  ;;  %v9776_v35 = vpop.eup %6762 }
 0xe27   :  { %4488 = vmatpush.bf16.msra.mxu3 %v11024_v61  ;;  %v9784_v19 = vmul.f32 %v9776_v35, %v4146_v40 }
 0xe28   :  { %6764 = vpow2.f32 %v4295_v39  ;;  %v4148_v2 = vadd.f32 1e-07, %v4116_v16 }
 0xe29   :  { %4391 = vmatpush.bf16.msra.mxu1 %v11025_v25 }
 0xe2a   :  { %v4181_v54 = vmul.f32 %v9637_v14, %v4148_v2 }
 0xe2b   :  { %v4068_v7 = vpop.f32.mrf.mxu0  ;;  %4489 = vmatpush.bf16.msra.mxu3 %v11026_v15 }
 0xe2c   :  { %v4069_v17 = vadd.f32 %v6987_v56, %v4068_v7  ;;  %v6189_v52 = vclamps-f32 %v4181_v54, 60.0 }
 0xe2d   :  { %4392 = vmatpush.bf16.msra.mxu1 %v11027_v58 }
 0xe2e   :  { %v9781_v44 = vpop.eup %6764  ;;  %v4117_v20 = vmax.f32 %v4069_v17, 0.0  ;;  %v4297_v11 = vmul.f32 1.442695, %v6189_v52 }
 0xe2f   :  { %v9787_v1 = vmul.f32 %v9781_v44, %v4147_v30  ;;  %4490 = vmatpush.bf16.msra.mxu3 %v11028_v6  ;;  %v4371_v27 = vpack.c.bf16 %v9781_v44, %v9776_v35 }
 0xe30   :  { %v4149_v62 = vadd.f32 1e-07, %v4117_v20  ;;  %4393 = vmatmul.bf16.vlgmr.msra.gmra.mxu1 %v7532_v4  ;;  %6766 = vpow2.f32 %v4297_v11 }
 0xe31   :  { %v4372_v37 = vpack.c.bf16 %v9787_v1, %v9784_v19  ;;  %v6338_v1 = vld [vmem:[#allocation14 + $0xa8] sm:$0xff] }
 0xe32   :  { %v4182_v40 = vmul.f32 %v9637_v14, %v4149_v62  ;;  %4491 = vmatmul.bf16.vlgmr.msra.gmra.mxu3 %v7532_v4 }
 0xe33   :  { %v4071_v55 = vpop.f32.mrf.mxu0 }
 0xe34   :  { %v6190_v5 = vclamps-f32 %v4182_v40, 60.0  ;;  %v4072_v10 = vadd.f32 %v6988_v43, %v4071_v55  ;;  %v6990_v40 = vld [vmem:[#allocation8 + $0xe8] sm:$0xff] }
 0xe36   :  { %v4299_v59 = vmul.f32 1.442695, %v6190_v5  ;;  %v4118_v28 = vmax.f32 %v4072_v10, 0.0  ;;  %v9800_v42 = vpop.eup %6766  ;;  %v6991_v5 = vld [vmem:[#allocation8 + $0xe0] sm:$0xff] }
 0xe37   :  { %v9805_v50 = vmul.f32 %v9800_v42, %v4148_v2 }
 0xe38   :  { %6768 = vpow2.f32 %v4299_v59  ;;  %v4150_v45 = vadd.f32 1e-07, %v4118_v28  ;;  %v6992_v28 = vld [vmem:[#allocation8 + $0xd8] sm:$0xff] }
 0xe3a   :  { %v4183_v33 = vmul.f32 %v9637_v14, %v4150_v45 }
 0xe3b   :  { %v4073_v30 = vpop.f32.mrf.mxu0 }
 0xe3c   :  { %v4074_v0 = vadd.f32 %v6989_v49, %v4073_v30  ;;  %v6191_v22 = vclamps-f32 %v4183_v33, 60.0  ;;  %v6994_v30 = vld [vmem:[#allocation8 + $0xd0] sm:$0xff] }
 0xe3e   :  { %v9802_v60 = vpop.eup %6768  ;;  %v4119_v4 = vmax.f32 %v4074_v0, 0.0  ;;  %v4301_v16 = vmul.f32 1.442695, %v6191_v22 }
 0xe3f   :  { %v9808_v47 = vmul.f32 %v9802_v60, %v4149_v62  ;;  %v4373_v24 = vpack.c.bf16 %v9802_v60, %v9800_v42  ;;  %v6337_v60 = vld [vmem:[#allocation14 + $0xa0] sm:$0xff] }
 0xe40   :  { %v4151_v63 = vadd.f32 1e-07, %v4119_v4  ;;  %4398 = vmatmul.bf16.gmra.mxu1 %v7544_v26  ;;  %6770 = vpow2.f32 %v4301_v16  ;;  %v6995_v4 = vld [vmem:[#allocation8 + $0xc8] sm:$0xff] }
 0xe41   :  { %v4374_v39 = vpack.c.bf16 %v9808_v47, %v9805_v50  ;;  %v6336_v50 = vld [vmem:[#allocation14 + $0x98] sm:$0xff] }
 0xe42   :  { %v4184_v61 = vmul.f32 %v9637_v14, %v4151_v63  ;;  %4496 = vmatmul.bf16.gmra.mxu3 %v7544_v26 }
 0xe43   :  { %v4076_v25 = vpop.f32.mrf.mxu0 }
 0xe44   :  { %v6192_v2 = vclamps-f32 %v4184_v61, 60.0 }
 0xe46   :  { %v4303_v54 = vmul.f32 1.442695, %v6192_v2  ;;  %v9817_v15 = vpop.eup %6770  ;;  %v6996_v2 = vld [vmem:[#allocation8 + $0xc0] sm:$0xff] }
 0xe47   :  { %v9822_v17 = vmul.f32 %v9817_v15, %v4150_v45  ;;  %v6993_v45 = vld [vmem:[#allocation8 + $0xf0] sm:$0xff] }
 0xe48   :  { %6772 = vpow2.f32 %v4303_v54  ;;  %v4077_v54 = vadd.f32 %v6996_v2, %v4076_v25 }
 0xe4b   :  { %v4078_v7 = vpop.f32.mrf.mxu0 }
 0xe4e   :  { %v9819_v56 = vpop.eup %6772 }
 0xe4f   :  { %v9825_v58 = vmul.f32 %v9819_v56, %v4151_v63  ;;  %v4375_v52 = vpack.c.bf16 %v9819_v56, %v9817_v15  ;;  %v4079_v63 = vadd.f32 %v6995_v4, %v4078_v7  ;;  %v6333_v56 = vld [vmem:[#allocation14 + $0x80] sm:$0xff] }
 0xe50   :  { %4403 = vmatmul.bf16.gmra.mxu1 %v7548_v3 }
 0xe51   :  { %v4376_v26 = vpack.c.bf16 %v9825_v58, %v9822_v17 }
 0xe52   :  { %4501 = vmatmul.bf16.gmra.mxu3 %v7548_v3 }
 0xe53   :  { %v4081_v20 = vpop.f32.mrf.mxu0 }
 0xe54   :  { %v4082_v49 = vadd.f32 %v6994_v30, %v4081_v20 }
 0xe5b   :  { %v4083_v6 = vpop.f32.mrf.mxu0 }
 0xe5c   :  { %v4084_v3 = vadd.f32 %v6992_v28, %v4083_v6 }
 0xe5e   :  { %v4123_v16 = vmax.f32 %v4084_v3, 0.0 }
 0xe60   :  { %4408 = vmatmul.bf16.gmra.mxu1 %v7552_v48 }
 0xe62   :  { %4506 = vmatmul.bf16.gmra.mxu3 %v7552_v48 }
 0xe63   :  { %v4086_v62 = vpop.f32.mrf.mxu0 }
 0xe64   :  { %v4087_v43 = vadd.f32 %v6991_v5, %v4086_v62  ;;  %v4122_v62 = vmax.f32 %v4082_v49, 0.0  ;;  %v4155_v5 = vadd.f32 1e-07, %v4123_v16 }
 0xe66   :  { %v4124_v0 = vmax.f32 %v4087_v43, 0.0  ;;  %v4120_v43 = vmax.f32 %v4077_v54, 0.0  ;;  %v4154_v28 = vadd.f32 1e-07, %v4122_v62  ;;  %v4188_v25 = vmul.f32 %v9637_v14, %v4155_v5 }
 0xe68   :  { %v4152_v49 = vadd.f32 1e-07, %v4120_v43  ;;  %v6196_v54 = vclamps-f32 %v4188_v25, 60.0 }
 0xe6b   :  { %v4088_v11 = vpop.f32.mrf.mxu0 }
 0xe6c   :  { %v4089_v55 = vadd.f32 %v6990_v40, %v4088_v11  ;;  %v4156_v11 = vadd.f32 1e-07, %v4124_v0  ;;  %v4187_v0 = vmul.f32 %v9637_v14, %v4154_v28 }
 0xe6e   :  { %v4125_v10 = vmax.f32 %v4089_v55, 0.0  ;;  %v4121_v55 = vmax.f32 %v4079_v63, 0.0 }
 0xe70   :  { %4413 = vmatmul.bf16.gmra.mxu1 %v7556_v57  ;;  %v4157_v22 = vadd.f32 1e-07, %v4125_v10  ;;  %v4189_v10 = vmul.f32 %v9637_v14, %v4156_v11 }
 0xe72   :  { %4511 = vmatmul.bf16.gmra.mxu3 %v7556_v57  ;;  %v4190_v40 = vmul.f32 %v9637_v14, %v4157_v22 }
 0xe73   :  { %v4091_v59 = vpop.f32.mrf.mxu0 }
 0xe74   :  { %v4092_v33 = vadd.f32 %v6993_v45, %v4091_v59  ;;  %v6997_v59 = vld [vmem:[#allocation8 + $0xf8] sm:$0xff]  ;;  %v6198_v45 = vclamps-f32 %v4190_v40, 60.0  ;;  %v6195_v40 = vclamps-f32 %v4187_v0, 60.0 }
 0xe76   :  { %v4126_v48 = vmax.f32 %v4092_v33, 0.0  ;;  %v4153_v33 = vadd.f32 1e-07, %v4121_v55  ;;  %v4315_v16 = vmul.f32 1.442695, %v6198_v45 }
 0xe78   :  { %v4158_v61 = vadd.f32 1e-07, %v4126_v48  ;;  %v6197_v48 = vclamps-f32 %v4189_v10, 60.0  ;;  %v4186_v2 = vmul.f32 %v9637_v14, %v4153_v33  ;;  %v4309_v10 = vmul.f32 1.442695, %v6195_v40 }
 0xe7a   :  { %v4191_v57 = vmul.f32 %v9637_v14, %v4158_v61 }
 0xe7b   :  { %v4093_v6 = vpop.f32.mrf.mxu0 }
 0xe7c   :  { %v4094_v20 = vadd.f32 %v6997_v59, %v4093_v6  ;;  %v6199_v7 = vclamps-f32 %v4191_v57, 60.0  ;;  %v4185_v57 = vmul.f32 %v9637_v14, %v4152_v49  ;;  %v4313_v6 = vmul.f32 1.442695, %v6197_v48 }
 0xe7d   :  { %v6194_v59 = vclamps-f32 %v4186_v2, 60.0 }
 0xe7e   :  { %v4127_v3 = vmax.f32 %v4094_v20, 0.0  ;;  %v4317_v4 = vmul.f32 1.442695, %v6199_v7  ;;  %v4311_v20 = vmul.f32 1.442695, %v6196_v54  ;;  %v6193_v43 = vclamps-f32 %v4185_v57, 60.0 }
 0xe80   :  { %v4159_v30 = vadd.f32 1e-07, %v4127_v3  ;;  %4418 = vmatmul.bf16.gmra.mxu1 %v7572_v21  ;;  %6774 = vpow2.f32 %v4317_v4  ;;  %v4305_v25 = vmul.f32 1.442695, %v6193_v43 }
 0xe81   :  { %6776 = vpow2.f32 %v4315_v16 }
 0xe82   :  { %v4192_v63 = vmul.f32 %v9637_v14, %v4159_v30  ;;  %4516 = vmatmul.bf16.gmra.mxu3 %v7572_v21  ;;  %v4307_v21 = vmul.f32 1.442695, %v6194_v59 }
 0xe84   :  { %v6200_v62 = vclamps-f32 %v4192_v63, 60.0 }
 0xe86   :  { %v4319_v55 = vmul.f32 1.442695, %v6200_v62  ;;  %v6775_v7 = vpop.eup %6774 }
 0xe87   :  { %v6777_v3 = vpop.eup %6776  ;;  %v4351_v63 = vmul.f32 %v6775_v7, %v4158_v61 }
 0xe88   :  { %6778 = vpow2.f32 %v4319_v55  ;;  %v4350_v4 = vmul.f32 %v6777_v3, %v4157_v22 }
 0xe89   :  { %6780 = vpow2.f32 %v4313_v6 }
 0xe8a   :  { %6782 = vpow2.f32 %v4311_v20 }
 0xe8b   :  { %6784 = vpow2.f32 %v4309_v10 }
 0xe8c   :  { %6786 = vpow2.f32 %v4307_v21 }
 0xe8d   :  { %6788 = vpow2.f32 %v4305_v25 }
 0xe8e   :  { %v6779_v45 = vpop.eup %6778 }
 0xe8f   :  { %v4352_v14 = vmul.f32 %v6779_v45, %v4159_v30  ;;  %v4383_v0 = vpack.c.bf16 %v6779_v45, %v6775_v7  ;;  %v6781_v48 = vpop.eup %6780 }
 0xe90   :  { %4423 = vmatmul.bf16.gmra.mxu1 %v7619_v23  ;;  %v6783_v2 = vpop.eup %6782  ;;  %v4349_v54 = vmul.f32 %v6781_v48, %v4156_v11  ;;  %v4381_v62 = vpack.c.bf16 %v6777_v3, %v6781_v48 }
 0xe91   :  { %v4384_v16 = vpack.c.bf16 %v4352_v14, %v4351_v63  ;;  %4434 = vmatpush.bf16.msra.mxu2 %v4383_v0  ;;  %v6785_v57 = vpop.eup %6784  ;;  %v4348_v40 = vmul.f32 %v6783_v2, %v4155_v5 }
 0xe92   :  { %4521 = vmatmul.bf16.gmra.mxu3 %v7619_v23  ;;  %v4382_v61 = vpack.c.bf16 %v4350_v4, %v4349_v54  ;;  %v6787_v30 = vpop.eup %6786  ;;  %v4347_v6 = vmul.f32 %v6785_v57, %v4154_v28  ;;  %v4379_v55 = vpack.c.bf16 %v6783_v2, %v6785_v57  ;;  %v11030_v57 = vmax.f32 %v9629_v9, 0.0 }
 0xe93   :  { %4532 = vmatpush.bf16.msrb.mxu1 %v4384_v16  ;;  %v6789_v59 = vpop.eup %6788  ;;  %v4346_v20 = vmul.f32 %v6787_v30, %v4153_v33 }
 0xe94   :  { %v4380_v22 = vpack.c.bf16 %v4348_v40, %v4347_v6  ;;  %v4345_v43 = vmul.f32 %v6789_v59, %v4152_v49  ;;  %v4377_v10 = vpack.c.bf16 %v6787_v30, %v6789_v59 }
 0xe95   :  { %4435 = vmatpush.bf16.msra.mxu2 %v4381_v62 }
 0xe96   :  { %v4378_v23 = vpack.c.bf16 %v4346_v20, %v4345_v43 }
 0xe97   :  { %4533 = vmatpush.bf16.msrb.mxu1 %v4382_v61  ;;  %v11031_v61 = vld [vmem:[#allocation61_spill] sm:$0xff] }
 0xe98   :  { %v11032_v30 = vmax.f32 %v11031_v61, 0.0 }
 0xe99   :  { %4436 = vmatpush.bf16.msra.mxu2 %v4379_v55 }
 0xe9b   :  { %4534 = vmatpush.bf16.msrb.mxu1 %v4380_v22 }
 0xe9d   :  { %4437 = vmatpush.bf16.msra.mxu2 %v4377_v10 }
 0xe9f   :  { %4535 = vmatpush.bf16.msrb.mxu1 %v4378_v23 }
 0xea0   :  { %4428 = vmatmul.bf16.gmra.mxu1 %v7647_v29 }
 0xea1   :  { %4438 = vmatpush.bf16.msra.mxu2 %v4375_v52 }
 0xea2   :  { %4526 = vmatmul.bf16.gmra.mxu3 %v7647_v29 }
 0xea3   :  { %4536 = vmatpush.bf16.msrb.mxu1 %v4376_v26 }
 0xea5   :  { %4439 = vmatpush.bf16.msra.mxu2 %v4373_v24  ;;  %v6335_v24 = vld [vmem:[#allocation14 + $0x90] sm:$0xff] }
 0xea7   :  { %4537 = vmatpush.bf16.msrb.mxu1 %v4374_v39  ;;  %v6334_v39 = vld [vmem:[#allocation14 + $0x88] sm:$0xff] }
 0xea9   :  { %4440 = vmatpush.bf16.msra.mxu2 %v4371_v27 }
 0xeab   :  { %4538 = vmatpush.bf16.msrb.mxu1 %v4372_v37 }
 0xead   :  { %4441 = vmatpush.bf16.msra.mxu2 %v4369_v36  ;;  %v4394_v29 = vpop.f32.mrf.mxu1 }
 0xeaf   :  { %4539 = vmatpush.bf16.msrb.mxu1 %v4370_v31 }
 0xeb0   :  { %4442 = vmatmul.bf16.vlgmr.msra.gmra.mxu2 %v7659_v8 }
 0xeb2   :  { %4540 = vmatmul.bf16.vlgmr.msrb.gmra.mxu1 %v7659_v8 }
 0xeb5   :  { %v4396_v42 = vpop.f32.mrf.mxu1  ;;  %v4492_v37 = vpop.f32.mrf.mxu3 }
 0xebd   :  { %v9877_v35 = vpop.f32.mrf.mxu1 }
 0xec0   :  { %4447 = vmatmul.bf16.gmra.mxu2 %v7667_v12 }
 0xec2   :  { %4545 = vmatmul.bf16.gmra.mxu1 %v7667_v12 }
 0xec5   :  { %v9881_v44 = vpop.f32.mrf.mxu1 }
 0xecd   :  { %v9883_v53 = vpop.f32.mrf.mxu1 }
 0xed0   :  { %4452 = vmatmul.bf16.gmra.mxu2 %v7675_v18 }
 0xed2   :  { %4550 = vmatmul.bf16.gmra.mxu1 %v7675_v18  ;;  %v6340_v18 = vld [vmem:[#allocation14 + $0xb8] sm:$0xff] }
 0xed3   :  { %4755 = vmatpush.bf16.msrb.mxu2 %v6340_v18 }
 0xed5   :  { %v9887_v32 = vpop.f32.mrf.mxu1 }
 0xedd   :  { %v9889_v46 = vpop.f32.mrf.mxu1 }
 0xee0   :  { %4457 = vmatmul.bf16.gmra.mxu2 %v7683_v41 }
 0xee2   :  { %4555 = vmatmul.bf16.gmra.mxu1 %v7683_v41 }
 0xee5   :  { %v9893_v8 = vpop.f32.mrf.mxu1 }
 0xeed   :  { %v9895_v13 = vpop.f32.mrf.mxu1 }
 0xef0   :  { %4462 = vmatmul.bf16.gmra.mxu2 %v7691_v34 }
 0xef2   :  { %4560 = vmatmul.bf16.gmra.mxu1 %v7691_v34  ;;  %v6339_v34 = vld [vmem:[#allocation14 + $0xb0] sm:$0xff] }
 0xef3   :  { %4756 = vmatpush.bf16.msrb.mxu2 %v6339_v34 }
 0xef5   :  { %v9899_v12 = vpop.f32.mrf.mxu1 }
 0xef7   :  { %4757 = vmatpush.bf16.msrb.mxu2 %v6338_v1 }
 0xefb   :  { %4758 = vmatpush.bf16.msrb.mxu2 %v6337_v60 }
 0xefd   :  { %v9901_v36 = vpop.f32.mrf.mxu1 }
 0xeff   :  { %4759 = vmatpush.bf16.msrb.mxu2 %v6336_v50 }
 0xf00   :  { %4467 = vmatmul.bf16.gmra.mxu2 %v7699_v38 }
 0xf02   :  { %4565 = vmatmul.bf16.gmra.mxu1 %v7699_v38  ;;  %v11029_v38 = vld [vmem:[#allocation29_spill] sm:$0xff] }
 0xf03   :  { %4760 = vmatpush.bf16.msrb.mxu2 %v6335_v24 }
 0xf05   :  { %v9905_v31 = vpop.f32.mrf.mxu1 }
 0xf07   :  { %4761 = vmatpush.bf16.msrb.mxu2 %v6334_v39 }
 0xf0b   :  { %4762 = vmatpush.bf16.msrb.mxu2 %v6333_v56 }
 0xf0d   :  { %v9907_v41 = vpop.f32.mrf.mxu1 }
 0xf10   :  { %4472 = vmatmul.bf16.gmra.mxu2 %v10919_v51 }
 0xf12   :  { %4570 = vmatmul.bf16.gmra.mxu1 %v10919_v51  ;;  %v4494_v51 = vpop.f32.mrf.mxu3 }
 0xf15   :  { %v9911_v19 = vpop.f32.mrf.mxu1 }
 0xf1a   :  { %v4497_v17 = vpop.f32.mrf.mxu3 }
 0xf1d   :  { %v9913_v27 = vpop.f32.mrf.mxu1 }
 0xf20   :  { %4477 = vmatmul.bf16.gmra.mxu2 %v11029_v38 }
 0xf22   :  { %4575 = vmatmul.bf16.gmra.mxu1 %v11029_v38  ;;  %v4499_v5 = vpop.f32.mrf.mxu3 }
 0xf25   :  { %v9917_v47 = vpop.f32.mrf.mxu1 }
 0xf2a   :  { %v4502_v14 = vpop.f32.mrf.mxu3 }
 0xf2f   :  { %v4541_v15 = vpop.f32.mrf.mxu1 }
 0xf30   :  { %v4542_v7 = vadd.f32 %v4541_v15, %v4492_v37  ;;  %v11035_v15 = vld [vmem:[#allocation46_spill] sm:$0xff] }
 0xf31   :  { %v11036_v56 = vmax.f32 %v11035_v15, 0.0 }
 0xf32   :  { %v4504_v22 = vpop.f32.mrf.mxu3 }
 0xf33   :  { %v4443_v58 = vpop.f32.mrf.mxu2 }
 0xf34   :  { %v4444_v52 = vadd.f32 %v4443_v58, %v4394_v29 }
 0xf36   :  { %vm4581_vm2 = vcmp.gt.f32.partialorder %v4444_v52, 0.0 }
 0xf37   :  { %v4597_v26 = vsel %vm4581_vm2, %v4444_v52, 1.0  ;;  %v4543_v11 = vpop.f32.mrf.mxu1 }
 0xf38   :  { %6790 = vrcp.f32 %v4597_v26  ;;  %v4544_v0 = vadd.f32 %v4543_v11, %v4494_v51  ;;  %v11033_v51 = vld [vmem:[#allocation47_spill] sm:$0xff] }
 0xf39   :  { %v11034_v24 = vmax.f32 %v11033_v51, 0.0 }
 0xf3a   :  { %v4507_v60 = vpop.f32.mrf.mxu3 }
 0xf3b   :  { %v4445_v28 = vpop.f32.mrf.mxu2 }
 0xf3c   :  { %v4446_v33 = vadd.f32 %v4445_v28, %v4396_v42 }
 0xf3e   :  { %vm4582_vm4 = vcmp.gt.f32.partialorder %v4446_v33, 0.0  ;;  %v6791_v3 = vpop.eup %6790 }
 0xf3f   :  { %v4598_v49 = vsel %vm4582_vm4, %v4446_v33, 1.0  ;;  %v4546_v21 = vpop.f32.mrf.mxu1  ;;  %v4629_v45 = vmul.f32 %v6791_v3, %v4542_v7 }
 0xf40   :  { %6792 = vrcp.f32 %v4598_v49  ;;  %v4547_v10 = vadd.f32 %v4546_v21, %v4497_v17 }
 0xf41   :  { %v4645_v4 = vsel %vm4581_vm2, %v4629_v45, 0.0 }
 0xf42   :  { %v4661_v40 = vadd.f32 %v4645_v4, %v11030_v57  ;;  %v4509_v33 = vpop.f32.mrf.mxu3 }
 0xf43   :  { %v4448_v25 = vpop.f32.mrf.mxu2 }
 0xf44   :  { %v4449_v63 = vadd.f32 %v4448_v25, %v9877_v35 }
 0xf46   :  { %v6793_v48 = vpop.eup %6792  ;;  %vm4583_vm3 = vcmp.gt.f32.partialorder %v4449_v63, 0.0 }
 0xf47   :  { %v4599_v16 = vsel %vm4583_vm3, %v4449_v63, 1.0  ;;  %v4630_v2 = vmul.f32 %v6793_v48, %v4544_v0  ;;  %v4548_v54 = vpop.f32.mrf.mxu1 }
 0xf48   :  { %6794 = vrcp.f32 %v4599_v16  ;;  %v4549_v18 = vadd.f32 %v4548_v54, %v4499_v5 }
 0xf49   :  { %v4646_v62 = vsel %vm4582_vm4, %v4630_v2, 0.0  ;;  %v11039_v2 = vld [vmem:[#allocation45_spill] sm:$0xff] }
 0xf4a   :  { %v4662_v6 = vadd.f32 %v4646_v62, %v11032_v30  ;;  %v11040_v54 = vmax.f32 %v11039_v2, 0.0  ;;  %v4512_v57 = vpop.f32.mrf.mxu3 }
 0xf4b   :  { %v4450_v55 = vpop.f32.mrf.mxu2 }
 0xf4c   :  { %v4677_v59 = vpack.c.bf16 %v4662_v6, %v4661_v40  ;;  %v4451_v20 = vadd.f32 %v4450_v55, %v9881_v44 }
 0xf4e   :  { %vm4584_vm5 = vcmp.gt.f32.partialorder %v4451_v20, 0.0  ;;  %4763 = vmatmul.bf16.vlgmr.msrb.gmra.mxu2 %v4677_v59  ;;  %v6795_v29 = vpop.eup %6794 }
 0xf4f   :  { %v4600_v43 = vsel %vm4584_vm5, %v4451_v20, 1.0  ;;  %v4551_v23 = vpop.f32.mrf.mxu1  ;;  %v4631_v42 = vmul.f32 %v6795_v29, %v4547_v10 }
 0xf50   :  { %6796 = vrcp.f32 %v4600_v43  ;;  %v4552_v11 = vadd.f32 %v4551_v23, %v4502_v14  ;;  %v11037_v14 = vld [vmem:[#allocation44_spill] sm:$0xff] }
 0xf51   :  { %v4647_v1 = vsel %vm4583_vm3, %v4631_v42, 0.0  ;;  %v11038_v4 = vmax.f32 %v11037_v14, 0.0 }
 0xf52   :  { %v4663_v39 = vadd.f32 %v4647_v1, %v11034_v24  ;;  %v4514_v10 = vpop.f32.mrf.mxu3 }
 0xf53   :  { %v4453_v9 = vpop.f32.mrf.mxu2 }
 0xf54   :  { %v4454_v35 = vadd.f32 %v4453_v9, %v9883_v53 }
 0xf56   :  { %v6797_v34 = vpop.eup %6796  ;;  %vm4585_vm6 = vcmp.gt.f32.partialorder %v4454_v35, 0.0 }
 0xf57   :  { %v4601_v44 = vsel %vm4585_vm6, %v4454_v35, 1.0  ;;  %v4632_v37 = vmul.f32 %v6797_v34, %v4549_v18  ;;  %v4553_v38 = vpop.f32.mrf.mxu1  ;;  %v11041_v34 = vld [vmem:[#allocation43_spill] sm:$0xff] }
 0xf58   :  { %6798 = vrcp.f32 %v4601_v44  ;;  %v4554_v3 = vadd.f32 %v4553_v38, %v4504_v22  ;;  %v11042_v1 = vmax.f32 %v11041_v34, 0.0 }
 0xf59   :  { %v4648_v50 = vsel %vm4584_vm5, %v4632_v37, 0.0  ;;  %v11043_v37 = vld [vmem:[#allocation42_spill] sm:$0xff] }
 0xf5a   :  { %v4664_v17 = vadd.f32 %v4648_v50, %v11036_v56  ;;  %v11044_v38 = vmax.f32 %v11043_v37, 0.0  ;;  %v4517_v24 = vpop.f32.mrf.mxu3 }
 0xf5b   :  { %v4455_v53 = vpop.f32.mrf.mxu2 }
 0xf5c   :  { %v4456_v58 = vadd.f32 %v4455_v53, %v9887_v32  ;;  %v4678_v52 = vpack.c.bf16 %v4664_v17, %v4663_v39 }
 0xf5e   :  { %vm4586_vm7 = vcmp.gt.f32.partialorder %v4456_v58, 0.0  ;;  %4768 = vmatmul.bf16.gmra.mxu2 %v4678_v52  ;;  %v6799_v28 = vpop.eup %6798 }
 0xf5f   :  { %v4602_v26 = vsel %vm4586_vm7, %v4456_v58, 1.0  ;;  %v4556_v5 = vpop.f32.mrf.mxu1  ;;  %v4633_v49 = vmul.f32 %v6799_v28, %v4552_v11 }
 0xf60   :  { %6800 = vrcp.f32 %v4602_v26  ;;  %v4557_v6 = vadd.f32 %v4556_v5, %v4507_v60 }
 0xf61   :  { %v4649_v25 = vsel %vm4585_vm6, %v4633_v49, 0.0 }
 0xf62   :  { %v4665_v16 = vadd.f32 %v4649_v25, %v11038_v4  ;;  %v11047_v25 = vld [vmem:[#allocation40_spill] sm:$0xff] }
 0xf63   :  { %v4458_v7 = vpop.f32.mrf.mxu2 }
 0xf64   :  { %v4459_v21 = vadd.f32 %v4458_v7, %v9889_v46 }
 0xf66   :  { %v6801_v45 = vpop.eup %6800  ;;  %vm4587_vm8 = vcmp.gt.f32.partialorder %v4459_v21, 0.0 }
 0xf67   :  { %v4603_v32 = vsel %vm4587_vm8, %v4459_v21, 1.0  ;;  %v4634_v63 = vmul.f32 %v6801_v45, %v4554_v3  ;;  %v4558_v0 = vpop.f32.mrf.mxu1  ;;  %v11045_v21 = vld [vmem:[#allocation41_spill] sm:$0xff] }
 0xf68   :  { %6802 = vrcp.f32 %v4603_v32  ;;  %v4559_v23 = vadd.f32 %v4558_v0, %v4509_v33  ;;  %v4519_v33 = vpop.f32.mrf.mxu3  ;;  %v11046_v3 = vmax.f32 %v11045_v21, 0.0  ;;  %v11048_v32 = vmax.f32 %v11047_v25, 0.0 }
 0xf69   :  { %v4650_v48 = vsel %vm4586_vm7, %v4634_v63, 0.0 }
 0xf6a   :  { %v4666_v62 = vadd.f32 %v4650_v48, %v11040_v54 }
 0xf6b   :  { %v4460_v46 = vpop.f32.mrf.mxu2 }
 0xf6c   :  { %v4461_v40 = vadd.f32 %v4460_v46, %v9893_v8  ;;  %v4679_v61 = vpack.c.bf16 %v4666_v62, %v4665_v16 }
 0xf6e   :  { %vm4588_vm9 = vcmp.gt.f32.partialorder %v4461_v40, 0.0  ;;  %4773 = vmatmul.bf16.gmra.mxu2 %v4679_v61  ;;  %v6803_v59 = vpop.eup %6802 }
 0xf6f   :  { %v4604_v30 = vsel %vm4588_vm9, %v4461_v40, 1.0  ;;  %v4561_v55 = vpop.f32.mrf.mxu1  ;;  %v4635_v20 = vmul.f32 %v6803_v59, %v4557_v6  ;;  %v11049_v59 = vld [vmem:[#allocation34_spill] sm:$0xff] }
 0xf70   :  { %6804 = vrcp.f32 %v4604_v30  ;;  %v4562_v15 = vadd.f32 %v4561_v55, %v4512_v57  ;;  %v4522_v2 = vpop.f32.mrf.mxu3 }
 0xf71   :  { %v4651_v42 = vsel %vm4587_vm8, %v4635_v20, 0.0  ;;  %v11050_v20 = vmax.f32 %v11049_v59, 0.0 }
 0xf72   :  { %v4667_v44 = vadd.f32 %v4651_v42, %v11042_v1 }
 0xf73   :  { %v4463_v22 = vpop.f32.mrf.mxu2 }
 0xf74   :  { %v4464_v43 = vadd.f32 %v4463_v22, %v9895_v13 }
 0xf76   :  { %v6805_v29 = vpop.eup %6804  ;;  %vm4589_vm10 = vcmp.gt.f32.partialorder %v4464_v43, 0.0 }
 0xf77   :  { %v4605_v8 = vsel %vm4589_vm10, %v4464_v43, 1.0  ;;  %v4636_v9 = vmul.f32 %v6805_v29, %v4559_v23  ;;  %v4563_v35 = vpop.f32.mrf.mxu1  ;;  %v11051_v43 = vld [vmem:[#allocation35_spill] sm:$0xff] }
 0xf78   :  { %6806 = vrcp.f32 %v4605_v8  ;;  %v4564_v52 = vadd.f32 %v4563_v35, %v4514_v10  ;;  %v11052_v10 = vmax.f32 %v11051_v43, 0.0  ;;  %v4524_v8 = vpop.f32.mrf.mxu3 }
 0xf79   :  { %v4652_v18 = vsel %vm4588_vm9, %v4636_v9, 0.0 }
 0xf7a   :  { %v4668_v60 = vadd.f32 %v4652_v18, %v11044_v38 }
 0xf7b   :  { %v4465_v13 = vpop.f32.mrf.mxu2 }
 0xf7c   :  { %v4466_v50 = vadd.f32 %v4465_v13, %v9899_v12  ;;  %v4680_v51 = vpack.c.bf16 %v4668_v60, %v4667_v44 }
 0xf7e   :  { %vm4590_vm11 = vcmp.gt.f32.partialorder %v4466_v50, 0.0  ;;  %4778 = vmatmul.bf16.gmra.mxu2 %v4680_v51  ;;  %v6807_v17 = vpop.eup %6806 }
 0xf7f   :  { %v4606_v39 = vsel %vm4590_vm11, %v4466_v50, 1.0  ;;  %v4566_v56 = vpop.f32.mrf.mxu1  ;;  %v4637_v53 = vmul.f32 %v6807_v17, %v4562_v15  ;;  %v11053_v15 = vld [vmem:[#allocation36_spill] sm:$0xff] }
 0xf80   :  { %6808 = vrcp.f32 %v4606_v39  ;;  %v4567_v4 = vadd.f32 %v4566_v56, %v4517_v24  ;;  %v4527_v13 = vpop.f32.mrf.mxu3  ;;  %v11054_v56 = vmax.f32 %v11053_v15, 0.0 }
 0xf81   :  { %v4653_v5 = vsel %vm4589_vm10, %v4637_v53, 0.0  ;;  %v11055_v53 = vld [vmem:[#allocation38_spill] sm:$0xff] }
 0xf82   :  { %v4669_v45 = vadd.f32 %v4653_v5, %v11046_v3 }
 0xf83   :  { %v4468_v58 = vpop.f32.mrf.mxu2 }
 0xf84   :  { %v4469_v26 = vadd.f32 %v4468_v58, %v9901_v36  ;;  %v11056_v58 = vmax.f32 %v11055_v53, 0.0 }
 0xf86   :  { %v6809_v11 = vpop.eup %6808  ;;  %vm4591_vm12 = vcmp.gt.f32.partialorder %v4469_v26, 0.0 }
 0xf87   :  { %v4607_v12 = vsel %vm4591_vm12, %v4469_v26, 1.0  ;;  %v4638_v28 = vmul.f32 %v6809_v11, %v4564_v52  ;;  %v4568_v49 = vpop.f32.mrf.mxu1 }
 0xf88   :  { %6810 = vrcp.f32 %v4607_v12  ;;  %v4569_v46 = vadd.f32 %v4568_v49, %v4519_v33  ;;  %v4529_v33 = vpop.f32.mrf.mxu3 }
 0xf89   :  { %v4654_v7 = vsel %vm4590_vm11, %v4638_v28, 0.0 }
 0xf8a   :  { %v4670_v63 = vadd.f32 %v4654_v7, %v11048_v32 }
 0xf8b   :  { %v4470_v0 = vpop.f32.mrf.mxu2 }
 0xf8c   :  { %v4471_v36 = vadd.f32 %v4470_v0, %v9905_v31  ;;  %v4681_v48 = vpack.c.bf16 %v4670_v63, %v4669_v45  ;;  %v11057_v63 = vld [vmem:[#allocation37_spill] sm:$0xff] }
 0xf8d   :  { %v11058_v0 = vmax.f32 %v11057_v63, 0.0 }
 0xf8e   :  { %vm4592_vm13 = vcmp.gt.f32.partialorder %v4471_v36, 0.0  ;;  %4783 = vmatmul.bf16.gmra.mxu2 %v4681_v48  ;;  %v6811_v16 = vpop.eup %6810 }
 0xf8f   :  { %v4608_v14 = vsel %vm4592_vm13, %v4471_v36, 1.0  ;;  %v4571_v54 = vpop.f32.mrf.mxu1  ;;  %v4639_v62 = vmul.f32 %v6811_v16, %v4567_v4  ;;  %v9998_v16 = vld [vmem:[%s10741_s7 + $0x2] ss:$0 sm:$0xff] }
 0xf90   :  { %6812 = vrcp.f32 %v4608_v14  ;;  %v4572_v18 = vadd.f32 %v4571_v54, %v4522_v2 }
 0xf91   :  { %v4655_v30 = vsel %vm4591_vm12, %v4639_v62, 0.0  ;;  %v11061_v62 = vld [vmem:[#allocation30_spill] sm:$0xff] }
 0xf92   :  { %v4671_v22 = vadd.f32 %v4655_v30, %v11050_v20 }
 0xf93   :  { %v4473_v57 = vpop.f32.mrf.mxu2 }
 0xf94   :  { %v4474_v40 = vadd.f32 %v4473_v57, %v9907_v41 }
 0xf96   :  { %v6813_v61 = vpop.eup %6812  ;;  %vm4593_vm14 = vcmp.gt.f32.partialorder %v4474_v40, 0.0 }
 0xf97   :  { %v4609_v31 = vsel %vm4593_vm14, %v4474_v40, 1.0  ;;  %v4640_v6 = vmul.f32 %v6813_v61, %v4569_v46  ;;  %v4573_v9 = vpop.f32.mrf.mxu1 }
 0xf98   :  { %6814 = vrcp.f32 %v4609_v31  ;;  %v4574_v37 = vadd.f32 %v4573_v9, %v4524_v8 }
 0xf99   :  { %v4656_v55 = vsel %vm4592_vm13, %v4640_v6, 0.0 }
 0xf9a   :  { %v4672_v23 = vadd.f32 %v4656_v55, %v11052_v10 }
 0xf9b   :  { %v4475_v29 = vpop.f32.mrf.mxu2 }
 0xf9c   :  { %v4476_v42 = vadd.f32 %v4475_v29, %v9911_v19  ;;  %v4682_v41 = vpack.c.bf16 %v4672_v23, %v4671_v22 }
 0xf9e   :  { %vm4594_vm15 = vcmp.gt.f32.partialorder %v4476_v42, 0.0  ;;  %4788 = vmatmul.bf16.gmra.mxu2 %v4682_v41  ;;  %v6815_v34 = vpop.eup %6814 }
 0xf9f   :  { %v4610_v35 = vsel %vm4594_vm15, %v4476_v42, 1.0  ;;  %v4641_v1 = vmul.f32 %v6815_v34, %v4572_v18  ;;  %v4576_v50 = vpop.f32.mrf.mxu1 }
 0xfa0   :  { %6816 = vrcp.f32 %v4610_v35  ;;  %v4577_v12 = vadd.f32 %v4576_v50, %v4527_v13 }
 0xfa1   :  { %v4657_v19 = vsel %vm4593_vm14, %v4641_v1, 0.0 }
 0xfa2   :  { %v4673_v17 = vadd.f32 %v4657_v19, %v11054_v56 }
 0xfa3   :  { %v4478_v44 = vpop.f32.mrf.mxu2 }
 0xfa4   :  { %v4479_v38 = vadd.f32 %v4478_v44, %v9913_v27 }
 0xfa6   :  { %v6817_v60 = vpop.eup %6816  ;;  %vm4595_vm0 = vcmp.gt.f32.partialorder %v4479_v38, 0.0 }
 0xfa7   :  { %v4611_v51 = vsel %vm4595_vm0, %v4479_v38, 1.0  ;;  %v4642_v24 = vmul.f32 %v6817_v60, %v4574_v37  ;;  %v4578_v49 = vpop.f32.mrf.mxu1 }
 0xfa8   :  { %6818 = vrcp.f32 %v4611_v51  ;;  %v4579_v21 = vadd.f32 %v4578_v49, %v4529_v33 }
 0xfa9   :  { %v4658_v39 = vsel %vm4594_vm15, %v4642_v24, 0.0 }
 0xfaa   :  { %v4674_v52 = vadd.f32 %v4658_v39, %v11056_v58 }
 0xfab   :  { %v4480_v26 = vpop.f32.mrf.mxu2 }
 0xfac   :  { %v4481_v27 = vadd.f32 %v4480_v26, %v9917_v47  ;;  %v4683_v11 = vpack.c.bf16 %v4674_v52, %v4673_v17  ;;  %v11059_v47 = vld [vmem:[#allocation39_spill] sm:$0xff] }
 0xfad   :  { %v11060_v48 = vmax.f32 %v11059_v47, 0.0 }
 0xfae   :  { %vm4596_vm1 = vcmp.gt.f32.partialorder %v4481_v27, 0.0  ;;  %4793 = vmatmul.bf16.gmra.mxu2 %v4683_v11  ;;  %v6819_v28 = vpop.eup %6818 }
 0xfaf   :  { %v4612_v5 = vsel %vm4596_vm1, %v4481_v27, 1.0  ;;  %v4643_v7 = vmul.f32 %v6819_v28, %v4577_v12 }
 0xfb0   :  { %6820 = vrcp.f32 %v4612_v5 }
 0xfb1   :  { %v4659_v45 = vsel %vm4595_vm0, %v4643_v7, 0.0 }
 0xfb2   :  { %v4675_v36 = vadd.f32 %v4659_v45, %v11058_v0 }
 0xfb6   :  { %v6821_v3 = vpop.eup %6820 }
 0xfb7   :  { %v4644_v25 = vmul.f32 %v6821_v3, %v4579_v21 }
 0xfb9   :  { %v4660_v32 = vsel %vm4596_vm1, %v4644_v25, 0.0 }
 0xfba   :  { %v4676_v14 = vadd.f32 %v4660_v32, %v11060_v48 }
 0xfbc   :  { %v4684_v4 = vpack.c.bf16 %v4676_v14, %v4675_v36 }
 0xfbe   :  { %4798 = vmatmul.bf16.gmra.mxu2 %v4684_v4 }
 0xfd1   :  { %v4764_v2 = vpop.f32.mrf.mxu2 }
 0xfd2   :  { %v4765_v54 = vadd.f32 %v9998_v16, %v4764_v2 }
 0xfd4   :  { %v4808_v57 = vmul.f32 %v11061_v62, %v4765_v54 }
 0xfd6   :  { %4824 = vadd.xlane.f32.xlu2 %v4808_v57 }
 0xfd9   :  { %v4766_v46 = vpop.f32.mrf.mxu2 }
 0xfda   :  { %v4767_v40 = vadd.f32 %v9998_v16, %v4766_v46 }
 0xfdc   :  { %v4809_v61 = vmul.f32 %v11061_v62, %v4767_v40 }
 0xfde   :  { %4826 = vadd.xlane.f32.xlu0 %v4809_v61 }
 0xfe1   :  { %v4769_v30 = vpop.f32.mrf.mxu2 }
 0xfe2   :  { %v4770_v31 = vadd.f32 %v9998_v16, %v4769_v30 }
 0xfe4   :  { %v4810_v6 = vmul.f32 %v11061_v62, %v4770_v31 }
 0xfe6   :  { %4828 = vadd.xlane.f32.xlu1 %v4810_v6 }
 0xfe9   :  { %v4771_v55 = vpop.f32.mrf.mxu2 }
 0xfea   :  { %v4772_v59 = vadd.f32 %v9998_v16, %v4771_v55 }
 0xfec   :  { %v4811_v20 = vmul.f32 %v11061_v62, %v4772_v59 }
 0xfee   :  { %4830 = vadd.xlane.f32.xlu2 %v4811_v20 }
 0xff1   :  { %v4774_v22 = vpop.f32.mrf.mxu2 }
 0xff2   :  { %v4775_v43 = vadd.f32 %v9998_v16, %v4774_v22 }
 0xff4   :  { %v4812_v10 = vmul.f32 %v11061_v62, %v4775_v43 }
 0xff6   :  { %4832 = vadd.xlane.f32.xlu0 %v4812_v10 }
 0xff9   :  { %v4776_v23 = vpop.f32.mrf.mxu2 }
 0xffa   :  { %v10011_v29 = vadd.f32 %v9998_v16, %v4776_v23 }
 0xffc   :  { %v4813_v42 = vmul.f32 %v11061_v62, %v10011_v29 }
 0xffe   :  { %4834 = vadd.xlane.f32.xlu1 %v4813_v42 }
0x1001   :  { %v4779_v41 = vpop.f32.mrf.mxu2 }
0x1002   :  { %v10016_v8 = vadd.f32 %v9998_v16, %v4779_v41 }
0x1004   :  { %v4814_v9 = vmul.f32 %v11061_v62, %v10016_v8 }
0x1006   :  { %4836 = vadd.xlane.f32.xlu2 %v4814_v9 }
0x1009   :  { %v4781_v35 = vpop.f32.mrf.mxu2 }
0x100a   :  { %v10021_v18 = vadd.f32 %v9998_v16, %v4781_v35 }
0x100c   :  { %v4815_v34 = vmul.f32 %v11061_v62, %v10021_v18 }
0x100e   :  { %4838 = vadd.xlane.f32.xlu0 %v4815_v34 }
0x1011   :  { %v4784_v1 = vpop.f32.mrf.mxu2 }
0x1012   :  { %v10026_v44 = vadd.f32 %v9998_v16, %v4784_v1 }
0x1014   :  { %v4816_v37 = vmul.f32 %v11061_v62, %v10026_v44 }
0x1016   :  { %4840 = vadd.xlane.f32.xlu0 %v4816_v37 }
0x1019   :  { %v4786_v38 = vpop.f32.mrf.mxu2 }
0x101a   :  { %v10036_v56 = vadd.f32 %v9998_v16, %v4786_v38 }
0x101c   :  { %v4817_v52 = vmul.f32 %v11061_v62, %v10036_v56 }
0x1021   :  { %v4789_v51 = vpop.f32.mrf.mxu2 }
0x1022   :  { %v10046_v5 = vadd.f32 %v9998_v16, %v4789_v51  ;;  %v6348_v51 = vld [vmem:[#allocation16 + $0xb8] sm:$0xff] }
0x1023   :  { %5292 = vmatpush.bf16.msrb.mxu3 %v6348_v51 }
0x1024   :  { %v4818_v49 = vmul.f32 %v11061_v62, %v10046_v5 }
0x1029   :  { %v4791_v26 = vpop.f32.mrf.mxu2 }
0x102a   :  { %v10056_v45 = vadd.f32 %v9998_v16, %v4791_v26 }
0x102c   :  { %v4819_v0 = vmul.f32 %v11061_v62, %v10056_v45 }
0x1031   :  { %v4794_v3 = vpop.f32.mrf.mxu2 }
0x1032   :  { %v10066_v48 = vadd.f32 %v9998_v16, %v4794_v3 }
0x1034   :  { %v4820_v57 = vmul.f32 %v11061_v62, %v10066_v48 }
0x1039   :  { %v4796_v4 = vpop.f32.mrf.mxu2 }
0x103a   :  { %v10076_v61 = vadd.f32 %v9998_v16, %v4796_v4 }
0x103c   :  { %v4821_v55 = vmul.f32 %v11061_v62, %v10076_v61 }
0x1041   :  { %v4799_v6 = vpop.f32.mrf.mxu2 }
0x1049   :  { %v4825_v60 = vpop.xlane.xlu2 %4824  ;;  %v4801_v41 = vpop.f32.mrf.mxu2 }
0x104a   :  { %v4856_v13 = vmul.f32 0.015625, %v4825_v60  ;;  %v10098_v34 = vadd.f32 %v9998_v16, %v4801_v41 }
0x104c   :  { %v4872_v50 = vsub.f32 %v4765_v54, %v4856_v13  ;;  %v4823_v37 = vmul.f32 %v11061_v62, %v10098_v34 }
0x104e   :  { %v10031_v19 = vmul.f32 %v11061_v62, %v4872_v50 }
0x1050   :  { %v4904_v24 = vmul.f32 %v10031_v19, %v10031_v19 }
0x1051   :  { %v4827_v39 = vpop.xlane.xlu0 %4826 }
0x1052   :  { %v4857_v15 = vmul.f32 0.015625, %v4827_v39  ;;  %4920 = vadd.xlane.f32.xlu1 %v4904_v24  ;;  %v6347_v24 = vld [vmem:[#allocation16 + $0xb0] sm:$0xff]  ;;  %v6346_v39 = vld [vmem:[#allocation16 + $0xa8] sm:$0xff] }
0x1053   :  { %5293 = vmatpush.bf16.msrb.mxu3 %v6347_v24  ;;  %v10136_v24 = vld [vmem:[%s10857_s4 + $0x2] ss:$0 sm:$0xff] }
0x1054   :  { %v4873_v17 = vsub.f32 %v4767_v40, %v4857_v15  ;;  %v6345_v15 = vld [vmem:[#allocation16 + $0xa0] sm:$0xff] }
0x1056   :  { %v10039_v53 = vmul.f32 %v11061_v62, %v4873_v17 }
0x1057   :  { %5294 = vmatpush.bf16.msrb.mxu3 %v6346_v39 }
0x1058   :  { %v4905_v58 = vmul.f32 %v10039_v53, %v10039_v53 }
0x1059   :  { %v4829_v27 = vpop.xlane.xlu1 %4828 }
0x105a   :  { %v4858_v11 = vmul.f32 0.015625, %v4829_v27  ;;  %4922 = vadd.xlane.f32.xlu2 %v4905_v58  ;;  %4842 = vadd.xlane.f32.xlu1 %v4817_v52  ;;  %v6344_v52 = vld [vmem:[#allocation16 + $0x98] sm:$0xff] }
0x105b   :  { %5295 = vmatpush.bf16.msrb.mxu3 %v6345_v15 }
0x105c   :  { %v4874_v12 = vsub.f32 %v4770_v31, %v4858_v11 }
0x105e   :  { %v10049_v28 = vmul.f32 %v11061_v62, %v4874_v12 }
0x105f   :  { %5296 = vmatpush.bf16.msrb.mxu3 %v6344_v52 }
0x1060   :  { %v4906_v33 = vmul.f32 %v10049_v28, %v10049_v28 }
0x1061   :  { %v4831_v7 = vpop.xlane.xlu2 %4830 }
0x1062   :  { %v4859_v21 = vmul.f32 0.015625, %v4831_v7  ;;  %4924 = vadd.xlane.f32.xlu2 %v4906_v33  ;;  %4844 = vadd.xlane.f32.xlu1 %v4818_v49  ;;  %v6342_v49 = vld [vmem:[#allocation16 + $0x88] sm:$0xff] }
0x1064   :  { %v4875_v25 = vsub.f32 %v4772_v59, %v4859_v21 }
0x1066   :  { %v10059_v32 = vmul.f32 %v11061_v62, %v4875_v25 }
0x1068   :  { %v4907_v63 = vmul.f32 %v10059_v32, %v10059_v32 }
0x1069   :  { %v4833_v36 = vpop.xlane.xlu0 %4832 }
0x106a   :  { %v4860_v47 = vmul.f32 0.015625, %v4833_v36  ;;  %4926 = vadd.xlane.f32.xlu0 %v4907_v63  ;;  %4846 = vadd.xlane.f32.xlu2 %v4819_v0  ;;  %v6341_v0 = vld [vmem:[#allocation16 + $0x80] sm:$0xff] }
0x106c   :  { %v4876_v14 = vsub.f32 %v4775_v43, %v4860_v47  ;;  %v10087_v43 = vadd.f32 %v9998_v16, %v4799_v6 }
0x106e   :  { %v10069_v2 = vmul.f32 %v11061_v62, %v4876_v14 }
0x1070   :  { %v4908_v54 = vmul.f32 %v10069_v2, %v10069_v2 }
0x1071   :  { %v4835_v46 = vpop.xlane.xlu1 %4834 }
0x1072   :  { %v4861_v40 = vmul.f32 0.015625, %v4835_v46  ;;  %4928 = vadd.xlane.f32.xlu0 %v4908_v54  ;;  %4848 = vadd.xlane.f32.xlu2 %v4820_v57 }
0x1074   :  { %v4877_v30 = vsub.f32 %v10011_v29, %v4861_v40  ;;  %v4822_v29 = vmul.f32 %v11061_v62, %v10087_v43 }
0x1076   :  { %v10080_v31 = vmul.f32 %v11061_v62, %v4877_v30 }
0x1078   :  { %v4909_v59 = vmul.f32 %v10080_v31, %v10080_v31 }
0x1079   :  { %v4837_v20 = vpop.xlane.xlu2 %4836 }
0x107a   :  { %v4862_v22 = vmul.f32 0.015625, %v4837_v20  ;;  %4930 = vadd.xlane.f32.xlu1 %v4909_v59  ;;  %4850 = vadd.xlane.f32.xlu0 %v4821_v55 }
0x107c   :  { %v4878_v10 = vsub.f32 %v10016_v8, %v4862_v22 }
0x107e   :  { %v10091_v23 = vmul.f32 %v11061_v62, %v4878_v10 }
0x1080   :  { %v4910_v42 = vmul.f32 %v10091_v23, %v10091_v23 }
0x1081   :  { %v4839_v9 = vpop.xlane.xlu0 %4838 }
0x1082   :  { %v4863_v35 = vmul.f32 0.015625, %v4839_v9  ;;  %4932 = vadd.xlane.f32.xlu1 %v4910_v42  ;;  %4852 = vadd.xlane.f32.xlu0 %v4822_v29 }
0x1084   :  { %v4879_v1 = vsub.f32 %v10021_v18, %v4863_v35 }
0x1086   :  { %v10102_v8 = vmul.f32 %v11061_v62, %v4879_v1 }
0x1088   :  { %v4911_v38 = vmul.f32 %v10102_v8, %v10102_v8 }
0x1089   :  { %v4841_v60 = vpop.xlane.xlu0 %4840 }
0x108a   :  { %v4864_v13 = vmul.f32 0.015625, %v4841_v60  ;;  %4934 = vadd.xlane.f32.xlu2 %v4911_v38  ;;  %4854 = vadd.xlane.f32.xlu1 %v4823_v37 }
0x108c   :  { %v4880_v50 = vsub.f32 %v10026_v44, %v4864_v13  ;;  %v6343_v44 = vld [vmem:[#allocation16 + $0x90] sm:$0xff] }
0x108d   :  { %5297 = vmatpush.bf16.msrb.mxu3 %v6343_v44 }
0x108e   :  { %v10110_v16 = vmul.f32 %v11061_v62, %v4880_v50 }
0x1090   :  { %v4912_v18 = vmul.f32 %v10110_v16, %v10110_v16 }
0x1091   :  { %5298 = vmatpush.bf16.msrb.mxu3 %v6342_v49 }
0x1092   :  { %4936 = vadd.xlane.f32.xlu2 %v4912_v18 }
0x1095   :  { %5299 = vmatpush.bf16.msrb.mxu3 %v6341_v0 }
0x10c5   :  { %v4921_v17 = vpop.xlane.xlu1 %4920 }
0x10c6   :  { %v4952_v58 = vmul.f32 0.015625, %v4921_v17 }
0x10c8   :  { %v4968_v26 = vadd.f32 1e-05, %v4952_v58 }
0x10ca   :  { %6822 = vrsqrt.f32 %v4968_v26  ;;  %vm4990_vm4 = vweird.f32 %v4968_v26 }
0x10cd   :  { %v4923_v27 = vpop.xlane.xlu2 %4922  ;;  %v4843_v11 = vpop.xlane.xlu1 %4842 }
0x10ce   :  { %v4953_v12 = vmul.f32 0.015625, %v4923_v27  ;;  %v4865_v33 = vmul.f32 0.015625, %v4843_v11 }
0x10d0   :  { %v6823_v7 = vpop.eup %6822  ;;  %v4969_v21 = vadd.f32 1e-05, %v4953_v12  ;;  %v4881_v3 = vsub.f32 %v10036_v56, %v4865_v33 }
0x10d1   :  { %v4985_v25 = vmul.f32 %v6823_v7, %v4968_v26  ;;  %vm4991_vm2 = vweird.f32 %v6823_v7 }
0x10d2   :  { %6824 = vrsqrt.f32 %v4969_v21  ;;  %v10116_v63 = vmul.f32 %v11061_v62, %v4881_v3  ;;  %vm4992_vm3 = vmor %vm4990_vm4, %vm4991_vm2  ;;  %vm5000_vm6 = vweird.f32 %v4969_v21 }
0x10d3   :  { %v4986_v36 = vmul.f32 %v6823_v7, %v4985_v25 }
0x10d4   :  { %v4913_v47 = vmul.f32 %v10116_v63, %v10116_v63 }
0x10d5   :  { %v4987_v14 = vmul.f32 0.5, %v4986_v36  ;;  %v4925_v4 = vpop.xlane.xlu2 %4924  ;;  %v4845_v54 = vpop.xlane.xlu1 %4844 }
0x10d6   :  { %v4954_v57 = vmul.f32 0.015625, %v4925_v4  ;;  %v4866_v46 = vmul.f32 0.015625, %v4845_v54  ;;  %4938 = vadd.xlane.f32.xlu0 %v4913_v47 }
0x10d7   :  { %v4988_v40 = vsub.f32 1.5, %v4987_v14 }
0x10d8   :  { %v6825_v56 = vpop.eup %6824  ;;  %v4970_v30 = vadd.f32 1e-05, %v4954_v57  ;;  %v4882_v6 = vsub.f32 %v10046_v5, %v4866_v46  ;;  %v10129_v5 = vld [vmem:[%s10742_s8 + $0x2] ss:$0 sm:$0xff] }
0x10d9   :  { %v4989_v55 = vmul.f32 %v6823_v7, %v4988_v40  ;;  %v4995_v59 = vmul.f32 %v6825_v56, %v4969_v21  ;;  %vm5001_vm5 = vweird.f32 %v6825_v56 }
0x10da   :  { %6826 = vrsqrt.f32 %v4970_v30  ;;  %v10122_v20 = vmul.f32 %v11061_v62, %v4882_v6  ;;  %vm5002_vm7 = vmor %vm5000_vm6, %vm5001_vm5  ;;  %vm5010_vm9 = vweird.f32 %v4970_v30 }
0x10db   :  { %v4993_v22 = vsel %vm4992_vm3, %v6823_v7, %v4989_v55  ;;  %v4996_v10 = vmul.f32 %v6825_v56, %v4995_v59 }
0x10dc   :  { %v4914_v29 = vmul.f32 %v10122_v20, %v10122_v20  ;;  %v5144_v35 = vmul.f32 %v4993_v22, %v10031_v19 }
0x10dd   :  { %v4997_v42 = vmul.f32 0.5, %v4996_v10  ;;  %v4927_v41 = vpop.xlane.xlu0 %4926  ;;  %v4847_v9 = vpop.xlane.xlu2 %4846 }
0x10de   :  { %v4955_v1 = vmul.f32 0.015625, %v4927_v41  ;;  %v4867_v37 = vmul.f32 0.015625, %v4847_v9  ;;  %4940 = vadd.xlane.f32.xlu1 %v4914_v29  ;;  %v5163_v39 = vmul.f32 %v10129_v5, %v5144_v35 }
0x10df   :  { %v4998_v38 = vsub.f32 1.5, %v4997_v42 }
0x10e0   :  { %v6827_v60 = vpop.eup %6826  ;;  %v4971_v13 = vadd.f32 1e-05, %v4955_v1  ;;  %v4883_v50 = vsub.f32 %v10056_v45, %v4867_v37  ;;  %v5182_v27 = vadd.f32 %v10136_v24, %v5163_v39 }
0x10e1   :  { %v4999_v18 = vmul.f32 %v6825_v56, %v4998_v38  ;;  %v5005_v51 = vmul.f32 %v6827_v60, %v4970_v30  ;;  %vm5011_vm8 = vweird.f32 %v6827_v60 }
0x10e2   :  { %6828 = vrsqrt.f32 %v4971_v13  ;;  %v10140_v19 = vmul.f32 %v11061_v62, %v4883_v50  ;;  %vm5012_vm10 = vmor %vm5010_vm9, %vm5011_vm8  ;;  %v5198_v47 = vmax.f32 %v5182_v27, 0.0  ;;  %vm5020_vm12 = vweird.f32 %v4971_v13 }
0x10e3   :  { %v5003_v15 = vsel %vm5002_vm7, %v6825_v56, %v4999_v18  ;;  %v5006_v17 = vmul.f32 %v6827_v60, %v5005_v51 }
0x10e4   :  { %v5145_v58 = vmul.f32 %v5003_v15, %v10039_v53  ;;  %v4915_v45 = vmul.f32 %v10140_v19, %v10140_v19 }
0x10e5   :  { %v5007_v52 = vmul.f32 0.5, %v5006_v17  ;;  %v4929_v26 = vpop.xlane.xlu0 %4928  ;;  %v4849_v44 = vpop.xlane.xlu2 %4848 }
0x10e6   :  { %v5164_v11 = vmul.f32 %v10129_v5, %v5145_v58  ;;  %v4956_v12 = vmul.f32 0.015625, %v4929_v26  ;;  %v4868_v33 = vmul.f32 0.015625, %v4849_v44  ;;  %4942 = vadd.xlane.f32.xlu2 %v4915_v45 }
0x10e7   :  { %v5008_v49 = vsub.f32 1.5, %v5007_v52 }
0x10e8   :  { %v6829_v7 = vpop.eup %6828  ;;  %v5183_v21 = vadd.f32 %v10136_v24, %v5164_v11  ;;  %v4972_v3 = vadd.f32 1e-05, %v4956_v12  ;;  %v4884_v53 = vsub.f32 %v10066_v48, %v4868_v33 }
0x10e9   :  { %v5009_v25 = vmul.f32 %v6827_v60, %v5008_v49  ;;  %v5015_v0 = vmul.f32 %v6829_v7, %v4971_v13  ;;  %vm5021_vm11 = vweird.f32 %v6829_v7 }
0x10ea   :  { %6830 = vrsqrt.f32 %v4972_v3  ;;  %v10150_v36 = vmul.f32 %v11061_v62, %v4884_v53  ;;  %v5199_v14 = vmax.f32 %v5183_v21, 0.0  ;;  %vm5022_vm13 = vmor %vm5020_vm12, %vm5021_vm11  ;;  %vm5030_vm15 = vweird.f32 %v4972_v3 }
0x10eb   :  { %v5013_v4 = vsel %vm5012_vm10, %v6827_v60, %v5009_v25  ;;  %v5016_v54 = vmul.f32 %v6829_v7, %v5015_v0 }
0x10ec   :  { %v5214_v57 = vpack.c.bf16 %v5199_v14, %v5198_v47  ;;  %v4916_v46 = vmul.f32 %v10150_v36, %v10150_v36  ;;  %v5146_v48 = vmul.f32 %v5013_v4, %v10049_v28 }
0x10ed   :  { %v5017_v40 = vmul.f32 0.5, %v5016_v54  ;;  %v4931_v56 = vpop.xlane.xlu1 %4930  ;;  %v4851_v6 = vpop.xlane.xlu0 %4850 }
0x10ee   :  { %v4957_v30 = vmul.f32 0.015625, %v4931_v56  ;;  %v4869_v55 = vmul.f32 0.015625, %v4851_v6  ;;  %5300 = vmatmul.bf16.vlgmr.msrb.gmra.mxu3 %v5214_v57  ;;  %4944 = vadd.xlane.f32.xlu0 %v4916_v46  ;;  %v5165_v28 = vmul.f32 %v10129_v5, %v5146_v48 }
0x10ef   :  { %v5018_v59 = vsub.f32 1.5, %v5017_v40 }
0x10f0   :  { %v6831_v22 = vpop.eup %6830  ;;  %v4973_v10 = vadd.f32 1e-05, %v4957_v30  ;;  %v4885_v29 = vsub.f32 %v10076_v61, %v4869_v55  ;;  %v5184_v39 = vadd.f32 %v10136_v24, %v5165_v28 }
0x10f1   :  { %v5019_v42 = vmul.f32 %v6829_v7, %v5018_v59  ;;  %v5025_v41 = vmul.f32 %v6831_v22, %v4972_v3  ;;  %vm5031_vm14 = vweird.f32 %v6831_v22 }
0x10f2   :  { %6832 = vrsqrt.f32 %v4973_v10  ;;  %v10157_v9 = vmul.f32 %v11061_v62, %v4885_v29  ;;  %vm5032_vm0 = vmor %vm5030_vm15, %vm5031_vm14  ;;  %v5200_v27 = vmax.f32 %v5184_v39, 0.0  ;;  %vm5040_vm2 = vweird.f32 %v4973_v10 }
0x10f3   :  { %v5023_v35 = vsel %vm5022_vm13, %v6829_v7, %v5019_v42  ;;  %v5026_v1 = vmul.f32 %v6831_v22, %v5025_v41 }
0x10f4   :  { %v5147_v37 = vmul.f32 %v5023_v35, %v10059_v32  ;;  %v4917_v38 = vmul.f32 %v10157_v9, %v10157_v9 }
0x10f5   :  { %v5027_v60 = vmul.f32 0.5, %v5026_v1  ;;  %v4933_v50 = vpop.xlane.xlu1 %4932  ;;  %v4853_v61 = vpop.xlane.xlu0 %4852 }
0x10f6   :  { %v4958_v18 = vmul.f32 0.015625, %v4933_v50  ;;  %v4870_v13 = vmul.f32 0.015625, %v4853_v61  ;;  %4946 = vadd.xlane.f32.xlu1 %v4917_v38  ;;  %v5166_v51 = vmul.f32 %v10129_v5, %v5147_v37 }
0x10f7   :  { %v5028_v15 = vsub.f32 1.5, %v5027_v60 }
0x10f8   :  { %v6833_v17 = vpop.eup %6832  ;;  %v4974_v58 = vadd.f32 1e-05, %v4958_v18  ;;  %v4886_v45 = vsub.f32 %v10087_v43, %v4870_v13  ;;  %v5185_v32 = vadd.f32 %v10136_v24, %v5166_v51 }
0x10f9   :  { %v5029_v52 = vmul.f32 %v6831_v22, %v5028_v15  ;;  %v5035_v26 = vmul.f32 %v6833_v17, %v4973_v10  ;;  %vm5041_vm1 = vweird.f32 %v6833_v17 }
0x10fa   :  { %6834 = vrsqrt.f32 %v4974_v58  ;;  %v10168_v44 = vmul.f32 %v11061_v62, %v4886_v45  ;;  %v5201_v11 = vmax.f32 %v5185_v32, 0.0  ;;  %vm5042_vm4 = vmor %vm5040_vm2, %vm5041_vm1  ;;  %vm5050_vm5 = vweird.f32 %v4974_v58 }
0x10fb   :  { %v5033_v12 = vsel %vm5032_vm0, %v6831_v22, %v5029_v52  ;;  %v5036_v33 = vmul.f32 %v6833_v17, %v5035_v26 }
0x10fc   :  { %v5215_v49 = vpack.c.bf16 %v5201_v11, %v5200_v27  ;;  %v4918_v7 = vmul.f32 %v10168_v44, %v10168_v44  ;;  %v5148_v25 = vmul.f32 %v5033_v12, %v10069_v2 }
0x10fd   :  { %v5037_v21 = vmul.f32 0.5, %v5036_v33  ;;  %v4935_v43 = vpop.xlane.xlu2 %4934  ;;  %v4855_v53 = vpop.xlane.xlu1 %4854 }
0x10fe   :  { %v4959_v3 = vmul.f32 0.015625, %v4935_v43  ;;  %v4871_v0 = vmul.f32 0.015625, %v4855_v53  ;;  %5305 = vmatmul.bf16.gmra.mxu3 %v5215_v49  ;;  %4948 = vadd.xlane.f32.xlu2 %v4918_v7  ;;  %v5167_v2 = vmul.f32 %v10129_v5, %v5148_v25 }
0x10ff   :  { %v5038_v47 = vsub.f32 1.5, %v5037_v21 }
0x1100   :  { %v6835_v14 = vpop.eup %6834  ;;  %v4975_v4 = vadd.f32 1e-05, %v4959_v3  ;;  %v4887_v54 = vsub.f32 %v10098_v34, %v4871_v0  ;;  %v5186_v59 = vadd.f32 %v10136_v24, %v5167_v2 }
0x1101   :  { %v5039_v57 = vmul.f32 %v6833_v17, %v5038_v47  ;;  %v5045_v46 = vmul.f32 %v6835_v14, %v4974_v58  ;;  %vm5051_vm3 = vweird.f32 %v6835_v14 }
0x1102   :  { %6836 = vrsqrt.f32 %v4975_v4  ;;  %v10175_v40 = vmul.f32 %v11061_v62, %v4887_v54  ;;  %vm5052_vm6 = vmor %vm5050_vm5, %vm5051_vm3  ;;  %v5202_v41 = vmax.f32 %v5186_v59, 0.0  ;;  %vm5060_vm8 = vweird.f32 %v4975_v4 }
0x1103   :  { %v5043_v56 = vsel %vm5042_vm4, %v6833_v17, %v5039_v57  ;;  %v5046_v6 = vmul.f32 %v6835_v14, %v5045_v46 }
0x1104   :  { %v5149_v48 = vmul.f32 %v5043_v56, %v10080_v31  ;;  %v4919_v30 = vmul.f32 %v10175_v40, %v10175_v40 }
0x1105   :  { %v5047_v55 = vmul.f32 0.5, %v5046_v6  ;;  %v4937_v45 = vpop.xlane.xlu2 %4936 }
0x1106   :  { %4950 = vadd.xlane.f32.xlu0 %v4919_v30  ;;  %v5168_v34 = vmul.f32 %v10129_v5, %v5149_v48  ;;  %v4960_v32 = vmul.f32 0.015625, %v4937_v45 }
0x1107   :  { %v5048_v22 = vsub.f32 1.5, %v5047_v55 }
0x1108   :  { %v6837_v10 = vpop.eup %6836  ;;  %v5187_v62 = vadd.f32 %v10136_v24, %v5168_v34  ;;  %v4976_v52 = vadd.f32 1e-05, %v4960_v32 }
0x1109   :  { %v5049_v29 = vmul.f32 %v6835_v14, %v5048_v22  ;;  %v5055_v42 = vmul.f32 %v6837_v10, %v4975_v4  ;;  %vm5061_vm7 = vweird.f32 %v6837_v10 }
0x110a   :  { %v5203_v31 = vmax.f32 %v5187_v62, 0.0  ;;  %vm5062_vm9 = vmor %vm5060_vm8, %vm5061_vm7  ;;  %6838 = vrsqrt.f32 %v4976_v52  ;;  %vm5070_vm11 = vweird.f32 %v4976_v52 }
0x110b   :  { %v5053_v28 = vsel %vm5052_vm6, %v6835_v14, %v5049_v29  ;;  %v5056_v35 = vmul.f32 %v6837_v10, %v5055_v42 }
0x110c   :  { %v5216_v1 = vpack.c.bf16 %v5203_v31, %v5202_v41  ;;  %v5150_v38 = vmul.f32 %v5053_v28, %v10091_v23 }
0x110d   :  { %v5057_v37 = vmul.f32 0.5, %v5056_v35 }
0x110e   :  { %5310 = vmatmul.bf16.gmra.mxu3 %v5216_v1  ;;  %v5169_v61 = vmul.f32 %v10129_v5, %v5150_v38 }
0x110f   :  { %v5058_v60 = vsub.f32 1.5, %v5057_v37 }
0x1110   :  { %v5188_v39 = vadd.f32 %v10136_v24, %v5169_v61  ;;  %v6839_v26 = vpop.eup %6838 }
0x1111   :  { %v5059_v50 = vmul.f32 %v6837_v10, %v5058_v60  ;;  %v5065_v27 = vmul.f32 %v6839_v26, %v4976_v52  ;;  %vm5071_vm10 = vweird.f32 %v6839_v26 }
0x1112   :  { %v5204_v17 = vmax.f32 %v5188_v39, 0.0  ;;  %vm5072_vm12 = vmor %vm5070_vm11, %vm5071_vm10 }
0x1113   :  { %v5063_v18 = vsel %vm5062_vm9, %v6837_v10, %v5059_v50  ;;  %v5066_v11 = vmul.f32 %v6839_v26, %v5065_v27 }
0x1114   :  { %v5151_v13 = vmul.f32 %v5063_v18, %v10102_v8 }
0x1115   :  { %v5067_v8 = vmul.f32 0.5, %v5066_v11 }
0x1116   :  { %v5170_v51 = vmul.f32 %v10129_v5, %v5151_v13 }
0x1117   :  { %v5068_v7 = vsub.f32 1.5, %v5067_v8 }
0x1118   :  { %v5189_v15 = vadd.f32 %v10136_v24, %v5170_v51 }
0x1119   :  { %v5069_v53 = vmul.f32 %v6839_v26, %v5068_v7 }
0x111a   :  { %v5205_v58 = vmax.f32 %v5189_v15, 0.0 }
0x111b   :  { %v5073_v47 = vsel %vm5072_vm12, %v6839_v26, %v5069_v53 }
0x111c   :  { %v5217_v23 = vpack.c.bf16 %v5205_v58, %v5204_v17  ;;  %v5152_v57 = vmul.f32 %v5073_v47, %v10110_v16 }
0x111e   :  { %5315 = vmatmul.bf16.gmra.mxu3 %v5217_v23  ;;  %v5171_v55 = vmul.f32 %v10129_v5, %v5152_v57 }
0x1120   :  { %v5190_v42 = vadd.f32 %v10136_v24, %v5171_v55 }
0x1122   :  { %v5206_v38 = vmax.f32 %v5190_v42, 0.0 }
0x1149   :  { %v4939_v12 = vpop.xlane.xlu0 %4938 }
0x114a   :  { %v4961_v33 = vmul.f32 0.015625, %v4939_v12 }
0x114c   :  { %v4977_v49 = vadd.f32 1e-05, %v4961_v33 }
0x114e   :  { %6840 = vrsqrt.f32 %v4977_v49  ;;  %vm5080_vm14 = vweird.f32 %v4977_v49 }
0x1151   :  { %v4941_v21 = vpop.xlane.xlu1 %4940 }
0x1152   :  { %v4962_v43 = vmul.f32 0.015625, %v4941_v21 }
0x1154   :  { %v6841_v25 = vpop.eup %6840  ;;  %v4978_v3 = vadd.f32 1e-05, %v4962_v43 }
0x1155   :  { %v5075_v0 = vmul.f32 %v6841_v25, %v4977_v49  ;;  %vm5081_vm13 = vweird.f32 %v6841_v25 }
0x1156   :  { %6842 = vrsqrt.f32 %v4978_v3  ;;  %vm5082_vm15 = vmor %vm5080_vm14, %vm5081_vm13  ;;  %vm5090_vm1 = vweird.f32 %v4978_v3 }
0x1157   :  { %v5076_v14 = vmul.f32 %v6841_v25, %v5075_v0 }
0x1159   :  { %v5077_v4 = vmul.f32 0.5, %v5076_v14  ;;  %v4943_v54 = vpop.xlane.xlu2 %4942 }
0x115a   :  { %v4963_v46 = vmul.f32 0.015625, %v4943_v54 }
0x115b   :  { %v5078_v2 = vsub.f32 1.5, %v5077_v4 }
0x115c   :  { %v6843_v56 = vpop.eup %6842  ;;  %v4979_v6 = vadd.f32 1e-05, %v4963_v46 }
0x115d   :  { %v5079_v48 = vmul.f32 %v6841_v25, %v5078_v2  ;;  %v5085_v30 = vmul.f32 %v6843_v56, %v4978_v3  ;;  %vm5091_vm0 = vweird.f32 %v6843_v56 }
0x115e   :  { %6844 = vrsqrt.f32 %v4979_v6  ;;  %vm5092_vm2 = vmor %vm5090_vm1, %vm5091_vm0  ;;  %vm5100_vm3 = vweird.f32 %v4979_v6 }
0x115f   :  { %v5083_v34 = vsel %vm5082_vm15, %v6841_v25, %v5079_v48  ;;  %v5086_v59 = vmul.f32 %v6843_v56, %v5085_v30 }
0x1160   :  { %v5153_v22 = vmul.f32 %v5083_v34, %v10116_v63 }
0x1161   :  { %v5087_v10 = vmul.f32 0.5, %v5086_v59  ;;  %v4945_v62 = vpop.xlane.xlu0 %4944 }
0x1162   :  { %v4964_v29 = vmul.f32 0.015625, %v4945_v62  ;;  %v5172_v16 = vmul.f32 %v10129_v5, %v5153_v22 }
0x1163   :  { %v5088_v41 = vsub.f32 1.5, %v5087_v10 }
0x1164   :  { %v6845_v31 = vpop.eup %6844  ;;  %v4980_v28 = vadd.f32 1e-05, %v4964_v29  ;;  %v5191_v35 = vadd.f32 %v10136_v24, %v5172_v16 }
0x1165   :  { %v5089_v1 = vmul.f32 %v6843_v56, %v5088_v41  ;;  %v5095_v37 = vmul.f32 %v6845_v31, %v4979_v6  ;;  %vm5101_vm4 = vweird.f32 %v6845_v31 }
0x1166   :  { %6846 = vrsqrt.f32 %v4980_v28  ;;  %v5207_v63 = vmax.f32 %v5191_v35, 0.0  ;;  %vm5102_vm5 = vmor %vm5100_vm3, %vm5101_vm4  ;;  %vm5110_vm7 = vweird.f32 %v4980_v28 }
0x1167   :  { %v5093_v60 = vsel %vm5092_vm2, %v6843_v56, %v5089_v1  ;;  %v5096_v50 = vmul.f32 %v6845_v31, %v5095_v37 }
0x1168   :  { %v5218_v61 = vpack.c.bf16 %v5207_v63, %v5206_v38  ;;  %v5154_v51 = vmul.f32 %v5093_v60, %v10122_v20 }
0x1169   :  { %v5097_v18 = vmul.f32 0.5, %v5096_v50  ;;  %v4947_v13 = vpop.xlane.xlu1 %4946 }
0x116a   :  { %v4965_v39 = vmul.f32 0.015625, %v4947_v13  ;;  %5320 = vmatmul.bf16.gmra.mxu3 %v5218_v61  ;;  %v5173_v32 = vmul.f32 %v10129_v5, %v5154_v51 }
0x116b   :  { %v5098_v15 = vsub.f32 1.5, %v5097_v18 }
0x116c   :  { %v6847_v17 = vpop.eup %6846  ;;  %v4981_v58 = vadd.f32 1e-05, %v4965_v39  ;;  %v5192_v8 = vadd.f32 %v10136_v24, %v5173_v32 }
0x116d   :  { %v5099_v23 = vmul.f32 %v6845_v31, %v5098_v15  ;;  %v5105_v45 = vmul.f32 %v6847_v17, %v4980_v28  ;;  %vm5111_vm6 = vweird.f32 %v6847_v17 }
0x116e   :  { %6848 = vrsqrt.f32 %v4981_v58  ;;  %vm5112_vm8 = vmor %vm5110_vm7, %vm5111_vm6  ;;  %v5208_v3 = vmax.f32 %v5192_v8, 0.0  ;;  %vm5120_vm10 = vweird.f32 %v4981_v58  ;;  %v11062_v8 = vld [vmem:[#allocation28_spill] sm:$0xff] }
0x116f   :  { %v5103_v52 = vsel %vm5102_vm5, %v6845_v31, %v5099_v23  ;;  %v5106_v26 = vmul.f32 %v6847_v17, %v5105_v45 }
0x1170   :  { %v5155_v27 = vmul.f32 %v5103_v52, %v10140_v19 }
0x1171   :  { %v5107_v11 = vmul.f32 0.5, %v5106_v26  ;;  %v4949_v12 = vpop.xlane.xlu2 %4948  ;;  %v10214_v23 = vpop.f32.mrf.mxu3 }
0x1172   :  { %v4966_v20 = vmul.f32 0.015625, %v4949_v12  ;;  %v5174_v33 = vmul.f32 %v10129_v5, %v5155_v27 }
0x1173   :  { %v5108_v49 = vsub.f32 1.5, %v5107_v11 }
0x1174   :  { %v6849_v7 = vpop.eup %6848  ;;  %v4982_v21 = vadd.f32 1e-05, %v4966_v20  ;;  %v5193_v43 = vadd.f32 %v10136_v24, %v5174_v33 }
0x1175   :  { %v5109_v53 = vmul.f32 %v6847_v17, %v5108_v49  ;;  %v5115_v25 = vmul.f32 %v6849_v7, %v4981_v58  ;;  %vm5121_vm9 = vweird.f32 %v6849_v7 }
0x1176   :  { %6850 = vrsqrt.f32 %v4982_v21  ;;  %v5209_v19 = vmax.f32 %v5193_v43, 0.0  ;;  %vm5122_vm11 = vmor %vm5120_vm10, %vm5121_vm9  ;;  %vm5130_vm13 = vweird.f32 %v4982_v21 }
0x1177   :  { %v5113_v0 = vsel %vm5112_vm8, %v6847_v17, %v5109_v53  ;;  %v5116_v47 = vmul.f32 %v6849_v7, %v5115_v25  ;;  %v11064_v25 = vld [vmem:[#allocation60_spill] sm:$0xff] }
0x1178   :  { %v5219_v14 = vpack.c.bf16 %v5209_v19, %v5208_v3  ;;  %v5156_v57 = vmul.f32 %v5113_v0, %v10150_v36 }
0x1179   :  { %v5117_v4 = vmul.f32 0.5, %v5116_v47  ;;  %v4951_v54 = vpop.xlane.xlu0 %4950  ;;  %v5303_v45 = vpop.f32.mrf.mxu3 }
0x117a   :  { %v4967_v46 = vmul.f32 0.015625, %v4951_v54  ;;  %5325 = vmatmul.bf16.gmra.mxu3 %v5219_v14  ;;  %v5175_v55 = vmul.f32 %v10129_v5, %v5156_v57  ;;  %v11065_v14 = vld [vmem:[#allocation58_spill] sm:$0xff] }
0x117b   :  { %v5118_v2 = vsub.f32 1.5, %v5117_v4 }
0x117c   :  { %v6851_v56 = vpop.eup %6850  ;;  %v4983_v6 = vadd.f32 1e-05, %v4967_v46  ;;  %v5194_v62 = vadd.f32 %v10136_v24, %v5175_v55  ;;  %v11067_v55 = vld [vmem:[#allocation53_spill] sm:$0xff] }
0x117d   :  { %v5119_v48 = vmul.f32 %v6849_v7, %v5118_v2  ;;  %v5125_v30 = vmul.f32 %v6851_v56, %v4982_v21  ;;  %vm5131_vm12 = vweird.f32 %v6851_v56  ;;  %v11066_v2 = vld [vmem:[#allocation57_spill] sm:$0xff] }
0x117e   :  { %6852 = vrsqrt.f32 %v4983_v6  ;;  %vm5132_vm14 = vmor %vm5130_vm13, %vm5131_vm12  ;;  %v5210_v28 = vmax.f32 %v5194_v62, 0.0  ;;  %vm5140_vm0 = vweird.f32 %v4983_v6 }
0x117f   :  { %v5123_v34 = vsel %vm5122_vm11, %v6849_v7, %v5119_v48  ;;  %v5126_v59 = vmul.f32 %v6851_v56, %v5125_v30  ;;  %v11063_v7 = vld [vmem:[#allocation32_spill] sm:$0xff] }
0x1180   :  { %v5157_v22 = vmul.f32 %v5123_v34, %v10157_v9 }
0x1181   :  { %v5127_v10 = vmul.f32 0.5, %v5126_v59  ;;  %v5306_v32 = vpop.f32.mrf.mxu3 }
0x1182   :  { %v5176_v36 = vmul.f32 %v10129_v5, %v5157_v22  ;;  %v11068_v22 = vld [vmem:[#allocation55_spill] sm:$0xff] }
0x1183   :  { %v5128_v29 = vsub.f32 1.5, %v5127_v10 }
0x1184   :  { %v6853_v16 = vpop.eup %6852  ;;  %v5195_v42 = vadd.f32 %v10136_v24, %v5176_v36 }
0x1185   :  { %v5129_v41 = vmul.f32 %v6851_v56, %v5128_v29  ;;  %v5135_v31 = vmul.f32 %v6853_v16, %v4983_v6  ;;  %vm5141_vm15 = vweird.f32 %v6853_v16 }
0x1186   :  { %v5211_v35 = vmax.f32 %v5195_v42, 0.0  ;;  %vm5142_vm1 = vmor %vm5140_vm0, %vm5141_vm15 }
0x1187   :  { %v5133_v1 = vsel %vm5132_vm14, %v6851_v56, %v5129_v41  ;;  %v5136_v37 = vmul.f32 %v6853_v16, %v5135_v31  ;;  %v11069_v41 = vld [vmem:[#allocation51_spill] sm:$0xff] }
0x1188   :  { %v5220_v38 = vpack.c.bf16 %v5211_v35, %v5210_v28  ;;  %v5158_v63 = vmul.f32 %v5133_v1, %v10168_v44  ;;  %v11070_v35 = vld [vmem:[#allocation49_spill] sm:$0xff] }
0x1189   :  { %v5137_v9 = vmul.f32 0.5, %v5136_v37  ;;  %v10216_v52 = vpop.f32.mrf.mxu3  ;;  %v11071_v37 = vld [vmem:[#allocation48_spill] sm:$0xff] }
0x118a   :  { %5330 = vmatmul.bf16.gmra.mxu3 %v5220_v38  ;;  %v5177_v61 = vmul.f32 %v10129_v5, %v5158_v63 }
0x118b   :  { %v5138_v60 = vsub.f32 1.5, %v5137_v9 }
0x118c   :  { %v5196_v39 = vadd.f32 %v10136_v24, %v5177_v61 }
0x118d   :  { %v5139_v50 = vmul.f32 %v6853_v16, %v5138_v60 }
0x118e   :  { %v5212_v17 = vmax.f32 %v5196_v39, 0.0  ;;  %v11073_v39 = vld [vmem:[#allocation50_spill] sm:$0xff] }
0x118f   :  { %v5143_v18 = vsel %vm5142_vm1, %v6853_v16, %v5139_v50 }
0x1190   :  { %v5159_v13 = vmul.f32 %v5143_v18, %v10175_v40 }
0x1191   :  { %v5311_v26 = vpop.f32.mrf.mxu3 }
0x1192   :  { %v5178_v51 = vmul.f32 %v10129_v5, %v5159_v13  ;;  %v11072_v13 = vld [vmem:[#allocation33_spill] sm:$0xff] }
0x1194   :  { %v5197_v15 = vadd.f32 %v10136_v24, %v5178_v51  ;;  %v10221_v24 = vld [vmem:[%s10745_s11 + $0x2] ss:$0 sm:$0xff] }
0x1195   :  { %v5312_v36 = vadd.f32 %v10221_v24, %v5311_v26  ;;  %v5304_v9 = vadd.f32 %v10221_v24, %v5303_v45 }
0x1196   :  { %v5213_v58 = vmax.f32 %v5197_v15, 0.0 }
0x1197   :  { %v10262_v31 = vadd.f32 %v5312_v36, %v11069_v41  ;;  %v10281_v51 = vadd.f32 %v5304_v9, %v11072_v13 }
0x1198   :  { %v5221_v44 = vpack.c.bf16 %v5213_v58, %v5212_v17  ;;  %v11074_v17 = vld [vmem:[#allocation56_spill] sm:$0xff] }
0x1199   :  { %v5313_v27 = vpop.f32.mrf.mxu3  ;;  %v5363_v60 = vmul.f32 %v11063_v7, %v10262_v31  ;;  %v5360_v45 = vmul.f32 %v11063_v7, %v10281_v51 }
0x119a   :  { %5335 = vmatmul.bf16.gmra.mxu3 %v5221_v44  ;;  %v5314_v61 = vadd.f32 %v10221_v24, %v5313_v27  ;;  %v5307_v27 = vadd.f32 %v10221_v24, %v5306_v32 }
0x119c   :  { %v10287_v58 = vadd.f32 %v5314_v61, %v11074_v17 }
0x11a1   :  { %v5316_v11 = vpop.f32.mrf.mxu3 }
0x11a2   :  { %v5317_v44 = vadd.f32 %v10221_v24, %v5316_v11  ;;  %v5309_v11 = vadd.f32 %v10221_v24, %v10216_v52 }
0x11a9   :  { %v5318_v40 = vpop.f32.mrf.mxu3 }
0x11aa   :  { %v5319_v6 = vadd.f32 %v10221_v24, %v5318_v40  ;;  %v5364_v40 = vmul.f32 %v11063_v7, %v10287_v58 }
0x11ac   :  { %v10249_v34 = vadd.f32 %v5319_v6, %v11067_v55 }
0x11ae   :  { %v5366_v62 = vmul.f32 %v11063_v7, %v10249_v34 }
0x11ed   :  { %v5321_v12 = vpop.f32.mrf.mxu3 }
0x11ee   :  { %v5322_v16 = vadd.f32 %v10221_v24, %v5321_v12  ;;  %v11075_v12 = vld [vmem:[#allocation59_spill] sm:$0xff] }
0x11f0   :  { %v10266_v1 = vadd.f32 %v5322_v16, %v11070_v35 }
0x11f2   :  { %v5367_v18 = vmul.f32 %v11063_v7, %v10266_v1 }
0x11f5   :  { %v5323_v5 = vpop.f32.mrf.mxu3 }
0x11f6   :  { %v5324_v63 = vadd.f32 %v10221_v24, %v5323_v5  ;;  %v10298_v5 = vadd.f32 %v5317_v44, %v11075_v12 }
0x11f8   :  { %v10284_v15 = vadd.f32 %v5324_v63, %v11073_v39 }
0x11fa   :  { %v5368_v26 = vmul.f32 %v11063_v7, %v10284_v15 }
0x11fd   :  { %v5326_v20 = vpop.f32.mrf.mxu3 }
0x11fe   :  { %v5327_v33 = vadd.f32 %v10221_v24, %v5326_v20  ;;  %v11076_v20 = vld [vmem:[#allocation52_spill] sm:$0xff] }
0x1200   :  { %v10225_v49 = vadd.f32 %v5327_v33, %v11062_v8  ;;  %v10301_v33 = vadd.f32 %v5307_v27, %v11076_v20  ;;  %v5365_v8 = vmul.f32 %v11063_v7, %v10298_v5 }
0x1202   :  { %v5369_v21 = vmul.f32 %v11063_v7, %v10225_v49  ;;  %v5361_v32 = vmul.f32 %v11063_v7, %v10301_v33 }
0x1204   :  { %5395 = vadd.xlane.f32.xlu0 %v5369_v21  ;;  %v11077_v21 = vld [vmem:[#allocation31_spill] sm:$0xff] }
0x1205   :  { %v5328_v43 = vpop.f32.mrf.mxu3 }
0x1206   :  { %v5329_v53 = vadd.f32 %v10221_v24, %v5328_v43  ;;  %v10310_v43 = vadd.f32 %v5309_v11, %v11077_v21 }
0x1208   :  { %v10231_v3 = vadd.f32 %v5329_v53, %v11064_v25  ;;  %v5302_v53 = vadd.f32 %v10221_v24, %v10214_v23  ;;  %v5362_v25 = vmul.f32 %v11063_v7, %v10310_v43 }
0x120a   :  { %v5370_v19 = vmul.f32 %v11063_v7, %v10231_v3 }
0x120c   :  { %5397 = vadd.xlane.f32.xlu2 %v5370_v19  ;;  %v11078_v19 = vld [vmem:[#allocation54_spill] sm:$0xff] }
0x120d   :  { %v5331_v0 = vpop.f32.mrf.mxu3  ;;  %v10317_v52 = vadd.f32 %v5302_v53, %v11078_v19 }
0x120e   :  { %v5332_v47 = vadd.f32 %v10221_v24, %v5331_v0 }
0x120f   :  { %v5359_v0 = vmul.f32 %v11063_v7, %v10317_v52 }
0x1210   :  { %v10237_v4 = vadd.f32 %v5332_v47, %v11065_v14 }
0x1212   :  { %v5371_v54 = vmul.f32 %v11063_v7, %v10237_v4 }
0x1214   :  { %5399 = vadd.xlane.f32.xlu1 %v5371_v54 }
0x1215   :  { %v5333_v57 = vpop.f32.mrf.mxu3 }
0x1216   :  { %v5334_v46 = vadd.f32 %v10221_v24, %v5333_v57 }
0x1218   :  { %v10243_v56 = vadd.f32 %v5334_v46, %v11066_v2 }
0x121a   :  { %v5372_v48 = vmul.f32 %v11063_v7, %v10243_v56 }
0x121c   :  { %5401 = vadd.xlane.f32.xlu0 %v5372_v48 }
0x121d   :  { %v5336_v30 = vpop.f32.mrf.mxu3 }
0x121e   :  { %v5337_v59 = vadd.f32 %v10221_v24, %v5336_v30 }
0x1220   :  { %v10253_v10 = vadd.f32 %v5337_v59, %v11068_v22 }
0x1222   :  { %v5373_v29 = vmul.f32 %v11063_v7, %v10253_v10 }
0x1224   :  { %5389 = vadd.xlane.f32.xlu0 %v5366_v62  ;;  %5403 = vadd.xlane.f32.xlu2 %v5373_v29 }
0x1225   :  { %v5338_v42 = vpop.f32.mrf.mxu3 }
0x1226   :  { %v5339_v28 = vadd.f32 %v10221_v24, %v5338_v42 }
0x1228   :  { %v10269_v38 = vadd.f32 %v5339_v28, %v11071_v37 }
0x122a   :  { %v5374_v50 = vmul.f32 %v11063_v7, %v10269_v38 }
0x122c   :  { %5383 = vadd.xlane.f32.xlu0 %v5363_v60  ;;  %5405 = vadd.xlane.f32.xlu1 %v5374_v50 }
0x122d   :  { %5391 = vadd.xlane.f32.xlu2 %v5367_v18 }
0x1234   :  { %5377 = vadd.xlane.f32.xlu0 %v5360_v45  ;;  %5393 = vadd.xlane.f32.xlu1 %v5368_v26 }
0x1235   :  { %5385 = vadd.xlane.f32.xlu2 %v5364_v40 }
0x123c   :  { %5387 = vadd.xlane.f32.xlu1 %v5365_v8 }
0x123d   :  { %5379 = vadd.xlane.f32.xlu2 %v5361_v32 }
0x1244   :  { %5381 = vadd.xlane.f32.xlu1 %v5362_v25 }
0x124c   :  { %5375 = vadd.xlane.f32.xlu1 %v5359_v0 }
0x1277   :  { %v5396_v47 = vpop.xlane.xlu0 %5395 }
0x1278   :  { %v5417_v14 = vmul.f32 0.03125, %v5396_v47 }
0x127a   :  { %v5433_v54 = vsub.f32 %v10225_v49, %v5417_v14 }
0x127c   :  { %v10323_v57 = vmul.f32 %v11063_v7, %v5433_v54 }
0x127e   :  { %v5465_v23 = vmul.f32 %v10323_v57, %v10323_v57 }
0x127f   :  { %v5398_v24 = vpop.xlane.xlu2 %5397 }
0x1280   :  { %v5418_v46 = vmul.f32 0.03125, %v5398_v24  ;;  %5491 = vadd.xlane.f32.xlu1 %v5465_v23 }
0x1282   :  { %v5434_v2 = vsub.f32 %v10231_v3, %v5418_v46 }
0x1284   :  { %v10329_v6 = vmul.f32 %v11063_v7, %v5434_v2 }
0x1286   :  { %v5466_v48 = vmul.f32 %v10329_v6, %v10329_v6 }
0x1287   :  { %v5400_v30 = vpop.xlane.xlu1 %5399 }
0x1288   :  { %v5419_v55 = vmul.f32 0.03125, %v5400_v30  ;;  %5493 = vadd.xlane.f32.xlu0 %v5466_v48 }
0x128a   :  { %v5435_v49 = vsub.f32 %v10237_v4, %v5419_v55 }
0x128c   :  { %v10335_v59 = vmul.f32 %v11063_v7, %v5435_v49 }
0x128e   :  { %v5467_v22 = vmul.f32 %v10335_v59, %v10335_v59 }
0x128f   :  { %v5402_v36 = vpop.xlane.xlu0 %5401 }
0x1290   :  { %v5420_v62 = vmul.f32 0.03125, %v5402_v36  ;;  %5495 = vadd.xlane.f32.xlu2 %v5467_v22 }
0x1292   :  { %v5436_v3 = vsub.f32 %v10243_v56, %v5420_v62 }
0x1294   :  { %v10341_v29 = vmul.f32 %v11063_v7, %v5436_v3 }
0x1296   :  { %v5468_v16 = vmul.f32 %v10341_v29, %v10341_v29 }
0x1297   :  { %v5404_v42 = vpop.xlane.xlu2 %5403  ;;  %v5390_v41 = vpop.xlane.xlu0 %5389 }
0x1298   :  { %v5421_v4 = vmul.f32 0.03125, %v5404_v42  ;;  %v5414_v28 = vmul.f32 0.03125, %v5390_v41  ;;  %5497 = vadd.xlane.f32.xlu1 %v5468_v16 }
0x129a   :  { %v5437_v35 = vsub.f32 %v10253_v10, %v5421_v4  ;;  %v5430_v37 = vsub.f32 %v10249_v34, %v5414_v28 }
0x129c   :  { %v10348_v9 = vmul.f32 %v11063_v7, %v5437_v35  ;;  %v10351_v56 = vmul.f32 %v11063_v7, %v5430_v37 }
0x129e   :  { %v5469_v63 = vmul.f32 %v10348_v9, %v10348_v9  ;;  %v5462_v60 = vmul.f32 %v10351_v56, %v10351_v56 }
0x129f   :  { %v5406_v50 = vpop.xlane.xlu1 %5405  ;;  %v5384_v61 = vpop.xlane.xlu0 %5383 }
0x12a0   :  { %v5422_v18 = vmul.f32 0.03125, %v5406_v50  ;;  %v5392_v13 = vpop.xlane.xlu2 %5391  ;;  %v5411_v39 = vmul.f32 0.03125, %v5384_v61  ;;  %5499 = vadd.xlane.f32.xlu0 %v5469_v63  ;;  %5485 = vadd.xlane.f32.xlu1 %v5462_v60 }
0x12a1   :  { %v5415_v34 = vmul.f32 0.03125, %v5392_v13 }
0x12a2   :  { %v5438_v10 = vsub.f32 %v10269_v38, %v5422_v18  ;;  %v5427_v17 = vsub.f32 %v10262_v31, %v5411_v39 }
0x12a3   :  { %v5431_v44 = vsub.f32 %v10266_v1, %v5415_v34 }
0x12a4   :  { %v10361_v45 = vmul.f32 %v11063_v7, %v5438_v10  ;;  %v10364_v26 = vmul.f32 %v11063_v7, %v5427_v17 }
0x12a5   :  { %v10367_v27 = vmul.f32 %v11063_v7, %v5431_v44 }
0x12a6   :  { %v5470_v40 = vmul.f32 %v10361_v45, %v10361_v45  ;;  %v5459_v12 = vmul.f32 %v10364_v26, %v10364_v26 }
0x12a7   :  { %v5394_v38 = vpop.xlane.xlu1 %5393  ;;  %v5378_v20 = vpop.xlane.xlu0 %5377  ;;  %v5463_v31 = vmul.f32 %v10367_v27, %v10367_v27 }
0x12a8   :  { %v5416_v1 = vmul.f32 0.03125, %v5394_v38  ;;  %v5386_v11 = vpop.xlane.xlu2 %5385  ;;  %v5408_v8 = vmul.f32 0.03125, %v5378_v20  ;;  %5501 = vadd.xlane.f32.xlu2 %v5470_v40  ;;  %5479 = vadd.xlane.f32.xlu1 %v5459_v12 }
0x12a9   :  { %v5412_v32 = vmul.f32 0.03125, %v5386_v11  ;;  %5487 = vadd.xlane.f32.xlu0 %v5463_v31 }
0x12aa   :  { %v5432_v21 = vsub.f32 %v10284_v15, %v5416_v1  ;;  %v5424_v53 = vsub.f32 %v10281_v51, %v5408_v8 }
0x12ab   :  { %v5428_v25 = vsub.f32 %v10287_v58, %v5412_v32 }
0x12ac   :  { %v10379_v19 = vmul.f32 %v11063_v7, %v5432_v21  ;;  %v10382_v0 = vmul.f32 %v11063_v7, %v5424_v53 }
0x12ad   :  { %v10385_v47 = vmul.f32 %v11063_v7, %v5428_v25 }
0x12ae   :  { %v5464_v14 = vmul.f32 %v10379_v19, %v10379_v19  ;;  %v5456_v54 = vmul.f32 %v10382_v0, %v10382_v0 }
0x12af   :  { %v5388_v15 = vpop.xlane.xlu1 %5387  ;;  %v5460_v51 = vmul.f32 %v10385_v47, %v10385_v47 }
0x12b0   :  { %v5413_v58 = vmul.f32 0.03125, %v5388_v15  ;;  %v5380_v23 = vpop.xlane.xlu2 %5379  ;;  %5489 = vadd.xlane.f32.xlu2 %v5464_v14  ;;  %5473 = vadd.xlane.f32.xlu1 %v5456_v54 }
0x12b1   :  { %v5409_v24 = vmul.f32 0.03125, %v5380_v23  ;;  %5481 = vadd.xlane.f32.xlu0 %v5460_v51 }
0x12b2   :  { %v5429_v46 = vsub.f32 %v10298_v5, %v5413_v58 }
0x12b3   :  { %v5425_v2 = vsub.f32 %v10301_v33, %v5409_v24 }
0x12b4   :  { %v10396_v48 = vmul.f32 %v11063_v7, %v5429_v46 }
0x12b5   :  { %v10399_v30 = vmul.f32 %v11063_v7, %v5425_v2 }
0x12b6   :  { %v5461_v55 = vmul.f32 %v10396_v48, %v10396_v48 }
0x12b7   :  { %v5382_v49 = vpop.xlane.xlu1 %5381  ;;  %v5457_v22 = vmul.f32 %v10399_v30, %v10399_v30 }
0x12b8   :  { %v5410_v36 = vmul.f32 0.03125, %v5382_v49  ;;  %5483 = vadd.xlane.f32.xlu2 %v5461_v55 }
0x12b9   :  { %5475 = vadd.xlane.f32.xlu0 %v5457_v22 }
0x12ba   :  { %v5426_v5 = vsub.f32 %v10310_v43, %v5410_v36 }
0x12bc   :  { %v10407_v33 = vmul.f32 %v11063_v7, %v5426_v5 }
0x12be   :  { %v5458_v62 = vmul.f32 %v10407_v33, %v10407_v33 }
0x12bf   :  { %v5376_v3 = vpop.xlane.xlu1 %5375 }
0x12c0   :  { %v5407_v16 = vmul.f32 0.03125, %v5376_v3  ;;  %5477 = vadd.xlane.f32.xlu2 %v5458_v62 }
0x12c2   :  { %v5423_v42 = vsub.f32 %v10317_v52, %v5407_v16 }
0x12c4   :  { %v10413_v41 = vmul.f32 %v11063_v7, %v5423_v42 }
0x12c6   :  { %v5455_v4 = vmul.f32 %v10413_v41, %v10413_v41 }
0x12c8   :  { %5471 = vadd.xlane.f32.xlu2 %v5455_v4 }
0x12f3   :  { %v5492_v28 = vpop.xlane.xlu1 %5491 }
0x12f4   :  { %v5513_v43 = vmul.f32 0.03125, %v5492_v28 }
0x12f6   :  { %v5529_v35 = vadd.f32 1e-05, %v5513_v43 }
0x12f8   :  { %6854 = vrsqrt.f32 %v5529_v35  ;;  %vm5641_vm3 = vweird.f32 %v5529_v35 }
0x12fb   :  { %v5494_v37 = vpop.xlane.xlu0 %5493 }
0x12fc   :  { %v5514_v63 = vmul.f32 0.03125, %v5494_v37 }
0x12fe   :  { %v5530_v60 = vadd.f32 1e-05, %v5514_v63  ;;  %v6855_v18 = vpop.eup %6854 }
0x12ff   :  { %v5636_v39 = vmul.f32 %v6855_v18, %v5529_v35  ;;  %vm5642_vm2 = vweird.f32 %v6855_v18 }
0x1300   :  { %6856 = vrsqrt.f32 %v5530_v60  ;;  %vm10435_vm5 = vmor %vm5641_vm3, %vm5642_vm2  ;;  %vm5651_vm6 = vweird.f32 %v5530_v60 }
0x1301   :  { %v5637_v10 = vmul.f32 %v6855_v18, %v5636_v39 }
0x1303   :  { %v5496_v50 = vpop.xlane.xlu2 %5495  ;;  %v5638_v20 = vmul.f32 0.5, %v5637_v10 }
0x1304   :  { %v5515_v61 = vmul.f32 0.03125, %v5496_v50 }
0x1305   :  { %v5639_v32 = vsub.f32 1.5, %v5638_v20 }
0x1306   :  { %v6857_v13 = vpop.eup %6856  ;;  %v5531_v52 = vadd.f32 1e-05, %v5515_v61 }
0x1307   :  { %v5646_v7 = vmul.f32 %v6857_v13, %v5530_v60  ;;  %v5640_v23 = vmul.f32 %v6855_v18, %v5639_v32  ;;  %vm5652_vm4 = vweird.f32 %v6857_v13 }
0x1308   :  { %6858 = vrsqrt.f32 %v5531_v52  ;;  %vm10439_vm7 = vmor %vm5651_vm6, %vm5652_vm4  ;;  %vm5661_vm9 = vweird.f32 %v5531_v52 }
0x1309   :  { %v5647_v17 = vmul.f32 %v6857_v13, %v5646_v7  ;;  %v5644_v62 = vsel %vm10435_vm5, %v6855_v18, %v5640_v23  ;;  %v10459_v18 = vld [vmem:[#allocation17] ss:$0 sm:$0xff] }
0x130a   :  { %v5705_v39 = vmul.f32 %v5644_v62, %v10323_v57 }
0x130b   :  { %v5498_v34 = vpop.xlane.xlu1 %5497  ;;  %v5648_v31 = vmul.f32 0.5, %v5647_v17 }
0x130c   :  { %v5516_v44 = vmul.f32 0.03125, %v5498_v34  ;;  %v5724_v20 = vmul.f32 %v10459_v18, %v5705_v39 }
0x130d   :  { %v5649_v21 = vsub.f32 1.5, %v5648_v31 }
0x130e   :  { %v10417_v40 = vpop.eup %6858  ;;  %v10419_v12 = vadd.f32 1e-05, %v5516_v44 }
0x130f   :  { %v5656_v38 = vmul.f32 %v10417_v40, %v5531_v52  ;;  %v5650_v24 = vmul.f32 %v6857_v13, %v5649_v21  ;;  %vm5662_vm8 = vweird.f32 %v10417_v40 }
0x1310   :  { %6860 = vrsqrt.f32 %v10419_v12  ;;  %vm10463_vm10 = vmor %vm5661_vm9, %vm5662_vm8  ;;  %vm5671_vm12 = vweird.f32 %v10419_v12 }
0x1311   :  { %v5657_v1 = vmul.f32 %v10417_v40, %v5656_v38  ;;  %v5654_v3 = vsel %vm10439_vm7, %v6857_v13, %v5650_v24 }
0x1312   :  { %v5706_v13 = vmul.f32 %v5654_v3, %v10329_v6 }
0x1313   :  { %v5486_v11 = vpop.xlane.xlu1 %5485  ;;  %v5500_v8 = vpop.xlane.xlu0 %5499  ;;  %v5658_v14 = vmul.f32 0.5, %v5657_v1 }
0x1314   :  { %v5510_v53 = vmul.f32 0.03125, %v5486_v11  ;;  %v5517_v25 = vmul.f32 0.03125, %v5500_v8  ;;  %v5725_v38 = vmul.f32 %v10459_v18, %v5706_v13  ;;  %v10482_v8 = vld [vmem:[#allocation19] ss:$0 sm:$0xff] }
0x1315   :  { %v5659_v46 = vsub.f32 1.5, %v5658_v14 }
0x1316   :  { %v10424_v54 = vpop.eup %6860  ;;  %v10426_v15 = vadd.f32 1e-05, %v5510_v53  ;;  %v10428_v51 = vadd.f32 1e-05, %v5517_v25 }
0x1317   :  { %v5666_v58 = vmul.f32 %v10424_v54, %v10419_v12  ;;  %v5660_v28 = vmul.f32 %v10417_v40, %v5659_v46  ;;  %vm5672_vm11 = vweird.f32 %v10424_v54 }
0x1318   :  { %6862 = vrsqrt.f32 %v10426_v15  ;;  %vm10486_vm13 = vmor %vm5671_vm12, %vm5672_vm11  ;;  %vm5681_vm15 = vweird.f32 %v10428_v51  ;;  %vm5611_vm0 = vweird.f32 %v10426_v15 }
0x1319   :  { %v5667_v2 = vmul.f32 %v10424_v54, %v5666_v58  ;;  %6864 = vrsqrt.f32 %v10428_v51  ;;  %v5664_v34 = vsel %vm10463_vm10, %v10417_v40, %v5660_v28 }
0x131a   :  { %v5707_v32 = vmul.f32 %v5664_v34, %v10335_v59 }
0x131b   :  { %v5668_v22 = vmul.f32 0.5, %v5667_v2  ;;  %v5502_v36 = vpop.xlane.xlu2 %5501  ;;  %v5480_v5 = vpop.xlane.xlu1 %5479 }
0x131c   :  { %v5518_v16 = vmul.f32 0.03125, %v5502_v36  ;;  %v5507_v42 = vmul.f32 0.03125, %v5480_v5  ;;  %v5488_v4 = vpop.xlane.xlu0 %5487  ;;  %v5726_v49 = vmul.f32 %v10459_v18, %v5707_v32  ;;  %v10511_v36 = vadd.f32 %v10482_v8, %v5724_v20 }
0x131d   :  { %v5511_v43 = vmul.f32 0.03125, %v5488_v4  ;;  %v5669_v50 = vsub.f32 1.5, %v5668_v22  ;;  %v10508_v22 = vadd.f32 %v10482_v8, %v5725_v38 }
0x131e   :  { %v10449_v35 = vpop.eup %6862  ;;  %v10451_v37 = vadd.f32 1e-05, %v5518_v16  ;;  %v10453_v63 = vadd.f32 1e-05, %v5507_v42 }
0x131f   :  { %v10455_v60 = vpop.eup %6864  ;;  %v10457_v61 = vadd.f32 1e-05, %v5511_v43  ;;  %v5606_v6 = vmul.f32 %v10449_v35, %v10426_v15  ;;  %v5670_v10 = vmul.f32 %v10424_v54, %v5669_v50  ;;  %v5760_v39 = vmax.f32 %v10508_v22, 0.0 }
0x1320   :  { %v5676_v52 = vmul.f32 %v10455_v60, %v10428_v51  ;;  %6866 = vrsqrt.f32 %v10451_v37  ;;  %vm5682_vm14 = vweird.f32 %v10455_v60  ;;  %vm5612_vm4 = vweird.f32 %v10449_v35 }
0x1321   :  { %6868 = vrsqrt.f32 %v10453_v63  ;;  %v5607_v14 = vmul.f32 %v10449_v35, %v5606_v6  ;;  %v5674_v59 = vsel %vm10486_vm13, %v10424_v54, %v5670_v10  ;;  %vm10525_vm1 = vmor %vm5681_vm15, %vm5682_vm14  ;;  %vm5691_vm3 = vweird.f32 %v10451_v37 }
0x1322   :  { %v5677_v57 = vmul.f32 %v10455_v60, %v5676_v52  ;;  %6870 = vrsqrt.f32 %v10457_v61  ;;  %v5708_v16 = vmul.f32 %v5674_v59, %v10341_v29  ;;  %v10530_v29 = vadd.f32 %v10482_v8, %v5726_v49  ;;  %vm10576_vm9 = vmor %vm5611_vm0, %vm5612_vm4 }
0x1323   :  { %v5490_v17 = vpop.xlane.xlu2 %5489  ;;  %v5474_v44 = vpop.xlane.xlu1 %5473  ;;  %v5608_v3 = vmul.f32 0.5, %v5607_v14  ;;  %vm5621_vm6 = vweird.f32 %v10457_v61  ;;  %vm5581_vm11 = vweird.f32 %v10453_v63 }
0x1324   :  { %v5678_v40 = vmul.f32 0.5, %v5677_v57  ;;  %v5512_v31 = vmul.f32 0.03125, %v5490_v17  ;;  %v5504_v1 = vmul.f32 0.03125, %v5474_v44  ;;  %v5482_v11 = vpop.xlane.xlu0 %5481  ;;  %v5761_v25 = vmax.f32 %v10530_v29, 0.0 }
0x1325   :  { %v5508_v21 = vmul.f32 0.03125, %v5482_v11  ;;  %v5609_v10 = vsub.f32 1.5, %v5608_v3 }
0x1326   :  { %v6867_v53 = vpop.eup %6866  ;;  %v5679_v58 = vsub.f32 1.5, %v5678_v40  ;;  %v10491_v23 = vadd.f32 1e-05, %v5512_v31  ;;  %v10493_v24 = vadd.f32 1e-05, %v5504_v1 }
0x1327   :  { %v10495_v46 = vpop.eup %6868  ;;  %v5686_v12 = vmul.f32 %v6867_v53, %v10451_v37  ;;  %v10501_v2 = vadd.f32 1e-05, %v5508_v21  ;;  %vm5692_vm2 = vweird.f32 %v6867_v53  ;;  %v5610_v14 = vmul.f32 %v10449_v35, %v5609_v10 }
0x1328   :  { %v10503_v55 = vpop.eup %6870  ;;  %6872 = vrsqrt.f32 %v10491_v23  ;;  %v5680_v5 = vmul.f32 %v10455_v60, %v5679_v58  ;;  %v5576_v4 = vmul.f32 %v10495_v46, %v10453_v63  ;;  %vm5693_vm5 = vmor %vm5691_vm3, %vm5692_vm2  ;;  %vm5582_vm8 = vweird.f32 %v10495_v46 }
0x1329   :  { %v5687_v54 = vmul.f32 %v6867_v53, %v5686_v12  ;;  %v5616_v62 = vmul.f32 %v10503_v55, %v10457_v61  ;;  %6874 = vrsqrt.f32 %v10493_v24  ;;  %vm5622_vm7 = vweird.f32 %v10503_v55  ;;  %vm10644_vm3 = vmor %vm5581_vm11, %vm5582_vm8 }
0x132a   :  { %6876 = vrsqrt.f32 %v10501_v2  ;;  %v5684_v7 = vsel %vm10525_vm1, %v10455_v60, %v5680_v5  ;;  %v5577_v38 = vmul.f32 %v10495_v46, %v5576_v4  ;;  %v5727_v60 = vmul.f32 %v10459_v18, %v5708_v16  ;;  %vm10596_vm12 = vmor %vm5621_vm6, %vm5622_vm7 }
0x132b   :  { %v5688_v42 = vmul.f32 0.5, %v5687_v54  ;;  %v5617_v28 = vmul.f32 %v10503_v55, %v5616_v62  ;;  %v5484_v43 = vpop.xlane.xlu2 %5483  ;;  %v5709_v37 = vmul.f32 %v5684_v7, %v10348_v9  ;;  %vm5631_vm13 = vweird.f32 %v10491_v23 }
0x132c   :  { %v5509_v51 = vmul.f32 0.03125, %v5484_v43  ;;  %v5476_v13 = vpop.xlane.xlu0 %5475  ;;  %v5578_v49 = vmul.f32 0.5, %v5577_v38  ;;  %v10566_v5 = vadd.f32 %v10482_v8, %v5727_v60  ;;  %v5614_v43 = vsel %vm10576_vm9, %v10449_v35, %v5610_v14 }
0x132d   :  { %v5689_v52 = vsub.f32 1.5, %v5688_v42  ;;  %v5618_v34 = vmul.f32 0.5, %v5617_v28  ;;  %v5505_v6 = vmul.f32 0.03125, %v5476_v13  ;;  %v5728_v62 = vmul.f32 %v10459_v18, %v5709_v37 }
0x132e   :  { %v10536_v57 = vpop.eup %6872  ;;  %v10540_v17 = vadd.f32 1e-05, %v5509_v51  ;;  %v5579_v13 = vsub.f32 1.5, %v5578_v49  ;;  %vm5591_vm15 = vweird.f32 %v10501_v2  ;;  %v5762_v49 = vmax.f32 %v10566_v5, 0.0 }
0x132f   :  { %v5690_v44 = vmul.f32 %v6867_v53, %v5689_v52  ;;  %v5626_v20 = vmul.f32 %v10536_v57, %v10491_v23  ;;  %v10546_v40 = vpop.eup %6874  ;;  %v10551_v31 = vadd.f32 1e-05, %v5505_v6  ;;  %v5619_v32 = vsub.f32 1.5, %v5618_v34 }
0x1330   :  { %6878 = vrsqrt.f32 %v10540_v17  ;;  %v10554_v1 = vpop.eup %6876  ;;  %v5546_v59 = vmul.f32 %v10546_v40, %v10493_v24  ;;  %vm5632_vm10 = vweird.f32 %v10536_v57  ;;  %v5747_v10 = vadd.f32 %v10482_v8, %v5728_v62 }
0x1331   :  { %v5694_v11 = vsel %vm5693_vm5, %v6867_v53, %v5690_v44  ;;  %v5627_v21 = vmul.f32 %v10536_v57, %v5626_v20  ;;  %v5586_v12 = vmul.f32 %v10554_v1, %v10501_v2  ;;  %6880 = vrsqrt.f32 %v10551_v31  ;;  %vm5633_vm14 = vmor %vm5631_vm13, %vm5632_vm10 }
0x1332   :  { %v5710_v58 = vmul.f32 %v5694_v11, %v10361_v45  ;;  %v5620_v16 = vmul.f32 %v10503_v55, %v5619_v32  ;;  %v5547_v15 = vmul.f32 %v10546_v40, %v5546_v59  ;;  %v5702_v11 = vmul.f32 %v5614_v43, %v10351_v56 }
0x1333   :  { %v5628_v9 = vmul.f32 0.5, %v5627_v21  ;;  %v5478_v53 = vpop.xlane.xlu2 %5477  ;;  %v5587_v54 = vmul.f32 %v10554_v1, %v5586_v12  ;;  %vm5592_vm0 = vweird.f32 %v10554_v1  ;;  %v5580_v14 = vmul.f32 %v10495_v46, %v5579_v13 }
0x1334   :  { %v5506_v45 = vmul.f32 0.03125, %v5478_v53  ;;  %v5729_v4 = vmul.f32 %v10459_v18, %v5710_v58  ;;  %v5624_v61 = vsel %vm10596_vm12, %v10503_v55, %v5620_v16  ;;  %v5548_v20 = vmul.f32 0.5, %v5547_v15  ;;  %vm10632_vm2 = vmor %vm5591_vm15, %vm5592_vm0 }
0x1335   :  { %v5629_v42 = vsub.f32 1.5, %v5628_v9  ;;  %v5588_v50 = vmul.f32 0.5, %v5587_v54  ;;  %v5763_v59 = vmax.f32 %v5747_v10, 0.0  ;;  %v5703_v12 = vmul.f32 %v5624_v61, %v10367_v27 }
0x1336   :  { %v10583_v28 = vpop.eup %6878  ;;  %v10590_v51 = vadd.f32 1e-05, %v5506_v45  ;;  %v5748_v6 = vadd.f32 %v10482_v8, %v5729_v4  ;;  %v5549_v53 = vsub.f32 1.5, %v5548_v20  ;;  %vm5601_vm4 = vweird.f32 %v10540_v17 }
0x1337   :  { %v5630_v52 = vmul.f32 %v10536_v57, %v5629_v42  ;;  %v5596_v35 = vmul.f32 %v10583_v28, %v10540_v17  ;;  %v5589_v34 = vsub.f32 1.5, %v5588_v50  ;;  %v10613_v38 = vpop.eup %6880  ;;  %vm5602_vm1 = vweird.f32 %v10583_v28 }
0x1338   :  { %6882 = vrsqrt.f32 %v10590_v51  ;;  %v5764_v60 = vmax.f32 %v5748_v6, 0.0  ;;  %v5556_v55 = vmul.f32 %v10613_v38, %v10551_v31  ;;  %v5584_v16 = vsel %vm10644_vm3, %v10495_v46, %v5580_v14  ;;  %vm5603_vm5 = vmor %vm5601_vm4, %vm5602_vm1 }
0x1339   :  { %v5634_v44 = vsel %vm5633_vm14, %v10536_v57, %v5630_v52  ;;  %v5597_v23 = vmul.f32 %v10583_v28, %v5596_v35  ;;  %v5590_v32 = vmul.f32 %v10554_v1, %v5589_v34  ;;  %v5722_v63 = vmul.f32 %v10459_v18, %v5703_v12 }
0x133a   :  { %v5704_v37 = vmul.f32 %v5634_v44, %v10379_v19  ;;  %5767 = vmatpush.msrb.mxu0 %v5764_v60  ;;  %6349 = vmatpush.msra.mxu1 %v5764_v60  ;;  %v5557_v56 = vmul.f32 %v10613_v38, %v5556_v55  ;;  %vm5562_vm6 = vweird.f32 %v10613_v38  ;;  %vm5552_vm7 = vweird.f32 %v10546_v40 }
0x133b   :  { %v5598_v21 = vmul.f32 0.5, %v5597_v23  ;;  %v5472_v57 = vpop.xlane.xlu2 %5471  ;;  %v5594_v2 = vsel %vm10632_vm2, %v10554_v1, %v5590_v32  ;;  %v5721_v1 = vmul.f32 %v10459_v18, %v5702_v11  ;;  %vm5561_vm8 = vweird.f32 %v10551_v31 }
0x133c   :  { %v5503_v58 = vmul.f32 0.03125, %v5472_v57  ;;  %5768 = vmatpush.msrb.mxu0 %v5763_v59  ;;  %6350 = vmatpush.msra.mxu1 %v5763_v59  ;;  %v5723_v45 = vmul.f32 %v10459_v18, %v5704_v37  ;;  %v5558_v62 = vmul.f32 0.5, %v5557_v56  ;;  %v5700_v50 = vmul.f32 %v5594_v2, %v10385_v47  ;;  %vm10676_vm9 = vmor %vm5561_vm8, %vm5562_vm6 }
0x133d   :  { %v5599_v19 = vsub.f32 1.5, %v5598_v21  ;;  %v5741_v47 = vadd.f32 %v10482_v8, %v5722_v63  ;;  %vm5551_vm10 = vweird.f32 %v10493_v24  ;;  %vm5571_vm13 = vweird.f32 %v10590_v51 }
0x133e   :  { %v10626_v9 = vpop.eup %6882  ;;  %v10637_v27 = vadd.f32 1e-05, %v5503_v58  ;;  %5769 = vmatpush.msrb.mxu0 %v5762_v49  ;;  %6351 = vmatpush.msra.mxu1 %v5762_v49  ;;  %v5559_v4 = vsub.f32 1.5, %v5558_v62  ;;  %v5742_v46 = vadd.f32 %v10482_v8, %v5723_v45  ;;  %vm10695_vm12 = vmor %vm5551_vm10, %vm5552_vm7  ;;  %v5719_v24 = vmul.f32 %v10459_v18, %v5700_v50  ;;  %v5765_v62 = vld [vmem:[#allocation13] sm:$0xff] }
0x133f   :  { %v5600_v17 = vmul.f32 %v10583_v28, %v5599_v19  ;;  %v5566_v3 = vmul.f32 %v10626_v9, %v10590_v51  ;;  %vm5572_vm11 = vweird.f32 %v10626_v9  ;;  %v5757_v61 = vmax.f32 %v5741_v47, 0.0 }
0x1340   :  { %6884 = vrsqrt.f32 %v10637_v27  ;;  %5770 = vmatpush.msrb.mxu0 %v5761_v25  ;;  %6352 = vmatpush.msra.mxu1 %v5761_v25  ;;  %v5560_v13 = vmul.f32 %v10613_v38, %v5559_v4  ;;  %v5699_v25 = vmul.f32 %v5584_v16, %v10364_v26  ;;  %v5740_v26 = vadd.f32 %v10482_v8, %v5721_v1  ;;  %vm5573_vm14 = vmor %vm5571_vm13, %vm5572_vm11  ;;  %v6405_v1 = vld [vmem:[#allocation4] ss:$0 sm:$0xff] }
0x1341   :  { %v5604_v42 = vsel %vm5603_vm5, %v10583_v28, %v5600_v17  ;;  %v5567_v43 = vmul.f32 %v10626_v9, %v5566_v3  ;;  %v5550_v28 = vmul.f32 %v10546_v40, %v5549_v53  ;;  %v5738_v51 = vadd.f32 %v10482_v8, %v5719_v24  ;;  %v5766_v17 = vld [vmem:[#allocation13 + $0x8] sm:$0xff] }
0x1342   :  { %v5701_v15 = vmul.f32 %v5604_v42, %v10396_v48  ;;  %5771 = vmatpush.msrb.mxu0 %v5760_v39  ;;  %6353 = vmatpush.msra.mxu1 %v5760_v39  ;;  %v5759_v48 = vmax.f32 %v10511_v36, 0.0  ;;  %v5564_v31 = vsel %vm10676_vm9, %v10613_v38, %v5560_v13  ;;  %v5758_v36 = vmax.f32 %v5742_v46, 0.0 }
0x1343   :  { %v5568_v7 = vmul.f32 0.5, %v5567_v43  ;;  %v5554_v39 = vsel %vm10695_vm12, %v10546_v40, %v5550_v28  ;;  %v5718_v23 = vmul.f32 %v10459_v18, %v5699_v25  ;;  %v5697_v38 = vmul.f32 %v5564_v31, %v10399_v30 }
0x1344   :  { %v5720_v29 = vmul.f32 %v10459_v18, %v5701_v15  ;;  %5772 = vmatpush.msrb.mxu0 %v5759_v48  ;;  %6354 = vmatpush.msra.mxu1 %v5759_v48  ;;  %v5756_v40 = vmax.f32 %v5740_v26, 0.0  ;;  %v5696_v11 = vmul.f32 %v5554_v39, %v10382_v0  ;;  %v5754_v58 = vmax.f32 %v5738_v51, 0.0 }
0x1345   :  { %v5569_v35 = vsub.f32 1.5, %v5568_v7  ;;  %v5737_v55 = vadd.f32 %v10482_v8, %v5718_v23  ;;  %v5716_v57 = vmul.f32 %v10459_v18, %v5697_v38  ;;  %vm5541_vm0 = vweird.f32 %v10637_v27 }
0x1346   :  { %v6885_v34 = vpop.eup %6884  ;;  %5773 = vmatpush.msrb.mxu0 %v5758_v36  ;;  %6355 = vmatpush.msra.mxu1 %v5758_v36  ;;  %v5739_v44 = vadd.f32 %v10482_v8, %v5720_v29 }
0x1347   :  { %v5570_v6 = vmul.f32 %v10626_v9, %v5569_v35  ;;  %v5536_v10 = vmul.f32 %v6885_v34, %v10637_v27  ;;  %vm5542_vm15 = vweird.f32 %v6885_v34  ;;  %v5753_v12 = vmax.f32 %v5737_v55, 0.0 }
0x1348   :  { %5774 = vmatpush.msrb.mxu0 %v5757_v61  ;;  %6356 = vmatpush.msra.mxu1 %v5757_v61  ;;  %v5755_v21 = vmax.f32 %v5739_v44, 0.0  ;;  %vm5543_vm1 = vmor %vm5541_vm0, %vm5542_vm15  ;;  %v5735_v56 = vadd.f32 %v10482_v8, %v5716_v57 }
0x1349   :  { %v5574_v20 = vsel %vm5573_vm14, %v10626_v9, %v5570_v6  ;;  %v5537_v60 = vmul.f32 %v6885_v34, %v5536_v10 }
0x134a   :  { %v5698_v37 = vmul.f32 %v5574_v20, %v10407_v33  ;;  %5775 = vmatpush.msrb.mxu0 %v5756_v40  ;;  %6357 = vmatpush.msra.mxu1 %v5756_v40  ;;  %v5715_v33 = vmul.f32 %v10459_v18, %v5696_v11  ;;  %v5751_v54 = vmax.f32 %v5735_v56, 0.0 }
0x134b   :  { %v5538_v32 = vmul.f32 0.5, %v5537_v60 }
0x134c   :  { %v5717_v30 = vmul.f32 %v10459_v18, %v5698_v37  ;;  %5776 = vmatpush.msrb.mxu0 %v5755_v21  ;;  %6358 = vmatpush.msra.mxu1 %v5755_v21  ;;  %v5734_v9 = vadd.f32 %v10482_v8, %v5715_v33 }
0x134d   :  { %v5539_v14 = vsub.f32 1.5, %v5538_v32 }
0x134e   :  { %v5736_v59 = vadd.f32 %v10482_v8, %v5717_v30  ;;  %5777 = vmatpush.msrb.mxu0 %v5754_v58  ;;  %6359 = vmatpush.msra.mxu1 %v5754_v58  ;;  %v5750_v27 = vmax.f32 %v5734_v9, 0.0 }
0x134f   :  { %v5540_v0 = vmul.f32 %v6885_v34, %v5539_v14 }
0x1350   :  { %v5752_v19 = vmax.f32 %v5736_v59, 0.0  ;;  %5778 = vmatpush.msrb.mxu0 %v5753_v12  ;;  %6360 = vmatpush.msra.mxu1 %v5753_v12 }
0x1351   :  { %v5544_v49 = vsel %vm5543_vm1, %v6885_v34, %v5540_v0 }
0x1352   :  { %v5695_v53 = vmul.f32 %v5544_v49, %v10413_v41  ;;  %5779 = vmatpush.msrb.mxu0 %v5752_v19  ;;  %6361 = vmatpush.msra.mxu1 %v5752_v19  ;;  %v6404_v41 = vld [vmem:[%s10748_s14] ss:$0 sm:$0xff]  ;;  %s5822_s14 = sshll.u32 %s7282_s0, 4  ;;  %s5823_s14 = int_to_ptr.vmem [resolvable:$true] %s5822_s14 }
0x1354   :  { %v5714_v45 = vmul.f32 %v10459_v18, %v5695_v53  ;;  %5780 = vmatpush.msrb.mxu0 %v5751_v54  ;;  %6362 = vmatpush.msra.mxu1 %v5751_v54 }
0x1356   :  { %v5733_v5 = vadd.f32 %v10482_v8, %v5714_v45  ;;  %5781 = vmatpush.msrb.mxu0 %v5750_v27  ;;  %6363 = vmatpush.msra.mxu1 %v5750_v27  ;;  %v7281_v8 = vmov 0  }
0x1357   :  { %6385 = vset.pattern.permute.xlu0 %v7281_v8  ;;  %6384 = vset.pattern.permute.xlu2 %v7281_v8 }
0x1358   :  { %v5749_v2 = vmax.f32 %v5733_v5, 0.0 }
0x135a   :  { %5782 = vmatpush.msrb.mxu0 %v5749_v2  ;;  %6364 = vmatpush.msra.mxu1 %v5749_v2 }
0x135b   :  { %5786 = vmatmul.f32.vlgmr.msra.gmra.mxu1 %v5766_v17  ;;  %5783 = vmatmul.f32.vlgmr.msrb.gmra.mxu0 %v5765_v62 }
0x13d8   :  { %v5787_v3 = vpop.f32.mrf.mxu1  ;;  %v5784_v18 = vpop.f32.mrf.mxu0 }
0x13d9   :  { %v5795_v16 = vmul.f32 %v6404_v41, %v5787_v3  ;;  %v5794_v63 = vmul.f32 %v6404_v41, %v5784_v18 }
0x13db   :  { %5798 = vadd.xlane.f32.xlu1 %v5795_v16  ;;  %5796 = vadd.xlane.f32.xlu0 %v5794_v63 }
0x144e   :  { %v5799_v42 = vpop.xlane.xlu1 %5798  ;;  %v5797_v4 = vpop.xlane.xlu0 %5796 }
0x144f   :  { %v5805_v43 = vadd.f32 %v6405_v1, %v5799_v42  ;;  %v5804_v46 = vadd.f32 %v6405_v1, %v5797_v4 }
0x1451   :  { %5813 = vperm.xlu0 %6385, %v5805_v43   ;;  %5808 = vperm.xlu2 %6384, %v5804_v46  }
0x14ab   :  { %v5809_v15 = vpop.permute.xlu2 %5808 }
0x14ac   :  { %5816 = vst [vmem:[#allocation20] sm:$0xff] %v5809_v15 }
0x14c3   :  { %v5814_v50 = vpop.permute.xlu0 %5813 }
0x14c4   :  { %5817 = vst [vmem:[#allocation20 + $0x8] sm:$0xff] %v5814_v50 }
0x14c5   :  { %5830 = dma.vmem_to_hbm [thread:$0]  %s5823_s14, 256, %s5825_s23, [#allocation7], %s7266_s18, %s7266_s18, %s7267_s19  }
0x14c6   :  { %7262 = dma.done.wait [#allocation7], 256  }
0x14c7   :  { %7263 = vsyncadd [#allocation7], 4294967040 }
0x14c8   :  { %5835 = vsyncpa [#allocation6], 1 }
0x14c9   :  { %5836 = vsyncpa [#allocation9], 1 }
0x14ca   :  { %5837 = vsyncpa [#allocation12], 1 }
0x14cb   :  { %5838 = vsyncpa [#allocation15], 1 }
0x14cc   :  { %5839 = vsyncpa [#allocation18], 1 }
0x14cd   :  { %5840 = vsyncpa [#allocation7], 1 }

</bundles_post_ra>
